<compile_context>
chip_gen: v6e
topology: v6e:2x2x1
jax: 0.10.0
libtpu: 0.0.40
codegen_flags: <defaults>
</compile_context>

<pallas_src>
import functools

import numpy as np
import jax
import jax.numpy as jnp
from jax import lax
from jax.experimental import pallas as pl
from jax.experimental.pallas import tpu as pltpu

KSIZE = 4
STRIDE = 2
PAD = 1
NTAPS = KSIZE * KSIZE
CPAD = 8  # input channels padded to a sublane multiple


# ----------------------------------------------------------------------------
# Pallas kernel: the whole ConvVAE forward in one body
# ----------------------------------------------------------------------------
def _gather_conv(act_bf16, g_ref, w_ref, b_ref):
    """out = W @ concat_t(act @ G_t) + b  ==  conv/deconv/FC with lanes = B*oh*ow.

    G_t are precomputed 0/1 gather matrices (padding / stride / transposed-conv
    phase structure baked in), so each `act @ G_t` is an exact MXU gather.
    """
    n_taps = g_ref.shape[0]
    pieces = [
        jnp.dot(act_bf16, g_ref[t], preferred_element_type=jnp.float32)
        for t in range(n_taps)
    ]
    cols = jnp.concatenate(pieces, axis=0).astype(jnp.bfloat16)   # (n_taps*Cin, M)
    acc = jnp.dot(w_ref[...], cols, preferred_element_type=jnp.float32)
    return acc + b_ref[...]


def _conv_vae_kernel(x_ref, eps_ref,
                     g1_ref, w1_ref, b1_ref,
                     g2_ref, w2_ref, b2_ref,
                     gfc_ref, wenc_ref, benc_ref,
                     pfc_ref, wdfc_ref, bdfc_ref,
                     gd1_ref, wd1_ref, bd1_ref,
                     gd2_ref, wd2_ref, bd2_ref,
                     dec_ref, mu_ref, logvar_ref, *, latent):
    bf16 = jnp.bfloat16
    relu = lambda v: jnp.maximum(v, 0.0)

    # ----- encoder -----
    h1 = relu(_gather_conv(x_ref[...], g1_ref, w1_ref, b1_ref)).astype(bf16)  # (32, B*64)
    h2 = relu(_gather_conv(h1, g2_ref, w2_ref, b2_ref)).astype(bf16)          # (64, B*16)
    stats = _gather_conv(h2, gfc_ref, wenc_ref, benc_ref)                     # (2L, B) f32
    mu = stats[:latent, :]
    logvar = stats[latent:, :]
    mu_ref[...] = mu
    logvar_ref[...] = logvar

    # ----- reparametrize: z = mu + eps * exp(0.5 * logvar) (f32, EUP exp) -----
    z = (mu + eps_ref[...] * jnp.exp(0.5 * logvar)).astype(bf16)              # (L, B)

    # ----- decoder -----
    d2 = relu(_gather_conv(z, pfc_ref, wdfc_ref, bdfc_ref)).astype(bf16)      # (64, 16*B)
    d1 = relu(_gather_conv(d2, gd1_ref, wd1_ref, bd1_ref)).astype(bf16)       # (32, B*64)
    pre = _gather_conv(d1, gd2_ref, wd2_ref, bd2_ref)                         # (C, B*256) f32
    # sigmoid(x) = 0.5*(tanh(x/2)+1): rides the EUP, no divide, numerically stable
    dec_ref[...] = 0.5 * (jnp.tanh(0.5 * pre) + 1.0)


# ----------------------------------------------------------------------------
# Host-side (one-time) packing: gather matrices + matmul-ready weights
# ----------------------------------------------------------------------------
def _lane_bmajor(B, H, W):
    return lambda b, y, x: (b * H + y) * W + x


def _lane_smajor(B, H, W):
    return lambda b, y, x: (y * W + x) * B + b


def _build_conv_gather(B, in_hw, out_hw, in_order, out_order, transpose):
    Hi, Wi = in_hw
    Ho, Wo = out_hw
    G = np.zeros((NTAPS, B * Hi * Wi, B * Ho * Wo), np.float32)
    for i in range(KSIZE):
        for j in range(KSIZE):
            t = i * KSIZE + j
            for b in range(B):
                for oy in range(Ho):
                    for ox in range(Wo):
                        if transpose:
                            ny, nx = oy + PAD - i, ox + PAD - j
                            if ny % STRIDE or nx % STRIDE:
                                continue
                            iy, ix = ny // STRIDE, nx // STRIDE
                        else:
                            iy, ix = STRIDE * oy + i - PAD, STRIDE * ox + j - PAD
                        if 0 <= iy < Hi and 0 <= ix < Wi:
                            G[t, in_order(b, iy, ix), out_order(b, oy, ox)] = 1.0
    return G


def _build_encfc_gather(B, S):
    G = np.zeros((S, B * S, B), np.float32)
    for t in range(S):
        for b in range(B):
            G[t, b * S + t, b] = 1.0
    return G


def _build_decfc_placer(B, S):
    P = np.zeros((S, B, S * B), np.float32)
    for t in range(S):
        for b in range(B):
            P[t, b, t * B + b] = 1.0
    return P


def pack_operands(params, *, channels, hw, latent, batch):
    B, C, H, L = batch, channels, hw, latent
    H1, H2 = H // 2, H // 4
    S = H2 * H2
    C1 = params["enc_conv1_w"].shape[0]          # 32
    C2 = params["enc_conv2_w"].shape[0]          # 64
    bf16, f32 = jnp.bfloat16, jnp.float32

    lane_in = _lane_bmajor(B, H, H)
    lane_h1 = _lane_bmajor(B, H1, H1)
    lane_h2e = _lane_bmajor(B, H2, H2)           # encoder 4x4 feature map
    lane_h2d = _lane_smajor(B, H2, H2)           # decoder 4x4 feature map

    g1 = _build_conv_gather(B, (H, H), (H1, H1), lane_in, lane_h1, False)
    g2 = _build_conv_gather(B, (H1, H1), (H2, H2), lane_h1, lane_h2e, False)
    gd1 = _build_conv_gather(B, (H2, H2), (H1, H1), lane_h2d, lane_h1, True)
    gd2 = _build_conv_gather(B, (H1, H1), (H, H), lane_h1, lane_in, True)
    gfc = _build_encfc_gather(B, S)
    pfc = _build_decfc_placer(B, S)

    # conv1 weight (C1, C, 4, 4) -> (C1, NTAPS*CPAD), cols (t, ic), zero-padded ic
    w1 = jnp.pad(params["enc_conv1_w"], ((0, 0), (0, CPAD - C), (0, 0), (0, 0)))
    w1 = w1.transpose(0, 2, 3, 1).reshape(C1, NTAPS * CPAD)
    # conv2 weight (C2, C1, 4, 4) -> (C2, NTAPS*C1)
    w2 = params["enc_conv2_w"].transpose(0, 2, 3, 1).reshape(C2, NTAPS * C1)
    # encoder FC: rows [mu; logvar], cols ordered (s, c) to match gathered cols
    def _fc_cols(w):
        return w.reshape(L, C2, S).transpose(0, 2, 1).reshape(L, S * C2)
    wenc = jnp.concatenate([_fc_cols(params["fc_mu_w"]),
                            _fc_cols(params["fc_logvar_w"])], axis=0)
    benc = jnp.concatenate([params["fc_mu_b"], params["fc_logvar_b"]]).reshape(2 * L, 1)
    # decoder FC: torch (C2*S, L) rows (c*S+s)  ->  (C2, S*L) cols (s*L+l)
    wdfc = params["dec_fc_w"].reshape(C2, S * L)
    bdfc = jnp.repeat(params["dec_fc_b"].reshape(C2, S), B, axis=1)   # (C2, S*B)
    # deconv1 weight (C2, C1, 4, 4) -> (C1, NTAPS*C2)
    wd1 = params["dec_deconv1_w"].transpose(1, 2, 3, 0).reshape(C1, NTAPS * C2)
    # deconv2 weight (C1, C, 4, 4) -> (C, NTAPS*C1)
    wd2 = params["dec_deconv2_w"].transpose(1, 2, 3, 0).reshape(C, NTAPS * C1)

    return dict(
        g1=jnp.asarray(g1, bf16), w1=w1.astype(bf16),
        b1=params["enc_conv1_b"].reshape(C1, 1).astype(f32),
        g2=jnp.asarray(g2, bf16), w2=w2.astype(bf16),
        b2=params["enc_conv2_b"].reshape(C2, 1).astype(f32),
        gfc=jnp.asarray(gfc, bf16), wenc=wenc.astype(bf16), benc=benc.astype(f32),
        pfc=jnp.asarray(pfc, bf16), wdfc=wdfc.astype(bf16), bdfc=bdfc.astype(f32),
        gd1=jnp.asarray(gd1, bf16), wd1=wd1.astype(bf16),
        bd1=params["dec_deconv1_b"].reshape(C1, 1).astype(f32),
        gd2=jnp.asarray(gd2, bf16), wd2=wd2.astype(bf16),
        bd2=params["dec_deconv2_b"].reshape(C, 1).astype(f32),
    )


# ----------------------------------------------------------------------------
# Forward wrapper: one boundary transpose in, one out, single pallas_call
# ----------------------------------------------------------------------------
def conv_vae_forward(ops, x, eps):
    """Returns (decoded, mu, logvar) like ConvVAE.forward (eps passed in)."""
    B, C, H, W = x.shape
    L = eps.shape[1]

    x2d = x.transpose(1, 0, 2, 3).reshape(C, B * H * W)
    x2d = jnp.pad(x2d, ((0, CPAD - C), (0, 0))).astype(jnp.bfloat16)
    epsT = eps.T.astype(jnp.float32)

    operands = (x2d, epsT,
                ops["g1"], ops["w1"], ops["b1"],
                ops["g2"], ops["w2"], ops["b2"],
                ops["gfc"], ops["wenc"], ops["benc"],
                ops["pfc"], ops["wdfc"], ops["bdfc"],
                ops["gd1"], ops["wd1"], ops["bd1"],
                ops["gd2"], ops["wd2"], ops["bd2"])

    vmem = pl.BlockSpec(memory_space=pltpu.MemorySpace.VMEM)
    dec2d, muT, logvarT = pl.pallas_call(
        functools.partial(_conv_vae_kernel, latent=L),
        out_shape=(jax.ShapeDtypeStruct((C, B * H * W), jnp.float32),
                   jax.ShapeDtypeStruct((L, B), jnp.float32),
                   jax.ShapeDtypeStruct((L, B), jnp.float32)),
        in_specs=[vmem] * len(operands),
        out_specs=(vmem, vmem, vmem),
        compiler_params=pltpu.CompilerParams(vmem_limit_bytes=48 * 1024 * 1024),
    )(*operands)

    decoded = dec2d.reshape(C, B, H, W).transpose(1, 0, 2, 3)
    return decoded, muT.T, logvarT.T


# ----------------------------------------------------------------------------
# Parameters (PyTorch layouts) + pure-JAX f32 reference for validation
# ----------------------------------------------------------------------------
def init_params(key, *, channels, latent, hw):
    feat = 64 * (hw // 4) * (hw // 4)
    ks = jax.random.split(key, 14)
    s = 0.05
    n = lambda k, shp: s * jax.random.normal(k, shp, jnp.float32)
    return {
        "enc_conv1_w": n(ks[0], (32, channels, 4, 4)), "enc_conv1_b": n(ks[1], (32,)),
        "enc_conv2_w": n(ks[2], (64, 32, 4, 4)), "enc_conv2_b": n(ks[3], (64,)),
        "fc_mu_w": n(ks[4], (latent, feat)), "fc_mu_b": n(ks[5], (latent,)),
        "fc_logvar_w": n(ks[6], (latent, feat)), "fc_logvar_b": n(ks[7], (latent,)),
        "dec_fc_w": n(ks[8], (feat, latent)), "dec_fc_b": n(ks[9], (feat,)),
        "dec_deconv1_w": n(ks[10], (64, 32, 4, 4)), "dec_deconv1_b": n(ks[11], (32,)),
        "dec_deconv2_w": n(ks[12], (32, channels, 4, 4)), "dec_deconv2_b": n(ks[13], (channels,)),
    }


def _reference_forward(params, x, eps):
    dn = ("NCHW", "OIHW", "NCHW")

    def conv(v, w, b):
        y = lax.conv_general_dilated(v, w, (2, 2), [(1, 1), (1, 1)],
                                     dimension_numbers=dn)
        return jnp.maximum(y + b.reshape(1, -1, 1, 1), 0.0)

    def deconv(v, w, b):
        w_c = jnp.flip(w.transpose(1, 0, 2, 3), axis=(2, 3))
        y = lax.conv_general_dilated(v, w_c, (1, 1), [(2, 2), (2, 2)],
                                     lhs_dilation=(2, 2), dimension_numbers=dn)
        return y + b.reshape(1, -1, 1, 1)

    B = x.shape[0]
    h = conv(x, params["enc_conv1_w"], params["enc_conv1_b"])
    h = conv(h, params["enc_conv2_w"], params["enc_conv2_b"])
    hf = h.reshape(B, -1)
    mu = hf @ params["fc_mu_w"].T + params["fc_mu_b"]
    logvar = hf @ params["fc_logvar_w"].T + params["fc_logvar_b"]
    z = mu + eps * jnp.exp(0.5 * logvar)
    d = jnp.maximum(z @ params["dec_fc_w"].T + params["dec_fc_b"], 0.0)
    d = d.reshape(B, 64, x.shape[2] // 4, x.shape[3] // 4)
    d = jnp.maximum(deconv(d, params["dec_deconv1_w"], params["dec_deconv1_b"]), 0.0)
    dec = jax.nn.sigmoid(deconv(d, params["dec_deconv2_w"], params["dec_deconv2_b"]))
    return dec, mu, logvar


if __name__ == "__main__":
    channels, B, HW, latent = 3, 2, 16, 8
    root = jax.random.PRNGKey(0)
    k_params, k_x, k_eps = jax.random.split(root, 3)

    params = init_params(k_params, channels=channels, latent=latent, hw=HW)
    x = jax.random.normal(k_x, (B, channels, HW, HW), jnp.float32)
    # TODO(synk): torch draws eps in-forward via FloatTensor.normal_(); eps is a
    # deterministic input here (torch's RNG stream cannot be matched anyway).
    eps = jax.random.normal(k_eps, (B, latent), jnp.float32)

    ops = pack_operands(params, channels=channels, hw=HW, latent=latent, batch=B)

    fwd = jax.jit(conv_vae_forward)
    decoded, mu, logvar = fwd(ops, x, eps)
    jax.block_until_ready((decoded, mu, logvar))

    assert decoded.shape == (B, channels, HW, HW)
    assert mu.shape == (B, latent) and logvar.shape == (B, latent)
    assert bool(jnp.all(jnp.isfinite(decoded)))

    # pure-JAX f32 reference check (kernel uses bf16 MXU operands -> loose tol)
    ref_dec, ref_mu, ref_lv = jax.jit(_reference_forward)(params, x, eps)
    err = max(float(jnp.max(jnp.abs(decoded - ref_dec))),
              float(jnp.max(jnp.abs(mu - ref_mu))),
              float(jnp.max(jnp.abs(logvar - ref_lv))))
    assert err < 5e-2, err

    print("KERNEL_OK")
</pallas_src>

<mosaic_0001>
module attributes {stable_mosaic.version = 11 : i64} {
  func.func @_conv_vae_kernel(%arg0: memref<8x512xbf16, #tpu.memory_space<vmem>>, %arg1: memref<8x2xf32, #tpu.memory_space<vmem>>, %arg2: memref<16x512x128xbf16, #tpu.memory_space<vmem>>, %arg3: memref<32x128xbf16, #tpu.memory_space<vmem>>, %arg4: memref<32x1xf32, #tpu.memory_space<vmem>>, %arg5: memref<16x128x32xbf16, #tpu.memory_space<vmem>>, %arg6: memref<64x512xbf16, #tpu.memory_space<vmem>>, %arg7: memref<64x1xf32, #tpu.memory_space<vmem>>, %arg8: memref<16x32x2xbf16, #tpu.memory_space<vmem>>, %arg9: memref<16x1024xbf16, #tpu.memory_space<vmem>>, %arg10: memref<16x1xf32, #tpu.memory_space<vmem>>, %arg11: memref<16x2x32xbf16, #tpu.memory_space<vmem>>, %arg12: memref<64x128xbf16, #tpu.memory_space<vmem>>, %arg13: memref<64x32xf32, #tpu.memory_space<vmem>>, %arg14: memref<16x32x128xbf16, #tpu.memory_space<vmem>>, %arg15: memref<32x1024xbf16, #tpu.memory_space<vmem>>, %arg16: memref<32x1xf32, #tpu.memory_space<vmem>>, %arg17: memref<16x128x512xbf16, #tpu.memory_space<vmem>>, %arg18: memref<3x512xbf16, #tpu.memory_space<vmem>>, %arg19: memref<3x1xf32, #tpu.memory_space<vmem>>, %arg20: memref<3x512xf32, #tpu.memory_space<vmem>>, %arg21: memref<8x2xf32, #tpu.memory_space<vmem>>, %arg22: memref<8x2xf32, #tpu.memory_space<vmem>>) attributes {dimension_semantics = [], scalar_prefetch = 0 : i64, scratch_operands = 0 : i64, tpu.core_type = #tpu.core_type<tc>} {
    %c0 = arith.constant 0 : index
    %c0_0 = arith.constant 0 : index
    %0 = vector.load %arg0[%c0, %c0_0] : memref<8x512xbf16, #tpu.memory_space<vmem>>, vector<8x512xbf16>
    %c0_1 = arith.constant 0 : index
    %c0_2 = arith.constant 0 : index
    %c0_3 = arith.constant 0 : index
    %1 = vector.load %arg2[%c0_1, %c0_2, %c0_3] : memref<16x512x128xbf16, #tpu.memory_space<vmem>>, vector<1x512x128xbf16>
    %2 = vector.shape_cast %1 : vector<1x512x128xbf16> to vector<512x128xbf16>
    %cst = arith.constant dense<0.000000e+00> : vector<8x128xf32>
    %3 = tpu.matmul %0, %2, %cst {dimension_numbers = #tpu.dot_dimension_numbers<[1], [0], [0], [1], [0, 0, 1, 1], [], []>} : vector<8x512xbf16>, vector<512x128xbf16>, vector<8x128xf32> -> vector<8x128xf32>
    %c1 = arith.constant 1 : index
    %c0_4 = arith.constant 0 : index
    %c0_5 = arith.constant 0 : index
    %4 = vector.load %arg2[%c1, %c0_4, %c0_5] : memref<16x512x128xbf16, #tpu.memory_space<vmem>>, vector<1x512x128xbf16>
    %5 = vector.shape_cast %4 : vector<1x512x128xbf16> to vector<512x128xbf16>
    %cst_6 = arith.constant dense<0.000000e+00> : vector<8x128xf32>
    %6 = tpu.matmul %0, %5, %cst_6 {dimension_numbers = #tpu.dot_dimension_numbers<[1], [0], [0], [1], [0, 0, 1, 1], [], []>} : vector<8x512xbf16>, vector<512x128xbf16>, vector<8x128xf32> -> vector<8x128xf32>
    %c2 = arith.constant 2 : index
    %c0_7 = arith.constant 0 : index
    %c0_8 = arith.constant 0 : index
    %7 = vector.load %arg2[%c2, %c0_7, %c0_8] : memref<16x512x128xbf16, #tpu.memory_space<vmem>>, vector<1x512x128xbf16>
    %8 = vector.shape_cast %7 : vector<1x512x128xbf16> to vector<512x128xbf16>
    %cst_9 = arith.constant dense<0.000000e+00> : vector<8x128xf32>
    %9 = tpu.matmul %0, %8, %cst_9 {dimension_numbers = #tpu.dot_dimension_numbers<[1], [0], [0], [1], [0, 0, 1, 1], [], []>} : vector<8x512xbf16>, vector<512x128xbf16>, vector<8x128xf32> -> vector<8x128xf32>
    %c3 = arith.constant 3 : index
    %c0_10 = arith.constant 0 : index
    %c0_11 = arith.constant 0 : index
    %10 = vector.load %arg2[%c3, %c0_10, %c0_11] : memref<16x512x128xbf16, #tpu.memory_space<vmem>>, vector<1x512x128xbf16>
    %11 = vector.shape_cast %10 : vector<1x512x128xbf16> to vector<512x128xbf16>
    %cst_12 = arith.constant dense<0.000000e+00> : vector<8x128xf32>
    %12 = tpu.matmul %0, %11, %cst_12 {dimension_numbers = #tpu.dot_dimension_numbers<[1], [0], [0], [1], [0, 0, 1, 1], [], []>} : vector<8x512xbf16>, vector<512x128xbf16>, vector<8x128xf32> -> vector<8x128xf32>
    %c4 = arith.constant 4 : index
    %c0_13 = arith.constant 0 : index
    %c0_14 = arith.constant 0 : index
    %13 = vector.load %arg2[%c4, %c0_13, %c0_14] : memref<16x512x128xbf16, #tpu.memory_space<vmem>>, vector<1x512x128xbf16>
    %14 = vector.shape_cast %13 : vector<1x512x128xbf16> to vector<512x128xbf16>
    %cst_15 = arith.constant dense<0.000000e+00> : vector<8x128xf32>
    %15 = tpu.matmul %0, %14, %cst_15 {dimension_numbers = #tpu.dot_dimension_numbers<[1], [0], [0], [1], [0, 0, 1, 1], [], []>} : vector<8x512xbf16>, vector<512x128xbf16>, vector<8x128xf32> -> vector<8x128xf32>
    %c5 = arith.constant 5 : index
    %c0_16 = arith.constant 0 : index
    %c0_17 = arith.constant 0 : index
    %16 = vector.load %arg2[%c5, %c0_16, %c0_17] : memref<16x512x128xbf16, #tpu.memory_space<vmem>>, vector<1x512x128xbf16>
    %17 = vector.shape_cast %16 : vector<1x512x128xbf16> to vector<512x128xbf16>
    %cst_18 = arith.constant dense<0.000000e+00> : vector<8x128xf32>
    %18 = tpu.matmul %0, %17, %cst_18 {dimension_numbers = #tpu.dot_dimension_numbers<[1], [0], [0], [1], [0, 0, 1, 1], [], []>} : vector<8x512xbf16>, vector<512x128xbf16>, vector<8x128xf32> -> vector<8x128xf32>
    %c6 = arith.constant 6 : index
    %c0_19 = arith.constant 0 : index
    %c0_20 = arith.constant 0 : index
    %19 = vector.load %arg2[%c6, %c0_19, %c0_20] : memref<16x512x128xbf16, #tpu.memory_space<vmem>>, vector<1x512x128xbf16>
    %20 = vector.shape_cast %19 : vector<1x512x128xbf16> to vector<512x128xbf16>
    %cst_21 = arith.constant dense<0.000000e+00> : vector<8x128xf32>
    %21 = tpu.matmul %0, %20, %cst_21 {dimension_numbers = #tpu.dot_dimension_numbers<[1], [0], [0], [1], [0, 0, 1, 1], [], []>} : vector<8x512xbf16>, vector<512x128xbf16>, vector<8x128xf32> -> vector<8x128xf32>
    %c7 = arith.constant 7 : index
    %c0_22 = arith.constant 0 : index
    %c0_23 = arith.constant 0 : index
    %22 = vector.load %arg2[%c7, %c0_22, %c0_23] : memref<16x512x128xbf16, #tpu.memory_space<vmem>>, vector<1x512x128xbf16>
    %23 = vector.shape_cast %22 : vector<1x512x128xbf16> to vector<512x128xbf16>
    %cst_24 = arith.constant dense<0.000000e+00> : vector<8x128xf32>
    %24 = tpu.matmul %0, %23, %cst_24 {dimension_numbers = #tpu.dot_dimension_numbers<[1], [0], [0], [1], [0, 0, 1, 1], [], []>} : vector<8x512xbf16>, vector<512x128xbf16>, vector<8x128xf32> -> vector<8x128xf32>
    %c8 = arith.constant 8 : index
    %c0_25 = arith.constant 0 : index
    %c0_26 = arith.constant 0 : index
    %25 = vector.load %arg2[%c8, %c0_25, %c0_26] : memref<16x512x128xbf16, #tpu.memory_space<vmem>>, vector<1x512x128xbf16>
    %26 = vector.shape_cast %25 : vector<1x512x128xbf16> to vector<512x128xbf16>
    %cst_27 = arith.constant dense<0.000000e+00> : vector<8x128xf32>
    %27 = tpu.matmul %0, %26, %cst_27 {dimension_numbers = #tpu.dot_dimension_numbers<[1], [0], [0], [1], [0, 0, 1, 1], [], []>} : vector<8x512xbf16>, vector<512x128xbf16>, vector<8x128xf32> -> vector<8x128xf32>
    %c9 = arith.constant 9 : index
    %c0_28 = arith.constant 0 : index
    %c0_29 = arith.constant 0 : index
    %28 = vector.load %arg2[%c9, %c0_28, %c0_29] : memref<16x512x128xbf16, #tpu.memory_space<vmem>>, vector<1x512x128xbf16>
    %29 = vector.shape_cast %28 : vector<1x512x128xbf16> to vector<512x128xbf16>
    %cst_30 = arith.constant dense<0.000000e+00> : vector<8x128xf32>
    %30 = tpu.matmul %0, %29, %cst_30 {dimension_numbers = #tpu.dot_dimension_numbers<[1], [0], [0], [1], [0, 0, 1, 1], [], []>} : vector<8x512xbf16>, vector<512x128xbf16>, vector<8x128xf32> -> vector<8x128xf32>
    %c10 = arith.constant 10 : index
    %c0_31 = arith.constant 0 : index
    %c0_32 = arith.constant 0 : index
    %31 = vector.load %arg2[%c10, %c0_31, %c0_32] : memref<16x512x128xbf16, #tpu.memory_space<vmem>>, vector<1x512x128xbf16>
    %32 = vector.shape_cast %31 : vector<1x512x128xbf16> to vector<512x128xbf16>
    %cst_33 = arith.constant dense<0.000000e+00> : vector<8x128xf32>
    %33 = tpu.matmul %0, %32, %cst_33 {dimension_numbers = #tpu.dot_dimension_numbers<[1], [0], [0], [1], [0, 0, 1, 1], [], []>} : vector<8x512xbf16>, vector<512x128xbf16>, vector<8x128xf32> -> vector<8x128xf32>
    %c11 = arith.constant 11 : index
    %c0_34 = arith.constant 0 : index
    %c0_35 = arith.constant 0 : index
    %34 = vector.load %arg2[%c11, %c0_34, %c0_35] : memref<16x512x128xbf16, #tpu.memory_space<vmem>>, vector<1x512x128xbf16>
    %35 = vector.shape_cast %34 : vector<1x512x128xbf16> to vector<512x128xbf16>
    %cst_36 = arith.constant dense<0.000000e+00> : vector<8x128xf32>
    %36 = tpu.matmul %0, %35, %cst_36 {dimension_numbers = #tpu.dot_dimension_numbers<[1], [0], [0], [1], [0, 0, 1, 1], [], []>} : vector<8x512xbf16>, vector<512x128xbf16>, vector<8x128xf32> -> vector<8x128xf32>
    %c12 = arith.constant 12 : index
    %c0_37 = arith.constant 0 : index
    %c0_38 = arith.constant 0 : index
    %37 = vector.load %arg2[%c12, %c0_37, %c0_38] : memref<16x512x128xbf16, #tpu.memory_space<vmem>>, vector<1x512x128xbf16>
    %38 = vector.shape_cast %37 : vector<1x512x128xbf16> to vector<512x128xbf16>
    %cst_39 = arith.constant dense<0.000000e+00> : vector<8x128xf32>
    %39 = tpu.matmul %0, %38, %cst_39 {dimension_numbers = #tpu.dot_dimension_numbers<[1], [0], [0], [1], [0, 0, 1, 1], [], []>} : vector<8x512xbf16>, vector<512x128xbf16>, vector<8x128xf32> -> vector<8x128xf32>
    %c13 = arith.constant 13 : index
    %c0_40 = arith.constant 0 : index
    %c0_41 = arith.constant 0 : index
    %40 = vector.load %arg2[%c13, %c0_40, %c0_41] : memref<16x512x128xbf16, #tpu.memory_space<vmem>>, vector<1x512x128xbf16>
    %41 = vector.shape_cast %40 : vector<1x512x128xbf16> to vector<512x128xbf16>
    %cst_42 = arith.constant dense<0.000000e+00> : vector<8x128xf32>
    %42 = tpu.matmul %0, %41, %cst_42 {dimension_numbers = #tpu.dot_dimension_numbers<[1], [0], [0], [1], [0, 0, 1, 1], [], []>} : vector<8x512xbf16>, vector<512x128xbf16>, vector<8x128xf32> -> vector<8x128xf32>
    %c14 = arith.constant 14 : index
    %c0_43 = arith.constant 0 : index
    %c0_44 = arith.constant 0 : index
    %43 = vector.load %arg2[%c14, %c0_43, %c0_44] : memref<16x512x128xbf16, #tpu.memory_space<vmem>>, vector<1x512x128xbf16>
    %44 = vector.shape_cast %43 : vector<1x512x128xbf16> to vector<512x128xbf16>
    %cst_45 = arith.constant dense<0.000000e+00> : vector<8x128xf32>
    %45 = tpu.matmul %0, %44, %cst_45 {dimension_numbers = #tpu.dot_dimension_numbers<[1], [0], [0], [1], [0, 0, 1, 1], [], []>} : vector<8x512xbf16>, vector<512x128xbf16>, vector<8x128xf32> -> vector<8x128xf32>
    %c15 = arith.constant 15 : index
    %c0_46 = arith.constant 0 : index
    %c0_47 = arith.constant 0 : index
    %46 = vector.load %arg2[%c15, %c0_46, %c0_47] : memref<16x512x128xbf16, #tpu.memory_space<vmem>>, vector<1x512x128xbf16>
    %47 = vector.shape_cast %46 : vector<1x512x128xbf16> to vector<512x128xbf16>
    %cst_48 = arith.constant dense<0.000000e+00> : vector<8x128xf32>
    %48 = tpu.matmul %0, %47, %cst_48 {dimension_numbers = #tpu.dot_dimension_numbers<[1], [0], [0], [1], [0, 0, 1, 1], [], []>} : vector<8x512xbf16>, vector<512x128xbf16>, vector<8x128xf32> -> vector<8x128xf32>
    %49 = tpu.concatenate %3, %6, %9, %12, %15, %18, %21, %24, %27, %30, %33, %36, %39, %42, %45, %48 in 0 : vector<8x128xf32>, vector<8x128xf32>, vector<8x128xf32>, vector<8x128xf32>, vector<8x128xf32>, vector<8x128xf32>, vector<8x128xf32>, vector<8x128xf32>, vector<8x128xf32>, vector<8x128xf32>, vector<8x128xf32>, vector<8x128xf32>, vector<8x128xf32>, vector<8x128xf32>, vector<8x128xf32>, vector<8x128xf32> -> vector<128x128xf32>
    %50 = arith.truncf %49 : vector<128x128xf32> to vector<128x128xbf16>
    %c0_49 = arith.constant 0 : index
    %c0_50 = arith.constant 0 : index
    %51 = vector.load %arg3[%c0_49, %c0_50] : memref<32x128xbf16, #tpu.memory_space<vmem>>, vector<32x128xbf16>
    %cst_51 = arith.constant dense<0.000000e+00> : vector<32x128xf32>
    %52 = tpu.matmul %51, %50, %cst_51 {dimension_numbers = #tpu.dot_dimension_numbers<[1], [0], [0], [1], [0, 0, 1, 1], [], []>} : vector<32x128xbf16>, vector<128x128xbf16>, vector<32x128xf32> -> vector<32x128xf32>
    %c0_52 = arith.constant 0 : index
    %c0_53 = arith.constant 0 : index
    %53 = vector.load %arg4[%c0_52, %c0_53] : memref<32x1xf32, #tpu.memory_space<vmem>>, vector<32x1xf32>
    %54 = vector.broadcast %53 : vector<32x1xf32> to vector<32x128xf32>
    %55 = arith.addf %52, %54 : vector<32x128xf32>
    %cst_54 = arith.constant 0.000000e+00 : f32
    %56 = vector.broadcast %cst_54 : f32 to vector<32x128xf32>
    %57 = arith.maximumf %55, %56 : vector<32x128xf32>
    %58 = arith.truncf %57 : vector<32x128xf32> to vector<32x128xbf16>
    %c0_55 = arith.constant 0 : index
    %c0_56 = arith.constant 0 : index
    %c0_57 = arith.constant 0 : index
    %59 = vector.load %arg5[%c0_55, %c0_56, %c0_57] : memref<16x128x32xbf16, #tpu.memory_space<vmem>>, vector<1x128x32xbf16>
    %60 = vector.shape_cast %59 : vector<1x128x32xbf16> to vector<128x32xbf16>
    %cst_58 = arith.constant dense<0.000000e+00> : vector<32x32xf32>
    %61 = tpu.matmul %58, %60, %cst_58 {dimension_numbers = #tpu.dot_dimension_numbers<[1], [0], [0], [1], [0, 0, 1, 1], [], []>} : vector<32x128xbf16>, vector<128x32xbf16>, vector<32x32xf32> -> vector<32x32xf32>
    %c1_59 = arith.constant 1 : index
    %c0_60 = arith.constant 0 : index
    %c0_61 = arith.constant 0 : index
    %62 = vector.load %arg5[%c1_59, %c0_60, %c0_61] : memref<16x128x32xbf16, #tpu.memory_space<vmem>>, vector<1x128x32xbf16>
    %63 = vector.shape_cast %62 : vector<1x128x32xbf16> to vector<128x32xbf16>
    %cst_62 = arith.constant dense<0.000000e+00> : vector<32x32xf32>
    %64 = tpu.matmul %58, %63, %cst_62 {dimension_numbers = #tpu.dot_dimension_numbers<[1], [0], [0], [1], [0, 0, 1, 1], [], []>} : vector<32x128xbf16>, vector<128x32xbf16>, vector<32x32xf32> -> vector<32x32xf32>
    %c2_63 = arith.constant 2 : index
    %c0_64 = arith.constant 0 : index
    %c0_65 = arith.constant 0 : index
    %65 = vector.load %arg5[%c2_63, %c0_64, %c0_65] : memref<16x128x32xbf16, #tpu.memory_space<vmem>>, vector<1x128x32xbf16>
    %66 = vector.shape_cast %65 : vector<1x128x32xbf16> to vector<128x32xbf16>
    %cst_66 = arith.constant dense<0.000000e+00> : vector<32x32xf32>
    %67 = tpu.matmul %58, %66, %cst_66 {dimension_numbers = #tpu.dot_dimension_numbers<[1], [0], [0], [1], [0, 0, 1, 1], [], []>} : vector<32x128xbf16>, vector<128x32xbf16>, vector<32x32xf32> -> vector<32x32xf32>
    %c3_67 = arith.constant 3 : index
    %c0_68 = arith.constant 0 : index
    %c0_69 = arith.constant 0 : index
    %68 = vector.load %arg5[%c3_67, %c0_68, %c0_69] : memref<16x128x32xbf16, #tpu.memory_space<vmem>>, vector<1x128x32xbf16>
    %69 = vector.shape_cast %68 : vector<1x128x32xbf16> to vector<128x32xbf16>
    %cst_70 = arith.constant dense<0.000000e+00> : vector<32x32xf32>
    %70 = tpu.matmul %58, %69, %cst_70 {dimension_numbers = #tpu.dot_dimension_numbers<[1], [0], [0], [1], [0, 0, 1, 1], [], []>} : vector<32x128xbf16>, vector<128x32xbf16>, vector<32x32xf32> -> vector<32x32xf32>
    %c4_71 = arith.constant 4 : index
    %c0_72 = arith.constant 0 : index
    %c0_73 = arith.constant 0 : index
    %71 = vector.load %arg5[%c4_71, %c0_72, %c0_73] : memref<16x128x32xbf16, #tpu.memory_space<vmem>>, vector<1x128x32xbf16>
    %72 = vector.shape_cast %71 : vector<1x128x32xbf16> to vector<128x32xbf16>
    %cst_74 = arith.constant dense<0.000000e+00> : vector<32x32xf32>
    %73 = tpu.matmul %58, %72, %cst_74 {dimension_numbers = #tpu.dot_dimension_numbers<[1], [0], [0], [1], [0, 0, 1, 1], [], []>} : vector<32x128xbf16>, vector<128x32xbf16>, vector<32x32xf32> -> vector<32x32xf32>
    %c5_75 = arith.constant 5 : index
    %c0_76 = arith.constant 0 : index
    %c0_77 = arith.constant 0 : index
    %74 = vector.load %arg5[%c5_75, %c0_76, %c0_77] : memref<16x128x32xbf16, #tpu.memory_space<vmem>>, vector<1x128x32xbf16>
    %75 = vector.shape_cast %74 : vector<1x128x32xbf16> to vector<128x32xbf16>
    %cst_78 = arith.constant dense<0.000000e+00> : vector<32x32xf32>
    %76 = tpu.matmul %58, %75, %cst_78 {dimension_numbers = #tpu.dot_dimension_numbers<[1], [0], [0], [1], [0, 0, 1, 1], [], []>} : vector<32x128xbf16>, vector<128x32xbf16>, vector<32x32xf32> -> vector<32x32xf32>
    %c6_79 = arith.constant 6 : index
    %c0_80 = arith.constant 0 : index
    %c0_81 = arith.constant 0 : index
    %77 = vector.load %arg5[%c6_79, %c0_80, %c0_81] : memref<16x128x32xbf16, #tpu.memory_space<vmem>>, vector<1x128x32xbf16>
    %78 = vector.shape_cast %77 : vector<1x128x32xbf16> to vector<128x32xbf16>
    %cst_82 = arith.constant dense<0.000000e+00> : vector<32x32xf32>
    %79 = tpu.matmul %58, %78, %cst_82 {dimension_numbers = #tpu.dot_dimension_numbers<[1], [0], [0], [1], [0, 0, 1, 1], [], []>} : vector<32x128xbf16>, vector<128x32xbf16>, vector<32x32xf32> -> vector<32x32xf32>
    %c7_83 = arith.constant 7 : index
    %c0_84 = arith.constant 0 : index
    %c0_85 = arith.constant 0 : index
    %80 = vector.load %arg5[%c7_83, %c0_84, %c0_85] : memref<16x128x32xbf16, #tpu.memory_space<vmem>>, vector<1x128x32xbf16>
    %81 = vector.shape_cast %80 : vector<1x128x32xbf16> to vector<128x32xbf16>
    %cst_86 = arith.constant dense<0.000000e+00> : vector<32x32xf32>
    %82 = tpu.matmul %58, %81, %cst_86 {dimension_numbers = #tpu.dot_dimension_numbers<[1], [0], [0], [1], [0, 0, 1, 1], [], []>} : vector<32x128xbf16>, vector<128x32xbf16>, vector<32x32xf32> -> vector<32x32xf32>
    %c8_87 = arith.constant 8 : index
    %c0_88 = arith.constant 0 : index
    %c0_89 = arith.constant 0 : index
    %83 = vector.load %arg5[%c8_87, %c0_88, %c0_89] : memref<16x128x32xbf16, #tpu.memory_space<vmem>>, vector<1x128x32xbf16>
    %84 = vector.shape_cast %83 : vector<1x128x32xbf16> to vector<128x32xbf16>
    %cst_90 = arith.constant dense<0.000000e+00> : vector<32x32xf32>
    %85 = tpu.matmul %58, %84, %cst_90 {dimension_numbers = #tpu.dot_dimension_numbers<[1], [0], [0], [1], [0, 0, 1, 1], [], []>} : vector<32x128xbf16>, vector<128x32xbf16>, vector<32x32xf32> -> vector<32x32xf32>
    %c9_91 = arith.constant 9 : index
    %c0_92 = arith.constant 0 : index
    %c0_93 = arith.constant 0 : index
    %86 = vector.load %arg5[%c9_91, %c0_92, %c0_93] : memref<16x128x32xbf16, #tpu.memory_space<vmem>>, vector<1x128x32xbf16>
    %87 = vector.shape_cast %86 : vector<1x128x32xbf16> to vector<128x32xbf16>
    %cst_94 = arith.constant dense<0.000000e+00> : vector<32x32xf32>
    %88 = tpu.matmul %58, %87, %cst_94 {dimension_numbers = #tpu.dot_dimension_numbers<[1], [0], [0], [1], [0, 0, 1, 1], [], []>} : vector<32x128xbf16>, vector<128x32xbf16>, vector<32x32xf32> -> vector<32x32xf32>
    %c10_95 = arith.constant 10 : index
    %c0_96 = arith.constant 0 : index
    %c0_97 = arith.constant 0 : index
    %89 = vector.load %arg5[%c10_95, %c0_96, %c0_97] : memref<16x128x32xbf16, #tpu.memory_space<vmem>>, vector<1x128x32xbf16>
    %90 = vector.shape_cast %89 : vector<1x128x32xbf16> to vector<128x32xbf16>
    %cst_98 = arith.constant dense<0.000000e+00> : vector<32x32xf32>
    %91 = tpu.matmul %58, %90, %cst_98 {dimension_numbers = #tpu.dot_dimension_numbers<[1], [0], [0], [1], [0, 0, 1, 1], [], []>} : vector<32x128xbf16>, vector<128x32xbf16>, vector<32x32xf32> -> vector<32x32xf32>
    %c11_99 = arith.constant 11 : index
    %c0_100 = arith.constant 0 : index
    %c0_101 = arith.constant 0 : index
    %92 = vector.load %arg5[%c11_99, %c0_100, %c0_101] : memref<16x128x32xbf16, #tpu.memory_space<vmem>>, vector<1x128x32xbf16>
    %93 = vector.shape_cast %92 : vector<1x128x32xbf16> to vector<128x32xbf16>
    %cst_102 = arith.constant dense<0.000000e+00> : vector<32x32xf32>
    %94 = tpu.matmul %58, %93, %cst_102 {dimension_numbers = #tpu.dot_dimension_numbers<[1], [0], [0], [1], [0, 0, 1, 1], [], []>} : vector<32x128xbf16>, vector<128x32xbf16>, vector<32x32xf32> -> vector<32x32xf32>
    %c12_103 = arith.constant 12 : index
    %c0_104 = arith.constant 0 : index
    %c0_105 = arith.constant 0 : index
    %95 = vector.load %arg5[%c12_103, %c0_104, %c0_105] : memref<16x128x32xbf16, #tpu.memory_space<vmem>>, vector<1x128x32xbf16>
    %96 = vector.shape_cast %95 : vector<1x128x32xbf16> to vector<128x32xbf16>
    %cst_106 = arith.constant dense<0.000000e+00> : vector<32x32xf32>
    %97 = tpu.matmul %58, %96, %cst_106 {dimension_numbers = #tpu.dot_dimension_numbers<[1], [0], [0], [1], [0, 0, 1, 1], [], []>} : vector<32x128xbf16>, vector<128x32xbf16>, vector<32x32xf32> -> vector<32x32xf32>
    %c13_107 = arith.constant 13 : index
    %c0_108 = arith.constant 0 : index
    %c0_109 = arith.constant 0 : index
    %98 = vector.load %arg5[%c13_107, %c0_108, %c0_109] : memref<16x128x32xbf16, #tpu.memory_space<vmem>>, vector<1x128x32xbf16>
    %99 = vector.shape_cast %98 : vector<1x128x32xbf16> to vector<128x32xbf16>
    %cst_110 = arith.constant dense<0.000000e+00> : vector<32x32xf32>
    %100 = tpu.matmul %58, %99, %cst_110 {dimension_numbers = #tpu.dot_dimension_numbers<[1], [0], [0], [1], [0, 0, 1, 1], [], []>} : vector<32x128xbf16>, vector<128x32xbf16>, vector<32x32xf32> -> vector<32x32xf32>
    %c14_111 = arith.constant 14 : index
    %c0_112 = arith.constant 0 : index
    %c0_113 = arith.constant 0 : index
    %101 = vector.load %arg5[%c14_111, %c0_112, %c0_113] : memref<16x128x32xbf16, #tpu.memory_space<vmem>>, vector<1x128x32xbf16>
    %102 = vector.shape_cast %101 : vector<1x128x32xbf16> to vector<128x32xbf16>
    %cst_114 = arith.constant dense<0.000000e+00> : vector<32x32xf32>
    %103 = tpu.matmul %58, %102, %cst_114 {dimension_numbers = #tpu.dot_dimension_numbers<[1], [0], [0], [1], [0, 0, 1, 1], [], []>} : vector<32x128xbf16>, vector<128x32xbf16>, vector<32x32xf32> -> vector<32x32xf32>
    %c15_115 = arith.constant 15 : index
    %c0_116 = arith.constant 0 : index
    %c0_117 = arith.constant 0 : index
    %104 = vector.load %arg5[%c15_115, %c0_116, %c0_117] : memref<16x128x32xbf16, #tpu.memory_space<vmem>>, vector<1x128x32xbf16>
    %105 = vector.shape_cast %104 : vector<1x128x32xbf16> to vector<128x32xbf16>
    %cst_118 = arith.constant dense<0.000000e+00> : vector<32x32xf32>
    %106 = tpu.matmul %58, %105, %cst_118 {dimension_numbers = #tpu.dot_dimension_numbers<[1], [0], [0], [1], [0, 0, 1, 1], [], []>} : vector<32x128xbf16>, vector<128x32xbf16>, vector<32x32xf32> -> vector<32x32xf32>
    %107 = tpu.concatenate %61, %64, %67, %70, %73, %76, %79, %82, %85, %88, %91, %94, %97, %100, %103, %106 in 0 : vector<32x32xf32>, vector<32x32xf32>, vector<32x32xf32>, vector<32x32xf32>, vector<32x32xf32>, vector<32x32xf32>, vector<32x32xf32>, vector<32x32xf32>, vector<32x32xf32>, vector<32x32xf32>, vector<32x32xf32>, vector<32x32xf32>, vector<32x32xf32>, vector<32x32xf32>, vector<32x32xf32>, vector<32x32xf32> -> vector<512x32xf32>
    %108 = arith.truncf %107 : vector<512x32xf32> to vector<512x32xbf16>
    %c0_119 = arith.constant 0 : index
    %c0_120 = arith.constant 0 : index
    %109 = vector.load %arg6[%c0_119, %c0_120] : memref<64x512xbf16, #tpu.memory_space<vmem>>, vector<64x512xbf16>
    %cst_121 = arith.constant dense<0.000000e+00> : vector<64x32xf32>
    %110 = tpu.matmul %109, %108, %cst_121 {dimension_numbers = #tpu.dot_dimension_numbers<[1], [0], [0], [1], [0, 0, 1, 1], [], []>} : vector<64x512xbf16>, vector<512x32xbf16>, vector<64x32xf32> -> vector<64x32xf32>
    %c0_122 = arith.constant 0 : index
    %c0_123 = arith.constant 0 : index
    %111 = vector.load %arg7[%c0_122, %c0_123] : memref<64x1xf32, #tpu.memory_space<vmem>>, vector<64x1xf32>
    %112 = vector.broadcast %111 : vector<64x1xf32> to vector<64x32xf32>
    %113 = arith.addf %110, %112 : vector<64x32xf32>
    %cst_124 = arith.constant 0.000000e+00 : f32
    %114 = vector.broadcast %cst_124 : f32 to vector<64x32xf32>
    %115 = arith.maximumf %113, %114 : vector<64x32xf32>
    %116 = arith.truncf %115 : vector<64x32xf32> to vector<64x32xbf16>
    %c0_125 = arith.constant 0 : index
    %c0_126 = arith.constant 0 : index
    %c0_127 = arith.constant 0 : index
    %117 = vector.load %arg8[%c0_125, %c0_126, %c0_127] : memref<16x32x2xbf16, #tpu.memory_space<vmem>>, vector<1x32x2xbf16>
    %118 = vector.shape_cast %117 : vector<1x32x2xbf16> to vector<32x2xbf16>
    %cst_128 = arith.constant dense<0.000000e+00> : vector<64x2xf32>
    %119 = tpu.matmul %116, %118, %cst_128 {dimension_numbers = #tpu.dot_dimension_numbers<[1], [0], [0], [1], [0, 0, 1, 1], [], []>} : vector<64x32xbf16>, vector<32x2xbf16>, vector<64x2xf32> -> vector<64x2xf32>
    %c1_129 = arith.constant 1 : index
    %c0_130 = arith.constant 0 : index
    %c0_131 = arith.constant 0 : index
    %120 = vector.load %arg8[%c1_129, %c0_130, %c0_131] : memref<16x32x2xbf16, #tpu.memory_space<vmem>>, vector<1x32x2xbf16>
    %121 = vector.shape_cast %120 : vector<1x32x2xbf16> to vector<32x2xbf16>
    %cst_132 = arith.constant dense<0.000000e+00> : vector<64x2xf32>
    %122 = tpu.matmul %116, %121, %cst_132 {dimension_numbers = #tpu.dot_dimension_numbers<[1], [0], [0], [1], [0, 0, 1, 1], [], []>} : vector<64x32xbf16>, vector<32x2xbf16>, vector<64x2xf32> -> vector<64x2xf32>
    %c2_133 = arith.constant 2 : index
    %c0_134 = arith.constant 0 : index
    %c0_135 = arith.constant 0 : index
    %123 = vector.load %arg8[%c2_133, %c0_134, %c0_135] : memref<16x32x2xbf16, #tpu.memory_space<vmem>>, vector<1x32x2xbf16>
    %124 = vector.shape_cast %123 : vector<1x32x2xbf16> to vector<32x2xbf16>
    %cst_136 = arith.constant dense<0.000000e+00> : vector<64x2xf32>
    %125 = tpu.matmul %116, %124, %cst_136 {dimension_numbers = #tpu.dot_dimension_numbers<[1], [0], [0], [1], [0, 0, 1, 1], [], []>} : vector<64x32xbf16>, vector<32x2xbf16>, vector<64x2xf32> -> vector<64x2xf32>
    %c3_137 = arith.constant 3 : index
    %c0_138 = arith.constant 0 : index
    %c0_139 = arith.constant 0 : index
    %126 = vector.load %arg8[%c3_137, %c0_138, %c0_139] : memref<16x32x2xbf16, #tpu.memory_space<vmem>>, vector<1x32x2xbf16>
    %127 = vector.shape_cast %126 : vector<1x32x2xbf16> to vector<32x2xbf16>
    %cst_140 = arith.constant dense<0.000000e+00> : vector<64x2xf32>
    %128 = tpu.matmul %116, %127, %cst_140 {dimension_numbers = #tpu.dot_dimension_numbers<[1], [0], [0], [1], [0, 0, 1, 1], [], []>} : vector<64x32xbf16>, vector<32x2xbf16>, vector<64x2xf32> -> vector<64x2xf32>
    %c4_141 = arith.constant 4 : index
    %c0_142 = arith.constant 0 : index
    %c0_143 = arith.constant 0 : index
    %129 = vector.load %arg8[%c4_141, %c0_142, %c0_143] : memref<16x32x2xbf16, #tpu.memory_space<vmem>>, vector<1x32x2xbf16>
    %130 = vector.shape_cast %129 : vector<1x32x2xbf16> to vector<32x2xbf16>
    %cst_144 = arith.constant dense<0.000000e+00> : vector<64x2xf32>
    %131 = tpu.matmul %116, %130, %cst_144 {dimension_numbers = #tpu.dot_dimension_numbers<[1], [0], [0], [1], [0, 0, 1, 1], [], []>} : vector<64x32xbf16>, vector<32x2xbf16>, vector<64x2xf32> -> vector<64x2xf32>
    %c5_145 = arith.constant 5 : index
    %c0_146 = arith.constant 0 : index
    %c0_147 = arith.constant 0 : index
    %132 = vector.load %arg8[%c5_145, %c0_146, %c0_147] : memref<16x32x2xbf16, #tpu.memory_space<vmem>>, vector<1x32x2xbf16>
    %133 = vector.shape_cast %132 : vector<1x32x2xbf16> to vector<32x2xbf16>
    %cst_148 = arith.constant dense<0.000000e+00> : vector<64x2xf32>
    %134 = tpu.matmul %116, %133, %cst_148 {dimension_numbers = #tpu.dot_dimension_numbers<[1], [0], [0], [1], [0, 0, 1, 1], [], []>} : vector<64x32xbf16>, vector<32x2xbf16>, vector<64x2xf32> -> vector<64x2xf32>
    %c6_149 = arith.constant 6 : index
    %c0_150 = arith.constant 0 : index
    %c0_151 = arith.constant 0 : index
    %135 = vector.load %arg8[%c6_149, %c0_150, %c0_151] : memref<16x32x2xbf16, #tpu.memory_space<vmem>>, vector<1x32x2xbf16>
    %136 = vector.shape_cast %135 : vector<1x32x2xbf16> to vector<32x2xbf16>
    %cst_152 = arith.constant dense<0.000000e+00> : vector<64x2xf32>
    %137 = tpu.matmul %116, %136, %cst_152 {dimension_numbers = #tpu.dot_dimension_numbers<[1], [0], [0], [1], [0, 0, 1, 1], [], []>} : vector<64x32xbf16>, vector<32x2xbf16>, vector<64x2xf32> -> vector<64x2xf32>
    %c7_153 = arith.constant 7 : index
    %c0_154 = arith.constant 0 : index
    %c0_155 = arith.constant 0 : index
    %138 = vector.load %arg8[%c7_153, %c0_154, %c0_155] : memref<16x32x2xbf16, #tpu.memory_space<vmem>>, vector<1x32x2xbf16>
    %139 = vector.shape_cast %138 : vector<1x32x2xbf16> to vector<32x2xbf16>
    %cst_156 = arith.constant dense<0.000000e+00> : vector<64x2xf32>
    %140 = tpu.matmul %116, %139, %cst_156 {dimension_numbers = #tpu.dot_dimension_numbers<[1], [0], [0], [1], [0, 0, 1, 1], [], []>} : vector<64x32xbf16>, vector<32x2xbf16>, vector<64x2xf32> -> vector<64x2xf32>
    %c8_157 = arith.constant 8 : index
    %c0_158 = arith.constant 0 : index
    %c0_159 = arith.constant 0 : index
    %141 = vector.load %arg8[%c8_157, %c0_158, %c0_159] : memref<16x32x2xbf16, #tpu.memory_space<vmem>>, vector<1x32x2xbf16>
    %142 = vector.shape_cast %141 : vector<1x32x2xbf16> to vector<32x2xbf16>
    %cst_160 = arith.constant dense<0.000000e+00> : vector<64x2xf32>
    %143 = tpu.matmul %116, %142, %cst_160 {dimension_numbers = #tpu.dot_dimension_numbers<[1], [0], [0], [1], [0, 0, 1, 1], [], []>} : vector<64x32xbf16>, vector<32x2xbf16>, vector<64x2xf32> -> vector<64x2xf32>
    %c9_161 = arith.constant 9 : index
    %c0_162 = arith.constant 0 : index
    %c0_163 = arith.constant 0 : index
    %144 = vector.load %arg8[%c9_161, %c0_162, %c0_163] : memref<16x32x2xbf16, #tpu.memory_space<vmem>>, vector<1x32x2xbf16>
    %145 = vector.shape_cast %144 : vector<1x32x2xbf16> to vector<32x2xbf16>
    %cst_164 = arith.constant dense<0.000000e+00> : vector<64x2xf32>
    %146 = tpu.matmul %116, %145, %cst_164 {dimension_numbers = #tpu.dot_dimension_numbers<[1], [0], [0], [1], [0, 0, 1, 1], [], []>} : vector<64x32xbf16>, vector<32x2xbf16>, vector<64x2xf32> -> vector<64x2xf32>
    %c10_165 = arith.constant 10 : index
    %c0_166 = arith.constant 0 : index
    %c0_167 = arith.constant 0 : index
    %147 = vector.load %arg8[%c10_165, %c0_166, %c0_167] : memref<16x32x2xbf16, #tpu.memory_space<vmem>>, vector<1x32x2xbf16>
    %148 = vector.shape_cast %147 : vector<1x32x2xbf16> to vector<32x2xbf16>
    %cst_168 = arith.constant dense<0.000000e+00> : vector<64x2xf32>
    %149 = tpu.matmul %116, %148, %cst_168 {dimension_numbers = #tpu.dot_dimension_numbers<[1], [0], [0], [1], [0, 0, 1, 1], [], []>} : vector<64x32xbf16>, vector<32x2xbf16>, vector<64x2xf32> -> vector<64x2xf32>
    %c11_169 = arith.constant 11 : index
    %c0_170 = arith.constant 0 : index
    %c0_171 = arith.constant 0 : index
    %150 = vector.load %arg8[%c11_169, %c0_170, %c0_171] : memref<16x32x2xbf16, #tpu.memory_space<vmem>>, vector<1x32x2xbf16>
    %151 = vector.shape_cast %150 : vector<1x32x2xbf16> to vector<32x2xbf16>
    %cst_172 = arith.constant dense<0.000000e+00> : vector<64x2xf32>
    %152 = tpu.matmul %116, %151, %cst_172 {dimension_numbers = #tpu.dot_dimension_numbers<[1], [0], [0], [1], [0, 0, 1, 1], [], []>} : vector<64x32xbf16>, vector<32x2xbf16>, vector<64x2xf32> -> vector<64x2xf32>
    %c12_173 = arith.constant 12 : index
    %c0_174 = arith.constant 0 : index
    %c0_175 = arith.constant 0 : index
    %153 = vector.load %arg8[%c12_173, %c0_174, %c0_175] : memref<16x32x2xbf16, #tpu.memory_space<vmem>>, vector<1x32x2xbf16>
    %154 = vector.shape_cast %153 : vector<1x32x2xbf16> to vector<32x2xbf16>
    %cst_176 = arith.constant dense<0.000000e+00> : vector<64x2xf32>
    %155 = tpu.matmul %116, %154, %cst_176 {dimension_numbers = #tpu.dot_dimension_numbers<[1], [0], [0], [1], [0, 0, 1, 1], [], []>} : vector<64x32xbf16>, vector<32x2xbf16>, vector<64x2xf32> -> vector<64x2xf32>
    %c13_177 = arith.constant 13 : index
    %c0_178 = arith.constant 0 : index
    %c0_179 = arith.constant 0 : index
    %156 = vector.load %arg8[%c13_177, %c0_178, %c0_179] : memref<16x32x2xbf16, #tpu.memory_space<vmem>>, vector<1x32x2xbf16>
    %157 = vector.shape_cast %156 : vector<1x32x2xbf16> to vector<32x2xbf16>
    %cst_180 = arith.constant dense<0.000000e+00> : vector<64x2xf32>
    %158 = tpu.matmul %116, %157, %cst_180 {dimension_numbers = #tpu.dot_dimension_numbers<[1], [0], [0], [1], [0, 0, 1, 1], [], []>} : vector<64x32xbf16>, vector<32x2xbf16>, vector<64x2xf32> -> vector<64x2xf32>
    %c14_181 = arith.constant 14 : index
    %c0_182 = arith.constant 0 : index
    %c0_183 = arith.constant 0 : index
    %159 = vector.load %arg8[%c14_181, %c0_182, %c0_183] : memref<16x32x2xbf16, #tpu.memory_space<vmem>>, vector<1x32x2xbf16>
    %160 = vector.shape_cast %159 : vector<1x32x2xbf16> to vector<32x2xbf16>
    %cst_184 = arith.constant dense<0.000000e+00> : vector<64x2xf32>
    %161 = tpu.matmul %116, %160, %cst_184 {dimension_numbers = #tpu.dot_dimension_numbers<[1], [0], [0], [1], [0, 0, 1, 1], [], []>} : vector<64x32xbf16>, vector<32x2xbf16>, vector<64x2xf32> -> vector<64x2xf32>
    %c15_185 = arith.constant 15 : index
    %c0_186 = arith.constant 0 : index
    %c0_187 = arith.constant 0 : index
    %162 = vector.load %arg8[%c15_185, %c0_186, %c0_187] : memref<16x32x2xbf16, #tpu.memory_space<vmem>>, vector<1x32x2xbf16>
    %163 = vector.shape_cast %162 : vector<1x32x2xbf16> to vector<32x2xbf16>
    %cst_188 = arith.constant dense<0.000000e+00> : vector<64x2xf32>
    %164 = tpu.matmul %116, %163, %cst_188 {dimension_numbers = #tpu.dot_dimension_numbers<[1], [0], [0], [1], [0, 0, 1, 1], [], []>} : vector<64x32xbf16>, vector<32x2xbf16>, vector<64x2xf32> -> vector<64x2xf32>
    %165 = tpu.concatenate %119, %122, %125, %128, %131, %134, %137, %140, %143, %146, %149, %152, %155, %158, %161, %164 in 0 : vector<64x2xf32>, vector<64x2xf32>, vector<64x2xf32>, vector<64x2xf32>, vector<64x2xf32>, vector<64x2xf32>, vector<64x2xf32>, vector<64x2xf32>, vector<64x2xf32>, vector<64x2xf32>, vector<64x2xf32>, vector<64x2xf32>, vector<64x2xf32>, vector<64x2xf32>, vector<64x2xf32>, vector<64x2xf32> -> vector<1024x2xf32>
    %166 = arith.truncf %165 : vector<1024x2xf32> to vector<1024x2xbf16>
    %c0_189 = arith.constant 0 : index
    %c0_190 = arith.constant 0 : index
    %167 = vector.load %arg9[%c0_189, %c0_190] : memref<16x1024xbf16, #tpu.memory_space<vmem>>, vector<16x1024xbf16>
    %cst_191 = arith.constant dense<0.000000e+00> : vector<16x2xf32>
    %168 = tpu.matmul %167, %166, %cst_191 {dimension_numbers = #tpu.dot_dimension_numbers<[1], [0], [0], [1], [0, 0, 1, 1], [], []>} : vector<16x1024xbf16>, vector<1024x2xbf16>, vector<16x2xf32> -> vector<16x2xf32>
    %c0_192 = arith.constant 0 : index
    %c0_193 = arith.constant 0 : index
    %169 = vector.load %arg10[%c0_192, %c0_193] : memref<16x1xf32, #tpu.memory_space<vmem>>, vector<16x1xf32>
    %170 = vector.broadcast %169 : vector<16x1xf32> to vector<16x2xf32>
    %171 = arith.addf %168, %170 : vector<16x2xf32>
    %172 = vector.extract_strided_slice %171 {offsets = [0, 0], sizes = [8, 2], strides = [1, 1]} : vector<16x2xf32> to vector<8x2xf32>
    %173 = vector.extract_strided_slice %171 {offsets = [8, 0], sizes = [8, 2], strides = [1, 1]} : vector<16x2xf32> to vector<8x2xf32>
    %c0_194 = arith.constant 0 : index
    %c0_195 = arith.constant 0 : index
    %174 = vector.load %arg21[%c0_194, %c0_195] : memref<8x2xf32, #tpu.memory_space<vmem>>, vector<8x2xf32>
    tpu.vector_store %arg21[%c0_194, %c0_195], %172 {strides = array<i32>} : memref<8x2xf32, #tpu.memory_space<vmem>>, vector<8x2xf32>,
    %c0_196 = arith.constant 0 : index
    %c0_197 = arith.constant 0 : index
    %175 = vector.load %arg22[%c0_196, %c0_197] : memref<8x2xf32, #tpu.memory_space<vmem>>, vector<8x2xf32>
    tpu.vector_store %arg22[%c0_196, %c0_197], %173 {strides = array<i32>} : memref<8x2xf32, #tpu.memory_space<vmem>>, vector<8x2xf32>,
    %c0_198 = arith.constant 0 : index
    %c0_199 = arith.constant 0 : index
    %176 = vector.load %arg1[%c0_198, %c0_199] : memref<8x2xf32, #tpu.memory_space<vmem>>, vector<8x2xf32>
    %cst_200 = arith.constant 5.000000e-01 : f32
    %177 = vector.broadcast %cst_200 : f32 to vector<8x2xf32>
    %178 = arith.mulf %177, %173 : vector<8x2xf32>
    %179 = math.exp %178 : vector<8x2xf32>
    %180 = arith.mulf %176, %179 : vector<8x2xf32>
    %181 = arith.addf %172, %180 : vector<8x2xf32>
    %182 = arith.truncf %181 : vector<8x2xf32> to vector<8x2xbf16>
    %c0_201 = arith.constant 0 : index
    %c0_202 = arith.constant 0 : index
    %c0_203 = arith.constant 0 : index
    %183 = vector.load %arg11[%c0_201, %c0_202, %c0_203] : memref<16x2x32xbf16, #tpu.memory_space<vmem>>, vector<1x2x32xbf16>
    %184 = vector.shape_cast %183 : vector<1x2x32xbf16> to vector<2x32xbf16>
    %cst_204 = arith.constant dense<0.000000e+00> : vector<8x32xf32>
    %185 = tpu.matmul %182, %184, %cst_204 {dimension_numbers = #tpu.dot_dimension_numbers<[1], [0], [0], [1], [0, 0, 1, 1], [], []>} : vector<8x2xbf16>, vector<2x32xbf16>, vector<8x32xf32> -> vector<8x32xf32>
    %c1_205 = arith.constant 1 : index
    %c0_206 = arith.constant 0 : index
    %c0_207 = arith.constant 0 : index
    %186 = vector.load %arg11[%c1_205, %c0_206, %c0_207] : memref<16x2x32xbf16, #tpu.memory_space<vmem>>, vector<1x2x32xbf16>
    %187 = vector.shape_cast %186 : vector<1x2x32xbf16> to vector<2x32xbf16>
    %cst_208 = arith.constant dense<0.000000e+00> : vector<8x32xf32>
    %188 = tpu.matmul %182, %187, %cst_208 {dimension_numbers = #tpu.dot_dimension_numbers<[1], [0], [0], [1], [0, 0, 1, 1], [], []>} : vector<8x2xbf16>, vector<2x32xbf16>, vector<8x32xf32> -> vector<8x32xf32>
    %c2_209 = arith.constant 2 : index
    %c0_210 = arith.constant 0 : index
    %c0_211 = arith.constant 0 : index
    %189 = vector.load %arg11[%c2_209, %c0_210, %c0_211] : memref<16x2x32xbf16, #tpu.memory_space<vmem>>, vector<1x2x32xbf16>
    %190 = vector.shape_cast %189 : vector<1x2x32xbf16> to vector<2x32xbf16>
    %cst_212 = arith.constant dense<0.000000e+00> : vector<8x32xf32>
    %191 = tpu.matmul %182, %190, %cst_212 {dimension_numbers = #tpu.dot_dimension_numbers<[1], [0], [0], [1], [0, 0, 1, 1], [], []>} : vector<8x2xbf16>, vector<2x32xbf16>, vector<8x32xf32> -> vector<8x32xf32>
    %c3_213 = arith.constant 3 : index
    %c0_214 = arith.constant 0 : index
    %c0_215 = arith.constant 0 : index
    %192 = vector.load %arg11[%c3_213, %c0_214, %c0_215] : memref<16x2x32xbf16, #tpu.memory_space<vmem>>, vector<1x2x32xbf16>
    %193 = vector.shape_cast %192 : vector<1x2x32xbf16> to vector<2x32xbf16>
    %cst_216 = arith.constant dense<0.000000e+00> : vector<8x32xf32>
    %194 = tpu.matmul %182, %193, %cst_216 {dimension_numbers = #tpu.dot_dimension_numbers<[1], [0], [0], [1], [0, 0, 1, 1], [], []>} : vector<8x2xbf16>, vector<2x32xbf16>, vector<8x32xf32> -> vector<8x32xf32>
    %c4_217 = arith.constant 4 : index
    %c0_218 = arith.constant 0 : index
    %c0_219 = arith.constant 0 : index
    %195 = vector.load %arg11[%c4_217, %c0_218, %c0_219] : memref<16x2x32xbf16, #tpu.memory_space<vmem>>, vector<1x2x32xbf16>
    %196 = vector.shape_cast %195 : vector<1x2x32xbf16> to vector<2x32xbf16>
    %cst_220 = arith.constant dense<0.000000e+00> : vector<8x32xf32>
    %197 = tpu.matmul %182, %196, %cst_220 {dimension_numbers = #tpu.dot_dimension_numbers<[1], [0], [0], [1], [0, 0, 1, 1], [], []>} : vector<8x2xbf16>, vector<2x32xbf16>, vector<8x32xf32> -> vector<8x32xf32>
    %c5_221 = arith.constant 5 : index
    %c0_222 = arith.constant 0 : index
    %c0_223 = arith.constant 0 : index
    %198 = vector.load %arg11[%c5_221, %c0_222, %c0_223] : memref<16x2x32xbf16, #tpu.memory_space<vmem>>, vector<1x2x32xbf16>
    %199 = vector.shape_cast %198 : vector<1x2x32xbf16> to vector<2x32xbf16>
    %cst_224 = arith.constant dense<0.000000e+00> : vector<8x32xf32>
    %200 = tpu.matmul %182, %199, %cst_224 {dimension_numbers = #tpu.dot_dimension_numbers<[1], [0], [0], [1], [0, 0, 1, 1], [], []>} : vector<8x2xbf16>, vector<2x32xbf16>, vector<8x32xf32> -> vector<8x32xf32>
    %c6_225 = arith.constant 6 : index
    %c0_226 = arith.constant 0 : index
    %c0_227 = arith.constant 0 : index
    %201 = vector.load %arg11[%c6_225, %c0_226, %c0_227] : memref<16x2x32xbf16, #tpu.memory_space<vmem>>, vector<1x2x32xbf16>
    %202 = vector.shape_cast %201 : vector<1x2x32xbf16> to vector<2x32xbf16>
    %cst_228 = arith.constant dense<0.000000e+00> : vector<8x32xf32>
    %203 = tpu.matmul %182, %202, %cst_228 {dimension_numbers = #tpu.dot_dimension_numbers<[1], [0], [0], [1], [0, 0, 1, 1], [], []>} : vector<8x2xbf16>, vector<2x32xbf16>, vector<8x32xf32> -> vector<8x32xf32>
    %c7_229 = arith.constant 7 : index
    %c0_230 = arith.constant 0 : index
    %c0_231 = arith.constant 0 : index
    %204 = vector.load %arg11[%c7_229, %c0_230, %c0_231] : memref<16x2x32xbf16, #tpu.memory_space<vmem>>, vector<1x2x32xbf16>
    %205 = vector.shape_cast %204 : vector<1x2x32xbf16> to vector<2x32xbf16>
    %cst_232 = arith.constant dense<0.000000e+00> : vector<8x32xf32>
    %206 = tpu.matmul %182, %205, %cst_232 {dimension_numbers = #tpu.dot_dimension_numbers<[1], [0], [0], [1], [0, 0, 1, 1], [], []>} : vector<8x2xbf16>, vector<2x32xbf16>, vector<8x32xf32> -> vector<8x32xf32>
    %c8_233 = arith.constant 8 : index
    %c0_234 = arith.constant 0 : index
    %c0_235 = arith.constant 0 : index
    %207 = vector.load %arg11[%c8_233, %c0_234, %c0_235] : memref<16x2x32xbf16, #tpu.memory_space<vmem>>, vector<1x2x32xbf16>
    %208 = vector.shape_cast %207 : vector<1x2x32xbf16> to vector<2x32xbf16>
    %cst_236 = arith.constant dense<0.000000e+00> : vector<8x32xf32>
    %209 = tpu.matmul %182, %208, %cst_236 {dimension_numbers = #tpu.dot_dimension_numbers<[1], [0], [0], [1], [0, 0, 1, 1], [], []>} : vector<8x2xbf16>, vector<2x32xbf16>, vector<8x32xf32> -> vector<8x32xf32>
    %c9_237 = arith.constant 9 : index
    %c0_238 = arith.constant 0 : index
    %c0_239 = arith.constant 0 : index
    %210 = vector.load %arg11[%c9_237, %c0_238, %c0_239] : memref<16x2x32xbf16, #tpu.memory_space<vmem>>, vector<1x2x32xbf16>
    %211 = vector.shape_cast %210 : vector<1x2x32xbf16> to vector<2x32xbf16>
    %cst_240 = arith.constant dense<0.000000e+00> : vector<8x32xf32>
    %212 = tpu.matmul %182, %211, %cst_240 {dimension_numbers = #tpu.dot_dimension_numbers<[1], [0], [0], [1], [0, 0, 1, 1], [], []>} : vector<8x2xbf16>, vector<2x32xbf16>, vector<8x32xf32> -> vector<8x32xf32>
    %c10_241 = arith.constant 10 : index
    %c0_242 = arith.constant 0 : index
    %c0_243 = arith.constant 0 : index
    %213 = vector.load %arg11[%c10_241, %c0_242, %c0_243] : memref<16x2x32xbf16, #tpu.memory_space<vmem>>, vector<1x2x32xbf16>
    %214 = vector.shape_cast %213 : vector<1x2x32xbf16> to vector<2x32xbf16>
    %cst_244 = arith.constant dense<0.000000e+00> : vector<8x32xf32>
    %215 = tpu.matmul %182, %214, %cst_244 {dimension_numbers = #tpu.dot_dimension_numbers<[1], [0], [0], [1], [0, 0, 1, 1], [], []>} : vector<8x2xbf16>, vector<2x32xbf16>, vector<8x32xf32> -> vector<8x32xf32>
    %c11_245 = arith.constant 11 : index
    %c0_246 = arith.constant 0 : index
    %c0_247 = arith.constant 0 : index
    %216 = vector.load %arg11[%c11_245, %c0_246, %c0_247] : memref<16x2x32xbf16, #tpu.memory_space<vmem>>, vector<1x2x32xbf16>
    %217 = vector.shape_cast %216 : vector<1x2x32xbf16> to vector<2x32xbf16>
    %cst_248 = arith.constant dense<0.000000e+00> : vector<8x32xf32>
    %218 = tpu.matmul %182, %217, %cst_248 {dimension_numbers = #tpu.dot_dimension_numbers<[1], [0], [0], [1], [0, 0, 1, 1], [], []>} : vector<8x2xbf16>, vector<2x32xbf16>, vector<8x32xf32> -> vector<8x32xf32>
    %c12_249 = arith.constant 12 : index
    %c0_250 = arith.constant 0 : index
    %c0_251 = arith.constant 0 : index
    %219 = vector.load %arg11[%c12_249, %c0_250, %c0_251] : memref<16x2x32xbf16, #tpu.memory_space<vmem>>, vector<1x2x32xbf16>
    %220 = vector.shape_cast %219 : vector<1x2x32xbf16> to vector<2x32xbf16>
    %cst_252 = arith.constant dense<0.000000e+00> : vector<8x32xf32>
    %221 = tpu.matmul %182, %220, %cst_252 {dimension_numbers = #tpu.dot_dimension_numbers<[1], [0], [0], [1], [0, 0, 1, 1], [], []>} : vector<8x2xbf16>, vector<2x32xbf16>, vector<8x32xf32> -> vector<8x32xf32>
    %c13_253 = arith.constant 13 : index
    %c0_254 = arith.constant 0 : index
    %c0_255 = arith.constant 0 : index
    %222 = vector.load %arg11[%c13_253, %c0_254, %c0_255] : memref<16x2x32xbf16, #tpu.memory_space<vmem>>, vector<1x2x32xbf16>
    %223 = vector.shape_cast %222 : vector<1x2x32xbf16> to vector<2x32xbf16>
    %cst_256 = arith.constant dense<0.000000e+00> : vector<8x32xf32>
    %224 = tpu.matmul %182, %223, %cst_256 {dimension_numbers = #tpu.dot_dimension_numbers<[1], [0], [0], [1], [0, 0, 1, 1], [], []>} : vector<8x2xbf16>, vector<2x32xbf16>, vector<8x32xf32> -> vector<8x32xf32>
    %c14_257 = arith.constant 14 : index
    %c0_258 = arith.constant 0 : index
    %c0_259 = arith.constant 0 : index
    %225 = vector.load %arg11[%c14_257, %c0_258, %c0_259] : memref<16x2x32xbf16, #tpu.memory_space<vmem>>, vector<1x2x32xbf16>
    %226 = vector.shape_cast %225 : vector<1x2x32xbf16> to vector<2x32xbf16>
    %cst_260 = arith.constant dense<0.000000e+00> : vector<8x32xf32>
    %227 = tpu.matmul %182, %226, %cst_260 {dimension_numbers = #tpu.dot_dimension_numbers<[1], [0], [0], [1], [0, 0, 1, 1], [], []>} : vector<8x2xbf16>, vector<2x32xbf16>, vector<8x32xf32> -> vector<8x32xf32>
    %c15_261 = arith.constant 15 : index
    %c0_262 = arith.constant 0 : index
    %c0_263 = arith.constant 0 : index
    %228 = vector.load %arg11[%c15_261, %c0_262, %c0_263] : memref<16x2x32xbf16, #tpu.memory_space<vmem>>, vector<1x2x32xbf16>
    %229 = vector.shape_cast %228 : vector<1x2x32xbf16> to vector<2x32xbf16>
    %cst_264 = arith.constant dense<0.000000e+00> : vector<8x32xf32>
    %230 = tpu.matmul %182, %229, %cst_264 {dimension_numbers = #tpu.dot_dimension_numbers<[1], [0], [0], [1], [0, 0, 1, 1], [], []>} : vector<8x2xbf16>, vector<2x32xbf16>, vector<8x32xf32> -> vector<8x32xf32>
    %231 = tpu.concatenate %185, %188, %191, %194, %197, %200, %203, %206, %209, %212, %215, %218, %221, %224, %227, %230 in 0 : vector<8x32xf32>, vector<8x32xf32>, vector<8x32xf32>, vector<8x32xf32>, vector<8x32xf32>, vector<8x32xf32>, vector<8x32xf32>, vector<8x32xf32>, vector<8x32xf32>, vector<8x32xf32>, vector<8x32xf32>, vector<8x32xf32>, vector<8x32xf32>, vector<8x32xf32>, vector<8x32xf32>, vector<8x32xf32> -> vector<128x32xf32>
    %232 = arith.truncf %231 : vector<128x32xf32> to vector<128x32xbf16>
    %c0_265 = arith.constant 0 : index
    %c0_266 = arith.constant 0 : index
    %233 = vector.load %arg12[%c0_265, %c0_266] : memref<64x128xbf16, #tpu.memory_space<vmem>>, vector<64x128xbf16>
    %cst_267 = arith.constant dense<0.000000e+00> : vector<64x32xf32>
    %234 = tpu.matmul %233, %232, %cst_267 {dimension_numbers = #tpu.dot_dimension_numbers<[1], [0], [0], [1], [0, 0, 1, 1], [], []>} : vector<64x128xbf16>, vector<128x32xbf16>, vector<64x32xf32> -> vector<64x32xf32>
    %c0_268 = arith.constant 0 : index
    %c0_269 = arith.constant 0 : index
    %235 = vector.load %arg13[%c0_268, %c0_269] : memref<64x32xf32, #tpu.memory_space<vmem>>, vector<64x32xf32>
    %236 = arith.addf %234, %235 : vector<64x32xf32>
    %cst_270 = arith.constant 0.000000e+00 : f32
    %237 = vector.broadcast %cst_270 : f32 to vector<64x32xf32>
    %238 = arith.maximumf %236, %237 : vector<64x32xf32>
    %239 = arith.truncf %238 : vector<64x32xf32> to vector<64x32xbf16>
    %c0_271 = arith.constant 0 : index
    %c0_272 = arith.constant 0 : index
    %c0_273 = arith.constant 0 : index
    %240 = vector.load %arg14[%c0_271, %c0_272, %c0_273] : memref<16x32x128xbf16, #tpu.memory_space<vmem>>, vector<1x32x128xbf16>
    %241 = vector.shape_cast %240 : vector<1x32x128xbf16> to vector<32x128xbf16>
    %cst_274 = arith.constant dense<0.000000e+00> : vector<64x128xf32>
    %242 = tpu.matmul %239, %241, %cst_274 {dimension_numbers = #tpu.dot_dimension_numbers<[1], [0], [0], [1], [0, 0, 1, 1], [], []>} : vector<64x32xbf16>, vector<32x128xbf16>, vector<64x128xf32> -> vector<64x128xf32>
    %c1_275 = arith.constant 1 : index
    %c0_276 = arith.constant 0 : index
    %c0_277 = arith.constant 0 : index
    %243 = vector.load %arg14[%c1_275, %c0_276, %c0_277] : memref<16x32x128xbf16, #tpu.memory_space<vmem>>, vector<1x32x128xbf16>
    %244 = vector.shape_cast %243 : vector<1x32x128xbf16> to vector<32x128xbf16>
    %cst_278 = arith.constant dense<0.000000e+00> : vector<64x128xf32>
    %245 = tpu.matmul %239, %244, %cst_278 {dimension_numbers = #tpu.dot_dimension_numbers<[1], [0], [0], [1], [0, 0, 1, 1], [], []>} : vector<64x32xbf16>, vector<32x128xbf16>, vector<64x128xf32> -> vector<64x128xf32>
    %c2_279 = arith.constant 2 : index
    %c0_280 = arith.constant 0 : index
    %c0_281 = arith.constant 0 : index
    %246 = vector.load %arg14[%c2_279, %c0_280, %c0_281] : memref<16x32x128xbf16, #tpu.memory_space<vmem>>, vector<1x32x128xbf16>
    %247 = vector.shape_cast %246 : vector<1x32x128xbf16> to vector<32x128xbf16>
    %cst_282 = arith.constant dense<0.000000e+00> : vector<64x128xf32>
    %248 = tpu.matmul %239, %247, %cst_282 {dimension_numbers = #tpu.dot_dimension_numbers<[1], [0], [0], [1], [0, 0, 1, 1], [], []>} : vector<64x32xbf16>, vector<32x128xbf16>, vector<64x128xf32> -> vector<64x128xf32>
    %c3_283 = arith.constant 3 : index
    %c0_284 = arith.constant 0 : index
    %c0_285 = arith.constant 0 : index
    %249 = vector.load %arg14[%c3_283, %c0_284, %c0_285] : memref<16x32x128xbf16, #tpu.memory_space<vmem>>, vector<1x32x128xbf16>
    %250 = vector.shape_cast %249 : vector<1x32x128xbf16> to vector<32x128xbf16>
    %cst_286 = arith.constant dense<0.000000e+00> : vector<64x128xf32>
    %251 = tpu.matmul %239, %250, %cst_286 {dimension_numbers = #tpu.dot_dimension_numbers<[1], [0], [0], [1], [0, 0, 1, 1], [], []>} : vector<64x32xbf16>, vector<32x128xbf16>, vector<64x128xf32> -> vector<64x128xf32>
    %c4_287 = arith.constant 4 : index
    %c0_288 = arith.constant 0 : index
    %c0_289 = arith.constant 0 : index
    %252 = vector.load %arg14[%c4_287, %c0_288, %c0_289] : memref<16x32x128xbf16, #tpu.memory_space<vmem>>, vector<1x32x128xbf16>
    %253 = vector.shape_cast %252 : vector<1x32x128xbf16> to vector<32x128xbf16>
    %cst_290 = arith.constant dense<0.000000e+00> : vector<64x128xf32>
    %254 = tpu.matmul %239, %253, %cst_290 {dimension_numbers = #tpu.dot_dimension_numbers<[1], [0], [0], [1], [0, 0, 1, 1], [], []>} : vector<64x32xbf16>, vector<32x128xbf16>, vector<64x128xf32> -> vector<64x128xf32>
    %c5_291 = arith.constant 5 : index
    %c0_292 = arith.constant 0 : index
    %c0_293 = arith.constant 0 : index
    %255 = vector.load %arg14[%c5_291, %c0_292, %c0_293] : memref<16x32x128xbf16, #tpu.memory_space<vmem>>, vector<1x32x128xbf16>
    %256 = vector.shape_cast %255 : vector<1x32x128xbf16> to vector<32x128xbf16>
    %cst_294 = arith.constant dense<0.000000e+00> : vector<64x128xf32>
    %257 = tpu.matmul %239, %256, %cst_294 {dimension_numbers = #tpu.dot_dimension_numbers<[1], [0], [0], [1], [0, 0, 1, 1], [], []>} : vector<64x32xbf16>, vector<32x128xbf16>, vector<64x128xf32> -> vector<64x128xf32>
    %c6_295 = arith.constant 6 : index
    %c0_296 = arith.constant 0 : index
    %c0_297 = arith.constant 0 : index
    %258 = vector.load %arg14[%c6_295, %c0_296, %c0_297] : memref<16x32x128xbf16, #tpu.memory_space<vmem>>, vector<1x32x128xbf16>
    %259 = vector.shape_cast %258 : vector<1x32x128xbf16> to vector<32x128xbf16>
    %cst_298 = arith.constant dense<0.000000e+00> : vector<64x128xf32>
    %260 = tpu.matmul %239, %259, %cst_298 {dimension_numbers = #tpu.dot_dimension_numbers<[1], [0], [0], [1], [0, 0, 1, 1], [], []>} : vector<64x32xbf16>, vector<32x128xbf16>, vector<64x128xf32> -> vector<64x128xf32>
    %c7_299 = arith.constant 7 : index
    %c0_300 = arith.constant 0 : index
    %c0_301 = arith.constant 0 : index
    %261 = vector.load %arg14[%c7_299, %c0_300, %c0_301] : memref<16x32x128xbf16, #tpu.memory_space<vmem>>, vector<1x32x128xbf16>
    %262 = vector.shape_cast %261 : vector<1x32x128xbf16> to vector<32x128xbf16>
    %cst_302 = arith.constant dense<0.000000e+00> : vector<64x128xf32>
    %263 = tpu.matmul %239, %262, %cst_302 {dimension_numbers = #tpu.dot_dimension_numbers<[1], [0], [0], [1], [0, 0, 1, 1], [], []>} : vector<64x32xbf16>, vector<32x128xbf16>, vector<64x128xf32> -> vector<64x128xf32>
    %c8_303 = arith.constant 8 : index
    %c0_304 = arith.constant 0 : index
    %c0_305 = arith.constant 0 : index
    %264 = vector.load %arg14[%c8_303, %c0_304, %c0_305] : memref<16x32x128xbf16, #tpu.memory_space<vmem>>, vector<1x32x128xbf16>
    %265 = vector.shape_cast %264 : vector<1x32x128xbf16> to vector<32x128xbf16>
    %cst_306 = arith.constant dense<0.000000e+00> : vector<64x128xf32>
    %266 = tpu.matmul %239, %265, %cst_306 {dimension_numbers = #tpu.dot_dimension_numbers<[1], [0], [0], [1], [0, 0, 1, 1], [], []>} : vector<64x32xbf16>, vector<32x128xbf16>, vector<64x128xf32> -> vector<64x128xf32>
    %c9_307 = arith.constant 9 : index
    %c0_308 = arith.constant 0 : index
    %c0_309 = arith.constant 0 : index
    %267 = vector.load %arg14[%c9_307, %c0_308, %c0_309] : memref<16x32x128xbf16, #tpu.memory_space<vmem>>, vector<1x32x128xbf16>
    %268 = vector.shape_cast %267 : vector<1x32x128xbf16> to vector<32x128xbf16>
    %cst_310 = arith.constant dense<0.000000e+00> : vector<64x128xf32>
    %269 = tpu.matmul %239, %268, %cst_310 {dimension_numbers = #tpu.dot_dimension_numbers<[1], [0], [0], [1], [0, 0, 1, 1], [], []>} : vector<64x32xbf16>, vector<32x128xbf16>, vector<64x128xf32> -> vector<64x128xf32>
    %c10_311 = arith.constant 10 : index
    %c0_312 = arith.constant 0 : index
    %c0_313 = arith.constant 0 : index
    %270 = vector.load %arg14[%c10_311, %c0_312, %c0_313] : memref<16x32x128xbf16, #tpu.memory_space<vmem>>, vector<1x32x128xbf16>
    %271 = vector.shape_cast %270 : vector<1x32x128xbf16> to vector<32x128xbf16>
    %cst_314 = arith.constant dense<0.000000e+00> : vector<64x128xf32>
    %272 = tpu.matmul %239, %271, %cst_314 {dimension_numbers = #tpu.dot_dimension_numbers<[1], [0], [0], [1], [0, 0, 1, 1], [], []>} : vector<64x32xbf16>, vector<32x128xbf16>, vector<64x128xf32> -> vector<64x128xf32>
    %c11_315 = arith.constant 11 : index
    %c0_316 = arith.constant 0 : index
    %c0_317 = arith.constant 0 : index
    %273 = vector.load %arg14[%c11_315, %c0_316, %c0_317] : memref<16x32x128xbf16, #tpu.memory_space<vmem>>, vector<1x32x128xbf16>
    %274 = vector.shape_cast %273 : vector<1x32x128xbf16> to vector<32x128xbf16>
    %cst_318 = arith.constant dense<0.000000e+00> : vector<64x128xf32>
    %275 = tpu.matmul %239, %274, %cst_318 {dimension_numbers = #tpu.dot_dimension_numbers<[1], [0], [0], [1], [0, 0, 1, 1], [], []>} : vector<64x32xbf16>, vector<32x128xbf16>, vector<64x128xf32> -> vector<64x128xf32>
    %c12_319 = arith.constant 12 : index
    %c0_320 = arith.constant 0 : index
    %c0_321 = arith.constant 0 : index
    %276 = vector.load %arg14[%c12_319, %c0_320, %c0_321] : memref<16x32x128xbf16, #tpu.memory_space<vmem>>, vector<1x32x128xbf16>
    %277 = vector.shape_cast %276 : vector<1x32x128xbf16> to vector<32x128xbf16>
    %cst_322 = arith.constant dense<0.000000e+00> : vector<64x128xf32>
    %278 = tpu.matmul %239, %277, %cst_322 {dimension_numbers = #tpu.dot_dimension_numbers<[1], [0], [0], [1], [0, 0, 1, 1], [], []>} : vector<64x32xbf16>, vector<32x128xbf16>, vector<64x128xf32> -> vector<64x128xf32>
    %c13_323 = arith.constant 13 : index
    %c0_324 = arith.constant 0 : index
    %c0_325 = arith.constant 0 : index
    %279 = vector.load %arg14[%c13_323, %c0_324, %c0_325] : memref<16x32x128xbf16, #tpu.memory_space<vmem>>, vector<1x32x128xbf16>
    %280 = vector.shape_cast %279 : vector<1x32x128xbf16> to vector<32x128xbf16>
    %cst_326 = arith.constant dense<0.000000e+00> : vector<64x128xf32>
    %281 = tpu.matmul %239, %280, %cst_326 {dimension_numbers = #tpu.dot_dimension_numbers<[1], [0], [0], [1], [0, 0, 1, 1], [], []>} : vector<64x32xbf16>, vector<32x128xbf16>, vector<64x128xf32> -> vector<64x128xf32>
    %c14_327 = arith.constant 14 : index
    %c0_328 = arith.constant 0 : index
    %c0_329 = arith.constant 0 : index
    %282 = vector.load %arg14[%c14_327, %c0_328, %c0_329] : memref<16x32x128xbf16, #tpu.memory_space<vmem>>, vector<1x32x128xbf16>
    %283 = vector.shape_cast %282 : vector<1x32x128xbf16> to vector<32x128xbf16>
    %cst_330 = arith.constant dense<0.000000e+00> : vector<64x128xf32>
    %284 = tpu.matmul %239, %283, %cst_330 {dimension_numbers = #tpu.dot_dimension_numbers<[1], [0], [0], [1], [0, 0, 1, 1], [], []>} : vector<64x32xbf16>, vector<32x128xbf16>, vector<64x128xf32> -> vector<64x128xf32>
    %c15_331 = arith.constant 15 : index
    %c0_332 = arith.constant 0 : index
    %c0_333 = arith.constant 0 : index
    %285 = vector.load %arg14[%c15_331, %c0_332, %c0_333] : memref<16x32x128xbf16, #tpu.memory_space<vmem>>, vector<1x32x128xbf16>
    %286 = vector.shape_cast %285 : vector<1x32x128xbf16> to vector<32x128xbf16>
    %cst_334 = arith.constant dense<0.000000e+00> : vector<64x128xf32>
    %287 = tpu.matmul %239, %286, %cst_334 {dimension_numbers = #tpu.dot_dimension_numbers<[1], [0], [0], [1], [0, 0, 1, 1], [], []>} : vector<64x32xbf16>, vector<32x128xbf16>, vector<64x128xf32> -> vector<64x128xf32>
    %288 = tpu.concatenate %242, %245, %248, %251, %254, %257, %260, %263, %266, %269, %272, %275, %278, %281, %284, %287 in 0 : vector<64x128xf32>, vector<64x128xf32>, vector<64x128xf32>, vector<64x128xf32>, vector<64x128xf32>, vector<64x128xf32>, vector<64x128xf32>, vector<64x128xf32>, vector<64x128xf32>, vector<64x128xf32>, vector<64x128xf32>, vector<64x128xf32>, vector<64x128xf32>, vector<64x128xf32>, vector<64x128xf32>, vector<64x128xf32> -> vector<1024x128xf32>
    %289 = arith.truncf %288 : vector<1024x128xf32> to vector<1024x128xbf16>
    %c0_335 = arith.constant 0 : index
    %c0_336 = arith.constant 0 : index
    %290 = vector.load %arg15[%c0_335, %c0_336] : memref<32x1024xbf16, #tpu.memory_space<vmem>>, vector<32x1024xbf16>
    %cst_337 = arith.constant dense<0.000000e+00> : vector<32x128xf32>
    %291 = tpu.matmul %290, %289, %cst_337 {dimension_numbers = #tpu.dot_dimension_numbers<[1], [0], [0], [1], [0, 0, 1, 1], [], []>} : vector<32x1024xbf16>, vector<1024x128xbf16>, vector<32x128xf32> -> vector<32x128xf32>
    %c0_338 = arith.constant 0 : index
    %c0_339 = arith.constant 0 : index
    %292 = vector.load %arg16[%c0_338, %c0_339] : memref<32x1xf32, #tpu.memory_space<vmem>>, vector<32x1xf32>
    %293 = vector.broadcast %292 : vector<32x1xf32> to vector<32x128xf32>
    %294 = arith.addf %291, %293 : vector<32x128xf32>
    %cst_340 = arith.constant 0.000000e+00 : f32
    %295 = vector.broadcast %cst_340 : f32 to vector<32x128xf32>
    %296 = arith.maximumf %294, %295 : vector<32x128xf32>
    %297 = arith.truncf %296 : vector<32x128xf32> to vector<32x128xbf16>
    %c0_341 = arith.constant 0 : index
    %c0_342 = arith.constant 0 : index
    %c0_343 = arith.constant 0 : index
    %298 = vector.load %arg17[%c0_341, %c0_342, %c0_343] : memref<16x128x512xbf16, #tpu.memory_space<vmem>>, vector<1x128x512xbf16>
    %299 = vector.shape_cast %298 : vector<1x128x512xbf16> to vector<128x512xbf16>
    %cst_344 = arith.constant dense<0.000000e+00> : vector<32x512xf32>
    %300 = tpu.matmul %297, %299, %cst_344 {dimension_numbers = #tpu.dot_dimension_numbers<[1], [0], [0], [1], [0, 0, 1, 1], [], []>} : vector<32x128xbf16>, vector<128x512xbf16>, vector<32x512xf32> -> vector<32x512xf32>
    %c1_345 = arith.constant 1 : index
    %c0_346 = arith.constant 0 : index
    %c0_347 = arith.constant 0 : index
    %301 = vector.load %arg17[%c1_345, %c0_346, %c0_347] : memref<16x128x512xbf16, #tpu.memory_space<vmem>>, vector<1x128x512xbf16>
    %302 = vector.shape_cast %301 : vector<1x128x512xbf16> to vector<128x512xbf16>
    %cst_348 = arith.constant dense<0.000000e+00> : vector<32x512xf32>
    %303 = tpu.matmul %297, %302, %cst_348 {dimension_numbers = #tpu.dot_dimension_numbers<[1], [0], [0], [1], [0, 0, 1, 1], [], []>} : vector<32x128xbf16>, vector<128x512xbf16>, vector<32x512xf32> -> vector<32x512xf32>
    %c2_349 = arith.constant 2 : index
    %c0_350 = arith.constant 0 : index
    %c0_351 = arith.constant 0 : index
    %304 = vector.load %arg17[%c2_349, %c0_350, %c0_351] : memref<16x128x512xbf16, #tpu.memory_space<vmem>>, vector<1x128x512xbf16>
    %305 = vector.shape_cast %304 : vector<1x128x512xbf16> to vector<128x512xbf16>
    %cst_352 = arith.constant dense<0.000000e+00> : vector<32x512xf32>
    %306 = tpu.matmul %297, %305, %cst_352 {dimension_numbers = #tpu.dot_dimension_numbers<[1], [0], [0], [1], [0, 0, 1, 1], [], []>} : vector<32x128xbf16>, vector<128x512xbf16>, vector<32x512xf32> -> vector<32x512xf32>
    %c3_353 = arith.constant 3 : index
    %c0_354 = arith.constant 0 : index
    %c0_355 = arith.constant 0 : index
    %307 = vector.load %arg17[%c3_353, %c0_354, %c0_355] : memref<16x128x512xbf16, #tpu.memory_space<vmem>>, vector<1x128x512xbf16>
    %308 = vector.shape_cast %307 : vector<1x128x512xbf16> to vector<128x512xbf16>
    %cst_356 = arith.constant dense<0.000000e+00> : vector<32x512xf32>
    %309 = tpu.matmul %297, %308, %cst_356 {dimension_numbers = #tpu.dot_dimension_numbers<[1], [0], [0], [1], [0, 0, 1, 1], [], []>} : vector<32x128xbf16>, vector<128x512xbf16>, vector<32x512xf32> -> vector<32x512xf32>
    %c4_357 = arith.constant 4 : index
    %c0_358 = arith.constant 0 : index
    %c0_359 = arith.constant 0 : index
    %310 = vector.load %arg17[%c4_357, %c0_358, %c0_359] : memref<16x128x512xbf16, #tpu.memory_space<vmem>>, vector<1x128x512xbf16>
    %311 = vector.shape_cast %310 : vector<1x128x512xbf16> to vector<128x512xbf16>
    %cst_360 = arith.constant dense<0.000000e+00> : vector<32x512xf32>
    %312 = tpu.matmul %297, %311, %cst_360 {dimension_numbers = #tpu.dot_dimension_numbers<[1], [0], [0], [1], [0, 0, 1, 1], [], []>} : vector<32x128xbf16>, vector<128x512xbf16>, vector<32x512xf32> -> vector<32x512xf32>
    %c5_361 = arith.constant 5 : index
    %c0_362 = arith.constant 0 : index
    %c0_363 = arith.constant 0 : index
    %313 = vector.load %arg17[%c5_361, %c0_362, %c0_363] : memref<16x128x512xbf16, #tpu.memory_space<vmem>>, vector<1x128x512xbf16>
    %314 = vector.shape_cast %313 : vector<1x128x512xbf16> to vector<128x512xbf16>
    %cst_364 = arith.constant dense<0.000000e+00> : vector<32x512xf32>
    %315 = tpu.matmul %297, %314, %cst_364 {dimension_numbers = #tpu.dot_dimension_numbers<[1], [0], [0], [1], [0, 0, 1, 1], [], []>} : vector<32x128xbf16>, vector<128x512xbf16>, vector<32x512xf32> -> vector<32x512xf32>
    %c6_365 = arith.constant 6 : index
    %c0_366 = arith.constant 0 : index
    %c0_367 = arith.constant 0 : index
    %316 = vector.load %arg17[%c6_365, %c0_366, %c0_367] : memref<16x128x512xbf16, #tpu.memory_space<vmem>>, vector<1x128x512xbf16>
    %317 = vector.shape_cast %316 : vector<1x128x512xbf16> to vector<128x512xbf16>
    %cst_368 = arith.constant dense<0.000000e+00> : vector<32x512xf32>
    %318 = tpu.matmul %297, %317, %cst_368 {dimension_numbers = #tpu.dot_dimension_numbers<[1], [0], [0], [1], [0, 0, 1, 1], [], []>} : vector<32x128xbf16>, vector<128x512xbf16>, vector<32x512xf32> -> vector<32x512xf32>
    %c7_369 = arith.constant 7 : index
    %c0_370 = arith.constant 0 : index
    %c0_371 = arith.constant 0 : index
    %319 = vector.load %arg17[%c7_369, %c0_370, %c0_371] : memref<16x128x512xbf16, #tpu.memory_space<vmem>>, vector<1x128x512xbf16>
    %320 = vector.shape_cast %319 : vector<1x128x512xbf16> to vector<128x512xbf16>
    %cst_372 = arith.constant dense<0.000000e+00> : vector<32x512xf32>
    %321 = tpu.matmul %297, %320, %cst_372 {dimension_numbers = #tpu.dot_dimension_numbers<[1], [0], [0], [1], [0, 0, 1, 1], [], []>} : vector<32x128xbf16>, vector<128x512xbf16>, vector<32x512xf32> -> vector<32x512xf32>
    %c8_373 = arith.constant 8 : index
    %c0_374 = arith.constant 0 : index
    %c0_375 = arith.constant 0 : index
    %322 = vector.load %arg17[%c8_373, %c0_374, %c0_375] : memref<16x128x512xbf16, #tpu.memory_space<vmem>>, vector<1x128x512xbf16>
    %323 = vector.shape_cast %322 : vector<1x128x512xbf16> to vector<128x512xbf16>
    %cst_376 = arith.constant dense<0.000000e+00> : vector<32x512xf32>
    %324 = tpu.matmul %297, %323, %cst_376 {dimension_numbers = #tpu.dot_dimension_numbers<[1], [0], [0], [1], [0, 0, 1, 1], [], []>} : vector<32x128xbf16>, vector<128x512xbf16>, vector<32x512xf32> -> vector<32x512xf32>
    %c9_377 = arith.constant 9 : index
    %c0_378 = arith.constant 0 : index
    %c0_379 = arith.constant 0 : index
    %325 = vector.load %arg17[%c9_377, %c0_378, %c0_379] : memref<16x128x512xbf16, #tpu.memory_space<vmem>>, vector<1x128x512xbf16>
    %326 = vector.shape_cast %325 : vector<1x128x512xbf16> to vector<128x512xbf16>
    %cst_380 = arith.constant dense<0.000000e+00> : vector<32x512xf32>
    %327 = tpu.matmul %297, %326, %cst_380 {dimension_numbers = #tpu.dot_dimension_numbers<[1], [0], [0], [1], [0, 0, 1, 1], [], []>} : vector<32x128xbf16>, vector<128x512xbf16>, vector<32x512xf32> -> vector<32x512xf32>
    %c10_381 = arith.constant 10 : index
    %c0_382 = arith.constant 0 : index
    %c0_383 = arith.constant 0 : index
    %328 = vector.load %arg17[%c10_381, %c0_382, %c0_383] : memref<16x128x512xbf16, #tpu.memory_space<vmem>>, vector<1x128x512xbf16>
    %329 = vector.shape_cast %328 : vector<1x128x512xbf16> to vector<128x512xbf16>
    %cst_384 = arith.constant dense<0.000000e+00> : vector<32x512xf32>
    %330 = tpu.matmul %297, %329, %cst_384 {dimension_numbers = #tpu.dot_dimension_numbers<[1], [0], [0], [1], [0, 0, 1, 1], [], []>} : vector<32x128xbf16>, vector<128x512xbf16>, vector<32x512xf32> -> vector<32x512xf32>
    %c11_385 = arith.constant 11 : index
    %c0_386 = arith.constant 0 : index
    %c0_387 = arith.constant 0 : index
    %331 = vector.load %arg17[%c11_385, %c0_386, %c0_387] : memref<16x128x512xbf16, #tpu.memory_space<vmem>>, vector<1x128x512xbf16>
    %332 = vector.shape_cast %331 : vector<1x128x512xbf16> to vector<128x512xbf16>
    %cst_388 = arith.constant dense<0.000000e+00> : vector<32x512xf32>
    %333 = tpu.matmul %297, %332, %cst_388 {dimension_numbers = #tpu.dot_dimension_numbers<[1], [0], [0], [1], [0, 0, 1, 1], [], []>} : vector<32x128xbf16>, vector<128x512xbf16>, vector<32x512xf32> -> vector<32x512xf32>
    %c12_389 = arith.constant 12 : index
    %c0_390 = arith.constant 0 : index
    %c0_391 = arith.constant 0 : index
    %334 = vector.load %arg17[%c12_389, %c0_390, %c0_391] : memref<16x128x512xbf16, #tpu.memory_space<vmem>>, vector<1x128x512xbf16>
    %335 = vector.shape_cast %334 : vector<1x128x512xbf16> to vector<128x512xbf16>
    %cst_392 = arith.constant dense<0.000000e+00> : vector<32x512xf32>
    %336 = tpu.matmul %297, %335, %cst_392 {dimension_numbers = #tpu.dot_dimension_numbers<[1], [0], [0], [1], [0, 0, 1, 1], [], []>} : vector<32x128xbf16>, vector<128x512xbf16>, vector<32x512xf32> -> vector<32x512xf32>
    %c13_393 = arith.constant 13 : index
    %c0_394 = arith.constant 0 : index
    %c0_395 = arith.constant 0 : index
    %337 = vector.load %arg17[%c13_393, %c0_394, %c0_395] : memref<16x128x512xbf16, #tpu.memory_space<vmem>>, vector<1x128x512xbf16>
    %338 = vector.shape_cast %337 : vector<1x128x512xbf16> to vector<128x512xbf16>
    %cst_396 = arith.constant dense<0.000000e+00> : vector<32x512xf32>
    %339 = tpu.matmul %297, %338, %cst_396 {dimension_numbers = #tpu.dot_dimension_numbers<[1], [0], [0], [1], [0, 0, 1, 1], [], []>} : vector<32x128xbf16>, vector<128x512xbf16>, vector<32x512xf32> -> vector<32x512xf32>
    %c14_397 = arith.constant 14 : index
    %c0_398 = arith.constant 0 : index
    %c0_399 = arith.constant 0 : index
    %340 = vector.load %arg17[%c14_397, %c0_398, %c0_399] : memref<16x128x512xbf16, #tpu.memory_space<vmem>>, vector<1x128x512xbf16>
    %341 = vector.shape_cast %340 : vector<1x128x512xbf16> to vector<128x512xbf16>
    %cst_400 = arith.constant dense<0.000000e+00> : vector<32x512xf32>
    %342 = tpu.matmul %297, %341, %cst_400 {dimension_numbers = #tpu.dot_dimension_numbers<[1], [0], [0], [1], [0, 0, 1, 1], [], []>} : vector<32x128xbf16>, vector<128x512xbf16>, vector<32x512xf32> -> vector<32x512xf32>
    %c15_401 = arith.constant 15 : index
    %c0_402 = arith.constant 0 : index
    %c0_403 = arith.constant 0 : index
    %343 = vector.load %arg17[%c15_401, %c0_402, %c0_403] : memref<16x128x512xbf16, #tpu.memory_space<vmem>>, vector<1x128x512xbf16>
    %344 = vector.shape_cast %343 : vector<1x128x512xbf16> to vector<128x512xbf16>
    %cst_404 = arith.constant dense<0.000000e+00> : vector<32x512xf32>
    %345 = tpu.matmul %297, %344, %cst_404 {dimension_numbers = #tpu.dot_dimension_numbers<[1], [0], [0], [1], [0, 0, 1, 1], [], []>} : vector<32x128xbf16>, vector<128x512xbf16>, vector<32x512xf32> -> vector<32x512xf32>
    %346 = tpu.concatenate %300, %303, %306, %309, %312, %315, %318, %321, %324, %327, %330, %333, %336, %339, %342, %345 in 0 : vector<32x512xf32>, vector<32x512xf32>, vector<32x512xf32>, vector<32x512xf32>, vector<32x512xf32>, vector<32x512xf32>, vector<32x512xf32>, vector<32x512xf32>, vector<32x512xf32>, vector<32x512xf32>, vector<32x512xf32>, vector<32x512xf32>, vector<32x512xf32>, vector<32x512xf32>, vector<32x512xf32>, vector<32x512xf32> -> vector<512x512xf32>
    %347 = arith.truncf %346 : vector<512x512xf32> to vector<512x512xbf16>
    %c0_405 = arith.constant 0 : index
    %c0_406 = arith.constant 0 : index
    %348 = vector.load %arg18[%c0_405, %c0_406] : memref<3x512xbf16, #tpu.memory_space<vmem>>, vector<3x512xbf16>
    %cst_407 = arith.constant dense<0.000000e+00> : vector<3x512xf32>
    %349 = tpu.matmul %348, %347, %cst_407 {dimension_numbers = #tpu.dot_dimension_numbers<[1], [0], [0], [1], [0, 0, 1, 1], [], []>} : vector<3x512xbf16>, vector<512x512xbf16>, vector<3x512xf32> -> vector<3x512xf32>
    %c0_408 = arith.constant 0 : index
    %c0_409 = arith.constant 0 : index
    %350 = vector.load %arg19[%c0_408, %c0_409] : memref<3x1xf32, #tpu.memory_space<vmem>>, vector<3x1xf32>
    %351 = vector.broadcast %350 : vector<3x1xf32> to vector<3x512xf32>
    %352 = arith.addf %349, %351 : vector<3x512xf32>
    %cst_410 = arith.constant 5.000000e-01 : f32
    %353 = vector.broadcast %cst_410 : f32 to vector<3x512xf32>
    %354 = arith.mulf %353, %352 : vector<3x512xf32>
    %355 = math.tanh %354 : vector<3x512xf32>
    %cst_411 = arith.constant 1.000000e+00 : f32
    %356 = vector.broadcast %cst_411 : f32 to vector<3x512xf32>
    %357 = arith.addf %355, %356 : vector<3x512xf32>
    %cst_412 = arith.constant 5.000000e-01 : f32
    %358 = vector.broadcast %cst_412 : f32 to vector<3x512xf32>
    %359 = arith.mulf %358, %357 : vector<3x512xf32>
    %c0_413 = arith.constant 0 : index
    %c0_414 = arith.constant 0 : index
    %360 = vector.load %arg20[%c0_413, %c0_414] : memref<3x512xf32, #tpu.memory_space<vmem>>, vector<3x512xf32>
    tpu.vector_store %arg20[%c0_413, %c0_414], %359 {strides = array<i32>} : memref<3x512xf32, #tpu.memory_space<vmem>>, vector<3x512xf32>,
    return
  }
}

</mosaic_0001>

<bundles_post_ra>
// kernel: conv_vae_forward.1
= control target key start
LH: loop header
LB: loop body
LE: loop exit
PB: predicated region body
PF: predicated region fallthrough
CT: control target
= control target key end

     0   :  { %s25472_s0 = inlined_call_operand.vmem [shape: bf16[8,512], index: 0, kind: input, shape index: {}]   ;;  %s25473_s1 = inlined_call_operand.vmem [shape: f32[8,2], index: 1, kind: input, shape index: {}]   ;;  %s25474_s2 = inlined_call_operand.hbm [shape: bf16[16,512,128], index: 2, kind: input, shape index: {}]   ;;  %s25475_s3 = inlined_call_operand.hbm [shape: bf16[32,128], index: 3, kind: input, shape index: {}]   ;;  %s25476_s4 = inlined_call_operand.vmem [shape: f32[32,1], index: 4, kind: input, shape index: {}]   ;;  %s25477_s5 = inlined_call_operand.vmem [shape: bf16[16,128,32], index: 5, kind: input, shape index: {}]   ;;  %s25478_s6 = inlined_call_operand.hbm [shape: bf16[64,512], index: 6, kind: input, shape index: {}]   ;;  %s25479_s7 = inlined_call_operand.vmem [shape: f32[64,1], index: 7, kind: input, shape index: {}]   ;;  %s25480_s8 = inlined_call_operand.vmem [shape: bf16[16,32,2], index: 8, kind: input, shape index: {}]   ;;  %s25481_s9 = inlined_call_operand.hbm [shape: bf16[16,1024], index: 9, kind: input, shape index: {}]   ;;  %s25482_s10 = inlined_call_operand.vmem [shape: f32[16,1], index: 10, kind: input, shape index: {}]   ;;  %s25483_s11 = inlined_call_operand.hbm [shape: bf16[16,2,32], index: 11, kind: input, shape index: {}]   ;;  %s25484_s12 = inlined_call_operand.hbm [shape: bf16[64,128], index: 12, kind: input, shape index: {}]   ;;  %s25485_s13 = inlined_call_operand.vmem [shape: f32[64,32], index: 13, kind: input, shape index: {}]   ;;  %s25486_s14 = inlined_call_operand.hbm [shape: bf16[16,32,128], index: 14, kind: input, shape index: {}]   ;;  %s25487_s15 = inlined_call_operand.hbm [shape: bf16[32,1024], index: 15, kind: input, shape index: {}]   ;;  %s25488_s16 = inlined_call_operand.vmem [shape: f32[32,1], index: 16, kind: input, shape index: {}]   ;;  %s25489_s17 = inlined_call_operand.hbm [shape: bf16[16,128,512], index: 17, kind: input, shape index: {}]   ;;  %s25490_s18 = inlined_call_operand.hbm [shape: bf16[3,512], index: 18, kind: input, shape index: {}]   ;;  %s25491_s19 = inlined_call_operand.vmem [shape: f32[3,1], index: 19, kind: input, shape index: {}]   ;;  %s25492_s20 = inlined_call_operand.vmem [shape: f32[3,512], index: 20, kind: output, shape index: {0}]   ;;  %s25493_s21 = inlined_call_operand.vmem [shape: f32[8,2], index: 21, kind: output, shape index: {1}]   ;;  %s25494_s22 = inlined_call_operand.vmem [shape: f32[8,2], index: 22, kind: output, shape index: {2}]  }
   0x1   :  { %25565 = sst [smem:[#allocation130_spill]] %s25472_s0 }
   0x2   :  { %25566 = sst [smem:[#allocation131_spill]] %s25473_s1 }
   0x3   :  { %25567 = sst [smem:[#allocation132_spill]] %s25474_s2 }
   0x4   :  { %25568 = sst [smem:[#allocation133_spill]] %s25475_s3 }
   0x5   :  { %25569 = sst [smem:[#allocation134_spill]] %s25476_s4 }
   0x6   :  { %25570 = sst [smem:[#allocation135_spill]] %s25477_s5 }
   0x7   :  { %25571 = sst [smem:[#allocation136_spill]] %s25478_s6 }
   0x8   :  { %25572 = sst [smem:[#allocation137_spill]] %s25492_s20 }
   0x9   :  { %28 = vsyncpa [#allocation3], 0 }
   0xa   :  { %29 = vsyncpa [#allocation5], 0 }
   0xb   :  { %30 = vsyncpa [#allocation8], 0 }
   0xc   :  { %31 = vsyncpa [#allocation11], 0 }
   0xd   :  { %32 = vsyncpa [#allocation14], 0 }
   0xe   :  { %33 = vsyncpa [#allocation17], 0  ;;  %s22877_s3 = smov [#allocation4]   ;;  %s22878_s29 = smov [#allocation7]  }
   0xf   :  { %s55_s28 = sshll.u32 %s22877_s3, 4  ;;  %s87_s30 = sshll.u32 %s22878_s29, 4  ;;  %s56_s28 = int_to_ptr.vmem [resolvable:$true] %s55_s28  ;;  %s88_s30 = int_to_ptr.vmem [resolvable:$true] %s87_s30 }
  0x10   :  { %s22673_s4 = scalar_lea.vmem %s56_s28, 256  ;;  %p22678_p1 = scmp.lt.s32.totalorder %s56_s28, %s56_s28 }
  0x11   :  { %p22674_p0 = scmp.ne.s32.totalorder %s56_s28, %s22673_s4  ;;  %p22679_p2 = scmp.lt.s32.totalorder %s22673_s4, %s22673_s4 }
  0x13   :  { %p22680_p3 = por %p22679_p2, %p22678_p1 }
  0x15   :  { %p22681_p4 = pnand %p22680_p3, %p22674_p0 }
  0x17   :  { %22684 = shalt.err (!%p22681_p4)
}
  0x18   :  { %s22879_s0 = smov 64   ;;  %s22880_s23 = smov 4  }
  0x19   :  { %s25573_s24 = sld [smem:[#allocation133_spill]]  ;;  %s22693_s6 = scalar_lea.vmem %s88_s30, 1024 }
  0x1a   :  { %p22694_p5 = scmp.ne.s32.totalorder %s88_s30, %s22693_s6  ;;  %p22698_p6 = scmp.lt.s32.totalorder %s88_s30, %s88_s30 }
  0x1b   :  { %p22699_p7 = scmp.lt.s32.totalorder %s22693_s6, %s22693_s6 }
  0x1d   :  { %p22700_p8 = por %p22699_p7, %p22698_p6 }
  0x1f   :  { %61 = dma.hbm_to_vmem [thread:$0]  %s25573_s24, 256, %s56_s28, [#allocation5], %s22879_s0, %s22879_s0, %s22880_s23  }
  0x20   :  { %p22701_p9 = pnand %p22700_p8, %p22694_p5 }
  0x22   :  { %22704 = shalt.err (!%p22701_p9)
}
  0x23   :  { %s22881_s25 = smov 512   ;;  %s22882_s26 = smov 32  }
  0x24   :  { %93 = dma.hbm_to_vmem [thread:$0]  %s25481_s9, 1024, %s88_s30, [#allocation8], %s22881_s25, %s22881_s25, %s22882_s26  }
  0x25   :  { %s22883_s3 = smov [#allocation10]   ;;  %s22884_s4 = smov [#allocation13]  }
  0x26   :  { %s113_s29 = sshll.u32 %s22883_s3, 4  ;;  %s139_s20 = sshll.u32 %s22884_s4, 4  ;;  %s114_s29 = int_to_ptr.vmem [resolvable:$true] %s113_s29  ;;  %s140_s20 = int_to_ptr.vmem [resolvable:$true] %s139_s20 }
  0x27   :  { %s22713_s28 = scalar_lea.vmem %s114_s29, 512  ;;  %p22718_p11 = scmp.lt.s32.totalorder %s114_s29, %s114_s29 }
  0x28   :  { %p22714_p10 = scmp.ne.s32.totalorder %s114_s29, %s22713_s28  ;;  %p22719_p12 = scmp.lt.s32.totalorder %s22713_s28, %s22713_s28 }
  0x2a   :  { %p22720_p13 = por %p22719_p12, %p22718_p11 }
  0x2c   :  { %p22721_p0 = pnand %p22720_p13, %p22714_p10 }
  0x2e   :  { %22724 = shalt.err (!%p22721_p0)
}
  0x2f   :  { %119 = dma.hbm_to_vmem [thread:$0]  %s25484_s12, 512, %s114_s29, [#allocation11], %s22879_s0, %s22879_s0, %s22880_s23  }
  0x30   :  { %s22733_s9 = scalar_lea.vmem %s140_s20, 2048  ;;  %p22738_p2 = scmp.lt.s32.totalorder %s140_s20, %s140_s20 }
  0x31   :  { %p22734_p1 = scmp.ne.s32.totalorder %s140_s20, %s22733_s9  ;;  %p22739_p3 = scmp.lt.s32.totalorder %s22733_s9, %s22733_s9 }
  0x33   :  { %p22740_p4 = por %p22739_p3, %p22738_p2 }
  0x35   :  { %p22741_p5 = pnand %p22740_p4, %p22734_p1 }
  0x37   :  { %22744 = shalt.err (!%p22741_p5)
}
  0x38   :  { %145 = dma.hbm_to_vmem [thread:$0]  %s25487_s15, 2048, %s140_s20, [#allocation14], %s22881_s25, %s22881_s25, %s22882_s26  }
  0x39   :  { %s22885_s6 = smov [#allocation2]   ;;  %s22886_s27 = smov [#allocation6]  }
  0x3a   :  { %s43_s2 = sshll.u32 %s22885_s6, 4  ;;  %s71_s3 = sshll.u32 %s22886_s27, 4  ;;  %s44_s2 = int_to_ptr.vmem [resolvable:$true] %s43_s2  ;;  %s72_s3 = int_to_ptr.vmem [resolvable:$true] %s71_s3 }
  0x3b   :  { %s22753_s4 = scalar_lea.vmem %s44_s2, 65536  ;;  %p22758_p7 = scmp.lt.s32.totalorder %s44_s2, %s44_s2 }
  0x3c   :  { %p22754_p6 = scmp.ne.s32.totalorder %s44_s2, %s22753_s4  ;;  %p22759_p8 = scmp.lt.s32.totalorder %s22753_s4, %s22753_s4 }
  0x3e   :  { %p22760_p9 = por %p22759_p8, %p22758_p7 }
  0x40   :  { %p22761_p10 = pnand %p22760_p9, %p22754_p6 }
  0x42   :  { %22764 = shalt.err (!%p22761_p10)
}
  0x43   :  { %s25574_s28 = sld [smem:[#allocation132_spill]]  ;;  %s22773_s15 = scalar_lea.vmem %s72_s3, 2048 }
  0x44   :  { %p22774_p11 = scmp.ne.s32.totalorder %s72_s3, %s22773_s15  ;;  %p22778_p12 = scmp.lt.s32.totalorder %s72_s3, %s72_s3 }
  0x45   :  { %p22779_p13 = scmp.lt.s32.totalorder %s22773_s15, %s22773_s15 }
  0x47   :  { %p22780_p0 = por %p22779_p13, %p22778_p12 }
  0x49   :  { %49 = dma.hbm_to_vmem [thread:$0]  %s25574_s28, 65536, %s44_s2, [#allocation3], %s22879_s0, %s22879_s0, %s22880_s23  }
  0x4a   :  { %p22781_p1 = pnand %p22780_p0, %p22774_p11 }
  0x4c   :  { %22784 = shalt.err (!%p22781_p1)
}
  0x4d   :  { %s22887_s20 = smov 256   ;;  %s22888_s25 = smov 16  }
  0x4e   :  { %s25575_s5 = sld [smem:[#allocation136_spill]]  ;;  %s22889_s9 = smov [#allocation9]  }
  0x4f   :  { %s101_s30 = sshll.u32 %s22889_s9, 4  ;;  %s22890_s24 = smov [#allocation12]   ;;  %s102_s30 = int_to_ptr.vmem [resolvable:$true] %s101_s30 }
  0x50   :  { %s127_s6 = sshll.u32 %s22890_s24, 4  ;;  %s22793_s2 = scalar_lea.vmem %s102_s30, 256  ;;  %s128_s6 = int_to_ptr.vmem [resolvable:$true] %s127_s6 }
  0x51   :  { %p22794_p2 = scmp.ne.s32.totalorder %s102_s30, %s22793_s2  ;;  %p22798_p3 = scmp.lt.s32.totalorder %s102_s30, %s102_s30 }
  0x52   :  { %p22799_p4 = scmp.lt.s32.totalorder %s22793_s2, %s22793_s2 }
  0x54   :  { %77 = dma.hbm_to_vmem [thread:$0]  %s25575_s5, 2048, %s72_s3, [#allocation5], %s22887_s20, %s22887_s20, %s22888_s25  }
  0x55   :  { %p22800_p5 = por %p22799_p4, %p22798_p3 }
  0x57   :  { %p22801_p6 = pnand %p22800_p5, %p22794_p2 }
  0x59   :  { %22804 = shalt.err (!%p22801_p6)
}
  0x5a   :  { %s22891_s27 = smov 1   ;;  %s22813_s3 = scalar_lea.vmem %s128_s6, 4096 }
  0x5b   :  { %107 = dma.hbm_to_vmem [thread:$0]  %s25483_s11, 256, %s102_s30, [#allocation8], %s22888_s25, %s22888_s25, %s22891_s27  }
  0x5c   :  { %p22814_p7 = scmp.ne.s32.totalorder %s128_s6, %s22813_s3  ;;  %p22818_p8 = scmp.lt.s32.totalorder %s128_s6, %s128_s6 }
  0x5d   :  { %p22819_p9 = scmp.lt.s32.totalorder %s22813_s3, %s22813_s3 }
  0x5f   :  { %p22820_p10 = por %p22819_p9, %p22818_p8 }
  0x61   :  { %p22821_p11 = pnand %p22820_p10, %p22814_p7 }
  0x63   :  { %22824 = shalt.err (!%p22821_p11)
}
  0x64   :  { %133 = dma.hbm_to_vmem [thread:$0]  %s25486_s14, 4096, %s128_s6, [#allocation11], %s22879_s0, %s22879_s0, %s22880_s23  }
  0x65   :  { %s22892_s15 = smov [#allocation15]   ;;  %s22893_s1 = smov [#allocation16]  }
  0x66   :  { %s153_s26 = sshll.u32 %s22892_s15, 4  ;;  %s166_s11 = sshll.u32 %s22893_s1, 4  ;;  %s154_s26 = int_to_ptr.vmem [resolvable:$true] %s153_s26  ;;  %s167_s11 = int_to_ptr.vmem [resolvable:$true] %s166_s11 }
  0x67   :  { %s22833_s5 = scalar_lea.vmem %s154_s26, 65536  ;;  %p22838_p13 = scmp.lt.s32.totalorder %s154_s26, %s154_s26 }
  0x68   :  { %p22834_p12 = scmp.ne.s32.totalorder %s154_s26, %s22833_s5  ;;  %p22839_p0 = scmp.lt.s32.totalorder %s22833_s5, %s22833_s5 }
  0x6a   :  { %p22840_p1 = por %p22839_p0, %p22838_p13 }
  0x6c   :  { %p22841_p2 = pnand %p22840_p1, %p22834_p12 }
  0x6e   :  { %22844 = shalt.err (!%p22841_p2)
}
  0x6f   :  { %159 = dma.hbm_to_vmem [thread:$0]  %s25489_s17, 65536, %s154_s26, [#allocation14], %s22887_s20, %s22887_s20, %s22888_s25  }
  0x70   :  { %s22853_s14 = scalar_lea.vmem %s167_s11, 128  ;;  %p22858_p4 = scmp.lt.s32.totalorder %s167_s11, %s167_s11 }
  0x71   :  { %p22854_p3 = scmp.ne.s32.totalorder %s167_s11, %s22853_s14  ;;  %p22859_p5 = scmp.lt.s32.totalorder %s22853_s14, %s22853_s14 }
  0x73   :  { %p22860_p6 = por %p22859_p5, %p22858_p4 }
  0x75   :  { %p22861_p7 = pnand %p22860_p6, %p22854_p3 }
  0x77   :  { %22864 = shalt.err (!%p22861_p7)
}
  0x78   :  { %169 = dma.hbm_to_vmem [thread:$0]  %s25490_s18, 128, %s167_s11, [#allocation17]  }
  0x79   :  { %22865 = dma.done.wait [#allocation3], 65536  }
  0x7a   :  { %22866 = vsyncadd [#allocation3], 4294901760 }
  0x7b   :  { %22867 = dma.done.wait [#allocation5], 2304  }
  0x7c   :  { %22868 = vsyncadd [#allocation5], 4294964992 }
  0x7d   :  { %22869 = dma.done.wait [#allocation8], 1280  }
  0x7e   :  { %22870 = vsyncadd [#allocation8], 4294966016 }
  0x7f   :  { %22871 = dma.done.wait [#allocation11], 4608  }
  0x80   :  { %22872 = vsyncadd [#allocation11], 4294962688 }
  0x81   :  { %22873 = dma.done.wait [#allocation14], 67584  }
  0x82   :  { %22874 = vsyncadd [#allocation14], 4294899712 }
  0x83   :  { %22875 = dma.done.wait [#allocation17], 128  }
  0x84   :  { %22876 = vsyncadd [#allocation17], 4294967168  ;;  %v21148_v0 = vld [vmem:[#allocation2 + $0x78] sm:$0xff]   ;;  %v21152_v4 = vld [vmem:[#allocation2 + $0x70] sm:$0xff]   ;;  %s25576_s20 = sld [smem:[#allocation130_spill]]  ;;  %vm7870_vm0 = vcmask 261120  }
  0x85   :  { %v21149_v1 = vld [vmem:[#allocation2 + $0xf8] sm:$0xff]   ;;  %18891 = vmatprep.subr.bf16.mxu0 %v21148_v0  ;;  %v21153_v5 = vld [vmem:[#allocation2 + $0xf0] sm:$0xff]   ;;  %v21156_v8 = vld [vmem:[#allocation2 + $0x68] sm:$0xff]   ;;  %s25577_s27 = sld [smem:[#allocation134_spill]]  ;;  %vm9480_vm1 = vcmask 1040384   ;;  %vm22896_vm2 = vmmov 0  }
  0x86   :  { %v21150_v2 = vld [vmem:[#allocation2 + $0x38] sm:$0xff]   ;;  %18913 = vmatprep.subr.bf16.mxu1 %v21149_v1  ;;  %v21154_v6 = vld [vmem:[#allocation2 + $0x30] sm:$0xff]   ;;  %v21157_v9 = vld [vmem:[#allocation2 + $0xe8] sm:$0xff]   ;;  %s25578_s18 = sld [smem:[#allocation135_spill]]  ;;  %vm9466_vm3 = vcmask 15360  }
  0x87   :  { %v21151_v3 = vld [vmem:[#allocation2 + $0xb8] sm:$0xff]   ;;  %18892 = vmatpush3.bf16.msra.mxu0 %v21150_v2  ;;  %v21155_v7 = vld [vmem:[#allocation2 + $0xb0] sm:$0xff]   ;;  %v21158_v10 = vld [vmem:[#allocation2 + $0x28] sm:$0xff]   ;;  %s25870_s14 = sld [smem:[#allocation137_spill]] }
  0x88   :  { %18914 = vmatpush3.bf16.msra.mxu1 %v21151_v3  ;;  %18893 = vmatprep.subr.bf16.mxu0 %v21152_v4  ;;  %v21159_v11 = vld [vmem:[#allocation2 + $0xa8] sm:$0xff]   ;;  %v21160_v12 = vld [vmem:[#allocation2 + $0x60] sm:$0xff]   ;;  %v21164_v16 = vld [vmem:[#allocation2 + $0x58] sm:$0xff]  }
  0x89   :  { %18915 = vmatprep.subr.bf16.mxu1 %v21153_v5  ;;  %v21161_v13 = vld [vmem:[#allocation2 + $0xe0] sm:$0xff]   ;;  %v21165_v17 = vld [vmem:[#allocation2 + $0xd8] sm:$0xff]   ;;  %v21168_v20 = vld [vmem:[#allocation2 + $0x50] sm:$0xff]  }
  0x8a   :  { %v21162_v14 = vld [vmem:[#allocation2 + $0x20] sm:$0xff]   ;;  %v21166_v18 = vld [vmem:[#allocation2 + $0x18] sm:$0xff]   ;;  %v21169_v21 = vld [vmem:[#allocation2 + $0xd0] sm:$0xff]  }
  0x8b   :  { %18894 = vmatpush3.bf16.msra.mxu0 %v21154_v6  ;;  %v21163_v15 = vld [vmem:[#allocation2 + $0xa0] sm:$0xff]   ;;  %v21167_v19 = vld [vmem:[#allocation2 + $0x98] sm:$0xff]   ;;  %v21170_v22 = vld [vmem:[#allocation2 + $0x10] sm:$0xff]  }
  0x8c   :  { %18916 = vmatpush3.bf16.msra.mxu1 %v21155_v7  ;;  %18895 = vmatprep.subr.bf16.mxu0 %v21156_v8  ;;  %v21171_v23 = vld [vmem:[#allocation2 + $0x90] sm:$0xff]   ;;  %v21172_v24 = vld [vmem:[#allocation2 + $0x48] sm:$0xff]   ;;  %v21176_v28 = vld [vmem:[#allocation2 + $0x40] sm:$0xff]  }
  0x8d   :  { %18917 = vmatprep.subr.bf16.mxu1 %v21157_v9  ;;  %v21173_v25 = vld [vmem:[#allocation2 + $0xc8] sm:$0xff]   ;;  %v21177_v29 = vld [vmem:[#allocation2 + $0xc0] sm:$0xff]   ;;  %v21184_v38 = vld [vmem:[#allocation2 + $0x178] sm:$0xff]  }
  0x8e   :  { %v21174_v26 = vld [vmem:[#allocation2 + $0x8] sm:$0xff]   ;;  %v21178_v30 = vld [vmem:[#allocation2] sm:$0xff]   ;;  %v21185_v39 = vld [vmem:[#allocation2 + $0x1f8] sm:$0xff]  }
  0x8f   :  { %18896 = vmatpush3.bf16.msra.mxu0 %v21158_v10  ;;  %v21175_v27 = vld [vmem:[#allocation2 + $0x88] sm:$0xff]   ;;  %v21179_v31 = vld [vmem:[#allocation2 + $0x80] sm:$0xff]   ;;  %v21186_v40 = vld [vmem:[#allocation2 + $0x138] sm:$0xff]  }
  0x90   :  { %18918 = vmatpush3.bf16.msra.mxu1 %v21159_v11  ;;  %18897 = vmatprep.subr.bf16.mxu0 %v21160_v12  ;;  %v203_v32 = vld [vmem:[%s25576_s20] sm:$0xff]  ;;  %v204_v33 = vld [vmem:[%s25576_s20 + $0x8] sm:$0xff]  ;;  %v21187_v41 = vld [vmem:[#allocation2 + $0x1b8] sm:$0xff]  }
  0x91   :  { %18919 = vmatprep.subr.bf16.mxu1 %v21161_v13  ;;  %v23069_v34 = vcombine.high %v203_v32, %v203_v32  ;;  %v23071_v35 = vcombine.high %v204_v33, %v204_v33  ;;  %v23073_v36 = vcombine.low %v203_v32, %v203_v32  ;;  %v23075_v37 = vcombine.low %v204_v33, %v204_v33  ;;  %v21188_v42 = vld [vmem:[#allocation2 + $0x170] sm:$0xff]   ;;  %v21192_v46 = vld [vmem:[#allocation2 + $0x168] sm:$0xff]   ;;  %v21196_v50 = vld [vmem:[#allocation2 + $0x160] sm:$0xff]  }
  0x92   :  { %v21189_v43 = vld [vmem:[#allocation2 + $0x1f0] sm:$0xff]   ;;  %v21193_v47 = vld [vmem:[#allocation2 + $0x1e8] sm:$0xff]   ;;  %v21197_v51 = vld [vmem:[#allocation2 + $0x1e0] sm:$0xff]  }
  0x93   :  { %18898 = vmatpush3.bf16.msra.mxu0 %v21162_v14  ;;  %507 = vmatprep.mubr.bf16.mxu0 %v23069_v34  ;;  %v21190_v44 = vld [vmem:[#allocation2 + $0x130] sm:$0xff]   ;;  %v21194_v48 = vld [vmem:[#allocation2 + $0x128] sm:$0xff]   ;;  %v21198_v52 = vld [vmem:[#allocation2 + $0x120] sm:$0xff]  }
  0x94   :  { %18920 = vmatpush3.bf16.msra.mxu1 %v21163_v15  ;;  %18899 = vmatprep.subr.bf16.mxu0 %v21164_v16  ;;  %v21191_v45 = vld [vmem:[#allocation2 + $0x1b0] sm:$0xff]   ;;  %v21195_v49 = vld [vmem:[#allocation2 + $0x1a8] sm:$0xff]   ;;  %v21199_v53 = vld [vmem:[#allocation2 + $0x1a0] sm:$0xff]  }
  0x95   :  { %18921 = vmatprep.subr.bf16.mxu1 %v21165_v17  ;;  %547 = vmatprep.mubr.bf16.mxu1 %v23071_v35  ;;  %v21200_v54 = vld [vmem:[#allocation2 + $0x158] sm:$0xff]   ;;  %v21204_v58 = vld [vmem:[#allocation2 + $0x150] sm:$0xff]   ;;  %v21208_v62 = vld [vmem:[#allocation2 + $0x148] sm:$0xff]  }
  0x96   :  { %v21201_v55 = vld [vmem:[#allocation2 + $0x1d8] sm:$0xff]   ;;  %v21205_v59 = vld [vmem:[#allocation2 + $0x1d0] sm:$0xff]   ;;  %v21209_v63 = vld [vmem:[#allocation2 + $0x1c8] sm:$0xff]  }
  0x97   :  { %18900 = vmatpush3.bf16.msra.mxu0 %v21166_v18  ;;  %v21202_v56 = vld [vmem:[#allocation2 + $0x118] sm:$0xff]   ;;  %v21206_v60 = vld [vmem:[#allocation2 + $0x110] sm:$0xff]   ;;  %v21210_v0 = vld [vmem:[#allocation2 + $0x108] sm:$0xff]  }
  0x98   :  { %18922 = vmatpush3.bf16.msra.mxu1 %v21167_v19  ;;  %18901 = vmatprep.subr.bf16.mxu0 %v21168_v20  ;;  %v21203_v57 = vld [vmem:[#allocation2 + $0x198] sm:$0xff]   ;;  %v21207_v61 = vld [vmem:[#allocation2 + $0x190] sm:$0xff]   ;;  %v21211_v1 = vld [vmem:[#allocation2 + $0x188] sm:$0xff]  }
  0x99   :  { %18923 = vmatprep.subr.bf16.mxu1 %v21169_v21  ;;  %v21212_v2 = vld [vmem:[#allocation2 + $0x140] sm:$0xff]   ;;  %v21216_v6 = vld [vmem:[#allocation2 + $0x278] sm:$0xff]   ;;  %v21220_v10 = vld [vmem:[#allocation2 + $0x270] sm:$0xff]  }
  0x9a   :  { %v21213_v3 = vld [vmem:[#allocation2 + $0x1c0] sm:$0xff]   ;;  %v21217_v7 = vld [vmem:[#allocation2 + $0x2f8] sm:$0xff]   ;;  %v21221_v11 = vld [vmem:[#allocation2 + $0x2f0] sm:$0xff]  }
  0x9b   :  { %18902 = vmatpush3.bf16.msra.mxu0 %v21170_v22  ;;  %v21214_v4 = vld [vmem:[#allocation2 + $0x100] sm:$0xff]   ;;  %v21218_v8 = vld [vmem:[#allocation2 + $0x238] sm:$0xff]   ;;  %v21222_v12 = vld [vmem:[#allocation2 + $0x230] sm:$0xff]  }
  0x9c   :  { %18924 = vmatpush3.bf16.msra.mxu1 %v21171_v23  ;;  %18903 = vmatprep.subr.bf16.mxu0 %v21172_v24  ;;  %v21215_v5 = vld [vmem:[#allocation2 + $0x180] sm:$0xff]   ;;  %v21219_v9 = vld [vmem:[#allocation2 + $0x2b8] sm:$0xff]   ;;  %v21223_v13 = vld [vmem:[#allocation2 + $0x2b0] sm:$0xff]  }
  0x9d   :  { %18925 = vmatprep.subr.bf16.mxu1 %v21173_v25  ;;  %v21224_v14 = vld [vmem:[#allocation2 + $0x268] sm:$0xff]   ;;  %v21228_v18 = vld [vmem:[#allocation2 + $0x260] sm:$0xff]   ;;  %v21232_v22 = vld [vmem:[#allocation2 + $0x258] sm:$0xff]  }
  0x9e   :  { %v21225_v15 = vld [vmem:[#allocation2 + $0x2e8] sm:$0xff]   ;;  %v21229_v19 = vld [vmem:[#allocation2 + $0x2e0] sm:$0xff]   ;;  %v21233_v23 = vld [vmem:[#allocation2 + $0x2d8] sm:$0xff]  }
  0x9f   :  { %18904 = vmatpush3.bf16.msra.mxu0 %v21174_v26  ;;  %v21226_v16 = vld [vmem:[#allocation2 + $0x228] sm:$0xff]   ;;  %v21230_v20 = vld [vmem:[#allocation2 + $0x220] sm:$0xff]   ;;  %v21234_v24 = vld [vmem:[#allocation2 + $0x218] sm:$0xff]  }
  0xa0   :  { %18926 = vmatpush3.bf16.msra.mxu1 %v21175_v27  ;;  %18905 = vmatprep.subr.bf16.mxu0 %v21176_v28  ;;  %v21227_v17 = vld [vmem:[#allocation2 + $0x2a8] sm:$0xff]   ;;  %v21231_v21 = vld [vmem:[#allocation2 + $0x2a0] sm:$0xff]   ;;  %v21235_v25 = vld [vmem:[#allocation2 + $0x298] sm:$0xff]  }
  0xa1   :  { %18927 = vmatprep.subr.bf16.mxu1 %v21177_v29  ;;  %v21236_v26 = vld [vmem:[#allocation2 + $0x250] sm:$0xff]   ;;  %v21242_v32 = vld [vmem:[#allocation2 + $0x208] sm:$0xff]  }
  0xa2   :  { %v21237_v27 = vld [vmem:[#allocation2 + $0x2d0] sm:$0xff]   ;;  %v21243_v33 = vld [vmem:[#allocation2 + $0x288] sm:$0xff]  }
  0xa3   :  { %18906 = vmatpush3.bf16.msra.mxu0 %v21178_v30  ;;  %v21238_v28 = vld [vmem:[#allocation2 + $0x210] sm:$0xff]   ;;  %v21240_v30 = vld [vmem:[#allocation2 + $0x248] sm:$0xff]  }
  0xa4   :  { %18928 = vmatpush3.bf16.msra.mxu1 %v21179_v31  ;;  %18935 = vmatprep.subr.bf16.mxu0 %v21184_v38  ;;  %v21239_v29 = vld [vmem:[#allocation2 + $0x290] sm:$0xff]   ;;  %v21241_v31 = vld [vmem:[#allocation2 + $0x2c8] sm:$0xff]   ;;  %v21244_v38 = vld [vmem:[#allocation2 + $0x240] sm:$0xff]  }
  0xa5   :  { %18957 = vmatprep.subr.bf16.mxu1 %v21185_v39  ;;  %v21245_v39 = vld [vmem:[#allocation2 + $0x2c0] sm:$0xff]  }
  0xa6   :  { %508 = vmatmul.mubr.bf16.vlgmr.msra.gmra.mxu0 %v23073_v36 }
  0xa7   :  { %548 = vmatmul.mubr.bf16.vlgmr.msra.gmra.mxu1 %v23075_v37  ;;  %18936 = vmatpush3.bf16.msra.mxu0 %v21186_v40  ;;  %v21246_v40 = vld [vmem:[#allocation2 + $0x200] sm:$0xff]  }
  0xa8   :  { %18958 = vmatpush3.bf16.msra.mxu1 %v21187_v41  ;;  %18937 = vmatprep.subr.bf16.mxu0 %v21188_v42  ;;  %v21247_v41 = vld [vmem:[#allocation2 + $0x280] sm:$0xff]   ;;  %v21248_v42 = vld [vmem:[#allocation2 + $0x378] sm:$0xff]  }
  0xa9   :  { %844 = vmatprep.mubr.bf16.mxu0 %v23069_v34  ;;  %18959 = vmatprep.subr.bf16.mxu1 %v21189_v43  ;;  %v21249_v43 = vld [vmem:[#allocation2 + $0x3f8] sm:$0xff]  }
  0xaa   :  { %884 = vmatprep.mubr.bf16.mxu1 %v23071_v35 }
  0xab   :  { %18938 = vmatpush3.bf16.msra.mxu0 %v21190_v44  ;;  %v21250_v44 = vld [vmem:[#allocation2 + $0x338] sm:$0xff]  }
  0xac   :  { %18960 = vmatpush3.bf16.msra.mxu1 %v21191_v45  ;;  %18939 = vmatprep.subr.bf16.mxu0 %v21192_v46  ;;  %v21251_v45 = vld [vmem:[#allocation2 + $0x3b8] sm:$0xff]   ;;  %v21252_v46 = vld [vmem:[#allocation2 + $0x370] sm:$0xff]  }
  0xad   :  { %18961 = vmatprep.subr.bf16.mxu1 %v21193_v47  ;;  %v21253_v47 = vld [vmem:[#allocation2 + $0x3f0] sm:$0xff]  }
  0xaf   :  { %18940 = vmatpush3.bf16.msra.mxu0 %v21194_v48  ;;  %v21254_v48 = vld [vmem:[#allocation2 + $0x330] sm:$0xff]  }
  0xb0   :  { %18962 = vmatpush3.bf16.msra.mxu1 %v21195_v49  ;;  %18941 = vmatprep.subr.bf16.mxu0 %v21196_v50  ;;  %v21255_v49 = vld [vmem:[#allocation2 + $0x3b0] sm:$0xff]   ;;  %v21256_v50 = vld [vmem:[#allocation2 + $0x368] sm:$0xff]  }
  0xb1   :  { %18963 = vmatprep.subr.bf16.mxu1 %v21197_v51  ;;  %v21257_v51 = vld [vmem:[#allocation2 + $0x3e8] sm:$0xff]  }
  0xb3   :  { %18942 = vmatpush3.bf16.msra.mxu0 %v21198_v52  ;;  %v21258_v52 = vld [vmem:[#allocation2 + $0x328] sm:$0xff]  }
  0xb4   :  { %18964 = vmatpush3.bf16.msra.mxu1 %v21199_v53  ;;  %18943 = vmatprep.subr.bf16.mxu0 %v21200_v54  ;;  %v21259_v53 = vld [vmem:[#allocation2 + $0x3a8] sm:$0xff]   ;;  %v21260_v54 = vld [vmem:[#allocation2 + $0x360] sm:$0xff]  }
  0xb5   :  { %18965 = vmatprep.subr.bf16.mxu1 %v21201_v55  ;;  %v21261_v55 = vld [vmem:[#allocation2 + $0x3e0] sm:$0xff]  }
  0xb7   :  { %18944 = vmatpush3.bf16.msra.mxu0 %v21202_v56  ;;  %v21262_v56 = vld [vmem:[#allocation2 + $0x320] sm:$0xff]  }
  0xb8   :  { %18966 = vmatpush3.bf16.msra.mxu1 %v21203_v57  ;;  %18945 = vmatprep.subr.bf16.mxu0 %v21204_v58  ;;  %v21263_v57 = vld [vmem:[#allocation2 + $0x3a0] sm:$0xff]   ;;  %v21264_v58 = vld [vmem:[#allocation2 + $0x358] sm:$0xff]  }
  0xb9   :  { %18967 = vmatprep.subr.bf16.mxu1 %v21205_v59  ;;  %v21265_v59 = vld [vmem:[#allocation2 + $0x3d8] sm:$0xff]  }
  0xbb   :  { %18946 = vmatpush3.bf16.msra.mxu0 %v21206_v60  ;;  %v21266_v60 = vld [vmem:[#allocation2 + $0x318] sm:$0xff]  }
  0xbc   :  { %18968 = vmatpush3.bf16.msra.mxu1 %v21207_v61  ;;  %18947 = vmatprep.subr.bf16.mxu0 %v21208_v62  ;;  %v21267_v61 = vld [vmem:[#allocation2 + $0x398] sm:$0xff]   ;;  %v21268_v62 = vld [vmem:[#allocation2 + $0x350] sm:$0xff]  }
  0xbd   :  { %18969 = vmatprep.subr.bf16.mxu1 %v21209_v63  ;;  %v21269_v63 = vld [vmem:[#allocation2 + $0x3d0] sm:$0xff]  }
  0xbf   :  { %18948 = vmatpush3.bf16.msra.mxu0 %v21210_v0  ;;  %v21270_v0 = vld [vmem:[#allocation2 + $0x310] sm:$0xff]  }
  0xc0   :  { %18970 = vmatpush3.bf16.msra.mxu1 %v21211_v1  ;;  %18949 = vmatprep.subr.bf16.mxu0 %v21212_v2  ;;  %v21271_v1 = vld [vmem:[#allocation2 + $0x390] sm:$0xff]   ;;  %v21272_v2 = vld [vmem:[#allocation2 + $0x348] sm:$0xff]  }
  0xc1   :  { %18971 = vmatprep.subr.bf16.mxu1 %v21213_v3  ;;  %v21273_v3 = vld [vmem:[#allocation2 + $0x3c8] sm:$0xff]  }
  0xc3   :  { %18950 = vmatpush3.bf16.msra.mxu0 %v21214_v4  ;;  %v21274_v4 = vld [vmem:[#allocation2 + $0x308] sm:$0xff]  }
  0xc4   :  { %18972 = vmatpush3.bf16.msra.mxu1 %v21215_v5  ;;  %18979 = vmatprep.subr.bf16.mxu0 %v21216_v6  ;;  %v21275_v5 = vld [vmem:[#allocation2 + $0x388] sm:$0xff]   ;;  %v21276_v6 = vld [vmem:[#allocation2 + $0x340] sm:$0xff]  }
  0xc5   :  { %19001 = vmatprep.subr.bf16.mxu1 %v21217_v7  ;;  %v21277_v7 = vld [vmem:[#allocation2 + $0x3c0] sm:$0xff]  }
  0xc6   :  { %845 = vmatmul.mubr.bf16.vlgmr.msra.gmra.mxu0 %v23073_v36 }
  0xc7   :  { %885 = vmatmul.mubr.bf16.vlgmr.msra.gmra.mxu1 %v23075_v37  ;;  %18980 = vmatpush3.bf16.msra.mxu0 %v21218_v8  ;;  %v21278_v8 = vld [vmem:[#allocation2 + $0x300] sm:$0xff]  }
  0xc8   :  { %19002 = vmatpush3.bf16.msra.mxu1 %v21219_v9  ;;  %18981 = vmatprep.subr.bf16.mxu0 %v21220_v10  ;;  %v21279_v9 = vld [vmem:[#allocation2 + $0x380] sm:$0xff]   ;;  %v21280_v10 = vld [vmem:[#allocation2 + $0x478] sm:$0xff]  }
  0xc9   :  { %1181 = vmatprep.mubr.bf16.mxu0 %v23069_v34  ;;  %19003 = vmatprep.subr.bf16.mxu1 %v21221_v11  ;;  %v21281_v11 = vld [vmem:[#allocation2 + $0x4f8] sm:$0xff]  }
  0xca   :  { %1221 = vmatprep.mubr.bf16.mxu1 %v23071_v35 }
  0xcb   :  { %18982 = vmatpush3.bf16.msra.mxu0 %v21222_v12  ;;  %v21282_v12 = vld [vmem:[#allocation2 + $0x438] sm:$0xff]  }
  0xcc   :  { %19004 = vmatpush3.bf16.msra.mxu1 %v21223_v13  ;;  %18983 = vmatprep.subr.bf16.mxu0 %v21224_v14  ;;  %v21283_v13 = vld [vmem:[#allocation2 + $0x4b8] sm:$0xff]   ;;  %v21284_v14 = vld [vmem:[#allocation2 + $0x470] sm:$0xff]  }
  0xcd   :  { %19005 = vmatprep.subr.bf16.mxu1 %v21225_v15  ;;  %v21285_v15 = vld [vmem:[#allocation2 + $0x4f0] sm:$0xff]  }
  0xcf   :  { %18984 = vmatpush3.bf16.msra.mxu0 %v21226_v16  ;;  %v21286_v16 = vld [vmem:[#allocation2 + $0x430] sm:$0xff]  }
  0xd0   :  { %19006 = vmatpush3.bf16.msra.mxu1 %v21227_v17  ;;  %18985 = vmatprep.subr.bf16.mxu0 %v21228_v18  ;;  %v21287_v17 = vld [vmem:[#allocation2 + $0x4b0] sm:$0xff]   ;;  %v21288_v18 = vld [vmem:[#allocation2 + $0x468] sm:$0xff]  }
  0xd1   :  { %19007 = vmatprep.subr.bf16.mxu1 %v21229_v19  ;;  %v21289_v19 = vld [vmem:[#allocation2 + $0x4e8] sm:$0xff]  }
  0xd3   :  { %18986 = vmatpush3.bf16.msra.mxu0 %v21230_v20  ;;  %v21290_v20 = vld [vmem:[#allocation2 + $0x428] sm:$0xff]  }
  0xd4   :  { %19008 = vmatpush3.bf16.msra.mxu1 %v21231_v21  ;;  %18987 = vmatprep.subr.bf16.mxu0 %v21232_v22  ;;  %v21291_v21 = vld [vmem:[#allocation2 + $0x4a8] sm:$0xff]   ;;  %v21292_v22 = vld [vmem:[#allocation2 + $0x460] sm:$0xff]  }
  0xd5   :  { %19009 = vmatprep.subr.bf16.mxu1 %v21233_v23  ;;  %v21293_v23 = vld [vmem:[#allocation2 + $0x4e0] sm:$0xff]  }
  0xd7   :  { %18988 = vmatpush3.bf16.msra.mxu0 %v21234_v24  ;;  %v21294_v24 = vld [vmem:[#allocation2 + $0x420] sm:$0xff]  }
  0xd8   :  { %19010 = vmatpush3.bf16.msra.mxu1 %v21235_v25  ;;  %18989 = vmatprep.subr.bf16.mxu0 %v21236_v26  ;;  %v21295_v25 = vld [vmem:[#allocation2 + $0x4a0] sm:$0xff]   ;;  %v21296_v26 = vld [vmem:[#allocation2 + $0x458] sm:$0xff]  }
  0xd9   :  { %19011 = vmatprep.subr.bf16.mxu1 %v21237_v27  ;;  %v21297_v27 = vld [vmem:[#allocation2 + $0x4d8] sm:$0xff]  }
  0xdb   :  { %18990 = vmatpush3.bf16.msra.mxu0 %v21238_v28  ;;  %v21298_v28 = vld [vmem:[#allocation2 + $0x418] sm:$0xff]  }
  0xdc   :  { %19012 = vmatpush3.bf16.msra.mxu1 %v21239_v29  ;;  %18991 = vmatprep.subr.bf16.mxu0 %v21240_v30  ;;  %v21299_v29 = vld [vmem:[#allocation2 + $0x498] sm:$0xff]   ;;  %v21300_v30 = vld [vmem:[#allocation2 + $0x450] sm:$0xff]  }
  0xdd   :  { %19013 = vmatprep.subr.bf16.mxu1 %v21241_v31  ;;  %v21301_v31 = vld [vmem:[#allocation2 + $0x4d0] sm:$0xff]  }
  0xdf   :  { %18992 = vmatpush3.bf16.msra.mxu0 %v21242_v32  ;;  %v21302_v32 = vld [vmem:[#allocation2 + $0x410] sm:$0xff]  }
  0xe0   :  { %19014 = vmatpush3.bf16.msra.mxu1 %v21243_v33  ;;  %18993 = vmatprep.subr.bf16.mxu0 %v21244_v38  ;;  %v21303_v33 = vld [vmem:[#allocation2 + $0x490] sm:$0xff]   ;;  %v21304_v38 = vld [vmem:[#allocation2 + $0x448] sm:$0xff]  }
  0xe1   :  { %19015 = vmatprep.subr.bf16.mxu1 %v21245_v39  ;;  %v21305_v39 = vld [vmem:[#allocation2 + $0x4c8] sm:$0xff]  }
  0xe3   :  { %18994 = vmatpush3.bf16.msra.mxu0 %v21246_v40  ;;  %v21306_v40 = vld [vmem:[#allocation2 + $0x408] sm:$0xff]  }
  0xe4   :  { %19016 = vmatpush3.bf16.msra.mxu1 %v21247_v41  ;;  %19023 = vmatprep.subr.bf16.mxu0 %v21248_v42  ;;  %v21307_v41 = vld [vmem:[#allocation2 + $0x488] sm:$0xff]   ;;  %v21308_v42 = vld [vmem:[#allocation2 + $0x440] sm:$0xff]  }
  0xe5   :  { %19045 = vmatprep.subr.bf16.mxu1 %v21249_v43  ;;  %v21309_v43 = vld [vmem:[#allocation2 + $0x4c0] sm:$0xff]  }
  0xe6   :  { %1182 = vmatmul.mubr.bf16.vlgmr.msra.gmra.mxu0 %v23073_v36 }
  0xe7   :  { %1222 = vmatmul.mubr.bf16.vlgmr.msra.gmra.mxu1 %v23075_v37  ;;  %19024 = vmatpush3.bf16.msra.mxu0 %v21250_v44  ;;  %v21310_v44 = vld [vmem:[#allocation2 + $0x400] sm:$0xff]  }
  0xe8   :  { %19046 = vmatpush3.bf16.msra.mxu1 %v21251_v45  ;;  %19025 = vmatprep.subr.bf16.mxu0 %v21252_v46  ;;  %v21311_v45 = vld [vmem:[#allocation2 + $0x480] sm:$0xff]   ;;  %v21312_v46 = vld [vmem:[#allocation2 + $0x578] sm:$0xff]  }
  0xe9   :  { %1518 = vmatprep.mubr.bf16.mxu0 %v23069_v34  ;;  %19047 = vmatprep.subr.bf16.mxu1 %v21253_v47  ;;  %v21313_v47 = vld [vmem:[#allocation2 + $0x5f8] sm:$0xff]  }
  0xea   :  { %1558 = vmatprep.mubr.bf16.mxu1 %v23071_v35 }
  0xeb   :  { %19026 = vmatpush3.bf16.msra.mxu0 %v21254_v48  ;;  %v21314_v48 = vld [vmem:[#allocation2 + $0x538] sm:$0xff]  }
  0xec   :  { %19048 = vmatpush3.bf16.msra.mxu1 %v21255_v49  ;;  %19027 = vmatprep.subr.bf16.mxu0 %v21256_v50  ;;  %v21315_v49 = vld [vmem:[#allocation2 + $0x5b8] sm:$0xff]   ;;  %v21316_v50 = vld [vmem:[#allocation2 + $0x570] sm:$0xff]  }
  0xed   :  { %19049 = vmatprep.subr.bf16.mxu1 %v21257_v51  ;;  %v21317_v51 = vld [vmem:[#allocation2 + $0x5f0] sm:$0xff]  }
  0xef   :  { %19028 = vmatpush3.bf16.msra.mxu0 %v21258_v52  ;;  %v21318_v52 = vld [vmem:[#allocation2 + $0x530] sm:$0xff]  }
  0xf0   :  { %19050 = vmatpush3.bf16.msra.mxu1 %v21259_v53  ;;  %19029 = vmatprep.subr.bf16.mxu0 %v21260_v54  ;;  %v21319_v53 = vld [vmem:[#allocation2 + $0x5b0] sm:$0xff]   ;;  %v21320_v54 = vld [vmem:[#allocation2 + $0x568] sm:$0xff]  }
  0xf1   :  { %19051 = vmatprep.subr.bf16.mxu1 %v21261_v55  ;;  %v21321_v55 = vld [vmem:[#allocation2 + $0x5e8] sm:$0xff]  }
  0xf3   :  { %19030 = vmatpush3.bf16.msra.mxu0 %v21262_v56  ;;  %v21322_v56 = vld [vmem:[#allocation2 + $0x528] sm:$0xff]  }
  0xf4   :  { %19052 = vmatpush3.bf16.msra.mxu1 %v21263_v57  ;;  %19031 = vmatprep.subr.bf16.mxu0 %v21264_v58  ;;  %v21323_v57 = vld [vmem:[#allocation2 + $0x5a8] sm:$0xff]   ;;  %v21324_v58 = vld [vmem:[#allocation2 + $0x560] sm:$0xff]  }
  0xf5   :  { %19053 = vmatprep.subr.bf16.mxu1 %v21265_v59  ;;  %v21325_v59 = vld [vmem:[#allocation2 + $0x5e0] sm:$0xff]  }
  0xf7   :  { %19032 = vmatpush3.bf16.msra.mxu0 %v21266_v60  ;;  %v21326_v60 = vld [vmem:[#allocation2 + $0x520] sm:$0xff]  }
  0xf8   :  { %19054 = vmatpush3.bf16.msra.mxu1 %v21267_v61  ;;  %19033 = vmatprep.subr.bf16.mxu0 %v21268_v62  ;;  %v21327_v61 = vld [vmem:[#allocation2 + $0x5a0] sm:$0xff]   ;;  %v21328_v62 = vld [vmem:[#allocation2 + $0x558] sm:$0xff]  }
  0xf9   :  { %19055 = vmatprep.subr.bf16.mxu1 %v21269_v63  ;;  %v21329_v63 = vld [vmem:[#allocation2 + $0x5d8] sm:$0xff]  }
  0xfb   :  { %19034 = vmatpush3.bf16.msra.mxu0 %v21270_v0  ;;  %v21330_v0 = vld [vmem:[#allocation2 + $0x518] sm:$0xff]  }
  0xfc   :  { %19056 = vmatpush3.bf16.msra.mxu1 %v21271_v1  ;;  %19035 = vmatprep.subr.bf16.mxu0 %v21272_v2  ;;  %v21331_v1 = vld [vmem:[#allocation2 + $0x598] sm:$0xff]   ;;  %v21332_v2 = vld [vmem:[#allocation2 + $0x550] sm:$0xff]  }
  0xfd   :  { %19057 = vmatprep.subr.bf16.mxu1 %v21273_v3  ;;  %v21333_v3 = vld [vmem:[#allocation2 + $0x5d0] sm:$0xff]  }
  0xff   :  { %19036 = vmatpush3.bf16.msra.mxu0 %v21274_v4  ;;  %v21334_v4 = vld [vmem:[#allocation2 + $0x510] sm:$0xff]  }
 0x100   :  { %19058 = vmatpush3.bf16.msra.mxu1 %v21275_v5  ;;  %19037 = vmatprep.subr.bf16.mxu0 %v21276_v6  ;;  %v21335_v5 = vld [vmem:[#allocation2 + $0x590] sm:$0xff]   ;;  %v21336_v6 = vld [vmem:[#allocation2 + $0x548] sm:$0xff]  }
 0x101   :  { %19059 = vmatprep.subr.bf16.mxu1 %v21277_v7  ;;  %v21337_v7 = vld [vmem:[#allocation2 + $0x5c8] sm:$0xff]  }
 0x103   :  { %19038 = vmatpush3.bf16.msra.mxu0 %v21278_v8  ;;  %v21338_v8 = vld [vmem:[#allocation2 + $0x508] sm:$0xff]  }
 0x104   :  { %19060 = vmatpush3.bf16.msra.mxu1 %v21279_v9  ;;  %19067 = vmatprep.subr.bf16.mxu0 %v21280_v10  ;;  %v21339_v9 = vld [vmem:[#allocation2 + $0x588] sm:$0xff]   ;;  %v21340_v10 = vld [vmem:[#allocation2 + $0x540] sm:$0xff]  }
 0x105   :  { %19089 = vmatprep.subr.bf16.mxu1 %v21281_v11  ;;  %v21341_v11 = vld [vmem:[#allocation2 + $0x5c0] sm:$0xff]  }
 0x106   :  { %1519 = vmatmul.mubr.bf16.vlgmr.msra.gmra.mxu0 %v23073_v36 }
 0x107   :  { %1559 = vmatmul.mubr.bf16.vlgmr.msra.gmra.mxu1 %v23075_v37  ;;  %19068 = vmatpush3.bf16.msra.mxu0 %v21282_v12  ;;  %v21342_v12 = vld [vmem:[#allocation2 + $0x500] sm:$0xff]  }
 0x108   :  { %19090 = vmatpush3.bf16.msra.mxu1 %v21283_v13  ;;  %19069 = vmatprep.subr.bf16.mxu0 %v21284_v14  ;;  %v21343_v13 = vld [vmem:[#allocation2 + $0x580] sm:$0xff]   ;;  %v21344_v14 = vld [vmem:[#allocation2 + $0x678] sm:$0xff]  }
 0x109   :  { %1855 = vmatprep.mubr.bf16.mxu0 %v23069_v34  ;;  %19091 = vmatprep.subr.bf16.mxu1 %v21285_v15  ;;  %v21345_v15 = vld [vmem:[#allocation2 + $0x6f8] sm:$0xff]  }
 0x10a   :  { %1895 = vmatprep.mubr.bf16.mxu1 %v23071_v35 }
 0x10b   :  { %19070 = vmatpush3.bf16.msra.mxu0 %v21286_v16  ;;  %v21346_v16 = vld [vmem:[#allocation2 + $0x638] sm:$0xff]  }
 0x10c   :  { %19092 = vmatpush3.bf16.msra.mxu1 %v21287_v17  ;;  %19071 = vmatprep.subr.bf16.mxu0 %v21288_v18  ;;  %v21347_v17 = vld [vmem:[#allocation2 + $0x6b8] sm:$0xff]   ;;  %v21348_v18 = vld [vmem:[#allocation2 + $0x670] sm:$0xff]  }
 0x10d   :  { %19093 = vmatprep.subr.bf16.mxu1 %v21289_v19  ;;  %v21349_v19 = vld [vmem:[#allocation2 + $0x6f0] sm:$0xff]  }
 0x10f   :  { %19072 = vmatpush3.bf16.msra.mxu0 %v21290_v20  ;;  %v21350_v20 = vld [vmem:[#allocation2 + $0x630] sm:$0xff]  }
 0x110   :  { %19094 = vmatpush3.bf16.msra.mxu1 %v21291_v21  ;;  %19073 = vmatprep.subr.bf16.mxu0 %v21292_v22  ;;  %v21351_v21 = vld [vmem:[#allocation2 + $0x6b0] sm:$0xff]   ;;  %v21352_v22 = vld [vmem:[#allocation2 + $0x668] sm:$0xff]  }
 0x111   :  { %19095 = vmatprep.subr.bf16.mxu1 %v21293_v23  ;;  %v21353_v23 = vld [vmem:[#allocation2 + $0x6e8] sm:$0xff]  }
 0x113   :  { %19074 = vmatpush3.bf16.msra.mxu0 %v21294_v24  ;;  %v21354_v24 = vld [vmem:[#allocation2 + $0x628] sm:$0xff]  }
 0x114   :  { %19096 = vmatpush3.bf16.msra.mxu1 %v21295_v25  ;;  %19075 = vmatprep.subr.bf16.mxu0 %v21296_v26  ;;  %v21355_v25 = vld [vmem:[#allocation2 + $0x6a8] sm:$0xff]   ;;  %v21356_v26 = vld [vmem:[#allocation2 + $0x660] sm:$0xff]  }
 0x115   :  { %19097 = vmatprep.subr.bf16.mxu1 %v21297_v27  ;;  %v21357_v27 = vld [vmem:[#allocation2 + $0x6e0] sm:$0xff]  }
 0x117   :  { %19076 = vmatpush3.bf16.msra.mxu0 %v21298_v28  ;;  %v21358_v28 = vld [vmem:[#allocation2 + $0x620] sm:$0xff]  }
 0x118   :  { %19098 = vmatpush3.bf16.msra.mxu1 %v21299_v29  ;;  %19077 = vmatprep.subr.bf16.mxu0 %v21300_v30  ;;  %v21359_v29 = vld [vmem:[#allocation2 + $0x6a0] sm:$0xff]   ;;  %v21360_v30 = vld [vmem:[#allocation2 + $0x658] sm:$0xff]  }
 0x119   :  { %19099 = vmatprep.subr.bf16.mxu1 %v21301_v31  ;;  %v21361_v31 = vld [vmem:[#allocation2 + $0x6d8] sm:$0xff]  }
 0x11b   :  { %19078 = vmatpush3.bf16.msra.mxu0 %v21302_v32  ;;  %v21362_v32 = vld [vmem:[#allocation2 + $0x618] sm:$0xff]  }
 0x11c   :  { %19100 = vmatpush3.bf16.msra.mxu1 %v21303_v33  ;;  %19079 = vmatprep.subr.bf16.mxu0 %v21304_v38  ;;  %v21363_v33 = vld [vmem:[#allocation2 + $0x698] sm:$0xff]   ;;  %v21364_v38 = vld [vmem:[#allocation2 + $0x650] sm:$0xff]  }
 0x11d   :  { %19101 = vmatprep.subr.bf16.mxu1 %v21305_v39  ;;  %v21365_v39 = vld [vmem:[#allocation2 + $0x6d0] sm:$0xff]  }
 0x11f   :  { %19080 = vmatpush3.bf16.msra.mxu0 %v21306_v40  ;;  %v21366_v40 = vld [vmem:[#allocation2 + $0x610] sm:$0xff]  }
 0x120   :  { %19102 = vmatpush3.bf16.msra.mxu1 %v21307_v41  ;;  %19081 = vmatprep.subr.bf16.mxu0 %v21308_v42  ;;  %v21367_v41 = vld [vmem:[#allocation2 + $0x690] sm:$0xff]   ;;  %v21368_v42 = vld [vmem:[#allocation2 + $0x648] sm:$0xff]  }
 0x121   :  { %19103 = vmatprep.subr.bf16.mxu1 %v21309_v43  ;;  %v21369_v43 = vld [vmem:[#allocation2 + $0x6c8] sm:$0xff]  }
 0x123   :  { %19082 = vmatpush3.bf16.msra.mxu0 %v21310_v44  ;;  %v21370_v44 = vld [vmem:[#allocation2 + $0x608] sm:$0xff]  }
 0x124   :  { %19104 = vmatpush3.bf16.msra.mxu1 %v21311_v45  ;;  %19111 = vmatprep.subr.bf16.mxu0 %v21312_v46  ;;  %v21371_v45 = vld [vmem:[#allocation2 + $0x688] sm:$0xff]   ;;  %v21372_v46 = vld [vmem:[#allocation2 + $0x640] sm:$0xff]  }
 0x125   :  { %19133 = vmatprep.subr.bf16.mxu1 %v21313_v47  ;;  %v21373_v47 = vld [vmem:[#allocation2 + $0x6c0] sm:$0xff]  }
 0x126   :  { %1856 = vmatmul.mubr.bf16.vlgmr.msra.gmra.mxu0 %v23073_v36 }
 0x127   :  { %1896 = vmatmul.mubr.bf16.vlgmr.msra.gmra.mxu1 %v23075_v37  ;;  %19112 = vmatpush3.bf16.msra.mxu0 %v21314_v48  ;;  %v21374_v48 = vld [vmem:[#allocation2 + $0x600] sm:$0xff]  }
 0x128   :  { %19134 = vmatpush3.bf16.msra.mxu1 %v21315_v49  ;;  %19113 = vmatprep.subr.bf16.mxu0 %v21316_v50  ;;  %v21375_v49 = vld [vmem:[#allocation2 + $0x680] sm:$0xff]   ;;  %v21376_v50 = vld [vmem:[#allocation2 + $0x778] sm:$0xff]  }
 0x129   :  { %2192 = vmatprep.mubr.bf16.mxu0 %v23069_v34  ;;  %19135 = vmatprep.subr.bf16.mxu1 %v21317_v51  ;;  %v21377_v51 = vld [vmem:[#allocation2 + $0x7f8] sm:$0xff]  }
 0x12a   :  { %2232 = vmatprep.mubr.bf16.mxu1 %v23071_v35 }
 0x12b   :  { %19114 = vmatpush3.bf16.msra.mxu0 %v21318_v52  ;;  %v21378_v52 = vld [vmem:[#allocation2 + $0x738] sm:$0xff]  }
 0x12c   :  { %19136 = vmatpush3.bf16.msra.mxu1 %v21319_v53  ;;  %19115 = vmatprep.subr.bf16.mxu0 %v21320_v54 }
 0x12d   :  { %19137 = vmatprep.subr.bf16.mxu1 %v21321_v55  ;;  %v21379_v55 = vld [vmem:[#allocation2 + $0x7b8] sm:$0xff]  }
 0x12f   :  { %19116 = vmatpush3.bf16.msra.mxu0 %v21322_v56  ;;  %v21380_v56 = vld [vmem:[#allocation2 + $0x770] sm:$0xff]  }
 0x130   :  { %19138 = vmatpush3.bf16.msra.mxu1 %v21323_v57  ;;  %19117 = vmatprep.subr.bf16.mxu0 %v21324_v58 }
 0x131   :  { %19139 = vmatprep.subr.bf16.mxu1 %v21325_v59  ;;  %v21381_v59 = vld [vmem:[#allocation2 + $0x7f0] sm:$0xff]  }
 0x133   :  { %19118 = vmatpush3.bf16.msra.mxu0 %v21326_v60 }
 0x134   :  { %19140 = vmatpush3.bf16.msra.mxu1 %v21327_v61  ;;  %19119 = vmatprep.subr.bf16.mxu0 %v21328_v62  ;;  %v21382_v62 = vld [vmem:[#allocation2 + $0x730] sm:$0xff]  }
 0x135   :  { %19141 = vmatprep.subr.bf16.mxu1 %v21329_v63 }
 0x137   :  { %19120 = vmatpush3.bf16.msra.mxu0 %v21330_v0 }
 0x138   :  { %19142 = vmatpush3.bf16.msra.mxu1 %v21331_v1  ;;  %19121 = vmatprep.subr.bf16.mxu0 %v21332_v2  ;;  %v21383_v1 = vld [vmem:[#allocation2 + $0x7b0] sm:$0xff]  }
 0x139   :  { %19143 = vmatprep.subr.bf16.mxu1 %v21333_v3  ;;  %v21384_v3 = vld [vmem:[#allocation2 + $0x768] sm:$0xff]  }
 0x13b   :  { %19122 = vmatpush3.bf16.msra.mxu0 %v21334_v4 }
 0x13c   :  { %19144 = vmatpush3.bf16.msra.mxu1 %v21335_v5  ;;  %19123 = vmatprep.subr.bf16.mxu0 %v21336_v6  ;;  %v21385_v6 = vld [vmem:[#allocation2 + $0x7e8] sm:$0xff]  }
 0x13d   :  { %19145 = vmatprep.subr.bf16.mxu1 %v21337_v7  ;;  %v21386_v7 = vld [vmem:[#allocation2 + $0x728] sm:$0xff]  }
 0x13f   :  { %19124 = vmatpush3.bf16.msra.mxu0 %v21338_v8  ;;  %v21387_v8 = vld [vmem:[#allocation2 + $0x7a8] sm:$0xff]  }
 0x140   :  { %19146 = vmatpush3.bf16.msra.mxu1 %v21339_v9  ;;  %19125 = vmatprep.subr.bf16.mxu0 %v21340_v10  ;;  %v21388_v9 = vld [vmem:[#allocation2 + $0x760] sm:$0xff]  }
 0x141   :  { %19147 = vmatprep.subr.bf16.mxu1 %v21341_v11  ;;  %v21389_v10 = vld [vmem:[#allocation2 + $0x7e0] sm:$0xff]  }
 0x142   :  { %v21390_v11 = vld [vmem:[#allocation2 + $0x720] sm:$0xff]  }
 0x143   :  { %19126 = vmatpush3.bf16.msra.mxu0 %v21342_v12  ;;  %v21391_v12 = vld [vmem:[#allocation2 + $0x7a0] sm:$0xff]  }
 0x144   :  { %19148 = vmatpush3.bf16.msra.mxu1 %v21343_v13  ;;  %19155 = vmatprep.subr.bf16.mxu0 %v21344_v14  ;;  %v21392_v13 = vld [vmem:[#allocation2 + $0x758] sm:$0xff]  }
 0x145   :  { %19177 = vmatprep.subr.bf16.mxu1 %v21345_v15  ;;  %v21393_v14 = vld [vmem:[#allocation2 + $0x7d8] sm:$0xff]  }
 0x146   :  { %2193 = vmatmul.mubr.bf16.vlgmr.msra.gmra.mxu0 %v23073_v36  ;;  %v21394_v15 = vld [vmem:[#allocation2 + $0x718] sm:$0xff]  }
 0x147   :  { %2233 = vmatmul.mubr.bf16.vlgmr.msra.gmra.mxu1 %v23075_v37  ;;  %19156 = vmatpush3.bf16.msra.mxu0 %v21346_v16  ;;  %v21395_v16 = vld [vmem:[#allocation2 + $0x798] sm:$0xff]  }
 0x148   :  { %19178 = vmatpush3.bf16.msra.mxu1 %v21347_v17  ;;  %19157 = vmatprep.subr.bf16.mxu0 %v21348_v18  ;;  %v21396_v17 = vld [vmem:[#allocation2 + $0x750] sm:$0xff]  }
 0x149   :  { %2529 = vmatprep.mubr.bf16.mxu0 %v23069_v34  ;;  %19179 = vmatprep.subr.bf16.mxu1 %v21349_v19  ;;  %v21397_v18 = vld [vmem:[#allocation2 + $0x7d0] sm:$0xff]  }
 0x14a   :  { %2569 = vmatprep.mubr.bf16.mxu1 %v23071_v35  ;;  %v21398_v19 = vld [vmem:[#allocation2 + $0x710] sm:$0xff]  }
 0x14b   :  { %19158 = vmatpush3.bf16.msra.mxu0 %v21350_v20  ;;  %v21399_v20 = vld [vmem:[#allocation2 + $0x790] sm:$0xff]  }
 0x14c   :  { %19180 = vmatpush3.bf16.msra.mxu1 %v21351_v21  ;;  %19159 = vmatprep.subr.bf16.mxu0 %v21352_v22  ;;  %v21400_v21 = vld [vmem:[#allocation2 + $0x748] sm:$0xff]  }
 0x14d   :  { %19181 = vmatprep.subr.bf16.mxu1 %v21353_v23  ;;  %v21401_v22 = vld [vmem:[#allocation2 + $0x7c8] sm:$0xff]  }
 0x14e   :  { %v21402_v23 = vld [vmem:[#allocation2 + $0x708] sm:$0xff]  }
 0x14f   :  { %19160 = vmatpush3.bf16.msra.mxu0 %v21354_v24  ;;  %v21403_v24 = vld [vmem:[#allocation2 + $0x788] sm:$0xff]  }
 0x150   :  { %19182 = vmatpush3.bf16.msra.mxu1 %v21355_v25  ;;  %19161 = vmatprep.subr.bf16.mxu0 %v21356_v26  ;;  %v21404_v25 = vld [vmem:[#allocation2 + $0x740] sm:$0xff]  }
 0x151   :  { %19183 = vmatprep.subr.bf16.mxu1 %v21357_v27  ;;  %v21405_v26 = vld [vmem:[#allocation2 + $0x7c0] sm:$0xff]  }
 0x152   :  { %v21406_v27 = vld [vmem:[#allocation2 + $0x700] sm:$0xff]  }
 0x153   :  { %19162 = vmatpush3.bf16.msra.mxu0 %v21358_v28  ;;  %v21407_v28 = vld [vmem:[#allocation2 + $0x780] sm:$0xff]  }
 0x154   :  { %19184 = vmatpush3.bf16.msra.mxu1 %v21359_v29  ;;  %19163 = vmatprep.subr.bf16.mxu0 %v21360_v30  ;;  %v21408_v29 = vld [vmem:[#allocation2 + $0x878] sm:$0xff]  }
 0x155   :  { %19185 = vmatprep.subr.bf16.mxu1 %v21361_v31  ;;  %v21409_v30 = vld [vmem:[#allocation2 + $0x8f8] sm:$0xff]  }
 0x156   :  { %v21410_v31 = vld [vmem:[#allocation2 + $0x838] sm:$0xff]  }
 0x157   :  { %19164 = vmatpush3.bf16.msra.mxu0 %v21362_v32  ;;  %v21411_v32 = vld [vmem:[#allocation2 + $0x8b8] sm:$0xff]  }
 0x158   :  { %19186 = vmatpush3.bf16.msra.mxu1 %v21363_v33  ;;  %19165 = vmatprep.subr.bf16.mxu0 %v21364_v38 }
 0x159   :  { %19187 = vmatprep.subr.bf16.mxu1 %v21365_v39  ;;  %v21412_v39 = vld [vmem:[#allocation2 + $0x870] sm:$0xff]  }
 0x15b   :  { %19166 = vmatpush3.bf16.msra.mxu0 %v21366_v40  ;;  %v21413_v40 = vld [vmem:[#allocation2 + $0x8f0] sm:$0xff]  }
 0x15c   :  { %19188 = vmatpush3.bf16.msra.mxu1 %v21367_v41  ;;  %19167 = vmatprep.subr.bf16.mxu0 %v21368_v42 }
 0x15d   :  { %19189 = vmatprep.subr.bf16.mxu1 %v21369_v43  ;;  %v21414_v43 = vld [vmem:[#allocation2 + $0x830] sm:$0xff]  }
 0x15f   :  { %19168 = vmatpush3.bf16.msra.mxu0 %v21370_v44 }
 0x160   :  { %19190 = vmatpush3.bf16.msra.mxu1 %v21371_v45  ;;  %19169 = vmatprep.subr.bf16.mxu0 %v21372_v46  ;;  %v21415_v46 = vld [vmem:[#allocation2 + $0x8b0] sm:$0xff]  }
 0x161   :  { %19191 = vmatprep.subr.bf16.mxu1 %v21373_v47 }
 0x163   :  { %19170 = vmatpush3.bf16.msra.mxu0 %v21374_v48 }
 0x164   :  { %19192 = vmatpush3.bf16.msra.mxu1 %v21375_v49  ;;  %19199 = vmatprep.subr.bf16.mxu0 %v21376_v50  ;;  %v21416_v49 = vld [vmem:[#allocation2 + $0x868] sm:$0xff]  }
 0x165   :  { %19221 = vmatprep.subr.bf16.mxu1 %v21377_v51  ;;  %v21417_v51 = vld [vmem:[#allocation2 + $0x8e8] sm:$0xff]  }
 0x166   :  { %v18907_v53 = vpop.f32.mrf.mxu0  ;;  %2530 = vmatmul.mubr.bf16.vlgmr.msra.gmra.mxu0 %v23073_v36 }
 0x167   :  { %v18929_v54 = vpop.f32.mrf.mxu1  ;;  %2570 = vmatmul.mubr.bf16.vlgmr.msra.gmra.mxu1 %v23075_v37  ;;  %19200 = vmatpush3.bf16.msra.mxu0 %v21378_v52 }
 0x168   :  { %19222 = vmatpush3.bf16.msra.mxu1 %v21379_v55  ;;  %v18908_v57 = vpop.f32.mrf.mxu0  ;;  %19201 = vmatprep.subr.bf16.mxu0 %v21380_v56  ;;  %v21419_v55 = vld [vmem:[#allocation2 + $0x8a8] sm:$0xff]  }
 0x169   :  { %v18930_v58 = vpop.f32.mrf.mxu1  ;;  %v18909_v60 = vadd.f32 %v18908_v57, %v18907_v53  ;;  %2866 = vmatprep.mubr.bf16.mxu0 %v23069_v34  ;;  %19223 = vmatprep.subr.bf16.mxu1 %v21381_v59  ;;  %v21420_v57 = vld [vmem:[#allocation2 + $0x860] sm:$0xff]  }
 0x16a   :  { %v18931_v61 = vadd.f32 %v18930_v58, %v18929_v54  ;;  %v18910_v63 = vpop.f32.mrf.mxu0  ;;  %2906 = vmatprep.mubr.bf16.mxu1 %v23071_v35  ;;  %v21418_v54 = vld [vmem:[#allocation2 + $0x828] sm:$0xff]   ;;  %v21421_v58 = vld [vmem:[#allocation2 + $0x8e0] sm:$0xff]  }
 0x16b   :  { %v18932_v0 = vpop.f32.mrf.mxu1  ;;  %19202 = vmatpush3.bf16.msra.mxu0 %v21382_v62  ;;  %v21422_v59 = vld [vmem:[#allocation2 + $0x820] sm:$0xff]   ;;  %v21425_v62 = vld [vmem:[#allocation2 + $0x8d8] sm:$0xff]  }
 0x16c   :  { %v23107_v2 = vadd.f32 %v18931_v61, %v18909_v60  ;;  %19224 = vmatpush3.bf16.msra.mxu1 %v21383_v1  ;;  %v18911_v4 = vpop.f32.mrf.mxu0  ;;  %19203 = vmatprep.subr.bf16.mxu0 %v21384_v3  ;;  %v21423_v60 = vld [vmem:[#allocation2 + $0x8a0] sm:$0xff]   ;;  %v21424_v61 = vld [vmem:[#allocation2 + $0x858] sm:$0xff]   ;;  %v21428_v1 = vld [vmem:[#allocation2 + $0x850] sm:$0xff]  }
 0x16d   :  { %v18933_v5 = vpop.f32.mrf.mxu1  ;;  %19225 = vmatprep.subr.bf16.mxu1 %v21385_v6  ;;  %v21426_v63 = vld [vmem:[#allocation2 + $0x818] sm:$0xff]   ;;  %v21430_v3 = vld [vmem:[#allocation2 + $0x810] sm:$0xff]   ;;  %v21433_v6 = vld [vmem:[#allocation2 + $0x8c8] sm:$0xff]  }
 0x16e   :  { %v21427_v0 = vld [vmem:[#allocation2 + $0x898] sm:$0xff]   ;;  %v21431_v4 = vld [vmem:[#allocation2 + $0x890] sm:$0xff]   ;;  %v21432_v5 = vld [vmem:[#allocation2 + $0x848] sm:$0xff]  }
 0x16f   :  { %19204 = vmatpush3.bf16.msra.mxu0 %v21386_v7  ;;  %v21434_v7 = vld [vmem:[#allocation2 + $0x808] sm:$0xff]  }
 0x170   :  { %19226 = vmatpush3.bf16.msra.mxu1 %v21387_v8  ;;  %19205 = vmatprep.subr.bf16.mxu0 %v21388_v9  ;;  %v21435_v8 = vld [vmem:[#allocation2 + $0x888] sm:$0xff]   ;;  %v21436_v9 = vld [vmem:[#allocation2 + $0x840] sm:$0xff]  }
 0x171   :  { %19227 = vmatprep.subr.bf16.mxu1 %v21389_v10  ;;  %v21437_v10 = vld [vmem:[#allocation2 + $0x8c0] sm:$0xff]  }
 0x173   :  { %19206 = vmatpush3.bf16.msra.mxu0 %v21390_v11  ;;  %v21438_v11 = vld [vmem:[#allocation2 + $0x800] sm:$0xff]  }
 0x174   :  { %19228 = vmatpush3.bf16.msra.mxu1 %v21391_v12  ;;  %19207 = vmatprep.subr.bf16.mxu0 %v21392_v13  ;;  %v21439_v12 = vld [vmem:[#allocation2 + $0x880] sm:$0xff]   ;;  %v21440_v13 = vld [vmem:[#allocation2 + $0x978] sm:$0xff]  }
 0x175   :  { %19229 = vmatprep.subr.bf16.mxu1 %v21393_v14  ;;  %v21441_v14 = vld [vmem:[#allocation2 + $0x9f8] sm:$0xff]  }
 0x177   :  { %19208 = vmatpush3.bf16.msra.mxu0 %v21394_v15  ;;  %v21442_v15 = vld [vmem:[#allocation2 + $0x938] sm:$0xff]  }
 0x178   :  { %19230 = vmatpush3.bf16.msra.mxu1 %v21395_v16  ;;  %19209 = vmatprep.subr.bf16.mxu0 %v21396_v17  ;;  %v21443_v16 = vld [vmem:[#allocation2 + $0x9b8] sm:$0xff]  }
 0x179   :  { %19231 = vmatprep.subr.bf16.mxu1 %v21397_v18 }
 0x17b   :  { %19210 = vmatpush3.bf16.msra.mxu0 %v21398_v19  ;;  %v21444_v19 = vld [vmem:[#allocation2 + $0x970] sm:$0xff]  }
 0x17c   :  { %19232 = vmatpush3.bf16.msra.mxu1 %v21399_v20  ;;  %19211 = vmatprep.subr.bf16.mxu0 %v21400_v21  ;;  %v21445_v20 = vld [vmem:[#allocation2 + $0x9f0] sm:$0xff]  }
 0x17d   :  { %19233 = vmatprep.subr.bf16.mxu1 %v21401_v22 }
 0x17f   :  { %19212 = vmatpush3.bf16.msra.mxu0 %v21402_v23  ;;  %v21446_v23 = vld [vmem:[#allocation2 + $0x930] sm:$0xff]  }
 0x180   :  { %19234 = vmatpush3.bf16.msra.mxu1 %v21403_v24  ;;  %19213 = vmatprep.subr.bf16.mxu0 %v21404_v25 }
 0x181   :  { %19235 = vmatprep.subr.bf16.mxu1 %v21405_v26  ;;  %v21447_v26 = vld [vmem:[#allocation2 + $0x9b0] sm:$0xff]  }
 0x183   :  { %19214 = vmatpush3.bf16.msra.mxu0 %v21406_v27 }
 0x184   :  { %19236 = vmatpush3.bf16.msra.mxu1 %v21407_v28  ;;  %19243 = vmatprep.subr.bf16.mxu0 %v21408_v29  ;;  %v21448_v29 = vld [vmem:[#allocation2 + $0x968] sm:$0xff]  }
 0x185   :  { %19265 = vmatprep.subr.bf16.mxu1 %v21409_v30 }
 0x186   :  { %v18951_v33 = vpop.f32.mrf.mxu0  ;;  %2867 = vmatmul.mubr.bf16.vlgmr.msra.gmra.mxu0 %v23073_v36 }
 0x187   :  { %v18973_v38 = vpop.f32.mrf.mxu1  ;;  %2907 = vmatmul.mubr.bf16.vlgmr.msra.gmra.mxu1 %v23075_v37  ;;  %19244 = vmatpush3.bf16.msra.mxu0 %v21410_v31  ;;  %v21449_v31 = vld [vmem:[#allocation2 + $0x9e8] sm:$0xff]  }
 0x188   :  { %19266 = vmatpush3.bf16.msra.mxu1 %v21411_v32  ;;  %v18952_v41 = vpop.f32.mrf.mxu0  ;;  %19245 = vmatprep.subr.bf16.mxu0 %v21412_v39  ;;  %v21451_v39 = vld [vmem:[#allocation2 + $0x9a8] sm:$0xff]  }
 0x189   :  { %v18974_v42 = vpop.f32.mrf.mxu1  ;;  %3203 = vmatprep.mubr.bf16.mxu0 %v23069_v34  ;;  %v18953_v44 = vadd.f32 %v18952_v41, %v18951_v33  ;;  %19267 = vmatprep.subr.bf16.mxu1 %v21413_v40  ;;  %v21452_v40 = vld [vmem:[#allocation2 + $0x960] sm:$0xff]  }
 0x18a   :  { %v18975_v45 = vadd.f32 %v18974_v42, %v18973_v38  ;;  %3243 = vmatprep.mubr.bf16.mxu1 %v23071_v35  ;;  %v18954_v47 = vpop.f32.mrf.mxu0  ;;  %v21450_v38 = vld [vmem:[#allocation2 + $0x928] sm:$0xff]   ;;  %v21453_v41 = vld [vmem:[#allocation2 + $0x9e0] sm:$0xff]  }
 0x18b   :  { %v18976_v48 = vpop.f32.mrf.mxu1  ;;  %19246 = vmatpush3.bf16.msra.mxu0 %v21414_v43  ;;  %v21454_v42 = vld [vmem:[#allocation2 + $0x920] sm:$0xff]   ;;  %v21459_v47 = vld [vmem:[#allocation2 + $0x998] sm:$0xff]  }
 0x18c   :  { %v887_v50 = vadd.f32 %v18975_v45, %v18953_v44  ;;  %19268 = vmatpush3.bf16.msra.mxu1 %v21415_v46  ;;  %v18955_v52 = vpop.f32.mrf.mxu0  ;;  %19247 = vmatprep.subr.bf16.mxu0 %v21416_v49  ;;  %v21455_v43 = vld [vmem:[#allocation2 + $0x9a0] sm:$0xff]   ;;  %v21456_v44 = vld [vmem:[#allocation2 + $0x958] sm:$0xff]   ;;  %v21460_v48 = vld [vmem:[#allocation2 + $0x950] sm:$0xff]  }
 0x18d   :  { %v18977_v53 = vpop.f32.mrf.mxu1  ;;  %19269 = vmatprep.subr.bf16.mxu1 %v21417_v51  ;;  %v21457_v45 = vld [vmem:[#allocation2 + $0x9d8] sm:$0xff]   ;;  %v21461_v49 = vld [vmem:[#allocation2 + $0x9d0] sm:$0xff]   ;;  %v21464_v52 = vld [vmem:[#allocation2 + $0x948] sm:$0xff]  }
 0x18e   :  { %v23114_v56 = vpack.c.bf16 %v887_v50, %v23107_v2  ;;  %v21429_v2 = vld [vmem:[#allocation2 + $0x8d0] sm:$0xff]   ;;  %v21458_v46 = vld [vmem:[#allocation2 + $0x918] sm:$0xff]   ;;  %v21465_v53 = vld [vmem:[#allocation2 + $0x9c8] sm:$0xff]  }
 0x18f   :  { %19248 = vmatpush3.bf16.msra.mxu0 %v21418_v54  ;;  %v21462_v50 = vld [vmem:[#allocation2 + $0x910] sm:$0xff]   ;;  %v21466_v54 = vld [vmem:[#allocation2 + $0x908] sm:$0xff]  }
 0x190   :  { %19270 = vmatpush3.bf16.msra.mxu1 %v21419_v55  ;;  %19249 = vmatprep.subr.bf16.mxu0 %v21420_v57  ;;  %v21463_v51 = vld [vmem:[#allocation2 + $0x990] sm:$0xff]   ;;  %v21467_v55 = vld [vmem:[#allocation2 + $0x988] sm:$0xff]   ;;  %v21468_v57 = vld [vmem:[#allocation2 + $0x940] sm:$0xff]  }
 0x191   :  { %19271 = vmatprep.subr.bf16.mxu1 %v21421_v58  ;;  %v21469_v58 = vld [vmem:[#allocation2 + $0x9c0] sm:$0xff]  }
 0x193   :  { %19250 = vmatpush3.bf16.msra.mxu0 %v21422_v59  ;;  %v21470_v59 = vld [vmem:[#allocation2 + $0x900] sm:$0xff]  }
 0x194   :  { %19272 = vmatpush3.bf16.msra.mxu1 %v21423_v60  ;;  %19251 = vmatprep.subr.bf16.mxu0 %v21424_v61  ;;  %v21471_v60 = vld [vmem:[#allocation2 + $0x980] sm:$0xff]   ;;  %v21472_v61 = vld [vmem:[#allocation2 + $0xa78] sm:$0xff]  }
 0x195   :  { %19273 = vmatprep.subr.bf16.mxu1 %v21425_v62  ;;  %v21473_v62 = vld [vmem:[#allocation2 + $0xaf8] sm:$0xff]  }
 0x197   :  { %19252 = vmatpush3.bf16.msra.mxu0 %v21426_v63  ;;  %v21474_v63 = vld [vmem:[#allocation2 + $0xa38] sm:$0xff]  }
 0x198   :  { %19274 = vmatpush3.bf16.msra.mxu1 %v21427_v0  ;;  %19253 = vmatprep.subr.bf16.mxu0 %v21428_v1  ;;  %v21475_v0 = vld [vmem:[#allocation2 + $0xab8] sm:$0xff]  }
 0x199   :  { %19275 = vmatprep.subr.bf16.mxu1 %v21429_v2 }
 0x19b   :  { %19254 = vmatpush3.bf16.msra.mxu0 %v21430_v3  ;;  %v21476_v3 = vld [vmem:[#allocation2 + $0xa70] sm:$0xff]  }
 0x19c   :  { %19276 = vmatpush3.bf16.msra.mxu1 %v21431_v4  ;;  %19255 = vmatprep.subr.bf16.mxu0 %v21432_v5  ;;  %v21477_v4 = vld [vmem:[#allocation2 + $0xaf0] sm:$0xff]  }
 0x19d   :  { %19277 = vmatprep.subr.bf16.mxu1 %v21433_v6 }
 0x19f   :  { %19256 = vmatpush3.bf16.msra.mxu0 %v21434_v7  ;;  %v21478_v7 = vld [vmem:[#allocation2 + $0xa30] sm:$0xff]  }
 0x1a0   :  { %19278 = vmatpush3.bf16.msra.mxu1 %v21435_v8  ;;  %19257 = vmatprep.subr.bf16.mxu0 %v21436_v9 }
 0x1a1   :  { %19279 = vmatprep.subr.bf16.mxu1 %v21437_v10  ;;  %v21479_v10 = vld [vmem:[#allocation2 + $0xab0] sm:$0xff]  }
 0x1a3   :  { %19258 = vmatpush3.bf16.msra.mxu0 %v21438_v11 }
 0x1a4   :  { %19280 = vmatpush3.bf16.msra.mxu1 %v21439_v12  ;;  %19287 = vmatprep.subr.bf16.mxu0 %v21440_v13  ;;  %v21480_v13 = vld [vmem:[#allocation2 + $0xa68] sm:$0xff]  }
 0x1a5   :  { %19309 = vmatprep.subr.bf16.mxu1 %v21441_v14 }
 0x1a6   :  { %v18995_v17 = vpop.f32.mrf.mxu0  ;;  %3204 = vmatmul.mubr.bf16.vlgmr.msra.gmra.mxu0 %v23073_v36 }
 0x1a7   :  { %v19017_v18 = vpop.f32.mrf.mxu1  ;;  %3244 = vmatmul.mubr.bf16.vlgmr.msra.gmra.mxu1 %v23075_v37  ;;  %19288 = vmatpush3.bf16.msra.mxu0 %v21442_v15  ;;  %v21481_v15 = vld [vmem:[#allocation2 + $0xae8] sm:$0xff]  }
 0x1a8   :  { %19310 = vmatpush3.bf16.msra.mxu1 %v21443_v16  ;;  %v18996_v21 = vpop.f32.mrf.mxu0  ;;  %19289 = vmatprep.subr.bf16.mxu0 %v21444_v19  ;;  %v21483_v19 = vld [vmem:[#allocation2 + $0xaa8] sm:$0xff]  }
 0x1a9   :  { %v19018_v22 = vpop.f32.mrf.mxu1  ;;  %3540 = vmatprep.mubr.bf16.mxu0 %v23069_v34  ;;  %v18997_v24 = vadd.f32 %v18996_v21, %v18995_v17  ;;  %19311 = vmatprep.subr.bf16.mxu1 %v21445_v20  ;;  %v21484_v21 = vld [vmem:[#allocation2 + $0xa60] sm:$0xff]  }
 0x1aa   :  { %v19019_v25 = vadd.f32 %v19018_v22, %v19017_v18  ;;  %3580 = vmatprep.mubr.bf16.mxu1 %v23071_v35  ;;  %v18998_v27 = vpop.f32.mrf.mxu0  ;;  %v21482_v18 = vld [vmem:[#allocation2 + $0xa28] sm:$0xff]   ;;  %v21485_v22 = vld [vmem:[#allocation2 + $0xae0] sm:$0xff]  }
 0x1ab   :  { %v19020_v28 = vpop.f32.mrf.mxu1  ;;  %19290 = vmatpush3.bf16.msra.mxu0 %v21446_v23  ;;  %v21486_v23 = vld [vmem:[#allocation2 + $0xa20] sm:$0xff]   ;;  %v21490_v27 = vld [vmem:[#allocation2 + $0xa18] sm:$0xff]  }
 0x1ac   :  { %v23120_v30 = vadd.f32 %v19019_v25, %v18997_v24  ;;  %19312 = vmatpush3.bf16.msra.mxu1 %v21447_v26  ;;  %v18999_v32 = vpop.f32.mrf.mxu0  ;;  %19291 = vmatprep.subr.bf16.mxu0 %v21448_v29  ;;  %v21487_v24 = vld [vmem:[#allocation2 + $0xaa0] sm:$0xff]   ;;  %v21488_v25 = vld [vmem:[#allocation2 + $0xa58] sm:$0xff]   ;;  %v21492_v29 = vld [vmem:[#allocation2 + $0xa50] sm:$0xff]  }
 0x1ad   :  { %v19021_v33 = vpop.f32.mrf.mxu1  ;;  %19313 = vmatprep.subr.bf16.mxu1 %v21449_v31  ;;  %v21489_v26 = vld [vmem:[#allocation2 + $0xad8] sm:$0xff]   ;;  %v21494_v31 = vld [vmem:[#allocation2 + $0xa10] sm:$0xff]  }
 0x1ae   :  { %v21491_v28 = vld [vmem:[#allocation2 + $0xa98] sm:$0xff]   ;;  %v21495_v32 = vld [vmem:[#allocation2 + $0xa90] sm:$0xff]   ;;  %v21496_v33 = vld [vmem:[#allocation2 + $0xa48] sm:$0xff]  }
 0x1af   :  { %19292 = vmatpush3.bf16.msra.mxu0 %v21450_v38  ;;  %v21497_v38 = vld [vmem:[#allocation2 + $0xac8] sm:$0xff]  }
 0x1b0   :  { %19314 = vmatpush3.bf16.msra.mxu1 %v21451_v39  ;;  %19293 = vmatprep.subr.bf16.mxu0 %v21452_v40  ;;  %v21498_v39 = vld [vmem:[#allocation2 + $0xa08] sm:$0xff]  }
 0x1b1   :  { %19315 = vmatprep.subr.bf16.mxu1 %v21453_v41  ;;  %v21499_v40 = vld [vmem:[#allocation2 + $0xa88] sm:$0xff]   ;;  %v21500_v41 = vld [vmem:[#allocation2 + $0xa40] sm:$0xff]  }
 0x1b3   :  { %19294 = vmatpush3.bf16.msra.mxu0 %v21454_v42  ;;  %v21501_v42 = vld [vmem:[#allocation2 + $0xac0] sm:$0xff]  }
 0x1b4   :  { %19316 = vmatpush3.bf16.msra.mxu1 %v21455_v43  ;;  %19295 = vmatprep.subr.bf16.mxu0 %v21456_v44  ;;  %v21502_v43 = vld [vmem:[#allocation2 + $0xa00] sm:$0xff]  }
 0x1b5   :  { %19317 = vmatprep.subr.bf16.mxu1 %v21457_v45  ;;  %v21503_v44 = vld [vmem:[#allocation2 + $0xa80] sm:$0xff]   ;;  %v21504_v45 = vld [vmem:[#allocation2 + $0xb78] sm:$0xff]  }
 0x1b7   :  { %19296 = vmatpush3.bf16.msra.mxu0 %v21458_v46  ;;  %v21505_v46 = vld [vmem:[#allocation2 + $0xbf8] sm:$0xff]  }
 0x1b8   :  { %19318 = vmatpush3.bf16.msra.mxu1 %v21459_v47  ;;  %19297 = vmatprep.subr.bf16.mxu0 %v21460_v48  ;;  %v21506_v47 = vld [vmem:[#allocation2 + $0xb38] sm:$0xff]  }
 0x1b9   :  { %19319 = vmatprep.subr.bf16.mxu1 %v21461_v49  ;;  %v21507_v48 = vld [vmem:[#allocation2 + $0xbb8] sm:$0xff]  }
 0x1bb   :  { %19298 = vmatpush3.bf16.msra.mxu0 %v21462_v50 }
 0x1bc   :  { %19320 = vmatpush3.bf16.msra.mxu1 %v21463_v51  ;;  %19299 = vmatprep.subr.bf16.mxu0 %v21464_v52  ;;  %v21508_v51 = vld [vmem:[#allocation2 + $0xb70] sm:$0xff]  }
 0x1bd   :  { %19321 = vmatprep.subr.bf16.mxu1 %v21465_v53  ;;  %v21509_v52 = vld [vmem:[#allocation2 + $0xbf0] sm:$0xff]  }
 0x1bf   :  { %19300 = vmatpush3.bf16.msra.mxu0 %v21466_v54 }
 0x1c0   :  { %19322 = vmatpush3.bf16.msra.mxu1 %v21467_v55  ;;  %19301 = vmatprep.subr.bf16.mxu0 %v21468_v57  ;;  %v21510_v55 = vld [vmem:[#allocation2 + $0xb30] sm:$0xff]  }
 0x1c1   :  { %19323 = vmatprep.subr.bf16.mxu1 %v21469_v58 }
 0x1c3   :  { %19302 = vmatpush3.bf16.msra.mxu0 %v21470_v59  ;;  %v21511_v59 = vld [vmem:[#allocation2 + $0xbb0] sm:$0xff]  }
 0x1c4   :  { %19324 = vmatpush3.bf16.msra.mxu1 %v21471_v60  ;;  %19331 = vmatprep.subr.bf16.mxu0 %v21472_v61 }
 0x1c5   :  { %19353 = vmatprep.subr.bf16.mxu1 %v21473_v62  ;;  %v21512_v62 = vld [vmem:[#allocation2 + $0xb68] sm:$0xff]  }
 0x1c6   :  { %v19039_v1 = vpop.f32.mrf.mxu0  ;;  %3541 = vmatmul.mubr.bf16.vlgmr.msra.gmra.mxu0 %v23073_v36 }
 0x1c7   :  { %v19061_v2 = vpop.f32.mrf.mxu1  ;;  %3581 = vmatmul.mubr.bf16.vlgmr.msra.gmra.mxu1 %v23075_v37  ;;  %19332 = vmatpush3.bf16.msra.mxu0 %v21474_v63 }
 0x1c8   :  { %19354 = vmatpush3.bf16.msra.mxu1 %v21475_v0  ;;  %v19040_v5 = vpop.f32.mrf.mxu0  ;;  %19333 = vmatprep.subr.bf16.mxu0 %v21476_v3  ;;  %v21513_v0 = vld [vmem:[#allocation2 + $0xbe8] sm:$0xff]  }
 0x1c9   :  { %v19062_v6 = vpop.f32.mrf.mxu1  ;;  %3877 = vmatprep.mubr.bf16.mxu0 %v23069_v34  ;;  %v19041_v8 = vadd.f32 %v19040_v5, %v19039_v1  ;;  %19355 = vmatprep.subr.bf16.mxu1 %v21477_v4  ;;  %v21514_v3 = vld [vmem:[#allocation2 + $0xb28] sm:$0xff]   ;;  %v21516_v5 = vld [vmem:[#allocation2 + $0xb60] sm:$0xff]  }
 0x1ca   :  { %v19063_v9 = vadd.f32 %v19062_v6, %v19061_v2  ;;  %3917 = vmatprep.mubr.bf16.mxu1 %v23071_v35  ;;  %v19042_v11 = vpop.f32.mrf.mxu0  ;;  %v21515_v4 = vld [vmem:[#allocation2 + $0xba8] sm:$0xff]   ;;  %v21517_v6 = vld [vmem:[#allocation2 + $0xbe0] sm:$0xff]  }
 0x1cb   :  { %v19064_v12 = vpop.f32.mrf.mxu1  ;;  %19334 = vmatpush3.bf16.msra.mxu0 %v21478_v7  ;;  %v21518_v7 = vld [vmem:[#allocation2 + $0xb20] sm:$0xff]   ;;  %v21522_v11 = vld [vmem:[#allocation2 + $0xb18] sm:$0xff]  }
 0x1cc   :  { %v1561_v14 = vadd.f32 %v19063_v9, %v19041_v8  ;;  %19356 = vmatpush3.bf16.msra.mxu1 %v21479_v10  ;;  %v19043_v16 = vpop.f32.mrf.mxu0  ;;  %19335 = vmatprep.subr.bf16.mxu0 %v21480_v13  ;;  %v21519_v8 = vld [vmem:[#allocation2 + $0xba0] sm:$0xff]   ;;  %v21520_v9 = vld [vmem:[#allocation2 + $0xb58] sm:$0xff]   ;;  %v21524_v13 = vld [vmem:[#allocation2 + $0xb50] sm:$0xff]  }
 0x1cd   :  { %v19065_v17 = vpop.f32.mrf.mxu1  ;;  %19357 = vmatprep.subr.bf16.mxu1 %v21481_v15  ;;  %v21521_v10 = vld [vmem:[#allocation2 + $0xbd8] sm:$0xff]   ;;  %v21526_v15 = vld [vmem:[#allocation2 + $0xb10] sm:$0xff]  }
 0x1ce   :  { %v23127_v20 = vpack.c.bf16 %v1561_v14, %v23120_v30  ;;  %v21493_v30 = vld [vmem:[#allocation2 + $0xad0] sm:$0xff]   ;;  %v21523_v12 = vld [vmem:[#allocation2 + $0xb98] sm:$0xff]   ;;  %v21528_v17 = vld [vmem:[#allocation2 + $0xb48] sm:$0xff]  }
 0x1cf   :  { %19336 = vmatpush3.bf16.msra.mxu0 %v21482_v18  ;;  %v21525_v14 = vld [vmem:[#allocation2 + $0xbd0] sm:$0xff]   ;;  %v21529_v18 = vld [vmem:[#allocation2 + $0xbc8] sm:$0xff]  }
 0x1d0   :  { %19358 = vmatpush3.bf16.msra.mxu1 %v21483_v19  ;;  %19337 = vmatprep.subr.bf16.mxu0 %v21484_v21  ;;  %v21527_v16 = vld [vmem:[#allocation2 + $0xb90] sm:$0xff]   ;;  %v21530_v19 = vld [vmem:[#allocation2 + $0xb08] sm:$0xff]  }
 0x1d1   :  { %19359 = vmatprep.subr.bf16.mxu1 %v21485_v22  ;;  %v21531_v21 = vld [vmem:[#allocation2 + $0xb88] sm:$0xff]   ;;  %v21532_v22 = vld [vmem:[#allocation2 + $0xb40] sm:$0xff]  }
 0x1d3   :  { %19338 = vmatpush3.bf16.msra.mxu0 %v21486_v23  ;;  %v21533_v23 = vld [vmem:[#allocation2 + $0xbc0] sm:$0xff]  }
 0x1d4   :  { %19360 = vmatpush3.bf16.msra.mxu1 %v21487_v24  ;;  %19339 = vmatprep.subr.bf16.mxu0 %v21488_v25  ;;  %v21534_v24 = vld [vmem:[#allocation2 + $0xb00] sm:$0xff]  }
 0x1d5   :  { %19361 = vmatprep.subr.bf16.mxu1 %v21489_v26  ;;  %v21535_v25 = vld [vmem:[#allocation2 + $0xb80] sm:$0xff]   ;;  %v21536_v26 = vld [vmem:[#allocation2 + $0xc78] sm:$0xff]  }
 0x1d7   :  { %19340 = vmatpush3.bf16.msra.mxu0 %v21490_v27  ;;  %v21537_v27 = vld [vmem:[#allocation2 + $0xcf8] sm:$0xff]  }
 0x1d8   :  { %19362 = vmatpush3.bf16.msra.mxu1 %v21491_v28  ;;  %19341 = vmatprep.subr.bf16.mxu0 %v21492_v29  ;;  %v21538_v28 = vld [vmem:[#allocation2 + $0xc38] sm:$0xff]  }
 0x1d9   :  { %19363 = vmatprep.subr.bf16.mxu1 %v21493_v30  ;;  %v21539_v29 = vld [vmem:[#allocation2 + $0xcb8] sm:$0xff]  }
 0x1db   :  { %19342 = vmatpush3.bf16.msra.mxu0 %v21494_v31 }
 0x1dc   :  { %19364 = vmatpush3.bf16.msra.mxu1 %v21495_v32  ;;  %19343 = vmatprep.subr.bf16.mxu0 %v21496_v33  ;;  %v21540_v32 = vld [vmem:[#allocation2 + $0xc70] sm:$0xff]  }
 0x1dd   :  { %19365 = vmatprep.subr.bf16.mxu1 %v21497_v38  ;;  %v21541_v33 = vld [vmem:[#allocation2 + $0xcf0] sm:$0xff]  }
 0x1df   :  { %19344 = vmatpush3.bf16.msra.mxu0 %v21498_v39 }
 0x1e0   :  { %19366 = vmatpush3.bf16.msra.mxu1 %v21499_v40  ;;  %19345 = vmatprep.subr.bf16.mxu0 %v21500_v41  ;;  %v21542_v40 = vld [vmem:[#allocation2 + $0xc30] sm:$0xff]  }
 0x1e1   :  { %19367 = vmatprep.subr.bf16.mxu1 %v21501_v42 }
 0x1e3   :  { %19346 = vmatpush3.bf16.msra.mxu0 %v21502_v43  ;;  %v21543_v43 = vld [vmem:[#allocation2 + $0xcb0] sm:$0xff]  }
 0x1e4   :  { %19368 = vmatpush3.bf16.msra.mxu1 %v21503_v44  ;;  %19375 = vmatprep.subr.bf16.mxu0 %v21504_v45 }
 0x1e5   :  { %19397 = vmatprep.subr.bf16.mxu1 %v21505_v46  ;;  %v21544_v46 = vld [vmem:[#allocation2 + $0xc68] sm:$0xff]  }
 0x1e6   :  { %v19083_v49 = vpop.f32.mrf.mxu0  ;;  %3878 = vmatmul.mubr.bf16.vlgmr.msra.gmra.mxu0 %v23073_v36 }
 0x1e7   :  { %v19105_v50 = vpop.f32.mrf.mxu1  ;;  %3918 = vmatmul.mubr.bf16.vlgmr.msra.gmra.mxu1 %v23075_v37  ;;  %19376 = vmatpush3.bf16.msra.mxu0 %v21506_v47 }
 0x1e8   :  { %19398 = vmatpush3.bf16.msra.mxu1 %v21507_v48  ;;  %v19084_v53 = vpop.f32.mrf.mxu0  ;;  %19377 = vmatprep.subr.bf16.mxu0 %v21508_v51  ;;  %v21545_v48 = vld [vmem:[#allocation2 + $0xce8] sm:$0xff]  }
 0x1e9   :  { %v19106_v54 = vpop.f32.mrf.mxu1  ;;  %4214 = vmatprep.mubr.bf16.mxu0 %v23069_v34  ;;  %v19085_v57 = vadd.f32 %v19084_v53, %v19083_v49  ;;  %19399 = vmatprep.subr.bf16.mxu1 %v21509_v52  ;;  %v21546_v51 = vld [vmem:[#allocation2 + $0xc28] sm:$0xff]  }
 0x1ea   :  { %v19107_v58 = vadd.f32 %v19106_v54, %v19105_v50  ;;  %4254 = vmatprep.mubr.bf16.mxu1 %v23071_v35  ;;  %v19086_v60 = vpop.f32.mrf.mxu0  ;;  %v21547_v52 = vld [vmem:[#allocation2 + $0xca8] sm:$0xff]   ;;  %v21548_v54 = vld [vmem:[#allocation2 + $0xc60] sm:$0xff]  }
 0x1eb   :  { %v19108_v61 = vpop.f32.mrf.mxu1  ;;  %19378 = vmatpush3.bf16.msra.mxu0 %v21510_v55  ;;  %v21549_v55 = vld [vmem:[#allocation2 + $0xce0] sm:$0xff]   ;;  %v21553_v60 = vld [vmem:[#allocation2 + $0xcd8] sm:$0xff]  }
 0x1ec   :  { %v23133_v63 = vadd.f32 %v19107_v58, %v19085_v57  ;;  %19400 = vmatpush3.bf16.msra.mxu1 %v21511_v59  ;;  %v19087_v1 = vpop.f32.mrf.mxu0  ;;  %19379 = vmatprep.subr.bf16.mxu0 %v21512_v62  ;;  %v21550_v57 = vld [vmem:[#allocation2 + $0xc20] sm:$0xff]   ;;  %v21552_v59 = vld [vmem:[#allocation2 + $0xc58] sm:$0xff]  }
 0x1ed   :  { %v19109_v2 = vpop.f32.mrf.mxu1  ;;  %19401 = vmatprep.subr.bf16.mxu1 %v21513_v0  ;;  %v21551_v58 = vld [vmem:[#allocation2 + $0xca0] sm:$0xff]   ;;  %v21554_v61 = vld [vmem:[#allocation2 + $0xc18] sm:$0xff]   ;;  %v21556_v0 = vld [vmem:[#allocation2 + $0xc50] sm:$0xff]  }
 0x1ee   :  { %v21555_v62 = vld [vmem:[#allocation2 + $0xc98] sm:$0xff]   ;;  %v21558_v1 = vld [vmem:[#allocation2 + $0xc10] sm:$0xff]  }
 0x1ef   :  { %19380 = vmatpush3.bf16.msra.mxu0 %v21514_v3  ;;  %v21559_v2 = vld [vmem:[#allocation2 + $0xc90] sm:$0xff]   ;;  %v21560_v3 = vld [vmem:[#allocation2 + $0xc48] sm:$0xff]  }
 0x1f0   :  { %19402 = vmatpush3.bf16.msra.mxu1 %v21515_v4  ;;  %19381 = vmatprep.subr.bf16.mxu0 %v21516_v5  ;;  %v21561_v4 = vld [vmem:[#allocation2 + $0xcc8] sm:$0xff]  }
 0x1f1   :  { %19403 = vmatprep.subr.bf16.mxu1 %v21517_v6  ;;  %v21562_v5 = vld [vmem:[#allocation2 + $0xc08] sm:$0xff]  }
 0x1f2   :  { %v21563_v6 = vld [vmem:[#allocation2 + $0xc88] sm:$0xff]  }
 0x1f3   :  { %19382 = vmatpush3.bf16.msra.mxu0 %v21518_v7  ;;  %v21564_v7 = vld [vmem:[#allocation2 + $0xc40] sm:$0xff]  }
 0x1f4   :  { %19404 = vmatpush3.bf16.msra.mxu1 %v21519_v8  ;;  %19383 = vmatprep.subr.bf16.mxu0 %v21520_v9  ;;  %v21565_v8 = vld [vmem:[#allocation2 + $0xcc0] sm:$0xff]  }
 0x1f5   :  { %19405 = vmatprep.subr.bf16.mxu1 %v21521_v10  ;;  %v21566_v9 = vld [vmem:[#allocation2 + $0xc00] sm:$0xff]  }
 0x1f6   :  { %v21567_v10 = vld [vmem:[#allocation2 + $0xc80] sm:$0xff]  }
 0x1f7   :  { %19384 = vmatpush3.bf16.msra.mxu0 %v21522_v11  ;;  %v21568_v11 = vld [vmem:[#allocation2 + $0xd78] sm:$0xff]  }
 0x1f8   :  { %19406 = vmatpush3.bf16.msra.mxu1 %v21523_v12  ;;  %19385 = vmatprep.subr.bf16.mxu0 %v21524_v13  ;;  %v21569_v12 = vld [vmem:[#allocation2 + $0xdf8] sm:$0xff]  }
 0x1f9   :  { %19407 = vmatprep.subr.bf16.mxu1 %v21525_v14  ;;  %v21570_v13 = vld [vmem:[#allocation2 + $0xd38] sm:$0xff]  }
 0x1fa   :  { %v21571_v14 = vld [vmem:[#allocation2 + $0xdb8] sm:$0xff]  }
 0x1fb   :  { %19386 = vmatpush3.bf16.msra.mxu0 %v21526_v15 }
 0x1fc   :  { %19408 = vmatpush3.bf16.msra.mxu1 %v21527_v16  ;;  %19387 = vmatprep.subr.bf16.mxu0 %v21528_v17  ;;  %v21572_v17 = vld [vmem:[#allocation2 + $0xd70] sm:$0xff]  }
 0x1fd   :  { %19409 = vmatprep.subr.bf16.mxu1 %v21529_v18  ;;  %v21573_v18 = vld [vmem:[#allocation2 + $0xdf0] sm:$0xff]  }
 0x1ff   :  { %19388 = vmatpush3.bf16.msra.mxu0 %v21530_v19 }
 0x200   :  { %19410 = vmatpush3.bf16.msra.mxu1 %v21531_v21  ;;  %19389 = vmatprep.subr.bf16.mxu0 %v21532_v22  ;;  %v21574_v22 = vld [vmem:[#allocation2 + $0xd30] sm:$0xff]  }
 0x201   :  { %19411 = vmatprep.subr.bf16.mxu1 %v21533_v23 }
 0x203   :  { %19390 = vmatpush3.bf16.msra.mxu0 %v21534_v24 }
 0x204   :  { %19412 = vmatpush3.bf16.msra.mxu1 %v21535_v25  ;;  %19419 = vmatprep.subr.bf16.mxu0 %v21536_v26  ;;  %v21575_v25 = vld [vmem:[#allocation2 + $0xdb0] sm:$0xff]  }
 0x205   :  { %19441 = vmatprep.subr.bf16.mxu1 %v21537_v27 }
 0x206   :  { %v19127_v30 = vpop.f32.mrf.mxu0  ;;  %4215 = vmatmul.mubr.bf16.vlgmr.msra.gmra.mxu0 %v23073_v36 }
 0x207   :  { %v19149_v31 = vpop.f32.mrf.mxu1  ;;  %4255 = vmatmul.mubr.bf16.vlgmr.msra.gmra.mxu1 %v23075_v37  ;;  %19420 = vmatpush3.bf16.msra.mxu0 %v21538_v28  ;;  %v21576_v28 = vld [vmem:[#allocation2 + $0xd68] sm:$0xff]  }
 0x208   :  { %19442 = vmatpush3.bf16.msra.mxu1 %v21539_v29  ;;  %v19128_v38 = vpop.f32.mrf.mxu0  ;;  %19421 = vmatprep.subr.bf16.mxu0 %v21540_v32 }
 0x209   :  { %v19150_v39 = vpop.f32.mrf.mxu1  ;;  %4551 = vmatprep.mubr.bf16.mxu0 %v23069_v34  ;;  %v19129_v41 = vadd.f32 %v19128_v38, %v19127_v30  ;;  %19443 = vmatprep.subr.bf16.mxu1 %v21541_v33  ;;  %v21577_v30 = vld [vmem:[#allocation2 + $0xde8] sm:$0xff]  }
 0x20a   :  { %v19151_v42 = vadd.f32 %v19150_v39, %v19149_v31  ;;  %4591 = vmatprep.mubr.bf16.mxu1 %v23071_v35  ;;  %v19130_v44 = vpop.f32.mrf.mxu0  ;;  %v21578_v33 = vld [vmem:[#allocation2 + $0xd28] sm:$0xff]   ;;  %v21580_v39 = vld [vmem:[#allocation2 + $0xd60] sm:$0xff]  }
 0x20b   :  { %v19152_v45 = vpop.f32.mrf.mxu1  ;;  %19422 = vmatpush3.bf16.msra.mxu0 %v21542_v40  ;;  %v21579_v38 = vld [vmem:[#allocation2 + $0xda8] sm:$0xff]   ;;  %v21581_v40 = vld [vmem:[#allocation2 + $0xde0] sm:$0xff]   ;;  %v21585_v44 = vld [vmem:[#allocation2 + $0xdd8] sm:$0xff]  }
 0x20c   :  { %v2235_v47 = vadd.f32 %v19151_v42, %v19129_v41  ;;  %19444 = vmatpush3.bf16.msra.mxu1 %v21543_v43  ;;  %v19131_v49 = vpop.f32.mrf.mxu0  ;;  %19423 = vmatprep.subr.bf16.mxu0 %v21544_v46  ;;  %v21582_v41 = vld [vmem:[#allocation2 + $0xd20] sm:$0xff]   ;;  %v21584_v43 = vld [vmem:[#allocation2 + $0xd58] sm:$0xff]  }
 0x20d   :  { %v19153_v50 = vpop.f32.mrf.mxu1  ;;  %19445 = vmatprep.subr.bf16.mxu1 %v21545_v48  ;;  %v21583_v42 = vld [vmem:[#allocation2 + $0xda0] sm:$0xff]   ;;  %v21586_v45 = vld [vmem:[#allocation2 + $0xd18] sm:$0xff]   ;;  %v21589_v48 = vld [vmem:[#allocation2 + $0xdd0] sm:$0xff]  }
 0x20e   :  { %v23140_v53 = vpack.c.bf16 %v2235_v47, %v23133_v63  ;;  %v21557_v63 = vld [vmem:[#allocation2 + $0xcd0] sm:$0xff]   ;;  %v21587_v46 = vld [vmem:[#allocation2 + $0xd98] sm:$0xff]  }
 0x20f   :  { %19424 = vmatpush3.bf16.msra.mxu0 %v21546_v51  ;;  %v21588_v47 = vld [vmem:[#allocation2 + $0xd50] sm:$0xff]   ;;  %v21592_v51 = vld [vmem:[#allocation2 + $0xd48] sm:$0xff]  }
 0x210   :  { %19446 = vmatpush3.bf16.msra.mxu1 %v21547_v52  ;;  %19425 = vmatprep.subr.bf16.mxu0 %v21548_v54  ;;  %v21590_v49 = vld [vmem:[#allocation2 + $0xd10] sm:$0xff]   ;;  %v21593_v52 = vld [vmem:[#allocation2 + $0xdc8] sm:$0xff]  }
 0x211   :  { %19447 = vmatprep.subr.bf16.mxu1 %v21549_v55  ;;  %v21591_v50 = vld [vmem:[#allocation2 + $0xd90] sm:$0xff]   ;;  %v21594_v54 = vld [vmem:[#allocation2 + $0xd08] sm:$0xff]  }
 0x212   :  { %v21595_v55 = vld [vmem:[#allocation2 + $0xd88] sm:$0xff]  }
 0x213   :  { %19426 = vmatpush3.bf16.msra.mxu0 %v21550_v57  ;;  %v21596_v57 = vld [vmem:[#allocation2 + $0xd40] sm:$0xff]  }
 0x214   :  { %19448 = vmatpush3.bf16.msra.mxu1 %v21551_v58  ;;  %19427 = vmatprep.subr.bf16.mxu0 %v21552_v59  ;;  %v21597_v58 = vld [vmem:[#allocation2 + $0xdc0] sm:$0xff]  }
 0x215   :  { %19449 = vmatprep.subr.bf16.mxu1 %v21553_v60  ;;  %v21598_v59 = vld [vmem:[#allocation2 + $0xd00] sm:$0xff]  }
 0x216   :  { %v21599_v60 = vld [vmem:[#allocation2 + $0xd80] sm:$0xff]  }
 0x217   :  { %19428 = vmatpush3.bf16.msra.mxu0 %v21554_v61  ;;  %v21600_v61 = vld [vmem:[#allocation2 + $0xe78] sm:$0xff]  }
 0x218   :  { %19450 = vmatpush3.bf16.msra.mxu1 %v21555_v62  ;;  %19429 = vmatprep.subr.bf16.mxu0 %v21556_v0  ;;  %v21601_v62 = vld [vmem:[#allocation2 + $0xef8] sm:$0xff]  }
 0x219   :  { %19451 = vmatprep.subr.bf16.mxu1 %v21557_v63  ;;  %v21602_v0 = vld [vmem:[#allocation2 + $0xe38] sm:$0xff]  }
 0x21a   :  { %v21603_v63 = vld [vmem:[#allocation2 + $0xeb8] sm:$0xff]  }
 0x21b   :  { %19430 = vmatpush3.bf16.msra.mxu0 %v21558_v1 }
 0x21c   :  { %19452 = vmatpush3.bf16.msra.mxu1 %v21559_v2  ;;  %19431 = vmatprep.subr.bf16.mxu0 %v21560_v3  ;;  %v21604_v3 = vld [vmem:[#allocation2 + $0xe70] sm:$0xff]  }
 0x21d   :  { %19453 = vmatprep.subr.bf16.mxu1 %v21561_v4  ;;  %v21605_v4 = vld [vmem:[#allocation2 + $0xef0] sm:$0xff]  }
 0x21f   :  { %19432 = vmatpush3.bf16.msra.mxu0 %v21562_v5 }
 0x220   :  { %19454 = vmatpush3.bf16.msra.mxu1 %v21563_v6  ;;  %19433 = vmatprep.subr.bf16.mxu0 %v21564_v7  ;;  %v21606_v7 = vld [vmem:[#allocation2 + $0xe30] sm:$0xff]  }
 0x221   :  { %19455 = vmatprep.subr.bf16.mxu1 %v21565_v8 }
 0x223   :  { %19434 = vmatpush3.bf16.msra.mxu0 %v21566_v9 }
 0x224   :  { %19456 = vmatpush3.bf16.msra.mxu1 %v21567_v10  ;;  %19463 = vmatprep.subr.bf16.mxu0 %v21568_v11  ;;  %v21607_v10 = vld [vmem:[#allocation2 + $0xeb0] sm:$0xff]  }
 0x225   :  { %19485 = vmatprep.subr.bf16.mxu1 %v21569_v12 }
 0x226   :  { %v19171_v15 = vpop.f32.mrf.mxu0  ;;  %4552 = vmatmul.mubr.bf16.vlgmr.msra.gmra.mxu0 %v23073_v36 }
 0x227   :  { %v19193_v16 = vpop.f32.mrf.mxu1  ;;  %4592 = vmatmul.mubr.bf16.vlgmr.msra.gmra.mxu1 %v23075_v37  ;;  %19464 = vmatpush3.bf16.msra.mxu0 %v21570_v13  ;;  %v21608_v13 = vld [vmem:[#allocation2 + $0xe68] sm:$0xff]  }
 0x228   :  { %19486 = vmatpush3.bf16.msra.mxu1 %v21571_v14  ;;  %v19172_v19 = vpop.f32.mrf.mxu0  ;;  %19465 = vmatprep.subr.bf16.mxu0 %v21572_v17 }
 0x229   :  { %v19194_v21 = vpop.f32.mrf.mxu1  ;;  %4888 = vmatprep.mubr.bf16.mxu0 %v23069_v34  ;;  %v19173_v23 = vadd.f32 %v19172_v19, %v19171_v15  ;;  %19487 = vmatprep.subr.bf16.mxu1 %v21573_v18  ;;  %v21609_v15 = vld [vmem:[#allocation2 + $0xee8] sm:$0xff]  }
 0x22a   :  { %v19195_v24 = vadd.f32 %v19194_v21, %v19193_v16  ;;  %4928 = vmatprep.mubr.bf16.mxu1 %v23071_v35  ;;  %v19174_v26 = vpop.f32.mrf.mxu0  ;;  %v21610_v18 = vld [vmem:[#allocation2 + $0xe28] sm:$0xff]  }
 0x22b   :  { %v19196_v27 = vpop.f32.mrf.mxu1  ;;  %19466 = vmatpush3.bf16.msra.mxu0 %v21574_v22  ;;  %v21611_v19 = vld [vmem:[#allocation2 + $0xea8] sm:$0xff]   ;;  %v21612_v22 = vld [vmem:[#allocation2 + $0xe60] sm:$0xff]   ;;  %v21616_v26 = vld [vmem:[#allocation2 + $0xe58] sm:$0xff]  }
 0x22c   :  { %v23146_v29 = vadd.f32 %v19195_v24, %v19173_v23  ;;  %19488 = vmatpush3.bf16.msra.mxu1 %v21575_v25  ;;  %v19175_v31 = vpop.f32.mrf.mxu0  ;;  %19467 = vmatprep.subr.bf16.mxu0 %v21576_v28  ;;  %v21613_v23 = vld [vmem:[#allocation2 + $0xee0] sm:$0xff]   ;;  %v21617_v27 = vld [vmem:[#allocation2 + $0xed8] sm:$0xff]  }
 0x22d   :  { %v19197_v32 = vpop.f32.mrf.mxu1  ;;  %19489 = vmatprep.subr.bf16.mxu1 %v21577_v30  ;;  %v21614_v24 = vld [vmem:[#allocation2 + $0xe20] sm:$0xff]   ;;  %v21618_v28 = vld [vmem:[#allocation2 + $0xe18] sm:$0xff]   ;;  %v21620_v31 = vld [vmem:[#allocation2 + $0xe50] sm:$0xff]  }
 0x22e   :  { %v21615_v25 = vld [vmem:[#allocation2 + $0xea0] sm:$0xff]   ;;  %v21619_v30 = vld [vmem:[#allocation2 + $0xe98] sm:$0xff]   ;;  %v21622_v32 = vld [vmem:[#allocation2 + $0xe10] sm:$0xff]  }
 0x22f   :  { %19468 = vmatpush3.bf16.msra.mxu0 %v21578_v33  ;;  %v21623_v33 = vld [vmem:[#allocation2 + $0xe90] sm:$0xff]  }
 0x230   :  { %19490 = vmatpush3.bf16.msra.mxu1 %v21579_v38  ;;  %19469 = vmatprep.subr.bf16.mxu0 %v21580_v39  ;;  %v21624_v38 = vld [vmem:[#allocation2 + $0xe48] sm:$0xff]  }
 0x231   :  { %19491 = vmatprep.subr.bf16.mxu1 %v21581_v40  ;;  %v21625_v39 = vld [vmem:[#allocation2 + $0xec8] sm:$0xff]  }
 0x232   :  { %v21626_v40 = vld [vmem:[#allocation2 + $0xe08] sm:$0xff]  }
 0x233   :  { %19470 = vmatpush3.bf16.msra.mxu0 %v21582_v41  ;;  %v21627_v41 = vld [vmem:[#allocation2 + $0xe88] sm:$0xff]  }
 0x234   :  { %19492 = vmatpush3.bf16.msra.mxu1 %v21583_v42  ;;  %19471 = vmatprep.subr.bf16.mxu0 %v21584_v43  ;;  %v21628_v42 = vld [vmem:[#allocation2 + $0xe40] sm:$0xff]  }
 0x235   :  { %19493 = vmatprep.subr.bf16.mxu1 %v21585_v44  ;;  %v21629_v43 = vld [vmem:[#allocation2 + $0xec0] sm:$0xff]  }
 0x236   :  { %v21630_v44 = vld [vmem:[#allocation2 + $0xe00] sm:$0xff]  }
 0x237   :  { %19472 = vmatpush3.bf16.msra.mxu0 %v21586_v45  ;;  %v21631_v45 = vld [vmem:[#allocation2 + $0xe80] sm:$0xff]  }
 0x238   :  { %19494 = vmatpush3.bf16.msra.mxu1 %v21587_v46  ;;  %19473 = vmatprep.subr.bf16.mxu0 %v21588_v47  ;;  %v21632_v46 = vld [vmem:[#allocation2 + $0xf78] sm:$0xff]  }
 0x239   :  { %19495 = vmatprep.subr.bf16.mxu1 %v21589_v48  ;;  %v21633_v47 = vld [vmem:[#allocation2 + $0xff8] sm:$0xff]  }
 0x23a   :  { %v21634_v48 = vld [vmem:[#allocation2 + $0xf38] sm:$0xff]  }
 0x23b   :  { %19474 = vmatpush3.bf16.msra.mxu0 %v21590_v49  ;;  %v21635_v49 = vld [vmem:[#allocation2 + $0xfb8] sm:$0xff]  }
 0x23c   :  { %19496 = vmatpush3.bf16.msra.mxu1 %v21591_v50  ;;  %19475 = vmatprep.subr.bf16.mxu0 %v21592_v51 }
 0x23d   :  { %19497 = vmatprep.subr.bf16.mxu1 %v21593_v52  ;;  %v21636_v52 = vld [vmem:[#allocation2 + $0xf70] sm:$0xff]  }
 0x23f   :  { %19476 = vmatpush3.bf16.msra.mxu0 %v21594_v54  ;;  %v21637_v54 = vld [vmem:[#allocation2 + $0xff0] sm:$0xff]  }
 0x240   :  { %19498 = vmatpush3.bf16.msra.mxu1 %v21595_v55  ;;  %19477 = vmatprep.subr.bf16.mxu0 %v21596_v57 }
 0x241   :  { %19499 = vmatprep.subr.bf16.mxu1 %v21597_v58  ;;  %v21638_v58 = vld [vmem:[#allocation2 + $0xf30] sm:$0xff]  }
 0x243   :  { %19478 = vmatpush3.bf16.msra.mxu0 %v21598_v59 }
 0x244   :  { %19500 = vmatpush3.bf16.msra.mxu1 %v21599_v60  ;;  %19507 = vmatprep.subr.bf16.mxu0 %v21600_v61  ;;  %v21639_v61 = vld [vmem:[#allocation2 + $0xfb0] sm:$0xff]  }
 0x245   :  { %19529 = vmatprep.subr.bf16.mxu1 %v21601_v62 }
 0x246   :  { %v19215_v1 = vpop.f32.mrf.mxu0  ;;  %4889 = vmatmul.mubr.bf16.vlgmr.msra.gmra.mxu0 %v23073_v36 }
 0x247   :  { %v19237_v2 = vpop.f32.mrf.mxu1  ;;  %4929 = vmatmul.mubr.bf16.vlgmr.msra.gmra.mxu1 %v23075_v37  ;;  %19508 = vmatpush3.bf16.msra.mxu0 %v21602_v0 }
 0x248   :  { %19530 = vmatpush3.bf16.msra.mxu1 %v21603_v63  ;;  %v19216_v5 = vpop.f32.mrf.mxu0  ;;  %19509 = vmatprep.subr.bf16.mxu0 %v21604_v3  ;;  %v21640_v63 = vld [vmem:[#allocation2 + $0xf68] sm:$0xff]  }
 0x249   :  { %v19238_v6 = vpop.f32.mrf.mxu1  ;;  %5225 = vmatprep.mubr.bf16.mxu0 %v23069_v34  ;;  %v19217_v8 = vadd.f32 %v19216_v5, %v19215_v1  ;;  %19531 = vmatprep.subr.bf16.mxu1 %v21605_v4  ;;  %v21642_v5 = vld [vmem:[#allocation2 + $0xf28] sm:$0xff]  }
 0x24a   :  { %v19239_v9 = vadd.f32 %v19238_v6, %v19237_v2  ;;  %5265 = vmatprep.mubr.bf16.mxu1 %v23071_v35  ;;  %v19218_v11 = vpop.f32.mrf.mxu0  ;;  %v21641_v2 = vld [vmem:[#allocation2 + $0xfe8] sm:$0xff]   ;;  %v21644_v6 = vld [vmem:[#allocation2 + $0xf60] sm:$0xff]  }
 0x24b   :  { %v19240_v12 = vpop.f32.mrf.mxu1  ;;  %19510 = vmatpush3.bf16.msra.mxu0 %v21606_v7  ;;  %v21645_v7 = vld [vmem:[#allocation2 + $0xfe0] sm:$0xff]   ;;  %v21650_v11 = vld [vmem:[#allocation2 + $0xf18] sm:$0xff]  }
 0x24c   :  { %v2909_v14 = vadd.f32 %v19239_v9, %v19217_v8  ;;  %19532 = vmatpush3.bf16.msra.mxu1 %v21607_v10  ;;  %v19219_v16 = vpop.f32.mrf.mxu0  ;;  %19511 = vmatprep.subr.bf16.mxu0 %v21608_v13  ;;  %v21647_v8 = vld [vmem:[#allocation2 + $0xfa0] sm:$0xff]   ;;  %v21648_v9 = vld [vmem:[#allocation2 + $0xf58] sm:$0xff]   ;;  %v21652_v13 = vld [vmem:[#allocation2 + $0xf50] sm:$0xff]  }
 0x24d   :  { %v19241_v17 = vpop.f32.mrf.mxu1  ;;  %19533 = vmatprep.subr.bf16.mxu1 %v21609_v15  ;;  %v21649_v10 = vld [vmem:[#allocation2 + $0xfd8] sm:$0xff]   ;;  %v21654_v15 = vld [vmem:[#allocation2 + $0xf10] sm:$0xff]  }
 0x24e   :  { %v23153_v21 = vpack.c.bf16 %v2909_v14, %v23146_v29  ;;  %v21621_v29 = vld [vmem:[#allocation2 + $0xed0] sm:$0xff]   ;;  %v21651_v12 = vld [vmem:[#allocation2 + $0xf98] sm:$0xff]   ;;  %v21656_v17 = vld [vmem:[#allocation2 + $0xf48] sm:$0xff]  }
 0x24f   :  { %19512 = vmatpush3.bf16.msra.mxu0 %v21610_v18  ;;  %v21653_v14 = vld [vmem:[#allocation2 + $0xfd0] sm:$0xff]   ;;  %v21657_v18 = vld [vmem:[#allocation2 + $0xfc8] sm:$0xff]  }
 0x250   :  { %19534 = vmatpush3.bf16.msra.mxu1 %v21611_v19  ;;  %19513 = vmatprep.subr.bf16.mxu0 %v21612_v22  ;;  %v21655_v16 = vld [vmem:[#allocation2 + $0xf90] sm:$0xff]   ;;  %v21658_v19 = vld [vmem:[#allocation2 + $0xf08] sm:$0xff]  }
 0x251   :  { %19535 = vmatprep.subr.bf16.mxu1 %v21613_v23  ;;  %v21659_v22 = vld [vmem:[#allocation2 + $0xf88] sm:$0xff]   ;;  %v21660_v23 = vld [vmem:[#allocation2 + $0xf40] sm:$0xff]  }
 0x253   :  { %19514 = vmatpush3.bf16.msra.mxu0 %v21614_v24  ;;  %v21661_v24 = vld [vmem:[#allocation2 + $0xfc0] sm:$0xff]  }
 0x254   :  { %19536 = vmatpush3.bf16.msra.mxu1 %v21615_v25  ;;  %19515 = vmatprep.subr.bf16.mxu0 %v21616_v26  ;;  %v21662_v25 = vld [vmem:[#allocation2 + $0xf00] sm:$0xff]  }
 0x255   :  { %19537 = vmatprep.subr.bf16.mxu1 %v21617_v27  ;;  %v21663_v26 = vld [vmem:[#allocation2 + $0xf80] sm:$0xff]  }
 0x257   :  { %19516 = vmatpush3.bf16.msra.mxu0 %v21618_v28 }
 0x258   :  { %19538 = vmatpush3.bf16.msra.mxu1 %v21619_v30  ;;  %19517 = vmatprep.subr.bf16.mxu0 %v21620_v31 }
 0x259   :  { %19539 = vmatprep.subr.bf16.mxu1 %v21621_v29 }
 0x25b   :  { %19518 = vmatpush3.bf16.msra.mxu0 %v21622_v32 }
 0x25c   :  { %19540 = vmatpush3.bf16.msra.mxu1 %v21623_v33  ;;  %19519 = vmatprep.subr.bf16.mxu0 %v21624_v38 }
 0x25d   :  { %19541 = vmatprep.subr.bf16.mxu1 %v21625_v39 }
 0x25f   :  { %19520 = vmatpush3.bf16.msra.mxu0 %v21626_v40 }
 0x260   :  { %19542 = vmatpush3.bf16.msra.mxu1 %v21627_v41  ;;  %19521 = vmatprep.subr.bf16.mxu0 %v21628_v42 }
 0x261   :  { %19543 = vmatprep.subr.bf16.mxu1 %v21629_v43 }
 0x263   :  { %19522 = vmatpush3.bf16.msra.mxu0 %v21630_v44 }
 0x264   :  { %19544 = vmatpush3.bf16.msra.mxu1 %v21631_v45  ;;  %19551 = vmatprep.subr.bf16.mxu0 %v21632_v46 }
 0x265   :  { %19573 = vmatprep.subr.bf16.mxu1 %v21633_v47 }
 0x266   :  { %v19259_v50 = vpop.f32.mrf.mxu0  ;;  %5226 = vmatmul.mubr.bf16.vlgmr.msra.gmra.mxu0 %v23073_v36 }
 0x267   :  { %v19281_v51 = vpop.f32.mrf.mxu1  ;;  %5266 = vmatmul.mubr.bf16.vlgmr.msra.gmra.mxu1 %v23075_v37  ;;  %19552 = vmatpush3.bf16.msra.mxu0 %v21634_v48 }
 0x268   :  { %19574 = vmatpush3.bf16.msra.mxu1 %v21635_v49  ;;  %v19260_v55 = vpop.f32.mrf.mxu0  ;;  %19553 = vmatprep.subr.bf16.mxu0 %v21636_v52 }
 0x269   :  { %v19282_v57 = vpop.f32.mrf.mxu1  ;;  %5562 = vmatprep.mubr.bf16.mxu0 %v23069_v34  ;;  %v19261_v59 = vadd.f32 %v19260_v55, %v19259_v50  ;;  %19575 = vmatprep.subr.bf16.mxu1 %v21637_v54  ;;  %v21643_v34 = vld [vmem:[#allocation2 + $0xfa8] sm:$0xff]  }
 0x26a   :  { %v19283_v60 = vadd.f32 %v19282_v57, %v19281_v51  ;;  %5602 = vmatprep.mubr.bf16.mxu1 %v23071_v35  ;;  %v19262_v62 = vpop.f32.mrf.mxu0  ;;  %v21646_v35 = vld [vmem:[#allocation2 + $0xf20] sm:$0xff]  }
 0x26b   :  { %v19284_v0 = vpop.f32.mrf.mxu1  ;;  %19554 = vmatpush3.bf16.msra.mxu0 %v21638_v58 }
 0x26c   :  { %v23159_v1 = vadd.f32 %v19283_v60, %v19261_v59  ;;  %19576 = vmatpush3.bf16.msra.mxu1 %v21639_v61  ;;  %v19263_v3 = vpop.f32.mrf.mxu0  ;;  %19555 = vmatprep.subr.bf16.mxu0 %v21640_v63 }
 0x26d   :  { %v19285_v4 = vpop.f32.mrf.mxu1  ;;  %19577 = vmatprep.subr.bf16.mxu1 %v21641_v2 }
 0x26f   :  { %19556 = vmatpush3.bf16.msra.mxu0 %v21642_v5 }
 0x270   :  { %19578 = vmatpush3.bf16.msra.mxu1 %v21643_v34  ;;  %19557 = vmatprep.subr.bf16.mxu0 %v21644_v6 }
 0x271   :  { %19579 = vmatprep.subr.bf16.mxu1 %v21645_v7 }
 0x273   :  { %19558 = vmatpush3.bf16.msra.mxu0 %v21646_v35 }
 0x274   :  { %19580 = vmatpush3.bf16.msra.mxu1 %v21647_v8  ;;  %19559 = vmatprep.subr.bf16.mxu0 %v21648_v9 }
 0x275   :  { %19581 = vmatprep.subr.bf16.mxu1 %v21649_v10 }
 0x277   :  { %19560 = vmatpush3.bf16.msra.mxu0 %v21650_v11  ;;  %v21664_v11 = vld [vmem:[#allocation4] sm:$0xff]  }
 0x278   :  { %19582 = vmatpush3.bf16.msra.mxu1 %v21651_v12  ;;  %19561 = vmatprep.subr.bf16.mxu0 %v21652_v13  ;;  %v5622_v12 = vld [vmem:[%s25577_s27] sm:$0xff]  ;;  %v5624_v13 = vld [vmem:[%s25577_s27 + $0x10] sm:$0xff] }
 0x279   :  { %19583 = vmatprep.subr.bf16.mxu1 %v21653_v14  ;;  %v25499_v14 = vmov 0  }
 0x27a   :  { %21146 = vset.pattern.permute.xlu0 %v25499_v14  ;;  %21147 = vset.pattern.permute.xlu1 %v25499_v14 }
 0x27b   :  { %19562 = vmatpush3.bf16.msra.mxu0 %v21654_v15  ;;  %5628 = vperm.xlu0 %21146, %v5622_v12   ;;  %v5623_v15 = vld [vmem:[%s25577_s27 + $0x8] sm:$0xff] }
 0x27c   :  { %19584 = vmatpush3.bf16.msra.mxu1 %v21655_v16  ;;  %19563 = vmatprep.subr.bf16.mxu0 %v21656_v17  ;;  %v5625_v16 = vld [vmem:[%s25577_s27 + $0x18] sm:$0xff]  ;;  %v7584_v17 = vld [vmem:[%s25479_s7] sm:$0xff] }
 0x27d   :  { %19585 = vmatprep.subr.bf16.mxu1 %v21657_v18  ;;  %5638 = vperm.xlu1 %21147, %v5624_v13   ;;  %v7585_v18 = vld [vmem:[%s25479_s7 + $0x8] sm:$0xff] }
 0x27f   :  { %19564 = vmatpush3.bf16.msra.mxu0 %v21658_v19  ;;  %5633 = vperm.xlu0 %21146, %v5623_v15   ;;  %v7586_v19 = vld [vmem:[%s25479_s7 + $0x10] sm:$0xff]  ;;  %v21667_v15 = vld [vmem:[%s25578_s18 + $0x78] sm:$0xff]  }
 0x280   :  { %19586 = vmatpush3.bf16.msra.mxu1 %v21659_v22  ;;  %19565 = vmatprep.subr.bf16.mxu0 %v21660_v23  ;;  %v7587_v22 = vld [vmem:[%s25479_s7 + $0x18] sm:$0xff] }
 0x281   :  { %19587 = vmatprep.subr.bf16.mxu1 %v21661_v24  ;;  %5643 = vperm.xlu1 %21147, %v5625_v16   ;;  %v21666_v23 = vld [vmem:[%s25578_s18 + $0x38] sm:$0xff]   ;;  %v7588_v24 = vld [vmem:[%s25479_s7 + $0x20] sm:$0xff]  ;;  %v21677_v16 = vld [vmem:[%s25578_s18 + $0x50] sm:$0xff]  }
 0x283   :  { %19566 = vmatpush3.bf16.msra.mxu0 %v21662_v25  ;;  %7594 = vperm.xlu0 %21146, %v7584_v17   ;;  %v7589_v25 = vld [vmem:[%s25479_s7 + $0x28] sm:$0xff] }
 0x284   :  { %19588 = vmatpush3.bf16.msra.mxu1 %v21663_v26  ;;  %v21668_v26 = vld [vmem:[%s25578_s18 + $0x30] sm:$0xff]   ;;  %v21678_v17 = vld [vmem:[%s25578_s18 + $0x8] sm:$0xff]  }
 0x285   :  { %7599 = vperm.xlu1 %21147, %v7585_v18   ;;  %20301 = vmatprep.subr.bf16.mxu1 %v21666_v23  ;;  %v21679_v18 = vld [vmem:[%s25578_s18 + $0x48] sm:$0xff]  }
 0x286   :  { %v19303_v27 = vpop.f32.mrf.mxu0  ;;  %5563 = vmatmul.mubr.bf16.vlgmr.msra.gmra.mxu0 %v23073_v36 }
 0x287   :  { %v19325_v28 = vpop.f32.mrf.mxu1  ;;  %5603 = vmatmul.mubr.bf16.vlgmr.msra.gmra.mxu1 %v23075_v37  ;;  %20297 = vmatprep.mubr.bf16.mxu0 %v21664_v11 }
 0x288   :  { %v19304_v30 = vpop.f32.mrf.mxu0  ;;  %20302 = vmatpush3.bf16.msra.mxu1 %v21666_v23  ;;  %7604 = vperm.xlu0 %21146, %v7586_v19   ;;  %v21680_v19 = vld [vmem:[%s25578_s18] sm:$0xff]   ;;  %v21682_v23 = vld [vmem:[%s25578_s18 + $0xb8] sm:$0xff]  }
 0x289   :  { %v19326_v31 = vpop.f32.mrf.mxu1  ;;  %v19305_v29 = vadd.f32 %v19304_v30, %v19303_v27  ;;  %7609 = vperm.xlu1 %21147, %v7587_v22   ;;  %20303 = vmatprep.subr.bf16.mxu1 %v21668_v26  ;;  %v7590_v27 = vld [vmem:[%s25479_s7 + $0x30] sm:$0xff]  ;;  %v21670_v30 = vld [vmem:[%s25578_s18 + $0x28] sm:$0xff]   ;;  %v21681_v22 = vld [vmem:[%s25578_s18 + $0x40] sm:$0xff]  }
 0x28a   :  { %v19327_v32 = vadd.f32 %v19326_v31, %v19325_v28  ;;  %v19306_v33 = vpop.f32.mrf.mxu0  ;;  %v7591_v28 = vld [vmem:[%s25479_s7 + $0x38] sm:$0xff]  ;;  %v9251_v31 = vld [vmem:[%s25482_s10 + $0x8] sm:$0xff] }
 0x28b   :  { %v19328_v38 = vpop.f32.mrf.mxu1 }
 0x28c   :  { %v3583_v39 = vadd.f32 %v19327_v32, %v19305_v29  ;;  %v19307_v40 = vpop.f32.mrf.mxu0  ;;  %20304 = vmatpush3.bf16.msra.mxu1 %v21668_v26  ;;  %7614 = vperm.xlu0 %21146, %v7588_v24   ;;  %v9250_v29 = vld [vmem:[%s25482_s10] sm:$0xff]  ;;  %v21683_v24 = vld [vmem:[%s25578_s18 + $0xf8] sm:$0xff]  }
 0x28d   :  { %v19329_v41 = vpop.f32.mrf.mxu1  ;;  %7619 = vperm.xlu1 %21147, %v7589_v25   ;;  %20305 = vmatprep.subr.bf16.mxu1 %v21670_v30  ;;  %v21672_v32 = vld [vmem:[%s25578_s18 + $0x20] sm:$0xff]  }
 0x28e   :  { %v23164_v42 = vpack.c.bf16 %v3583_v39, %v23159_v1  ;;  %v11727_v41 = vld [vmem:[%s25488_s16] sm:$0xff] }
 0x290   :  { %20306 = vmatpush3.bf16.msra.mxu1 %v21670_v30  ;;  %7624 = vperm.xlu0 %21146, %v7590_v27  }
 0x291   :  { %7629 = vperm.xlu1 %21147, %v7591_v28   ;;  %20307 = vmatprep.subr.bf16.mxu1 %v21672_v32 }
 0x294   :  { %20308 = vmatpush3.bf16.msra.mxu1 %v21672_v32  ;;  %9259 = vperm.xlu0 %21146, %v9251_v31  }
 0x295   :  { %9254 = vperm.xlu1 %21147, %v9250_v29  }
 0x298   :  { %11733 = vperm.xlu0 %21146, %v11727_v41  }
 0x2a6   :  { %v19347_v43 = vpop.f32.mrf.mxu0 }
 0x2a7   :  { %v19369_v44 = vpop.f32.mrf.mxu1 }
 0x2a8   :  { %v19348_v45 = vpop.f32.mrf.mxu0 }
 0x2a9   :  { %v19370_v46 = vpop.f32.mrf.mxu1  ;;  %v19349_v47 = vadd.f32 %v19348_v45, %v19347_v43  ;;  %v11728_v43 = vld [vmem:[%s25488_s16 + $0x8] sm:$0xff] }
 0x2aa   :  { %v19371_v36 = vadd.f32 %v19370_v46, %v19369_v44  ;;  %v19350_v48 = vpop.f32.mrf.mxu0  ;;  %v21674_v44 = vld [vmem:[%s25578_s18 + $0x18] sm:$0xff]   ;;  %11738 = vperm.xlu1 %21147, %v11728_v43  }
 0x2ab   :  { %v19372_v37 = vpop.f32.mrf.mxu1  ;;  %20309 = vmatprep.subr.bf16.mxu1 %v21674_v44 }
 0x2ac   :  { %v3920_v49 = vadd.f32 %v19371_v36, %v19349_v47  ;;  %v19351_v50 = vpop.f32.mrf.mxu0  ;;  %20310 = vmatpush3.bf16.msra.mxu1 %v21674_v44 }
 0x2ad   :  { %v19373_v51 = vpop.f32.mrf.mxu1  ;;  %v11729_v50 = vld [vmem:[%s25488_s16 + $0x10] sm:$0xff] }
 0x2ae   :  { %v11730_v51 = vld [vmem:[%s25488_s16 + $0x18] sm:$0xff]  ;;  %11743 = vperm.xlu0 %21146, %v11729_v50   ;;  %v21688_v50 = vld [vmem:[%s25578_s18 + $0xa0] sm:$0xff]   ;;  %s25580_s16 = sld [smem:[#allocation131_spill]] }
 0x2af   :  { %11748 = vperm.xlu1 %21147, %v11730_v51   ;;  %v21689_v51 = vld [vmem:[%s25578_s18 + $0xe0] sm:$0xff]  }
 0x2c6   :  { %v19391_v52 = vpop.f32.mrf.mxu0 }
 0x2c7   :  { %v19413_v54 = vpop.f32.mrf.mxu1 }
 0x2c8   :  { %v19392_v55 = vpop.f32.mrf.mxu0 }
 0x2c9   :  { %v19414_v57 = vpop.f32.mrf.mxu1  ;;  %v19393_v58 = vadd.f32 %v19392_v55, %v19391_v52 }
 0x2ca   :  { %v19415_v59 = vadd.f32 %v19414_v57, %v19413_v54  ;;  %v19394_v60 = vpop.f32.mrf.mxu0  ;;  %v16945_v54 = vld [vmem:[%s25491_s19] sm:$0x7] }
 0x2cb   :  { %v19416_v61 = vpop.f32.mrf.mxu1  ;;  %16948 = vperm.xlu0 %21146, %v16945_v54   ;;  %v21691_v54 = vld [vmem:[%s25578_s18 + $0xd8] sm:$0xff]  }
 0x2cc   :  { %v4257_v62 = vadd.f32 %v19415_v59, %v19393_v58  ;;  %v19395_v0 = vpop.f32.mrf.mxu0 }
 0x2cd   :  { %v19417_v63 = vpop.f32.mrf.mxu1 }
 0x2ce   :  { %v23166_v1 = vpack.c.bf16 %v4257_v62, %v3920_v49 }
 0x2e6   :  { %v19435_v2 = vpop.f32.mrf.mxu0 }
 0x2e7   :  { %v19457_v3 = vpop.f32.mrf.mxu1 }
 0x2e8   :  { %v19436_v4 = vpop.f32.mrf.mxu0 }
 0x2e9   :  { %v19458_v5 = vpop.f32.mrf.mxu1  ;;  %v19437_v34 = vadd.f32 %v19436_v4, %v19435_v2 }
 0x2ea   :  { %v19459_v6 = vadd.f32 %v19458_v5, %v19457_v3  ;;  %v19438_v7 = vpop.f32.mrf.mxu0 }
 0x2eb   :  { %v19460_v35 = vpop.f32.mrf.mxu1 }
 0x2ec   :  { %v23168_v8 = vadd.f32 %v19459_v6, %v19437_v34  ;;  %v19439_v9 = vpop.f32.mrf.mxu0 }
 0x2ed   :  { %v19461_v10 = vpop.f32.mrf.mxu1 }
 0x2f6   :  { %v5629_v26 = vpop.permute.xlu0 %5628 }
 0x2f8   :  { %v5639_v25 = vpop.permute.xlu1 %5638 }
 0x2fc   :  { %v5644_v30 = vpop.permute.xlu1 %5643 }
 0x306   :  { %v19479_v33 = vpop.f32.mrf.mxu0 }
 0x307   :  { %v19501_v38 = vpop.f32.mrf.mxu1 }
 0x308   :  { %v19480_v39 = vpop.f32.mrf.mxu0 }
 0x309   :  { %v19502_v40 = vpop.f32.mrf.mxu1  ;;  %v19481_v45 = vadd.f32 %v19480_v39, %v19479_v33  ;;  %v5634_v33 = vpop.permute.xlu0 %5633 }
 0x30a   :  { %v19503_v46 = vadd.f32 %v19502_v40, %v19501_v38  ;;  %v19482_v47 = vpop.f32.mrf.mxu0 }
 0x30b   :  { %v19504_v36 = vpop.f32.mrf.mxu1 }
 0x30c   :  { %v4931_v48 = vadd.f32 %v19503_v46, %v19481_v45  ;;  %v19483_v37 = vpop.f32.mrf.mxu0  ;;  %v21684_v36 = vld [vmem:[%s25578_s18 + $0xb0] sm:$0xff]  }
 0x30d   :  { %v19505_v49 = vpop.f32.mrf.mxu1  ;;  %v21686_v37 = vld [vmem:[%s25578_s18 + $0xa8] sm:$0xff]  }
 0x30e   :  { %v5616_v52 = vpack.c.bf16 %v4931_v48, %v23168_v8  ;;  %v21685_v48 = vld [vmem:[%s25578_s18 + $0xf0] sm:$0xff]   ;;  %v21687_v49 = vld [vmem:[%s25578_s18 + $0xe8] sm:$0xff]  }
 0x326   :  { %v19523_v55 = vpop.f32.mrf.mxu0 }
 0x327   :  { %v19545_v57 = vpop.f32.mrf.mxu1 }
 0x328   :  { %v19524_v58 = vpop.f32.mrf.mxu0 }
 0x329   :  { %v19546_v59 = vpop.f32.mrf.mxu1  ;;  %v19525_v3 = vadd.f32 %v19524_v58, %v19523_v55  ;;  %v21692_v55 = vld [vmem:[%s25578_s18 + $0x90] sm:$0xff]   ;;  %v21694_v58 = vld [vmem:[%s25578_s18 + $0x88] sm:$0xff]  }
 0x32a   :  { %v19526_v60 = vpop.f32.mrf.mxu0  ;;  %v19547_v4 = vadd.f32 %v19546_v59, %v19545_v57  ;;  %v21693_v57 = vld [vmem:[%s25578_s18 + $0xd0] sm:$0xff]   ;;  %v21695_v59 = vld [vmem:[%s25578_s18 + $0xc8] sm:$0xff]  }
 0x32b   :  { %v19548_v61 = vpop.f32.mrf.mxu1  ;;  %v21696_v60 = vld [vmem:[%s25578_s18 + $0x80] sm:$0xff]  }
 0x32c   :  { %v19527_v62 = vpop.f32.mrf.mxu0  ;;  %v5268_v9 = vadd.f32 %v19547_v4, %v19525_v3  ;;  %v21697_v61 = vld [vmem:[%s25578_s18 + $0xc0] sm:$0xff]   ;;  %v21702_v3 = vld [vmem:[%s25578_s18 + $0x128] sm:$0xff]  }
 0x32d   :  { %v19549_v0 = vpop.f32.mrf.mxu1  ;;  %v21698_v62 = vld [vmem:[%s25578_s18 + $0x138] sm:$0xff]   ;;  %v21703_v4 = vld [vmem:[%s25578_s18 + $0x168] sm:$0xff]  }
 0x32e   :  { %v21699_v0 = vld [vmem:[%s25578_s18 + $0x178] sm:$0xff]  }
 0x346   :  { %v19567_v63 = vpop.f32.mrf.mxu0 }
 0x347   :  { %v19589_v2 = vpop.f32.mrf.mxu1 }
 0x348   :  { %v19568_v5 = vpop.f32.mrf.mxu0 }
 0x349   :  { %v19590_v34 = vpop.f32.mrf.mxu1  ;;  %v19569_v6 = vadd.f32 %v19568_v5, %v19567_v63  ;;  %v21700_v63 = vld [vmem:[%s25578_s18 + $0x130] sm:$0xff]   ;;  %v21704_v5 = vld [vmem:[%s25578_s18 + $0x120] sm:$0xff]  }
 0x34a   :  { %v19591_v7 = vadd.f32 %v19590_v34, %v19589_v2  ;;  %v19570_v35 = vpop.f32.mrf.mxu0  ;;  %v21701_v2 = vld [vmem:[%s25578_s18 + $0x170] sm:$0xff]   ;;  %v21705_v34 = vld [vmem:[%s25578_s18 + $0x160] sm:$0xff]  }
 0x34b   :  { %v19592_v8 = vpop.f32.mrf.mxu1  ;;  %v21708_v35 = vld [vmem:[%s25578_s18 + $0x110] sm:$0xff]  }
 0x34c   :  { %v5605_v10 = vadd.f32 %v19591_v7, %v19569_v6  ;;  %v19571_v11 = vpop.f32.mrf.mxu0  ;;  %v21706_v6 = vld [vmem:[%s25578_s18 + $0x118] sm:$0xff]   ;;  %v21709_v8 = vld [vmem:[%s25578_s18 + $0x150] sm:$0xff]  }
 0x34d   :  { %v19593_v12 = vpop.f32.mrf.mxu1  ;;  %v21707_v7 = vld [vmem:[%s25578_s18 + $0x158] sm:$0xff]   ;;  %v21712_v11 = vld [vmem:[%s25578_s18 + $0x100] sm:$0xff]  }
 0x34e   :  { %v5617_v13 = vpack.c.bf16 %v5605_v10, %v5268_v9  ;;  %v21710_v9 = vld [vmem:[%s25578_s18 + $0x108] sm:$0xff]   ;;  %v21713_v12 = vld [vmem:[%s25578_s18 + $0x140] sm:$0xff]  }
 0x34f   :  { %v21711_v10 = vld [vmem:[%s25578_s18 + $0x148] sm:$0xff]  }
 0x350   :  { %20281 = vmatprep.subr.bf16.mxu0 %v5617_v13 }
 0x351   :  { %20282 = vmatpush3.bf16.msra.mxu0 %v5617_v13  ;;  %v21714_v13 = vld [vmem:[%s25578_s18 + $0x1b8] sm:$0xff]  }
 0x352   :  { %20283 = vmatprep.subr.bf16.mxu0 %v5616_v52 }
 0x355   :  { %20284 = vmatpush3.bf16.msra.mxu0 %v5616_v52  ;;  %v21690_v52 = vld [vmem:[%s25578_s18 + $0x98] sm:$0xff]  }
 0x356   :  { %20285 = vmatprep.subr.bf16.mxu0 %v23166_v1 }
 0x359   :  { %20286 = vmatpush3.bf16.msra.mxu0 %v23166_v1  ;;  %v21665_v1 = vld [vmem:[#allocation4 + $0x8] sm:$0xff]  }
 0x35a   :  { %20287 = vmatprep.subr.bf16.mxu0 %v23164_v42 }
 0x35d   :  { %20288 = vmatpush3.bf16.msra.mxu0 %v23164_v42  ;;  %v21669_v42 = vld [vmem:[%s25578_s18 + $0x70] sm:$0xff]  }
 0x35e   :  { %20289 = vmatprep.subr.bf16.mxu0 %v23153_v21 }
 0x361   :  { %20290 = vmatpush3.bf16.msra.mxu0 %v23153_v21  ;;  %v21675_v21 = vld [vmem:[%s25578_s18 + $0x58] sm:$0xff]  }
 0x362   :  { %20291 = vmatprep.subr.bf16.mxu0 %v23140_v53 }
 0x365   :  { %20292 = vmatpush3.bf16.msra.mxu0 %v23140_v53  ;;  %v21671_v53 = vld [vmem:[%s25578_s18 + $0x68] sm:$0xff]  }
 0x366   :  { %20293 = vmatprep.subr.bf16.mxu0 %v23127_v20 }
 0x369   :  { %20294 = vmatpush3.bf16.msra.mxu0 %v23127_v20  ;;  %v21673_v20 = vld [vmem:[%s25578_s18 + $0x60] sm:$0xff]  }
 0x36a   :  { %20295 = vmatprep.subr.bf16.mxu0 %v23114_v56 }
 0x36d   :  { %20296 = vmatpush3.bf16.msra.mxu0 %v23114_v56  ;;  %v21676_v56 = vld [vmem:[%s25578_s18 + $0x10] sm:$0xff]  }
 0x36e   :  { %20321 = vmatprep.subr.bf16.mxu0 %v21667_v15  ;;  %20311 = vmatprep.subr.bf16.mxu1 %v21676_v56 }
 0x36f   :  { %20312 = vmatpush3.bf16.msra.mxu1 %v21676_v56  ;;  %v21721_v56 = vld [vmem:[%s25578_s18 + $0x1e0] sm:$0xff]  }
 0x370   :  { %20298 = vmatmul.mubr.bf16.vlgmr.msra.gmra.mxu0 %v21665_v1  ;;  %20313 = vmatprep.subr.bf16.mxu1 %v21678_v17  ;;  %v21716_v1 = vld [vmem:[%s25578_s18 + $0x1b0] sm:$0xff]  }
 0x371   :  { %20322 = vmatpush3.bf16.msra.mxu0 %v21667_v15  ;;  %v21715_v15 = vld [vmem:[%s25578_s18 + $0x1f8] sm:$0xff]  }
 0x372   :  { %20323 = vmatprep.subr.bf16.mxu0 %v21669_v42 }
 0x373   :  { %20314 = vmatpush3.bf16.msra.mxu1 %v21678_v17  ;;  %v21723_v17 = vld [vmem:[%s25578_s18 + $0x1d8] sm:$0xff]  }
 0x374   :  { %20315 = vmatprep.subr.bf16.mxu1 %v21680_v19 }
 0x375   :  { %20324 = vmatpush3.bf16.msra.mxu0 %v21669_v42  ;;  %v21717_v42 = vld [vmem:[%s25578_s18 + $0x1f0] sm:$0xff]  }
 0x376   :  { %20325 = vmatprep.subr.bf16.mxu0 %v21671_v53 }
 0x377   :  { %20316 = vmatpush3.bf16.msra.mxu1 %v21680_v19  ;;  %v21725_v19 = vld [vmem:[%s25578_s18 + $0x1d0] sm:$0xff]  }
 0x378   :  { %20341 = vmatprep.subr.bf16.mxu1 %v21682_v23 }
 0x379   :  { %20326 = vmatpush3.bf16.msra.mxu0 %v21671_v53  ;;  %v21718_v53 = vld [vmem:[%s25578_s18 + $0x1a8] sm:$0xff]  }
 0x37a   :  { %20327 = vmatprep.subr.bf16.mxu0 %v21673_v20 }
 0x37d   :  { %20328 = vmatpush3.bf16.msra.mxu0 %v21673_v20  ;;  %v21719_v20 = vld [vmem:[%s25578_s18 + $0x1e8] sm:$0xff]  }
 0x37e   :  { %20329 = vmatprep.subr.bf16.mxu0 %v21675_v21 }
 0x381   :  { %20330 = vmatpush3.bf16.msra.mxu0 %v21675_v21  ;;  %v21720_v21 = vld [vmem:[%s25578_s18 + $0x1a0] sm:$0xff]  }
 0x382   :  { %20331 = vmatprep.subr.bf16.mxu0 %v21677_v16 }
 0x385   :  { %20332 = vmatpush3.bf16.msra.mxu0 %v21677_v16  ;;  %v21722_v16 = vld [vmem:[%s25578_s18 + $0x198] sm:$0xff]  }
 0x386   :  { %20333 = vmatprep.subr.bf16.mxu0 %v21679_v18 }
 0x389   :  { %20334 = vmatpush3.bf16.msra.mxu0 %v21679_v18  ;;  %v21724_v18 = vld [vmem:[%s25578_s18 + $0x190] sm:$0xff]  }
 0x38a   :  { %20335 = vmatprep.subr.bf16.mxu0 %v21681_v22 }
 0x38d   :  { %20336 = vmatpush3.bf16.msra.mxu0 %v21681_v22  ;;  %v21726_v22 = vld [vmem:[%s25578_s18 + $0x188] sm:$0xff]  }
 0x38e   :  { %20361 = vmatprep.subr.bf16.mxu0 %v21683_v24 }
 0x430   :  { %v20299_v27 = vpop.f32.mrf.mxu0 }
 0x431   :  { %v5701_v38 = vadd.f32 %v20299_v27, %v5639_v25  ;;  %v21729_v25 = vld [vmem:[%s25578_s18 + $0x1c0] sm:$0xff]   ;;  %v21731_v27 = vld [vmem:[%s25578_s18 + $0x278] sm:$0xff]  }
 0x432   :  { %v5692_v28 = vpop.f32.mrf.mxu0 }
 0x433   :  { %v5693_v29 = vadd.f32 %v5692_v28, %v5629_v26  ;;  %v5709_v45 = vmax.f32 %v5701_v38, 0.0  ;;  %v21730_v26 = vld [vmem:[%s25578_s18 + $0x238] sm:$0xff]   ;;  %v21732_v28 = vld [vmem:[%s25578_s18 + $0x230] sm:$0xff]  }
 0x434   :  { %v20300_v31 = vpop.f32.mrf.mxu0  ;;  %v21738_v38 = vld [vmem:[%s25578_s18 + $0x218] sm:$0xff]  }
 0x435   :  { %v5704_v32 = vadd.f32 %v20300_v31, %v5644_v30  ;;  %v5707_v43 = vmax.f32 %v5693_v29, 0.0  ;;  %v21733_v30 = vld [vmem:[%s25578_s18 + $0x270] sm:$0xff]   ;;  %v21734_v31 = vld [vmem:[%s25578_s18 + $0x228] sm:$0xff]  }
 0x436   :  { %v5695_v39 = vpop.f32.mrf.mxu0  ;;  %v21735_v29 = vld [vmem:[%s25578_s18 + $0x268] sm:$0xff]  }
 0x437   :  { %v5696_v40 = vadd.f32 %v5695_v39, %v5634_v33  ;;  %v5710_v41 = vmax.f32 %v5704_v32, 0.0  ;;  %v21736_v32 = vld [vmem:[%s25578_s18 + $0x220] sm:$0xff]   ;;  %v21739_v39 = vld [vmem:[%s25578_s18 + $0x258] sm:$0xff]  }
 0x438   :  { %v21737_v33 = vld [vmem:[%s25578_s18 + $0x260] sm:$0xff]  }
 0x439   :  { %v5708_v44 = vmax.f32 %v5696_v40, 0.0  ;;  %v23298_v47 = vpack.c.bf16 %v5710_v41, %v5709_v45  ;;  %v21740_v40 = vld [vmem:[%s25578_s18 + $0x210] sm:$0xff]   ;;  %v21744_v45 = vld [vmem:[%s25578_s18 + $0x200] sm:$0xff]  }
 0x43a   :  { %v21741_v41 = vld [vmem:[%s25578_s18 + $0x250] sm:$0xff]  }
 0x43b   :  { %v23296_v46 = vpack.c.bf16 %v5708_v44, %v5707_v43  ;;  %v21742_v43 = vld [vmem:[%s25578_s18 + $0x208] sm:$0xff]  }
 0x43c   :  { %v21743_v44 = vld [vmem:[%s25578_s18 + $0x248] sm:$0xff]  }
 0x43d   :  { %20317 = vmatprep.mubr.bf16.mxu1 %v23296_v46  ;;  %20337 = vmatprep.mubr.bf16.mxu0 %v23296_v46 }
 0x43e   :  { %20318 = vmatmul.mubr.bf16.vlgmr.msra.gmra.mxu1 %v23298_v47  ;;  %20338 = vmatmul.mubr.bf16.vlgmr.msra.gmra.mxu0 %v23298_v47 }
 0x43f   :  { %20342 = vmatpush3.bf16.msra.mxu1 %v21682_v23  ;;  %20362 = vmatpush3.bf16.msra.mxu0 %v21683_v24  ;;  %v21727_v23 = vld [vmem:[%s25578_s18 + $0x1c8] sm:$0xff]   ;;  %v21728_v24 = vld [vmem:[%s25578_s18 + $0x180] sm:$0xff]  }
 0x440   :  { %20357 = vmatprep.mubr.bf16.mxu1 %v23296_v46  ;;  %20377 = vmatprep.mubr.bf16.mxu0 %v23296_v46 }
 0x441   :  { %20343 = vmatprep.subr.bf16.mxu1 %v21684_v36  ;;  %20363 = vmatprep.subr.bf16.mxu0 %v21685_v48 }
 0x443   :  { %20344 = vmatpush3.bf16.msra.mxu1 %v21684_v36  ;;  %20364 = vmatpush3.bf16.msra.mxu0 %v21685_v48  ;;  %v21745_v36 = vld [vmem:[%s25578_s18 + $0x240] sm:$0xff]   ;;  %v21746_v48 = vld [vmem:[%s25578_s18 + $0x2b8] sm:$0xff]  }
 0x444   :  { %20345 = vmatprep.subr.bf16.mxu1 %v21686_v37  ;;  %20365 = vmatprep.subr.bf16.mxu0 %v21687_v49 }
 0x447   :  { %20346 = vmatpush3.bf16.msra.mxu1 %v21686_v37  ;;  %20366 = vmatpush3.bf16.msra.mxu0 %v21687_v49  ;;  %v21747_v37 = vld [vmem:[%s25578_s18 + $0x2f8] sm:$0xff]   ;;  %v21748_v49 = vld [vmem:[%s25578_s18 + $0x2b0] sm:$0xff]  }
 0x448   :  { %20347 = vmatprep.subr.bf16.mxu1 %v21688_v50  ;;  %20367 = vmatprep.subr.bf16.mxu0 %v21689_v51 }
 0x44b   :  { %20348 = vmatpush3.bf16.msra.mxu1 %v21688_v50  ;;  %20368 = vmatpush3.bf16.msra.mxu0 %v21689_v51  ;;  %v21749_v50 = vld [vmem:[%s25578_s18 + $0x2f0] sm:$0xff]   ;;  %v21750_v51 = vld [vmem:[%s25578_s18 + $0x2a8] sm:$0xff]  }
 0x44c   :  { %20349 = vmatprep.subr.bf16.mxu1 %v21690_v52  ;;  %20369 = vmatprep.subr.bf16.mxu0 %v21691_v54 }
 0x44f   :  { %20350 = vmatpush3.bf16.msra.mxu1 %v21690_v52  ;;  %20370 = vmatpush3.bf16.msra.mxu0 %v21691_v54  ;;  %v21751_v52 = vld [vmem:[%s25578_s18 + $0x2e8] sm:$0xff]   ;;  %v21752_v54 = vld [vmem:[%s25578_s18 + $0x2a0] sm:$0xff]  }
 0x450   :  { %20351 = vmatprep.subr.bf16.mxu1 %v21692_v55  ;;  %20371 = vmatprep.subr.bf16.mxu0 %v21693_v57 }
 0x453   :  { %20352 = vmatpush3.bf16.msra.mxu1 %v21692_v55  ;;  %20372 = vmatpush3.bf16.msra.mxu0 %v21693_v57  ;;  %v21753_v55 = vld [vmem:[%s25578_s18 + $0x2e0] sm:$0xff]   ;;  %v21754_v57 = vld [vmem:[%s25578_s18 + $0x298] sm:$0xff]  }
 0x454   :  { %20353 = vmatprep.subr.bf16.mxu1 %v21694_v58  ;;  %20373 = vmatprep.subr.bf16.mxu0 %v21695_v59 }
 0x457   :  { %20354 = vmatpush3.bf16.msra.mxu1 %v21694_v58  ;;  %20374 = vmatpush3.bf16.msra.mxu0 %v21695_v59  ;;  %v21755_v58 = vld [vmem:[%s25578_s18 + $0x2d8] sm:$0xff]   ;;  %v21756_v59 = vld [vmem:[%s25578_s18 + $0x290] sm:$0xff]  }
 0x458   :  { %20355 = vmatprep.subr.bf16.mxu1 %v21696_v60  ;;  %20375 = vmatprep.subr.bf16.mxu0 %v21697_v61 }
 0x45b   :  { %20356 = vmatpush3.bf16.msra.mxu1 %v21696_v60  ;;  %20376 = vmatpush3.bf16.msra.mxu0 %v21697_v61  ;;  %v21757_v60 = vld [vmem:[%s25578_s18 + $0x2d0] sm:$0xff]   ;;  %v21758_v61 = vld [vmem:[%s25578_s18 + $0x288] sm:$0xff]  }
 0x45c   :  { %20381 = vmatprep.subr.bf16.mxu1 %v21698_v62  ;;  %20401 = vmatprep.subr.bf16.mxu0 %v21699_v0 }
 0x45e   :  { %20358 = vmatmul.mubr.bf16.vlgmr.msra.gmra.mxu1 %v23298_v47  ;;  %20378 = vmatmul.mubr.bf16.vlgmr.msra.gmra.mxu0 %v23298_v47 }
 0x45f   :  { %20382 = vmatpush3.bf16.msra.mxu1 %v21698_v62  ;;  %20397 = vmatprep.mubr.bf16.mxu1 %v23296_v46  ;;  %v21759_v62 = vld [vmem:[%s25578_s18 + $0x2c8] sm:$0xff]  }
 0x460   :  { %20402 = vmatpush3.bf16.msra.mxu0 %v21699_v0  ;;  %20417 = vmatprep.mubr.bf16.mxu0 %v23296_v46  ;;  %v21760_v0 = vld [vmem:[%s25578_s18 + $0x280] sm:$0xff]  }
 0x461   :  { %20383 = vmatprep.subr.bf16.mxu1 %v21700_v63  ;;  %20403 = vmatprep.subr.bf16.mxu0 %v21701_v2 }
 0x463   :  { %20384 = vmatpush3.bf16.msra.mxu1 %v21700_v63  ;;  %v21761_v63 = vld [vmem:[%s25578_s18 + $0x2c0] sm:$0xff]  }
 0x464   :  { %20404 = vmatpush3.bf16.msra.mxu0 %v21701_v2  ;;  %20385 = vmatprep.subr.bf16.mxu1 %v21702_v3  ;;  %v21762_v2 = vld [vmem:[%s25578_s18 + $0x338] sm:$0xff]  }
 0x465   :  { %20405 = vmatprep.subr.bf16.mxu0 %v21703_v4 }
 0x467   :  { %20386 = vmatpush3.bf16.msra.mxu1 %v21702_v3  ;;  %v21763_v3 = vld [vmem:[%s25578_s18 + $0x378] sm:$0xff]  }
 0x468   :  { %20406 = vmatpush3.bf16.msra.mxu0 %v21703_v4  ;;  %20387 = vmatprep.subr.bf16.mxu1 %v21704_v5  ;;  %v21764_v4 = vld [vmem:[%s25578_s18 + $0x330] sm:$0xff]  }
 0x469   :  { %20407 = vmatprep.subr.bf16.mxu0 %v21705_v34 }
 0x46b   :  { %20388 = vmatpush3.bf16.msra.mxu1 %v21704_v5  ;;  %v21765_v5 = vld [vmem:[%s25578_s18 + $0x370] sm:$0xff]  }
 0x46c   :  { %20408 = vmatpush3.bf16.msra.mxu0 %v21705_v34  ;;  %20389 = vmatprep.subr.bf16.mxu1 %v21706_v6  ;;  %v21766_v34 = vld [vmem:[%s25578_s18 + $0x328] sm:$0xff]  }
 0x46d   :  { %20409 = vmatprep.subr.bf16.mxu0 %v21707_v7 }
 0x46f   :  { %20390 = vmatpush3.bf16.msra.mxu1 %v21706_v6  ;;  %v21767_v6 = vld [vmem:[%s25578_s18 + $0x368] sm:$0xff]  }
 0x470   :  { %20410 = vmatpush3.bf16.msra.mxu0 %v21707_v7  ;;  %20391 = vmatprep.subr.bf16.mxu1 %v21708_v35  ;;  %v21768_v7 = vld [vmem:[%s25578_s18 + $0x320] sm:$0xff]  }
 0x471   :  { %20411 = vmatprep.subr.bf16.mxu0 %v21709_v8 }
 0x473   :  { %20392 = vmatpush3.bf16.msra.mxu1 %v21708_v35  ;;  %v21769_v35 = vld [vmem:[%s25578_s18 + $0x360] sm:$0xff]  }
 0x474   :  { %20412 = vmatpush3.bf16.msra.mxu0 %v21709_v8  ;;  %20393 = vmatprep.subr.bf16.mxu1 %v21710_v9  ;;  %v21770_v8 = vld [vmem:[%s25578_s18 + $0x318] sm:$0xff]  }
 0x475   :  { %20413 = vmatprep.subr.bf16.mxu0 %v21711_v10 }
 0x477   :  { %20394 = vmatpush3.bf16.msra.mxu1 %v21710_v9  ;;  %v21771_v9 = vld [vmem:[%s25578_s18 + $0x358] sm:$0xff]  }
 0x478   :  { %20414 = vmatpush3.bf16.msra.mxu0 %v21711_v10  ;;  %20395 = vmatprep.subr.bf16.mxu1 %v21712_v11  ;;  %v21772_v10 = vld [vmem:[%s25578_s18 + $0x310] sm:$0xff]  }
 0x479   :  { %20415 = vmatprep.subr.bf16.mxu0 %v21713_v12 }
 0x47b   :  { %20396 = vmatpush3.bf16.msra.mxu1 %v21712_v11  ;;  %v21773_v11 = vld [vmem:[%s25578_s18 + $0x350] sm:$0xff]  }
 0x47c   :  { %20416 = vmatpush3.bf16.msra.mxu0 %v21713_v12  ;;  %20421 = vmatprep.subr.bf16.mxu1 %v21714_v13  ;;  %v21774_v12 = vld [vmem:[%s25578_s18 + $0x308] sm:$0xff]  }
 0x47d   :  { %20441 = vmatprep.subr.bf16.mxu0 %v21715_v15 }
 0x47e   :  { %20398 = vmatmul.mubr.bf16.vlgmr.msra.gmra.mxu1 %v23298_v47 }
 0x47f   :  { %20418 = vmatmul.mubr.bf16.vlgmr.msra.gmra.mxu0 %v23298_v47  ;;  %20422 = vmatpush3.bf16.msra.mxu1 %v21714_v13  ;;  %v21775_v13 = vld [vmem:[%s25578_s18 + $0x348] sm:$0xff]  }
 0x480   :  { %20437 = vmatprep.mubr.bf16.mxu1 %v23296_v46  ;;  %20442 = vmatpush3.bf16.msra.mxu0 %v21715_v15  ;;  %v21776_v15 = vld [vmem:[%s25578_s18 + $0x300] sm:$0xff]  }
 0x481   :  { %20457 = vmatprep.mubr.bf16.mxu0 %v23296_v46  ;;  %20423 = vmatprep.subr.bf16.mxu1 %v21716_v1 }
 0x482   :  { %20443 = vmatprep.subr.bf16.mxu0 %v21717_v42 }
 0x483   :  { %20424 = vmatpush3.bf16.msra.mxu1 %v21716_v1  ;;  %v21777_v1 = vld [vmem:[%s25578_s18 + $0x340] sm:$0xff]  }
 0x484   :  { %20444 = vmatpush3.bf16.msra.mxu0 %v21717_v42  ;;  %20425 = vmatprep.subr.bf16.mxu1 %v21718_v53  ;;  %v21778_v42 = vld [vmem:[%s25578_s18 + $0x3b8] sm:$0xff]  }
 0x485   :  { %20445 = vmatprep.subr.bf16.mxu0 %v21719_v20 }
 0x487   :  { %20426 = vmatpush3.bf16.msra.mxu1 %v21718_v53  ;;  %v21779_v53 = vld [vmem:[%s25578_s18 + $0x3f8] sm:$0xff]  }
 0x488   :  { %20446 = vmatpush3.bf16.msra.mxu0 %v21719_v20  ;;  %20427 = vmatprep.subr.bf16.mxu1 %v21720_v21  ;;  %v21780_v20 = vld [vmem:[%s25578_s18 + $0x3b0] sm:$0xff]  }
 0x489   :  { %20447 = vmatprep.subr.bf16.mxu0 %v21721_v56 }
 0x48b   :  { %20428 = vmatpush3.bf16.msra.mxu1 %v21720_v21  ;;  %v21781_v21 = vld [vmem:[%s25578_s18 + $0x3f0] sm:$0xff]  }
 0x48c   :  { %20448 = vmatpush3.bf16.msra.mxu0 %v21721_v56  ;;  %20429 = vmatprep.subr.bf16.mxu1 %v21722_v16  ;;  %v21782_v56 = vld [vmem:[%s25578_s18 + $0x3a8] sm:$0xff]  }
 0x48d   :  { %20449 = vmatprep.subr.bf16.mxu0 %v21723_v17 }
 0x48f   :  { %20430 = vmatpush3.bf16.msra.mxu1 %v21722_v16  ;;  %v21783_v16 = vld [vmem:[%s25578_s18 + $0x3e8] sm:$0xff]  }
 0x490   :  { %20450 = vmatpush3.bf16.msra.mxu0 %v21723_v17  ;;  %20431 = vmatprep.subr.bf16.mxu1 %v21724_v18  ;;  %v21784_v17 = vld [vmem:[%s25578_s18 + $0x3a0] sm:$0xff]  }
 0x491   :  { %20451 = vmatprep.subr.bf16.mxu0 %v21725_v19 }
 0x493   :  { %20432 = vmatpush3.bf16.msra.mxu1 %v21724_v18  ;;  %v21785_v18 = vld [vmem:[%s25578_s18 + $0x3e0] sm:$0xff]  }
 0x494   :  { %20452 = vmatpush3.bf16.msra.mxu0 %v21725_v19  ;;  %20433 = vmatprep.subr.bf16.mxu1 %v21726_v22  ;;  %v21787_v19 = vld [vmem:[%s25578_s18 + $0x3d8] sm:$0xff]  }
 0x495   :  { %20453 = vmatprep.subr.bf16.mxu0 %v21727_v23 }
 0x497   :  { %20434 = vmatpush3.bf16.msra.mxu1 %v21726_v22  ;;  %v21788_v22 = vld [vmem:[%s25578_s18 + $0x390] sm:$0xff]  }
 0x498   :  { %20454 = vmatpush3.bf16.msra.mxu0 %v21727_v23  ;;  %20435 = vmatprep.subr.bf16.mxu1 %v21728_v24  ;;  %v21789_v23 = vld [vmem:[%s25578_s18 + $0x3d0] sm:$0xff]  }
 0x499   :  { %20455 = vmatprep.subr.bf16.mxu0 %v21729_v25 }
 0x49b   :  { %20436 = vmatpush3.bf16.msra.mxu1 %v21728_v24  ;;  %v21790_v24 = vld [vmem:[%s25578_s18 + $0x388] sm:$0xff]  }
 0x49c   :  { %20456 = vmatpush3.bf16.msra.mxu0 %v21729_v25  ;;  %20461 = vmatprep.subr.bf16.mxu1 %v21730_v26  ;;  %v21791_v25 = vld [vmem:[%s25578_s18 + $0x3c8] sm:$0xff]  }
 0x49d   :  { %20481 = vmatprep.subr.bf16.mxu0 %v21731_v27 }
 0x49e   :  { %20438 = vmatmul.mubr.bf16.vlgmr.msra.gmra.mxu1 %v23298_v47 }
 0x49f   :  { %20458 = vmatmul.mubr.bf16.vlgmr.msra.gmra.mxu0 %v23298_v47  ;;  %20462 = vmatpush3.bf16.msra.mxu1 %v21730_v26  ;;  %v21792_v26 = vld [vmem:[%s25578_s18 + $0x380] sm:$0xff]  }
 0x4a0   :  { %20477 = vmatprep.mubr.bf16.mxu1 %v23296_v46  ;;  %20482 = vmatpush3.bf16.msra.mxu0 %v21731_v27  ;;  %v21793_v27 = vld [vmem:[%s25578_s18 + $0x3c0] sm:$0xff]  }
 0x4a1   :  { %20497 = vmatprep.mubr.bf16.mxu0 %v23296_v46  ;;  %20463 = vmatprep.subr.bf16.mxu1 %v21732_v28 }
 0x4a2   :  { %20483 = vmatprep.subr.bf16.mxu0 %v21733_v30 }
 0x4a3   :  { %20464 = vmatpush3.bf16.msra.mxu1 %v21732_v28  ;;  %v21796_v28 = vld [vmem:[#allocation6 + $0x4] ss:$16 sps:$4 sm:$0xff]  }
 0x4a4   :  { %20484 = vmatpush3.bf16.msra.mxu0 %v21733_v30  ;;  %20465 = vmatprep.subr.bf16.mxu1 %v21734_v31 }
 0x4a5   :  { %20485 = vmatprep.subr.bf16.mxu0 %v21735_v29 }
 0x4a7   :  { %20466 = vmatpush3.bf16.msra.mxu1 %v21734_v31 }
 0x4a8   :  { %20486 = vmatpush3.bf16.msra.mxu0 %v21735_v29  ;;  %20467 = vmatprep.subr.bf16.mxu1 %v21736_v32 }
 0x4a9   :  { %20487 = vmatprep.subr.bf16.mxu0 %v21737_v33 }
 0x4ab   :  { %20468 = vmatpush3.bf16.msra.mxu1 %v21736_v32 }
 0x4ac   :  { %20488 = vmatpush3.bf16.msra.mxu0 %v21737_v33  ;;  %20469 = vmatprep.subr.bf16.mxu1 %v21738_v38 }
 0x4ad   :  { %20489 = vmatprep.subr.bf16.mxu0 %v21739_v39 }
 0x4af   :  { %20470 = vmatpush3.bf16.msra.mxu1 %v21738_v38 }
 0x4b0   :  { %20490 = vmatpush3.bf16.msra.mxu0 %v21739_v39  ;;  %20471 = vmatprep.subr.bf16.mxu1 %v21740_v40 }
 0x4b1   :  { %20491 = vmatprep.subr.bf16.mxu0 %v21741_v41 }
 0x4b3   :  { %20472 = vmatpush3.bf16.msra.mxu1 %v21740_v40 }
 0x4b4   :  { %20492 = vmatpush3.bf16.msra.mxu0 %v21741_v41  ;;  %20473 = vmatprep.subr.bf16.mxu1 %v21742_v43 }
 0x4b5   :  { %20493 = vmatprep.subr.bf16.mxu0 %v21743_v44 }
 0x4b7   :  { %20474 = vmatpush3.bf16.msra.mxu1 %v21742_v43 }
 0x4b8   :  { %20494 = vmatpush3.bf16.msra.mxu0 %v21743_v44  ;;  %20475 = vmatprep.subr.bf16.mxu1 %v21744_v45 }
 0x4b9   :  { %20495 = vmatprep.subr.bf16.mxu0 %v21745_v36 }
 0x4bb   :  { %20476 = vmatpush3.bf16.msra.mxu1 %v21744_v45 }
 0x4bc   :  { %20496 = vmatpush3.bf16.msra.mxu0 %v21745_v36  ;;  %20501 = vmatprep.subr.bf16.mxu1 %v21746_v48 }
 0x4bd   :  { %20521 = vmatprep.subr.bf16.mxu0 %v21747_v37 }
 0x4be   :  { %20478 = vmatmul.mubr.bf16.vlgmr.msra.gmra.mxu1 %v23298_v47 }
 0x4bf   :  { %20498 = vmatmul.mubr.bf16.vlgmr.msra.gmra.mxu0 %v23298_v47  ;;  %20502 = vmatpush3.bf16.msra.mxu1 %v21746_v48 }
 0x4c0   :  { %20517 = vmatprep.mubr.bf16.mxu1 %v23296_v46  ;;  %20522 = vmatpush3.bf16.msra.mxu0 %v21747_v37 }
 0x4c1   :  { %20537 = vmatprep.mubr.bf16.mxu0 %v23296_v46  ;;  %20503 = vmatprep.subr.bf16.mxu1 %v21748_v49 }
 0x4c2   :  { %20523 = vmatprep.subr.bf16.mxu0 %v21749_v50 }
 0x4c3   :  { %20504 = vmatpush3.bf16.msra.mxu1 %v21748_v49 }
 0x4c4   :  { %20524 = vmatpush3.bf16.msra.mxu0 %v21749_v50  ;;  %20505 = vmatprep.subr.bf16.mxu1 %v21750_v51 }
 0x4c5   :  { %20525 = vmatprep.subr.bf16.mxu0 %v21751_v52 }
 0x4c7   :  { %20506 = vmatpush3.bf16.msra.mxu1 %v21750_v51 }
 0x4c8   :  { %20526 = vmatpush3.bf16.msra.mxu0 %v21751_v52  ;;  %20507 = vmatprep.subr.bf16.mxu1 %v21752_v54 }
 0x4c9   :  { %20527 = vmatprep.subr.bf16.mxu0 %v21753_v55 }
 0x4cb   :  { %20508 = vmatpush3.bf16.msra.mxu1 %v21752_v54 }
 0x4cc   :  { %20528 = vmatpush3.bf16.msra.mxu0 %v21753_v55  ;;  %20509 = vmatprep.subr.bf16.mxu1 %v21754_v57 }
 0x4cd   :  { %20529 = vmatprep.subr.bf16.mxu0 %v21755_v58 }
 0x4cf   :  { %20510 = vmatpush3.bf16.msra.mxu1 %v21754_v57 }
 0x4d0   :  { %20530 = vmatpush3.bf16.msra.mxu0 %v21755_v58  ;;  %20511 = vmatprep.subr.bf16.mxu1 %v21756_v59 }
 0x4d1   :  { %20531 = vmatprep.subr.bf16.mxu0 %v21757_v60 }
 0x4d3   :  { %20512 = vmatpush3.bf16.msra.mxu1 %v21756_v59 }
 0x4d4   :  { %20532 = vmatpush3.bf16.msra.mxu0 %v21757_v60  ;;  %20513 = vmatprep.subr.bf16.mxu1 %v21758_v61 }
 0x4d5   :  { %20533 = vmatprep.subr.bf16.mxu0 %v21759_v62 }
 0x4d7   :  { %20514 = vmatpush3.bf16.msra.mxu1 %v21758_v61 }
 0x4d8   :  { %20534 = vmatpush3.bf16.msra.mxu0 %v21759_v62  ;;  %20515 = vmatprep.subr.bf16.mxu1 %v21760_v0 }
 0x4d9   :  { %20535 = vmatprep.subr.bf16.mxu0 %v21761_v63 }
 0x4db   :  { %20516 = vmatpush3.bf16.msra.mxu1 %v21760_v0 }
 0x4dc   :  { %20536 = vmatpush3.bf16.msra.mxu0 %v21761_v63  ;;  %20541 = vmatprep.subr.bf16.mxu1 %v21762_v2 }
 0x4dd   :  { %20561 = vmatprep.subr.bf16.mxu0 %v21763_v3 }
 0x4de   :  { %20518 = vmatmul.mubr.bf16.vlgmr.msra.gmra.mxu1 %v23298_v47 }
 0x4df   :  { %20538 = vmatmul.mubr.bf16.vlgmr.msra.gmra.mxu0 %v23298_v47  ;;  %20542 = vmatpush3.bf16.msra.mxu1 %v21762_v2 }
 0x4e0   :  { %20557 = vmatprep.mubr.bf16.mxu1 %v23296_v46  ;;  %20562 = vmatpush3.bf16.msra.mxu0 %v21763_v3 }
 0x4e1   :  { %20577 = vmatprep.mubr.bf16.mxu0 %v23296_v46  ;;  %20543 = vmatprep.subr.bf16.mxu1 %v21764_v4 }
 0x4e2   :  { %20563 = vmatprep.subr.bf16.mxu0 %v21765_v5 }
 0x4e3   :  { %20544 = vmatpush3.bf16.msra.mxu1 %v21764_v4 }
 0x4e4   :  { %20564 = vmatpush3.bf16.msra.mxu0 %v21765_v5  ;;  %20545 = vmatprep.subr.bf16.mxu1 %v21766_v34 }
 0x4e5   :  { %20565 = vmatprep.subr.bf16.mxu0 %v21767_v6 }
 0x4e7   :  { %20546 = vmatpush3.bf16.msra.mxu1 %v21766_v34 }
 0x4e8   :  { %20566 = vmatpush3.bf16.msra.mxu0 %v21767_v6  ;;  %20547 = vmatprep.subr.bf16.mxu1 %v21768_v7 }
 0x4e9   :  { %20567 = vmatprep.subr.bf16.mxu0 %v21769_v35 }
 0x4eb   :  { %20548 = vmatpush3.bf16.msra.mxu1 %v21768_v7 }
 0x4ec   :  { %20568 = vmatpush3.bf16.msra.mxu0 %v21769_v35  ;;  %20549 = vmatprep.subr.bf16.mxu1 %v21770_v8 }
 0x4ed   :  { %20569 = vmatprep.subr.bf16.mxu0 %v21771_v9 }
 0x4ef   :  { %20550 = vmatpush3.bf16.msra.mxu1 %v21770_v8 }
 0x4f0   :  { %20570 = vmatpush3.bf16.msra.mxu0 %v21771_v9  ;;  %20551 = vmatprep.subr.bf16.mxu1 %v21772_v10 }
 0x4f1   :  { %20571 = vmatprep.subr.bf16.mxu0 %v21773_v11 }
 0x4f3   :  { %20552 = vmatpush3.bf16.msra.mxu1 %v21772_v10 }
 0x4f4   :  { %20572 = vmatpush3.bf16.msra.mxu0 %v21773_v11  ;;  %20553 = vmatprep.subr.bf16.mxu1 %v21774_v12 }
 0x4f5   :  { %20573 = vmatprep.subr.bf16.mxu0 %v21775_v13 }
 0x4f7   :  { %20554 = vmatpush3.bf16.msra.mxu1 %v21774_v12 }
 0x4f8   :  { %20574 = vmatpush3.bf16.msra.mxu0 %v21775_v13  ;;  %20555 = vmatprep.subr.bf16.mxu1 %v21776_v15 }
 0x4f9   :  { %20575 = vmatprep.subr.bf16.mxu0 %v21777_v1 }
 0x4fb   :  { %20556 = vmatpush3.bf16.msra.mxu1 %v21776_v15 }
 0x4fc   :  { %20576 = vmatpush3.bf16.msra.mxu0 %v21777_v1  ;;  %20581 = vmatprep.subr.bf16.mxu1 %v21778_v42 }
 0x4fd   :  { %20601 = vmatprep.subr.bf16.mxu0 %v21779_v53 }
 0x4fe   :  { %20558 = vmatmul.mubr.bf16.vlgmr.msra.gmra.mxu1 %v23298_v47  ;;  %v20319_v30 = vpop.f32.mrf.mxu1  ;;  %v20339_v31 = vpop.f32.mrf.mxu0 }
 0x4ff   :  { %20578 = vmatmul.mubr.bf16.vlgmr.msra.gmra.mxu0 %v23298_v47  ;;  %20582 = vmatpush3.bf16.msra.mxu1 %v21778_v42 }
 0x500   :  { %20597 = vmatprep.mubr.bf16.mxu1 %v23296_v46  ;;  %20602 = vmatpush3.bf16.msra.mxu0 %v21779_v53  ;;  %v5811_v29 = vpop.f32.mrf.mxu1  ;;  %v5925_v32 = vpop.f32.mrf.mxu0 }
 0x501   :  { %20617 = vmatprep.mubr.bf16.mxu0 %v23296_v46  ;;  %20583 = vmatprep.subr.bf16.mxu1 %v21780_v20  ;;  %v21786_v46 = vld [vmem:[%s25578_s18 + $0x398] sm:$0xff]  }
 0x502   :  { %20603 = vmatprep.subr.bf16.mxu0 %v21781_v21  ;;  %v20320_v33 = vpop.f32.mrf.mxu1  ;;  %v20340_v38 = vpop.f32.mrf.mxu0 }
 0x503   :  { %20584 = vmatpush3.bf16.msra.mxu1 %v21780_v20  ;;  %v7539_v11 = vpack.c.bf16 %v20340_v38, %v20339_v31  ;;  %v7537_v1 = vpack.c.bf16 %v20320_v33, %v20319_v30  ;;  %v21794_v20 = vld [vmem:[#allocation6] ss:$16 sps:$4 sm:$0xff]  }
 0x504   :  { %20604 = vmatpush3.bf16.msra.mxu0 %v21781_v21  ;;  %20585 = vmatprep.subr.bf16.mxu1 %v21782_v56  ;;  %v5814_v39 = vpop.f32.mrf.mxu1  ;;  %v5928_v40 = vpop.f32.mrf.mxu0  ;;  %v21797_v21 = vld [vmem:[#allocation6 + $0x24] ss:$16 sps:$4 sm:$0xff]  }
 0x505   :  { %20605 = vmatprep.subr.bf16.mxu0 %v21783_v16  ;;  %v7538_v13 = vpack.c.bf16 %v5928_v40, %v5925_v32  ;;  %v7536_v53 = vpack.c.bf16 %v5814_v39, %v5811_v29 }
 0x507   :  { %20586 = vmatpush3.bf16.msra.mxu1 %v21782_v56  ;;  %v21808_v56 = vld [vmem:[#allocation6 + $0xc] ss:$16 sps:$4 sm:$0xff]  }
 0x508   :  { %20606 = vmatpush3.bf16.msra.mxu0 %v21783_v16  ;;  %20587 = vmatprep.subr.bf16.mxu1 %v21784_v17  ;;  %v21799_v16 = vld [vmem:[#allocation6 + $0x20] ss:$16 sps:$4 sm:$0xff]  }
 0x509   :  { %20607 = vmatprep.subr.bf16.mxu0 %v21785_v18 }
 0x50b   :  { %20588 = vmatpush3.bf16.msra.mxu1 %v21784_v17  ;;  %v21800_v17 = vld [vmem:[#allocation6 + $0x44] ss:$16 sps:$4 sm:$0xff]  }
 0x50c   :  { %20608 = vmatpush3.bf16.msra.mxu0 %v21785_v18  ;;  %20589 = vmatprep.subr.bf16.mxu1 %v21786_v46  ;;  %v21802_v18 = vld [vmem:[#allocation6 + $0x40] ss:$16 sps:$4 sm:$0xff]  }
 0x50d   :  { %20609 = vmatprep.subr.bf16.mxu0 %v21787_v19 }
 0x50f   :  { %20590 = vmatpush3.bf16.msra.mxu1 %v21786_v46  ;;  %v21803_v46 = vld [vmem:[#allocation6 + $0x64] ss:$16 sps:$4 sm:$0xff]  }
 0x510   :  { %20610 = vmatpush3.bf16.msra.mxu0 %v21787_v19  ;;  %20591 = vmatprep.subr.bf16.mxu1 %v21788_v22  ;;  %v21805_v19 = vld [vmem:[#allocation6 + $0x60] ss:$16 sps:$4 sm:$0xff]  }
 0x511   :  { %20611 = vmatprep.subr.bf16.mxu0 %v21789_v23 }
 0x513   :  { %20592 = vmatpush3.bf16.msra.mxu1 %v21788_v22 }
 0x514   :  { %20612 = vmatpush3.bf16.msra.mxu0 %v21789_v23  ;;  %20593 = vmatprep.subr.bf16.mxu1 %v21790_v24 }
 0x515   :  { %20613 = vmatprep.subr.bf16.mxu0 %v21791_v25 }
 0x517   :  { %20594 = vmatpush3.bf16.msra.mxu1 %v21790_v24 }
 0x518   :  { %20614 = vmatpush3.bf16.msra.mxu0 %v21791_v25  ;;  %20595 = vmatprep.subr.bf16.mxu1 %v21792_v26 }
 0x519   :  { %20615 = vmatprep.subr.bf16.mxu0 %v21793_v27 }
 0x51b   :  { %20596 = vmatpush3.bf16.msra.mxu1 %v21792_v26 }
 0x51c   :  { %20616 = vmatpush3.bf16.msra.mxu0 %v21793_v27 }
 0x51e   :  { %20598 = vmatmul.mubr.bf16.vlgmr.msra.gmra.mxu1 %v23298_v47  ;;  %v20359_v41 = vpop.f32.mrf.mxu1  ;;  %v20379_v43 = vpop.f32.mrf.mxu0 }
 0x51f   :  { %20618 = vmatmul.mubr.bf16.vlgmr.msra.gmra.mxu0 %v23298_v47  ;;  %7744 = vmatprep.mubr.bf16.mxu1 %v21796_v28 }
 0x520   :  { %v6039_v44 = vpop.f32.mrf.mxu1  ;;  %v6153_v45 = vpop.f32.mrf.mxu0  ;;  %7809 = vmatprep.mubr.bf16.mxu0 %v21808_v56  ;;  %v21819_v56 = vld [vmem:[%s25480_s8] sm:$0xff]  }
 0x522   :  { %v20360_v36 = vpop.f32.mrf.mxu1  ;;  %v20380_v48 = vpop.f32.mrf.mxu0 }
 0x523   :  { %v7543_v2 = vpack.c.bf16 %v20380_v48, %v20379_v43  ;;  %v7541_v35 = vpack.c.bf16 %v20360_v36, %v20359_v41 }
 0x524   :  { %v6042_v37 = vpop.f32.mrf.mxu1  ;;  %v6156_v49 = vpop.f32.mrf.mxu0 }
 0x525   :  { %v7542_v34 = vpack.c.bf16 %v6156_v49, %v6153_v45  ;;  %v7540_v9 = vpack.c.bf16 %v6042_v37, %v6039_v44 }
 0x53e   :  { %v20399_v50 = vpop.f32.mrf.mxu1 }
 0x53f   :  { %v20419_v51 = vpop.f32.mrf.mxu0 }
 0x540   :  { %v6267_v47 = vpop.f32.mrf.mxu1 }
 0x541   :  { %v6381_v52 = vpop.f32.mrf.mxu0 }
 0x542   :  { %v20400_v54 = vpop.f32.mrf.mxu1 }
 0x543   :  { %v20420_v55 = vpop.f32.mrf.mxu0  ;;  %v7545_v15 = vpack.c.bf16 %v20400_v54, %v20399_v50 }
 0x544   :  { %v6270_v57 = vpop.f32.mrf.mxu1  ;;  %v7547_v10 = vpack.c.bf16 %v20420_v55, %v20419_v51 }
 0x545   :  { %v6384_v58 = vpop.f32.mrf.mxu0  ;;  %v7544_v42 = vpack.c.bf16 %v6270_v57, %v6267_v47 }
 0x546   :  { %v7546_v12 = vpack.c.bf16 %v6384_v58, %v6381_v52 }
 0x55e   :  { %v20439_v59 = vpop.f32.mrf.mxu1 }
 0x55f   :  { %v20459_v60 = vpop.f32.mrf.mxu0 }
 0x560   :  { %v6495_v62 = vpop.f32.mrf.mxu1 }
 0x561   :  { %v6609_v61 = vpop.f32.mrf.mxu0 }
 0x562   :  { %v20440_v5 = vpop.f32.mrf.mxu1 }
 0x563   :  { %v20460_v0 = vpop.f32.mrf.mxu0  ;;  %v7549_v6 = vpack.c.bf16 %v20440_v5, %v20439_v59 }
 0x564   :  { %v7551_v63 = vpack.c.bf16 %v20460_v0, %v20459_v60  ;;  %v6498_v7 = vpop.f32.mrf.mxu1 }
 0x565   :  { %v6612_v3 = vpop.f32.mrf.mxu0  ;;  %v7548_v8 = vpack.c.bf16 %v6498_v7, %v6495_v62  ;;  %v21818_v62 = vld [vmem:[%s25480_s8 + $0x8] sm:$0xff]  }
 0x566   :  { %v7550_v4 = vpack.c.bf16 %v6612_v3, %v6609_v61  ;;  %19765 = vmatprep.subr.bf16.mxu1 %v7551_v63 }
 0x567   :  { %19766 = vmatpush3.bf16.msra.mxu1 %v7543_v2 }
 0x568   :  { %19767 = vmatprep.subr.bf16.mxu1 %v7550_v4 }
 0x56b   :  { %19768 = vmatpush3.bf16.msra.mxu1 %v7542_v34 }
 0x56c   :  { %19769 = vmatprep.subr.bf16.mxu1 %v7549_v6 }
 0x56f   :  { %19770 = vmatpush3.bf16.msra.mxu1 %v7541_v35 }
 0x570   :  { %19771 = vmatprep.subr.bf16.mxu1 %v7548_v8 }
 0x573   :  { %19772 = vmatpush3.bf16.msra.mxu1 %v7540_v9 }
 0x574   :  { %19773 = vmatprep.subr.bf16.mxu1 %v7547_v10 }
 0x577   :  { %19774 = vmatpush3.bf16.msra.mxu1 %v7539_v11 }
 0x578   :  { %19775 = vmatprep.subr.bf16.mxu1 %v7546_v12  ;;  %v21806_v12 = vld [vmem:[#allocation6 + $0x8] ss:$16 sps:$4 sm:$0xff]  }
 0x57b   :  { %19776 = vmatpush3.bf16.msra.mxu1 %v7538_v13  ;;  %v21809_v13 = vld [vmem:[#allocation6 + $0x2c] ss:$16 sps:$4 sm:$0xff]  }
 0x57c   :  { %19777 = vmatprep.subr.bf16.mxu1 %v7545_v15  ;;  %v21811_v15 = vld [vmem:[#allocation6 + $0x28] ss:$16 sps:$4 sm:$0xff]  }
 0x57e   :  { %v23662_v22 = vpop.f32.mrf.mxu1 }
 0x57f   :  { %19778 = vmatpush3.bf16.msra.mxu1 %v7537_v1  ;;  %v20499_v23 = vpop.f32.mrf.mxu0  ;;  %v21812_v1 = vld [vmem:[#allocation6 + $0x4c] ss:$16 sps:$4 sm:$0xff]  }
 0x580   :  { %19779 = vmatprep.subr.bf16.mxu1 %v7544_v42  ;;  %v23664_v24 = vpop.f32.mrf.mxu1  ;;  %v21814_v42 = vld [vmem:[#allocation6 + $0x48] ss:$16 sps:$4 sm:$0xff]  }
 0x581   :  { %v6837_v25 = vpop.f32.mrf.mxu0 }
 0x582   :  { %v20480_v26 = vpop.f32.mrf.mxu1 }
 0x583   :  { %19780 = vmatpush3.bf16.msra.mxu1 %v7536_v53  ;;  %v20500_v27 = vpop.f32.mrf.mxu0  ;;  %v7553_v9 = vpack.c.bf16 %v20480_v26, %v23662_v22  ;;  %v21817_v53 = vld [vmem:[#allocation6 + $0x6c] ss:$16 sps:$4 sm:$0xff]  }
 0x584   :  { %v6726_v28 = vpop.f32.mrf.mxu1  ;;  %20621 = vmatprep.subr.bf16.mxu1 %v21818_v62  ;;  %v7555_v6 = vpack.c.bf16 %v20500_v27, %v20499_v23 }
 0x585   :  { %v6840_v30 = vpop.f32.mrf.mxu0  ;;  %v7552_v11 = vpack.c.bf16 %v6726_v28, %v23664_v24 }
 0x586   :  { %7745 = vmatmul.mubr.bf16.vlgmr.msra.gmra.mxu1 %v21794_v20  ;;  %v7554_v35 = vpack.c.bf16 %v6840_v30, %v6837_v25  ;;  %v21815_v20 = vld [vmem:[#allocation6 + $0x68] ss:$16 sps:$4 sm:$0xff]  }
 0x587   :  { %7752 = vmatprep.mubr.bf16.mxu1 %v21797_v21  ;;  %20622 = vmatpush3.bf16.msra.mxu1 %v21818_v62  ;;  %v21820_v21 = vld [vmem:[%s25480_s8 + $0x28] sm:$0xff]  }
 0x588   :  { %20623 = vmatprep.subr.bf16.mxu1 %v21819_v56 }
 0x58b   :  { %20624 = vmatpush3.bf16.msra.mxu1 %v21819_v56 }
 0x58e   :  { %7753 = vmatmul.mubr.bf16.gmra.mxu1 %v21799_v16  ;;  %v21821_v16 = vld [vmem:[%s25480_s8 + $0x20] sm:$0xff]  }
 0x58f   :  { %7760 = vmatprep.mubr.bf16.mxu1 %v21800_v17  ;;  %v23683_v17 = vld [vmem:[%s25480_s8 + $0x18] sm:$0xff]  }
 0x590   :  { %20633 = vmatprep.subr.bf16.mxu1 %v23683_v17 }
 0x596   :  { %7761 = vmatmul.mubr.bf16.gmra.mxu1 %v21802_v18  ;;  %v23688_v18 = vld [vmem:[%s25480_s8 + $0x48] sm:$0xff]  }
 0x597   :  { %7768 = vmatprep.mubr.bf16.mxu1 %v21803_v46 }
 0x59e   :  { %7769 = vmatmul.mubr.bf16.gmra.mxu1 %v21805_v19  ;;  %v20519_v31 = vpop.f32.mrf.mxu1 }
 0x59f   :  { %v20539_v29 = vpop.f32.mrf.mxu0 }
 0x5a0   :  { %v6951_v32 = vpop.f32.mrf.mxu1 }
 0x5a1   :  { %v7065_v33 = vpop.f32.mrf.mxu0 }
 0x5a2   :  { %v20520_v38 = vpop.f32.mrf.mxu1 }
 0x5a3   :  { %v20540_v39 = vpop.f32.mrf.mxu0  ;;  %v7557_v3 = vpack.c.bf16 %v20520_v38, %v20519_v31 }
 0x5a4   :  { %v6954_v40 = vpop.f32.mrf.mxu1  ;;  %v7559_v58 = vpack.c.bf16 %v20540_v39, %v20539_v29 }
 0x5a5   :  { %v7068_v41 = vpop.f32.mrf.mxu0  ;;  %v7556_v5 = vpack.c.bf16 %v6954_v40, %v6951_v32 }
 0x5a6   :  { %v7558_v0 = vpack.c.bf16 %v7068_v41, %v7065_v33  ;;  %v7595_v33 = vpop.permute.xlu0 %7594 }
 0x5be   :  { %v20559_v43 = vpop.f32.mrf.mxu1 }
 0x5bf   :  { %v20579_v44 = vpop.f32.mrf.mxu0 }
 0x5c0   :  { %v7179_v45 = vpop.f32.mrf.mxu1 }
 0x5c1   :  { %v7293_v36 = vpop.f32.mrf.mxu0 }
 0x5c2   :  { %v20560_v48 = vpop.f32.mrf.mxu1 }
 0x5c3   :  { %v20580_v37 = vpop.f32.mrf.mxu0  ;;  %v7561_v8 = vpack.c.bf16 %v20560_v48, %v20559_v43 }
 0x5c4   :  { %v7182_v49 = vpop.f32.mrf.mxu1  ;;  %v7563_v34 = vpack.c.bf16 %v20580_v37, %v20579_v44  ;;  %v7600_v44 = vpop.permute.xlu1 %7599 }
 0x5c5   :  { %v7296_v50 = vpop.f32.mrf.mxu0  ;;  %v7560_v10 = vpack.c.bf16 %v7182_v49, %v7179_v45 }
 0x5c6   :  { %v7562_v7 = vpack.c.bf16 %v7296_v50, %v7293_v36 }
 0x5de   :  { %v20599_v51 = vpop.f32.mrf.mxu1 }
 0x5df   :  { %v20619_v47 = vpop.f32.mrf.mxu0 }
 0x5e0   :  { %v7407_v54 = vpop.f32.mrf.mxu1 }
 0x5e1   :  { %v7521_v52 = vpop.f32.mrf.mxu0 }
 0x5e2   :  { %v20600_v61 = vpop.f32.mrf.mxu1 }
 0x5e3   :  { %v20620_v55 = vpop.f32.mrf.mxu0  ;;  %v7565_v63 = vpack.c.bf16 %v20600_v61, %v20599_v51 }
 0x5e4   :  { %v7567_v57 = vpack.c.bf16 %v20620_v55, %v20619_v47  ;;  %v7410_v2 = vpop.f32.mrf.mxu1 }
 0x5e5   :  { %v7524_v59 = vpop.f32.mrf.mxu0  ;;  %v7564_v4 = vpack.c.bf16 %v7410_v2, %v7407_v54  ;;  %v7605_v54 = vpop.permute.xlu0 %7604 }
 0x5e6   :  { %v7566_v60 = vpack.c.bf16 %v7524_v59, %v7521_v52  ;;  %19805 = vmatprep.subr.bf16.mxu0 %v7567_v57 }
 0x5e7   :  { %19806 = vmatpush3.bf16.msra.mxu0 %v7559_v58 }
 0x5e8   :  { %19807 = vmatprep.subr.bf16.mxu0 %v7566_v60 }
 0x5eb   :  { %19808 = vmatpush3.bf16.msra.mxu0 %v7558_v0 }
 0x5ec   :  { %19809 = vmatprep.subr.bf16.mxu0 %v7565_v63  ;;  %v7610_v63 = vpop.permute.xlu1 %7609 }
 0x5ef   :  { %19810 = vmatpush3.bf16.msra.mxu0 %v7557_v3 }
 0x5f0   :  { %19811 = vmatprep.subr.bf16.mxu0 %v7564_v4  ;;  %v7620_v56 = vpop.permute.xlu1 %7619 }
 0x5f3   :  { %19812 = vmatpush3.bf16.msra.mxu0 %v7556_v5 }
 0x5f4   :  { %19813 = vmatprep.subr.bf16.mxu0 %v7563_v34 }
 0x5f7   :  { %19814 = vmatpush3.bf16.msra.mxu0 %v7555_v6 }
 0x5f8   :  { %19815 = vmatprep.subr.bf16.mxu0 %v7562_v7 }
 0x5fb   :  { %19816 = vmatpush3.bf16.msra.mxu0 %v7554_v35 }
 0x5fc   :  { %19817 = vmatprep.subr.bf16.mxu0 %v7561_v8 }
 0x5ff   :  { %19818 = vmatpush3.bf16.msra.mxu0 %v7553_v9  ;;  %v7615_v9 = vpop.permute.xlu0 %7614 }
 0x600   :  { %19819 = vmatprep.subr.bf16.mxu0 %v7560_v10 }
 0x603   :  { %19820 = vmatpush3.bf16.msra.mxu0 %v7552_v11 }
 0x604   :  { %20645 = vmatprep.subr.bf16.mxu0 %v21820_v21 }
 0x606   :  { %7810 = vmatmul.mubr.bf16.vlgmr.msra.gmra.mxu0 %v21806_v12 }
 0x607   :  { %7817 = vmatprep.mubr.bf16.mxu0 %v21809_v13  ;;  %20646 = vmatpush3.bf16.msra.mxu0 %v21820_v21  ;;  %v21825_v21 = vld [vmem:[%s25480_s8 + $0x40] sm:$0xff]  }
 0x608   :  { %20647 = vmatprep.subr.bf16.mxu0 %v21821_v16 }
 0x60b   :  { %20648 = vmatpush3.bf16.msra.mxu0 %v21821_v16 }
 0x60c   :  { %20669 = vmatprep.subr.bf16.mxu0 %v23688_v18 }
 0x60e   :  { %7818 = vmatmul.mubr.bf16.gmra.mxu0 %v21811_v15 }
 0x60f   :  { %7825 = vmatprep.mubr.bf16.mxu0 %v21812_v1 }
 0x616   :  { %7826 = vmatmul.mubr.bf16.gmra.mxu0 %v21814_v42 }
 0x617   :  { %7833 = vmatprep.mubr.bf16.mxu0 %v21817_v53 }
 0x61e   :  { %7834 = vmatmul.mubr.bf16.gmra.mxu0 %v21815_v20  ;;  %v21823_v20 = vld [vmem:[%s25480_s8 + $0x10] sm:$0xff]  }
 0x646   :  { %v19781_v46 = vpop.f32.mrf.mxu1 }
 0x648   :  { %v19782_v19 = vpop.f32.mrf.mxu1 }
 0x649   :  { %v19783_v29 = vadd.f32 %v19782_v19, %v19781_v46 }
 0x64a   :  { %v19784_v22 = vpop.f32.mrf.mxu1 }
 0x64b   :  { %v7747_v43 = vadd.f32 %v19783_v29, %v7595_v33 }
 0x64c   :  { %v19785_v23 = vpop.f32.mrf.mxu1 }
 0x64d   :  { %v19786_v38 = vadd.f32 %v19785_v23, %v19784_v22 }
 0x64e   :  { %v19787_v24 = vpop.f32.mrf.mxu1 }
 0x64f   :  { %v7750_v36 = vadd.f32 %v19786_v38, %v7600_v44 }
 0x650   :  { %v19788_v25 = vpop.f32.mrf.mxu1 }
 0x651   :  { %v19789_v51 = vadd.f32 %v19788_v25, %v19787_v24 }
 0x652   :  { %v19790_v26 = vpop.f32.mrf.mxu1 }
 0x653   :  { %v7755_v62 = vadd.f32 %v19789_v51, %v7605_v54  ;;  %v21829_v51 = vld [vmem:[%s25480_s8 + $0x60] sm:$0xff]   ;;  %v21831_v54 = vld [vmem:[%s25480_s8 + $0x50] sm:$0xff]  }
 0x654   :  { %v19791_v27 = vpop.f32.mrf.mxu1 }
 0x655   :  { %v19792_v55 = vadd.f32 %v19791_v27, %v19790_v26  ;;  %v21826_v27 = vld [vmem:[%s25480_s8 + $0x38] sm:$0xff]  }
 0x656   :  { %v19793_v28 = vpop.f32.mrf.mxu1 }
 0x657   :  { %v7758_v3 = vadd.f32 %v19792_v55, %v7610_v63  ;;  %v21833_v55 = vld [vmem:[%s25480_s8 + $0x80] sm:$0xff]   ;;  %v21839_v63 = vld [vmem:[%s25480_s8 + $0x90] sm:$0xff]  }
 0x658   :  { %v19794_v30 = vpop.f32.mrf.mxu1 }
 0x659   :  { %v19795_v7 = vadd.f32 %v19794_v30, %v19793_v28  ;;  %v21828_v28 = vld [vmem:[%s25480_s8 + $0x68] sm:$0xff]  }
 0x65a   :  { %v19796_v40 = vpop.f32.mrf.mxu1 }
 0x65b   :  { %v7763_v42 = vadd.f32 %v19795_v7, %v7615_v9  ;;  %v21847_v7 = vld [vmem:[%s25480_s8 + $0xd0] sm:$0xff]  }
 0x65c   :  { %v19797_v49 = vpop.f32.mrf.mxu1  ;;  %v23908_v9 = vld [vmem:[#allocation7] sm:$0xff] }
 0x65d   :  { %v19798_v10 = vadd.f32 %v19797_v49, %v19796_v40  ;;  %v7630_v40 = vpop.permute.xlu1 %7629 }
 0x65e   :  { %v19799_v60 = vpop.f32.mrf.mxu1 }
 0x65f   :  { %v7766_v46 = vadd.f32 %v19798_v10, %v7620_v56  ;;  %v23910_v10 = vld [vmem:[#allocation7 + $0x20] sm:$0xff] }
 0x660   :  { %v19800_v34 = vpop.f32.mrf.mxu1 }
 0x661   :  { %v19801_v25 = vadd.f32 %v19800_v34, %v19799_v60  ;;  %v21837_v60 = vld [vmem:[%s25480_s8 + $0xa0] sm:$0xff]  }
 0x662   :  { %v19802_v15 = vpop.f32.mrf.mxu1  ;;  %v21845_v34 = vld [vmem:[%s25480_s8 + $0xe0] sm:$0xff]  }
 0x664   :  { %v19803_v23 = vpop.f32.mrf.mxu1 }
 0x6c6   :  { %v19821_v31 = vpop.f32.mrf.mxu0 }
 0x6c8   :  { %v19822_v32 = vpop.f32.mrf.mxu0 }
 0x6c9   :  { %v19823_v39 = vadd.f32 %v19822_v32, %v19821_v31  ;;  %v19804_v31 = vadd.f32 %v19803_v23, %v19802_v15 }
 0x6ca   :  { %v19824_v41 = vpop.f32.mrf.mxu0 }
 0x6cb   :  { %v7812_v48 = vadd.f32 %v19823_v39, %v7747_v43  ;;  %v7774_v43 = vadd.f32 %v19804_v31, %v7630_v40 }
 0x6cc   :  { %v19825_v45 = vpop.f32.mrf.mxu0 }
 0x6cd   :  { %v19826_v37 = vadd.f32 %v19825_v45, %v19824_v41  ;;  %v7842_v57 = vmax.f32 %v7812_v48, 0.0 }
 0x6ce   :  { %v19827_v50 = vpop.f32.mrf.mxu0 }
 0x6cf   :  { %v7815_v47 = vadd.f32 %v19826_v37, %v7750_v36 }
 0x6d0   :  { %v19828_v52 = vpop.f32.mrf.mxu0 }
 0x6d1   :  { %v7843_v58 = vmax.f32 %v7815_v47, 0.0  ;;  %v19829_v59 = vadd.f32 %v19828_v52, %v19827_v50  ;;  %v21827_v50 = vld [vmem:[%s25480_s8 + $0x30] sm:$0xff]   ;;  %v21830_v47 = vld [vmem:[%s25480_s8 + $0x58] sm:$0xff]   ;;  %v21832_v52 = vld [vmem:[%s25480_s8 + $0x88] sm:$0xff]  }
 0x6d2   :  { %v19830_v61 = vpop.f32.mrf.mxu0 }
 0x6d3   :  { %v23692_v0 = vpack.c.bf16 %v7843_v58, %v7842_v57  ;;  %v7820_v4 = vadd.f32 %v19829_v59, %v7755_v62  ;;  %v21834_v57 = vld [vmem:[%s25480_s8 + $0x78] sm:$0xff]   ;;  %v21836_v58 = vld [vmem:[%s25480_s8 + $0xa8] sm:$0xff]   ;;  %v21835_v59 = vld [vmem:[%s25480_s8 + $0x70] sm:$0xff]  }
 0x6d4   :  { %v19831_v2 = vpop.f32.mrf.mxu0  ;;  %v21840_v62 = vld [vmem:[%s25480_s8 + $0xc8] sm:$0xff]  }
 0x6d5   :  { %v19832_v5 = vadd.f32 %v19831_v2, %v19830_v61  ;;  %20625 = vmatprep.mubr.msk.bf16.mxu1 %vm7870_vm0, %v23692_v0  ;;  %20649 = vmatprep.mubr.msk.bf16.mxu0 %vm7870_vm0, %v23692_v0  ;;  %v7844_v11 = vmax.f32 %v7820_v4, 0.0  ;;  %v21838_v61 = vld [vmem:[%s25480_s8 + $0x98] sm:$0xff]   ;;  %v21841_v2 = vld [vmem:[%s25480_s8 + $0xc0] sm:$0xff]   ;;  %v21844_v4 = vld [vmem:[%s25480_s8 + $0xe8] sm:$0xff]  }
 0x6d6   :  { %v19833_v6 = vpop.f32.mrf.mxu0 }
 0x6d7   :  { %v7823_v35 = vadd.f32 %v19832_v5, %v7758_v3  ;;  %v21842_v3 = vld [vmem:[%s25480_s8 + $0xb8] sm:$0xff]   ;;  %v21843_v5 = vld [vmem:[%s25480_s8 + $0xb0] sm:$0xff]  }
 0x6d8   :  { %v19834_v8 = vpop.f32.mrf.mxu0 }
 0x6d9   :  { %v7845_v12 = vmax.f32 %v7823_v35, 0.0  ;;  %v19835_v13 = vadd.f32 %v19834_v8, %v19833_v6  ;;  %v21846_v6 = vld [vmem:[%s25480_s8 + $0xd8] sm:$0xff]   ;;  %v21849_v8 = vld [vmem:[%s25480_s8 + $0xf0] sm:$0xff]  }
 0x6da   :  { %v19836_v1 = vpop.f32.mrf.mxu0  ;;  %v21848_v35 = vld [vmem:[%s25480_s8 + $0xf8] sm:$0xff]  }
 0x6db   :  { %v23698_v53 = vpack.c.bf16 %v7845_v12, %v7844_v11  ;;  %v7828_v19 = vadd.f32 %v19835_v13, %v7763_v42  ;;  %v18240_v11 = vcombine.high %v23908_v9, %v23910_v10  ;;  %v18239_v12 = vcombine.low %v23908_v9, %v23910_v10  ;;  %v23918_v13 = vld [vmem:[#allocation7 + $0x28] sm:$0xff] }
 0x6dc   :  { %v19837_v16 = vpop.f32.mrf.mxu0 }
 0x6dd   :  { %v19838_v22 = vadd.f32 %v19837_v16, %v19836_v1  ;;  %20626 = vmatmul.mubr.msk.bf16.vlgmr.msra.gmra.mxu1 %vm7870_vm0, %v23698_v53  ;;  %20650 = vmatmul.mubr.msk.bf16.vlgmr.msra.gmra.mxu0 %vm7870_vm0, %v23698_v53  ;;  %v7846_v29 = vmax.f32 %v7828_v19, 0.0 }
 0x6de   :  { %v19839_v24 = vpop.f32.mrf.mxu0  ;;  %20634 = vmatpush3.bf16.msra.mxu1 %v23683_v17  ;;  %20670 = vmatpush3.bf16.msra.mxu0 %v23688_v18  ;;  %v7625_v17 = vpop.permute.xlu0 %7624 }
 0x6df   :  { %v7831_v26 = vadd.f32 %v19838_v22, %v7766_v46  ;;  %20635 = vmatprep.subr.bf16.mxu1 %v21823_v20  ;;  %20671 = vmatprep.subr.bf16.mxu0 %v21825_v21  ;;  %v7771_v18 = vadd.f32 %v19801_v25, %v7625_v17 }
 0x6e0   :  { %v19840_v30 = vpop.f32.mrf.mxu0 }
 0x6e1   :  { %v7847_v32 = vmax.f32 %v7831_v26, 0.0  ;;  %v19841_v33 = vadd.f32 %v19840_v30, %v19839_v24 }
 0x6e2   :  { %v19842_v38 = vpop.f32.mrf.mxu0  ;;  %20636 = vmatpush3.bf16.msra.mxu1 %v21823_v20  ;;  %20672 = vmatpush3.bf16.msra.mxu0 %v21825_v21 }
 0x6e3   :  { %v23718_v39 = vpack.c.bf16 %v7847_v32, %v7846_v29  ;;  %20657 = vmatprep.subr.bf16.mxu1 %v21826_v27  ;;  %20693 = vmatprep.subr.bf16.mxu0 %v21828_v28  ;;  %v7836_v44 = vadd.f32 %v19841_v33, %v7771_v18 }
 0x6e4   :  { %v19843_v41 = vpop.f32.mrf.mxu0 }
 0x6e5   :  { %v19844_v45 = vadd.f32 %v19843_v41, %v19842_v38  ;;  %20629 = vmatprep.mubr.msk.bf16.mxu1 %vm7870_vm0, %v23718_v39  ;;  %20653 = vmatprep.mubr.msk.bf16.mxu0 %vm7870_vm0, %v23718_v39  ;;  %v7848_v48 = vmax.f32 %v7836_v44, 0.0 }
 0x6e7   :  { %v7839_v36 = vadd.f32 %v19844_v45, %v7774_v43 }
 0x6e9   :  { %v7849_v37 = vmax.f32 %v7839_v36, 0.0 }
 0x6eb   :  { %v23724_v49 = vpack.c.bf16 %v7849_v37, %v7848_v48 }
 0x6ed   :  { %20630 = vmatmul.mubr.msk.bf16.gmra.mxu1 %vm7870_vm0, %v23724_v49  ;;  %20654 = vmatmul.mubr.msk.bf16.gmra.mxu0 %vm7870_vm0, %v23724_v49 }
 0x6ee   :  { %20637 = vmatprep.mubr.msk.bf16.mxu1 %vm7870_vm0, %v23692_v0  ;;  %20673 = vmatprep.mubr.msk.bf16.mxu0 %vm7870_vm0, %v23692_v0 }
 0x6f5   :  { %20638 = vmatmul.mubr.msk.bf16.vlgmr.msra.gmra.mxu1 %vm7870_vm0, %v23698_v53  ;;  %20674 = vmatmul.mubr.msk.bf16.vlgmr.msra.gmra.mxu0 %vm7870_vm0, %v23698_v53 }
 0x6f6   :  { %20658 = vmatpush3.bf16.msra.mxu1 %v21826_v27  ;;  %20641 = vmatprep.mubr.msk.bf16.mxu1 %vm7870_vm0, %v23718_v39 }
 0x6f7   :  { %20677 = vmatprep.mubr.msk.bf16.mxu0 %vm7870_vm0, %v23718_v39  ;;  %20659 = vmatprep.subr.bf16.mxu1 %v21827_v50 }
 0x6f8   :  { %20694 = vmatpush3.bf16.msra.mxu0 %v21828_v28 }
 0x6f9   :  { %20695 = vmatprep.subr.bf16.mxu0 %v21829_v51 }
 0x6fa   :  { %20660 = vmatpush3.bf16.msra.mxu1 %v21827_v50 }
 0x6fb   :  { %20681 = vmatprep.subr.bf16.mxu1 %v21830_v47 }
 0x6fc   :  { %20696 = vmatpush3.bf16.msra.mxu0 %v21829_v51 }
 0x6fd   :  { %20642 = vmatmul.mubr.msk.bf16.gmra.mxu1 %vm7870_vm0, %v23724_v49  ;;  %20678 = vmatmul.mubr.msk.bf16.gmra.mxu0 %vm7870_vm0, %v23724_v49 }
 0x6fe   :  { %20661 = vmatprep.mubr.msk.bf16.mxu1 %vm7870_vm0, %v23692_v0  ;;  %20697 = vmatprep.mubr.msk.bf16.mxu0 %vm7870_vm0, %v23692_v0 }
 0x6ff   :  { %20717 = vmatprep.subr.bf16.mxu0 %v21832_v52 }
 0x705   :  { %20662 = vmatmul.mubr.msk.bf16.vlgmr.msra.gmra.mxu1 %vm7870_vm0, %v23698_v53  ;;  %20698 = vmatmul.mubr.msk.bf16.vlgmr.msra.gmra.mxu0 %vm7870_vm0, %v23698_v53 }
 0x706   :  { %20682 = vmatpush3.bf16.msra.mxu1 %v21830_v47  ;;  %20665 = vmatprep.mubr.msk.bf16.mxu1 %vm7870_vm0, %v23718_v39 }
 0x707   :  { %20701 = vmatprep.mubr.msk.bf16.mxu0 %vm7870_vm0, %v23718_v39  ;;  %20683 = vmatprep.subr.bf16.mxu1 %v21831_v54 }
 0x708   :  { %20718 = vmatpush3.bf16.msra.mxu0 %v21832_v52 }
 0x709   :  { %20719 = vmatprep.subr.bf16.mxu0 %v21833_v55 }
 0x70a   :  { %20684 = vmatpush3.bf16.msra.mxu1 %v21831_v54 }
 0x70b   :  { %20705 = vmatprep.subr.bf16.mxu1 %v21834_v57 }
 0x70c   :  { %20720 = vmatpush3.bf16.msra.mxu0 %v21833_v55 }
 0x70d   :  { %20666 = vmatmul.mubr.msk.bf16.gmra.mxu1 %vm7870_vm0, %v23724_v49  ;;  %20702 = vmatmul.mubr.msk.bf16.gmra.mxu0 %vm7870_vm0, %v23724_v49 }
 0x70e   :  { %20685 = vmatprep.mubr.msk.bf16.mxu1 %vm7870_vm0, %v23692_v0  ;;  %20721 = vmatprep.mubr.msk.bf16.mxu0 %vm7870_vm0, %v23692_v0 }
 0x70f   :  { %20741 = vmatprep.subr.bf16.mxu0 %v21836_v58 }
 0x715   :  { %20686 = vmatmul.mubr.msk.bf16.vlgmr.msra.gmra.mxu1 %vm7870_vm0, %v23698_v53  ;;  %20722 = vmatmul.mubr.msk.bf16.vlgmr.msra.gmra.mxu0 %vm7870_vm0, %v23698_v53 }
 0x716   :  { %20706 = vmatpush3.bf16.msra.mxu1 %v21834_v57  ;;  %20689 = vmatprep.mubr.msk.bf16.mxu1 %vm7870_vm0, %v23718_v39 }
 0x717   :  { %20725 = vmatprep.mubr.msk.bf16.mxu0 %vm7870_vm0, %v23718_v39  ;;  %20707 = vmatprep.subr.bf16.mxu1 %v21835_v59 }
 0x718   :  { %20742 = vmatpush3.bf16.msra.mxu0 %v21836_v58 }
 0x719   :  { %20743 = vmatprep.subr.bf16.mxu0 %v21837_v60 }
 0x71a   :  { %20708 = vmatpush3.bf16.msra.mxu1 %v21835_v59 }
 0x71b   :  { %20729 = vmatprep.subr.bf16.mxu1 %v21838_v61 }
 0x71c   :  { %20744 = vmatpush3.bf16.msra.mxu0 %v21837_v60 }
 0x71d   :  { %20690 = vmatmul.mubr.msk.bf16.gmra.mxu1 %vm7870_vm0, %v23724_v49  ;;  %20726 = vmatmul.mubr.msk.bf16.gmra.mxu0 %vm7870_vm0, %v23724_v49 }
 0x71e   :  { %20709 = vmatprep.mubr.msk.bf16.mxu1 %vm7870_vm0, %v23692_v0  ;;  %20745 = vmatprep.mubr.msk.bf16.mxu0 %vm7870_vm0, %v23692_v0 }
 0x71f   :  { %20765 = vmatprep.subr.bf16.mxu0 %v21840_v62 }
 0x725   :  { %20710 = vmatmul.mubr.msk.bf16.vlgmr.msra.gmra.mxu1 %vm7870_vm0, %v23698_v53  ;;  %20746 = vmatmul.mubr.msk.bf16.vlgmr.msra.gmra.mxu0 %vm7870_vm0, %v23698_v53 }
 0x726   :  { %20730 = vmatpush3.bf16.msra.mxu1 %v21838_v61  ;;  %20713 = vmatprep.mubr.msk.bf16.mxu1 %vm7870_vm0, %v23718_v39 }
 0x727   :  { %20749 = vmatprep.mubr.msk.bf16.mxu0 %vm7870_vm0, %v23718_v39  ;;  %20731 = vmatprep.subr.bf16.mxu1 %v21839_v63 }
 0x728   :  { %20766 = vmatpush3.bf16.msra.mxu0 %v21840_v62 }
 0x729   :  { %20767 = vmatprep.subr.bf16.mxu0 %v21841_v2 }
 0x72a   :  { %20732 = vmatpush3.bf16.msra.mxu1 %v21839_v63 }
 0x72b   :  { %20753 = vmatprep.subr.bf16.mxu1 %v21842_v3 }
 0x72c   :  { %20768 = vmatpush3.bf16.msra.mxu0 %v21841_v2 }
 0x72d   :  { %20714 = vmatmul.mubr.msk.bf16.gmra.mxu1 %vm7870_vm0, %v23724_v49  ;;  %20750 = vmatmul.mubr.msk.bf16.gmra.mxu0 %vm7870_vm0, %v23724_v49 }
 0x72e   :  { %20733 = vmatprep.mubr.msk.bf16.mxu1 %vm7870_vm0, %v23692_v0  ;;  %20769 = vmatprep.mubr.msk.bf16.mxu0 %vm7870_vm0, %v23692_v0 }
 0x72f   :  { %20789 = vmatprep.subr.bf16.mxu0 %v21844_v4 }
 0x735   :  { %20734 = vmatmul.mubr.msk.bf16.vlgmr.msra.gmra.mxu1 %vm7870_vm0, %v23698_v53  ;;  %20770 = vmatmul.mubr.msk.bf16.vlgmr.msra.gmra.mxu0 %vm7870_vm0, %v23698_v53 }
 0x736   :  { %20754 = vmatpush3.bf16.msra.mxu1 %v21842_v3  ;;  %20737 = vmatprep.mubr.msk.bf16.mxu1 %vm7870_vm0, %v23718_v39 }
 0x737   :  { %20773 = vmatprep.mubr.msk.bf16.mxu0 %vm7870_vm0, %v23718_v39  ;;  %20755 = vmatprep.subr.bf16.mxu1 %v21843_v5 }
 0x738   :  { %20790 = vmatpush3.bf16.msra.mxu0 %v21844_v4 }
 0x739   :  { %20791 = vmatprep.subr.bf16.mxu0 %v21845_v34 }
 0x73a   :  { %20756 = vmatpush3.bf16.msra.mxu1 %v21843_v5 }
 0x73b   :  { %20777 = vmatprep.subr.bf16.mxu1 %v21846_v6 }
 0x73c   :  { %20792 = vmatpush3.bf16.msra.mxu0 %v21845_v34 }
 0x73d   :  { %20738 = vmatmul.mubr.msk.bf16.gmra.mxu1 %vm7870_vm0, %v23724_v49  ;;  %20774 = vmatmul.mubr.msk.bf16.gmra.mxu0 %vm7870_vm0, %v23724_v49 }
 0x73e   :  { %20757 = vmatprep.mubr.msk.bf16.mxu1 %vm7870_vm0, %v23692_v0  ;;  %20793 = vmatprep.mubr.msk.bf16.mxu0 %vm7870_vm0, %v23692_v0 }
 0x745   :  { %20758 = vmatmul.mubr.msk.bf16.vlgmr.msra.gmra.mxu1 %vm7870_vm0, %v23698_v53  ;;  %20794 = vmatmul.mubr.msk.bf16.vlgmr.msra.gmra.mxu0 %vm7870_vm0, %v23698_v53 }
 0x746   :  { %20778 = vmatpush3.bf16.msra.mxu1 %v21846_v6  ;;  %20761 = vmatprep.mubr.msk.bf16.mxu1 %vm7870_vm0, %v23718_v39 }
 0x747   :  { %20797 = vmatprep.mubr.msk.bf16.mxu0 %vm7870_vm0, %v23718_v39  ;;  %20779 = vmatprep.subr.bf16.mxu1 %v21847_v7 }
 0x74a   :  { %20780 = vmatpush3.bf16.msra.mxu1 %v21847_v7 }
 0x74b   :  { %20801 = vmatprep.subr.bf16.mxu1 %v21848_v35 }
 0x74d   :  { %20762 = vmatmul.mubr.msk.bf16.gmra.mxu1 %vm7870_vm0, %v23724_v49  ;;  %20798 = vmatmul.mubr.msk.bf16.gmra.mxu0 %vm7870_vm0, %v23724_v49 }
 0x74e   :  { %20781 = vmatprep.mubr.msk.bf16.mxu1 %vm7870_vm0, %v23692_v0  ;;  %9334 = vmatprep.mubr.bf16.mxu0 %v18240_v11 }
 0x755   :  { %20782 = vmatmul.mubr.msk.bf16.vlgmr.msra.gmra.mxu1 %vm7870_vm0, %v23698_v53 }
 0x756   :  { %20802 = vmatpush3.bf16.msra.mxu1 %v21848_v35  ;;  %20785 = vmatprep.mubr.msk.bf16.mxu1 %vm7870_vm0, %v23718_v39 }
 0x757   :  { %20803 = vmatprep.subr.bf16.mxu1 %v21849_v8 }
 0x75a   :  { %20804 = vmatpush3.bf16.msra.mxu1 %v21849_v8 }
 0x75d   :  { %20786 = vmatmul.mubr.msk.bf16.gmra.mxu1 %vm7870_vm0, %v23724_v49 }
 0x75e   :  { %20805 = vmatprep.mubr.msk.bf16.mxu1 %vm7870_vm0, %v23692_v0  ;;  %v23916_v0 = vld [vmem:[#allocation7 + $0x8] sm:$0xff] }
 0x75f   :  { %v18242_v15 = vcombine.high %v23916_v0, %v23918_v13 }
 0x765   :  { %20806 = vmatmul.mubr.msk.bf16.vlgmr.msra.gmra.mxu1 %vm7870_vm0, %v23698_v53 }
 0x766   :  { %20809 = vmatprep.mubr.msk.bf16.mxu1 %vm7870_vm0, %v23718_v39 }
 0x76d   :  { %20810 = vmatmul.mubr.msk.bf16.gmra.mxu1 %vm7870_vm0, %v23724_v49 }
 0x76e   :  { %9375 = vmatprep.mubr.bf16.mxu1 %v18242_v15 }
 0x79d   :  { %v23924_v42 = vpop.f32.mrf.mxu1  ;;  %v23926_v53 = vpop.f32.mrf.mxu0 }
 0x79f   :  { %v23928_v20 = vpop.f32.mrf.mxu1  ;;  %v23934_v16 = vpop.f32.mrf.mxu0 }
 0x7a1   :  { %v23930_v21 = vpop.f32.mrf.mxu1  ;;  %v23936_v46 = vpop.f32.mrf.mxu0 }
 0x7a2   :  { %v9179_v56 = vpack.c.bf16 %v23930_v21, %v23924_v42 }
 0x7a3   :  { %v23938_v19 = vpop.f32.mrf.mxu1  ;;  %v23940_v22 = vpop.f32.mrf.mxu0 }
 0x7ad   :  { %v23942_v23 = vpop.f32.mrf.mxu1  ;;  %v23944_v24 = vpop.f32.mrf.mxu0 }
 0x7af   :  { %v23946_v25 = vpop.f32.mrf.mxu1  ;;  %v23948_v26 = vpop.f32.mrf.mxu0 }
 0x7b1   :  { %v23950_v27 = vpop.f32.mrf.mxu1  ;;  %v23952_v28 = vpop.f32.mrf.mxu0 }
 0x7b3   :  { %v23954_v30 = vpop.f32.mrf.mxu1  ;;  %v23956_v31 = vpop.f32.mrf.mxu0 }
 0x7b5   :  { %v20639_v29 = vpop.f32.mrf.mxu1  ;;  %v23958_v32 = vpop.f32.mrf.mxu0 }
 0x7b7   :  { %v7999_v33 = vpop.f32.mrf.mxu1  ;;  %v23960_v17 = vpop.f32.mrf.mxu0 }
 0x7b9   :  { %v20640_v38 = vpop.f32.mrf.mxu1  ;;  %v23962_v18 = vpop.f32.mrf.mxu0 }
 0x7bb   :  { %v8002_v39 = vpop.f32.mrf.mxu1  ;;  %v23964_v40 = vpop.f32.mrf.mxu0 }
 0x7bd   :  { %v20643_v41 = vpop.f32.mrf.mxu1  ;;  %v23966_v43 = vpop.f32.mrf.mxu0 }
 0x7bf   :  { %v8015_v44 = vpop.f32.mrf.mxu1  ;;  %v23968_v45 = vpop.f32.mrf.mxu0 }
 0x7c1   :  { %v20644_v36 = vpop.f32.mrf.mxu1  ;;  %v23970_v48 = vpop.f32.mrf.mxu0 }
 0x7c2   :  { %v9185_v4 = vpack.c.bf16 %v20644_v36, %v20643_v41  ;;  %v9183_v36 = vpack.c.bf16 %v20640_v38, %v20639_v29  ;;  %v9181_v29 = vpack.c.bf16 %v23950_v27, %v23942_v23 }
 0x7c3   :  { %v8018_v37 = vpop.f32.mrf.mxu1  ;;  %v23972_v49 = vpop.f32.mrf.mxu0 }
 0x7c4   :  { %v9184_v8 = vpack.c.bf16 %v8018_v37, %v8015_v44  ;;  %v9182_v44 = vpack.c.bf16 %v8002_v39, %v7999_v33  ;;  %v9188_v33 = vpack.c.bf16 %v23956_v31, %v23948_v26  ;;  %v9186_v26 = vpack.c.bf16 %v23940_v22, %v23934_v16 }
 0x7c5   :  { %v20663_v50 = vpop.f32.mrf.mxu1  ;;  %v23974_v51 = vpop.f32.mrf.mxu0 }
 0x7c7   :  { %v8163_v47 = vpop.f32.mrf.mxu1  ;;  %v23976_v52 = vpop.f32.mrf.mxu0 }
 0x7c9   :  { %v20664_v54 = vpop.f32.mrf.mxu1  ;;  %v23978_v55 = vpop.f32.mrf.mxu0 }
 0x7ca   :  { %v9191_v14 = vpack.c.bf16 %v20664_v54, %v20663_v50  ;;  %v9189_v54 = vpack.c.bf16 %v23952_v28, %v23944_v24  ;;  %v9180_v24 = vpack.c.bf16 %v23954_v30, %v23946_v25  ;;  %v24035_v25 = vld [vmem:[#allocation7 + $0x10] sm:$0xff] }
 0x7cb   :  { %v8166_v57 = vpop.f32.mrf.mxu1  ;;  %v23980_v58 = vpop.f32.mrf.mxu0 }
 0x7cd   :  { %v20667_v59 = vpop.f32.mrf.mxu1  ;;  %v23982_v60 = vpop.f32.mrf.mxu0 }
 0x7cf   :  { %v8179_v61 = vpop.f32.mrf.mxu1  ;;  %v23984_v62 = vpop.f32.mrf.mxu0 }
 0x7d1   :  { %v20668_v63 = vpop.f32.mrf.mxu1  ;;  %v23986_v2 = vpop.f32.mrf.mxu0 }
 0x7d2   :  { %v9193_v3 = vpack.c.bf16 %v20668_v63, %v20667_v59  ;;  %v9190_v63 = vpack.c.bf16 %v8166_v57, %v8163_v47 }
 0x7d3   :  { %v8182_v5 = vpop.f32.mrf.mxu1  ;;  %v23988_v34 = vpop.f32.mrf.mxu0 }
 0x7d4   :  { %v9192_v6 = vpack.c.bf16 %v8182_v5, %v8179_v61  ;;  %19941 = vmatprep.subr.bf16.mxu0 %v9193_v3 }
 0x7d5   :  { %v23990_v7 = vpop.f32.mrf.mxu1  ;;  %v23992_v35 = vpop.f32.mrf.mxu0  ;;  %19942 = vmatpush3.bf16.msra.mxu0 %v9185_v4 }
 0x7d6   :  { %19943 = vmatprep.subr.bf16.mxu0 %v9192_v6  ;;  %v9187_v6 = vpack.c.bf16 %v23936_v46, %v23926_v53  ;;  %v24037_v53 = vld [vmem:[#allocation7 + $0x30] sm:$0xff]  ;;  %v9178_v46 = vpack.c.bf16 %v23938_v19, %v23928_v20 }
 0x7d7   :  { %v23994_v11 = vpop.f32.mrf.mxu1  ;;  %v23996_v15 = vpop.f32.mrf.mxu0  ;;  %v18244_v16 = vcombine.high %v24035_v25, %v24037_v53 }
 0x7d9   :  { %v23998_v1 = vpop.f32.mrf.mxu1  ;;  %v24000_v41 = vpop.f32.mrf.mxu0  ;;  %19944 = vmatpush3.bf16.msra.mxu0 %v9184_v8 }
 0x7da   :  { %19945 = vmatprep.subr.bf16.mxu0 %v9191_v14  ;;  %v9199_v9 = vpack.c.bf16 %v23998_v1, %v23990_v7  ;;  %v9197_v1 = vpack.c.bf16 %v23970_v48, %v23966_v43  ;;  %v9195_v43 = vpack.c.bf16 %v23962_v18, %v23958_v32 }
 0x7db   :  { %v24002_v59 = vpop.f32.mrf.mxu1  ;;  %v24004_v61 = vpop.f32.mrf.mxu0 }
 0x7dd   :  { %v20691_v3 = vpop.f32.mrf.mxu1  ;;  %v24006_v4 = vpop.f32.mrf.mxu0  ;;  %19946 = vmatpush3.bf16.msra.mxu0 %v9183_v36 }
 0x7de   :  { %19947 = vmatprep.subr.bf16.mxu0 %v9190_v63 }
 0x7df   :  { %v8343_v37 = vpop.f32.mrf.mxu1  ;;  %v24008_v50 = vpop.f32.mrf.mxu0 }
 0x7e1   :  { %v20692_v5 = vpop.f32.mrf.mxu1  ;;  %v24012_v14 = vpop.f32.mrf.mxu0  ;;  %19948 = vmatpush3.bf16.msra.mxu0 %v9182_v44 }
 0x7e2   :  { %19949 = vmatprep.subr.bf16.mxu0 %v9189_v54  ;;  %v9201_v54 = vpack.c.bf16 %v20692_v5, %v20691_v3 }
 0x7e3   :  { %v8346_v38 = vpop.f32.mrf.mxu1  ;;  %v24016_v47 = vpop.f32.mrf.mxu0 }
 0x7e4   :  { %v9200_v19 = vpack.c.bf16 %v8346_v38, %v8343_v37  ;;  %v9198_v37 = vpack.c.bf16 %v24002_v59, %v23994_v11  ;;  %v9203_v11 = vpack.c.bf16 %v23978_v55, %v23974_v51  ;;  %v9194_v51 = vpack.c.bf16 %v23964_v40, %v23960_v17 }
 0x7e5   :  { %v20711_v39 = vpop.f32.mrf.mxu1  ;;  %v24020_v57 = vpop.f32.mrf.mxu0  ;;  %19950 = vmatpush3.bf16.msra.mxu0 %v9181_v29 }
 0x7e6   :  { %19951 = vmatprep.subr.bf16.mxu0 %v9188_v33 }
 0x7e7   :  { %v8491_v28 = vpop.f32.mrf.mxu1  ;;  %v24026_v8 = vpop.f32.mrf.mxu0 }
 0x7e9   :  { %v20712_v23 = vpop.f32.mrf.mxu1  ;;  %19952 = vmatpush3.bf16.msra.mxu0 %v9180_v24  ;;  %v24030_v31 = vpop.f32.mrf.mxu0 }
 0x7ea   :  { %19953 = vmatprep.subr.bf16.mxu0 %v9187_v6  ;;  %v9207_v33 = vpack.c.bf16 %v20712_v23, %v20711_v39  ;;  %v9205_v39 = vpack.c.bf16 %v23986_v2, %v23982_v60  ;;  %v9196_v60 = vpack.c.bf16 %v23972_v49, %v23968_v45  ;;  %v24088_v45 = vld [vmem:[#allocation7 + $0x18] sm:$0xff] }
 0x7eb   :  { %v8494_v27 = vpop.f32.mrf.mxu1  ;;  %v24041_v63 = vpop.f32.mrf.mxu0  ;;  %v24090_v49 = vld [vmem:[#allocation7 + $0x38] sm:$0xff] }
 0x7ec   :  { %v18246_v18 = vcombine.high %v24088_v45, %v24090_v49 }
 0x7ed   :  { %v20715_v36 = vpop.f32.mrf.mxu1  ;;  %19954 = vmatpush3.bf16.msra.mxu0 %v9179_v56  ;;  %v24048_v56 = vpop.f32.mrf.mxu0 }
 0x7ee   :  { %19955 = vmatprep.subr.bf16.mxu0 %v9186_v26 }
 0x7ef   :  { %v8507_v30 = vpop.f32.mrf.mxu1  ;;  %v24054_v24 = vpop.f32.mrf.mxu0 }
 0x7f1   :  { %v20716_v44 = vpop.f32.mrf.mxu1  ;;  %19956 = vmatpush3.bf16.msra.mxu0 %v9178_v46  ;;  %v24062_v5 = vpop.f32.mrf.mxu0 }
 0x7f2   :  { %v9209_v22 = vpack.c.bf16 %v20716_v44, %v20715_v36 }
 0x7f3   :  { %v8510_v42 = vpop.f32.mrf.mxu1  ;;  %v24068_v23 = vpop.f32.mrf.mxu0 }
 0x7f4   :  { %v9208_v21 = vpack.c.bf16 %v8510_v42, %v8507_v30  ;;  %9335 = vmatmul.mubr.bf16.vlgmr.msra.gmra.mxu0 %v18239_v12  ;;  %19963 = vmatprep.subr.bf16.mxu1 %v9209_v22  ;;  %v9206_v12 = vpack.c.bf16 %v8494_v27, %v8491_v28  ;;  %v9204_v28 = vpack.c.bf16 %v23988_v34, %v23984_v62 }
 0x7f5   :  { %v24050_v20 = vpop.f32.mrf.mxu1  ;;  %19964 = vmatpush3.bf16.msra.mxu1 %v9201_v54  ;;  %9416 = vmatprep.mubr.bf16.mxu0 %v18244_v16  ;;  %v24074_v27 = vpop.f32.mrf.mxu0  ;;  %v9202_v62 = vpack.c.bf16 %v23980_v58, %v23976_v52  ;;  %v25579_v54 = vcombine.low %v23916_v0, %v23918_v13 }
 0x7f6   :  { %19965 = vmatprep.subr.bf16.mxu1 %v9208_v21 }
 0x7f7   :  { %v24052_v29 = vpop.f32.mrf.mxu1  ;;  %v24080_v59 = vpop.f32.mrf.mxu0 }
 0x7f9   :  { %v24056_v3 = vpop.f32.mrf.mxu1  ;;  %19966 = vmatpush3.bf16.msra.mxu1 %v9200_v19  ;;  %v24086_v34 = vpop.f32.mrf.mxu0 }
 0x7fa   :  { %19967 = vmatprep.subr.bf16.mxu1 %v9207_v33  ;;  %v9215_v0 = vpack.c.bf16 %v24056_v3, %v24050_v20  ;;  %v9213_v20 = vpack.c.bf16 %v24012_v14, %v24006_v4  ;;  %v9211_v4 = vpack.c.bf16 %v24000_v41, %v23992_v35 }
 0x7fb   :  { %v24060_v10 = vpop.f32.mrf.mxu1  ;;  %v24094_v44 = vpop.f32.mrf.mxu0 }
 0x7fd   :  { %v20739_v6 = vpop.f32.mrf.mxu1  ;;  %19968 = vmatpush3.bf16.msra.mxu1 %v9199_v9  ;;  %v24101_v42 = vpop.f32.mrf.mxu0 }
 0x7fe   :  { %19969 = vmatprep.subr.bf16.mxu1 %v9206_v12 }
 0x7ff   :  { %v8671_v38 = vpop.f32.mrf.mxu1  ;;  %v24107_v33 = vpop.f32.mrf.mxu0 }
 0x801   :  { %v20740_v26 = vpop.f32.mrf.mxu1  ;;  %19970 = vmatpush3.bf16.msra.mxu1 %v9198_v37 }
 0x802   :  { %19971 = vmatprep.subr.bf16.mxu1 %v9205_v39  ;;  %v9217_v58 = vpack.c.bf16 %v20740_v26, %v20739_v6  ;;  %v24111_v6 = vpop.f32.mrf.mxu0  ;;  %v9221_v26 = vpack.c.bf16 %v24062_v5, %v24048_v56  ;;  %v9219_v56 = vpack.c.bf16 %v24030_v31, %v24020_v57  ;;  %v18243_v57 = vcombine.low %v24035_v25, %v24037_v53 }
 0x803   :  { %v8674_v7 = vpop.f32.mrf.mxu1 }
 0x804   :  { %v9216_v40 = vpack.c.bf16 %v8674_v7, %v8671_v38  ;;  %v9214_v38 = vpack.c.bf16 %v24060_v10, %v24052_v29  ;;  %v9212_v29 = vpack.c.bf16 %v24016_v47, %v24008_v50  ;;  %v9210_v50 = vpack.c.bf16 %v24004_v61, %v23996_v15 }
 0x805   :  { %v20759_v36 = vpop.f32.mrf.mxu1  ;;  %19972 = vmatpush3.bf16.msra.mxu1 %v9197_v1  ;;  %v8920_v1 = vpop.f32.mrf.mxu0 }
 0x806   :  { %19973 = vmatprep.subr.bf16.mxu1 %v9204_v28  ;;  %v9220_v28 = vpack.c.bf16 %v24068_v23, %v24054_v24  ;;  %v9218_v24 = vpack.c.bf16 %v24041_v63, %v24026_v8 }
 0x807   :  { %v8819_v2 = vpop.f32.mrf.mxu1 }
 0x809   :  { %v20760_v46 = vpop.f32.mrf.mxu1  ;;  %19974 = vmatpush3.bf16.msra.mxu1 %v9196_v60 }
 0x80a   :  { %19975 = vmatprep.subr.bf16.mxu1 %v9203_v11  ;;  %v9223_v19 = vpack.c.bf16 %v20760_v46, %v20759_v36  ;;  %v20795_v36 = vpop.f32.mrf.mxu0 }
 0x80b   :  { %v8822_v48 = vpop.f32.mrf.mxu1 }
 0x80c   :  { %v9222_v12 = vpack.c.bf16 %v8822_v48, %v8819_v2  ;;  %v9065_v5 = vpop.f32.mrf.mxu0 }
 0x80d   :  { %v20763_v30 = vpop.f32.mrf.mxu1  ;;  %19976 = vmatpush3.bf16.msra.mxu1 %v9195_v43 }
 0x80e   :  { %19977 = vmatprep.subr.bf16.mxu1 %v9202_v62  ;;  %v20796_v23 = vpop.f32.mrf.mxu0 }
 0x80f   :  { %v8835_v55 = vpop.f32.mrf.mxu1 }
 0x810   :  { %v9068_v31 = vpop.f32.mrf.mxu0 }
 0x811   :  { %v20764_v32 = vpop.f32.mrf.mxu1  ;;  %19978 = vmatpush3.bf16.msra.mxu1 %v9194_v51 }
 0x812   :  { %v9225_v52 = vpack.c.bf16 %v20764_v32, %v20763_v30  ;;  %v20799_v8 = vpop.f32.mrf.mxu0  ;;  %v9229_v32 = vpack.c.bf16 %v24111_v6, %v24101_v42  ;;  %v18245_v42 = vcombine.low %v24088_v45, %v24090_v49 }
 0x813   :  { %v8838_v16 = vpop.f32.mrf.mxu1 }
 0x814   :  { %v9224_v22 = vpack.c.bf16 %v8838_v16, %v8835_v55  ;;  %9376 = vmatmul.mubr.bf16.vlgmr.msra.gmra.mxu1 %v25579_v54  ;;  %19985 = vmatprep.subr.bf16.mxu0 %v9225_v52  ;;  %v9081_v30 = vpop.f32.mrf.mxu0  ;;  %v9228_v52 = vpack.c.bf16 %v8920_v1, %v24107_v33  ;;  %v9227_v16 = vpack.c.bf16 %v24086_v34, %v24074_v27 }
 0x815   :  { %v24103_v17 = vpop.f32.mrf.mxu1  ;;  %19986 = vmatpush3.bf16.msra.mxu0 %v9217_v58  ;;  %9457 = vmatprep.mubr.bf16.mxu1 %v18246_v18  ;;  %v9235_v58 = vpack.c.bf16 %v20796_v23, %v20795_v36  ;;  %v9226_v54 = vpack.c.bf16 %v24094_v44, %v24080_v59 }
 0x816   :  { %19987 = vmatprep.subr.bf16.mxu0 %v9224_v22  ;;  %v20800_v25 = vpop.f32.mrf.mxu0  ;;  %v9234_v22 = vpack.c.bf16 %v9068_v31, %v9065_v5 }
 0x817   :  { %v24105_v21 = vpop.f32.mrf.mxu1  ;;  %v9237_v51 = vpack.c.bf16 %v20800_v25, %v20799_v8 }
 0x818   :  { %v9084_v55 = vpop.f32.mrf.mxu0 }
 0x819   :  { %v20784_v9 = vpop.f32.mrf.mxu1  ;;  %19988 = vmatpush3.bf16.msra.mxu0 %v9216_v40  ;;  %v9236_v18 = vpack.c.bf16 %v9084_v55, %v9081_v30  ;;  %v9525_v40 = vld [vmem:[#allocation9 + $0x1] sm:$0x1]  ;;  %v9795_v55 = vld [vmem:[#allocation9 + $0x7] sm:$0x1] }
 0x81a   :  { %19989 = vmatprep.subr.bf16.mxu0 %v9223_v19  ;;  %v9231_v15 = vpack.c.bf16 %v20784_v9, %v24103_v17  ;;  %v9476_v17 = vld [vmem:[#allocation9] sm:$0x1]  ;;  %v9527_v34 = vsel %vm9480_vm1, %v9525_v40, 0 }
 0x81b   :  { %v8986_v13 = vpop.f32.mrf.mxu1  ;;  %v9482_v27 = vsel %vm9480_vm1, %v9476_v17, 0 }
 0x81c   :  { %v9230_v53 = vpack.c.bf16 %v8986_v13, %v24105_v21  ;;  %v22895_v21 = vmov 0.0  }
 0x81d   :  { %v20787_v37 = vpop.f32.mrf.mxu1  ;;  %19990 = vmatpush3.bf16.msra.mxu0 %v9215_v0 }
 0x81e   :  { %19991 = vmatprep.subr.bf16.mxu0 %v9222_v12 }
 0x81f   :  { %v8999_v39 = vpop.f32.mrf.mxu1 }
 0x821   :  { %v20788_v7 = vpop.f32.mrf.mxu1  ;;  %19992 = vmatpush3.bf16.msra.mxu0 %v9214_v38  ;;  %v9255_v38 = vpop.permute.xlu1 %9254 }
 0x822   :  { %19993 = vmatprep.subr.bf16.mxu0 %v9221_v26  ;;  %v9233_v35 = vpack.c.bf16 %v20788_v7, %v20787_v37 }
 0x823   :  { %v9002_v3 = vpop.f32.mrf.mxu1 }
 0x824   :  { %v9232_v63 = vpack.c.bf16 %v9002_v3, %v8999_v39 }
 0x825   :  { %v20807_v60 = vpop.f32.mrf.mxu1  ;;  %19994 = vmatpush3.bf16.msra.mxu0 %v9213_v20 }
 0x826   :  { %19995 = vmatprep.subr.bf16.mxu0 %v9220_v28 }
 0x827   :  { %v9147_v10 = vpop.f32.mrf.mxu1 }
 0x829   :  { %v20808_v2 = vpop.f32.mrf.mxu1  ;;  %19996 = vmatpush3.bf16.msra.mxu0 %v9212_v29 }
 0x82a   :  { %19997 = vmatprep.subr.bf16.mxu0 %v9219_v56  ;;  %v9239_v62 = vpack.c.bf16 %v20808_v2, %v20807_v60  ;;  %v9260_v60 = vpop.permute.xlu0 %9259 }
 0x82b   :  { %v9150_v14 = vpop.f32.mrf.mxu1 }
 0x82c   :  { %v9238_v61 = vpack.c.bf16 %v9150_v14, %v9147_v10 }
 0x82d   :  { %v20811_v11 = vpop.f32.mrf.mxu1  ;;  %19998 = vmatpush3.bf16.msra.mxu0 %v9211_v4 }
 0x82e   :  { %19999 = vmatprep.subr.bf16.mxu0 %v9218_v24 }
 0x82f   :  { %v9163_v47 = vpop.f32.mrf.mxu1 }
 0x831   :  { %v20812_v46 = vpop.f32.mrf.mxu1  ;;  %20000 = vmatpush3.bf16.msra.mxu0 %v9210_v50 }
 0x832   :  { %v9241_v43 = vpack.c.bf16 %v20812_v46, %v20811_v11  ;;  %20813 = vmatprep.subr.bf16.mxu0 %v22895_v21  ;;  %v9469_v46 = vld [vmem:[%s25580_s16] sm:$0xff] }
 0x833   :  { %v9166_v41 = vpop.f32.mrf.mxu1 }
 0x834   :  { %v9240_v48 = vpack.c.bf16 %v9166_v41, %v9163_v47  ;;  %9417 = vmatmul.mubr.bf16.vlgmr.msra.gmra.mxu0 %v18243_v57  ;;  %20007 = vmatprep.subr.bf16.mxu1 %v9241_v43  ;;  %v9570_v41 = vld [vmem:[#allocation9 + $0x2] sm:$0x1] }
 0x835   :  { %20008 = vmatpush3.bf16.msra.mxu1 %v9233_v35  ;;  %20814 = vmatpush3.bf16.msra.mxu0 %v9482_v27  ;;  %v10020_v27 = vld [vmem:[#allocation9 + $0xc] sm:$0x1] }
 0x836   :  { %20009 = vmatprep.subr.bf16.mxu1 %v9240_v48  ;;  %20815 = vmatprep.mubr.msk.bf16.mxu0 %vm22896_vm2, %v22895_v21  ;;  %v9615_v48 = vld [vmem:[#allocation9 + $0x3] sm:$0x1] }
 0x837   :  { %20825 = vmatprep.subr.bf16.mxu0 %v22895_v21  ;;  %v9617_v30 = vsel %vm9480_vm1, %v9615_v48, 0 }
 0x839   :  { %20010 = vmatpush3.bf16.msra.mxu1 %v9232_v63 }
 0x83a   :  { %20011 = vmatprep.subr.bf16.mxu1 %v9239_v62  ;;  %v9572_v62 = vsel %vm9480_vm1, %v9570_v41, 0 }
 0x83d   :  { %20012 = vmatpush3.bf16.msra.mxu1 %v9231_v15  ;;  %v9660_v15 = vld [vmem:[#allocation9 + $0x4] sm:$0x1] }
 0x83e   :  { %20013 = vmatprep.subr.bf16.mxu1 %v9238_v61  ;;  %v9705_v61 = vld [vmem:[#allocation9 + $0x5] sm:$0x1]  ;;  %v9662_v25 = vsel %vm9480_vm1, %v9660_v15, 0 }
 0x841   :  { %20014 = vmatpush3.bf16.msra.mxu1 %v9230_v53  ;;  %v9707_v53 = vsel %vm9480_vm1, %v9705_v61, 0 }
 0x842   :  { %20015 = vmatprep.subr.bf16.mxu1 %v9237_v51  ;;  %v9750_v51 = vld [vmem:[#allocation9 + $0x6] sm:$0x1] }
 0x845   :  { %20016 = vmatpush3.bf16.msra.mxu1 %v9229_v32  ;;  %v9752_v32 = vsel %vm9480_vm1, %v9750_v51, 0 }
 0x846   :  { %20017 = vmatprep.subr.bf16.mxu1 %v9236_v18  ;;  %v9797_v18 = vsel %vm9480_vm1, %v9795_v55, 0 }
 0x849   :  { %20018 = vmatpush3.bf16.msra.mxu1 %v9228_v52  ;;  %v9840_v52 = vld [vmem:[#allocation9 + $0x8] sm:$0x1] }
 0x84a   :  { %20019 = vmatprep.subr.bf16.mxu1 %v9235_v58  ;;  %v9885_v58 = vld [vmem:[#allocation9 + $0x9] sm:$0x1] }
 0x84d   :  { %20020 = vmatpush3.bf16.msra.mxu1 %v9227_v16  ;;  %v9842_v16 = vsel %vm9480_vm1, %v9840_v52, 0 }
 0x84e   :  { %20021 = vmatprep.subr.bf16.mxu1 %v9234_v22  ;;  %v9887_v22 = vsel %vm9480_vm1, %v9885_v58, 0 }
 0x851   :  { %20022 = vmatpush3.bf16.msra.mxu1 %v9226_v54  ;;  %v9930_v54 = vld [vmem:[#allocation9 + $0xa] sm:$0x1] }
 0x852   :  { %20819 = vmatprep.subr.bf16.mxu1 %v22895_v21  ;;  %v9932_v17 = vsel %vm9480_vm1, %v9930_v54, 0 }
 0x854   :  { %9458 = vmatmul.mubr.bf16.vlgmr.msra.gmra.mxu1 %v18245_v42  ;;  %v9975_v42 = vld [vmem:[#allocation9 + $0xb] sm:$0x1] }
 0x855   :  { %20820 = vmatpush3.bf16.msra.mxu1 %v9527_v34  ;;  %20821 = vmatprep.mubr.msk.bf16.mxu1 %vm22896_vm2, %v22895_v21  ;;  %v9977_v40 = vsel %vm9480_vm1, %v9975_v42, 0  ;;  %v10065_v34 = vld [vmem:[#allocation9 + $0xd] sm:$0x1] }
 0x856   :  { %20831 = vmatprep.subr.bf16.mxu1 %v22895_v21 }
 0x8b4   :  { %v19957_v59 = vpop.f32.mrf.mxu0 }
 0x8b6   :  { %v19958_v45 = vpop.f32.mrf.mxu0 }
 0x8b7   :  { %v19959_v12 = vadd.f32 %v19958_v45, %v19957_v59  ;;  %v10022_v59 = vsel %vm9480_vm1, %v10020_v27, 0  ;;  %v10067_v45 = vsel %vm9480_vm1, %v10065_v34, 0 }
 0x8b8   :  { %v19960_v49 = vpop.f32.mrf.mxu0 }
 0x8b9   :  { %v9337_v26 = vadd.f32 %v19959_v12, %v9255_v38 }
 0x8ba   :  { %v19961_v44 = vpop.f32.mrf.mxu0 }
 0x8bb   :  { %v19962_v1 = vadd.f32 %v19961_v44, %v19960_v49  ;;  %v10110_v49 = vld [vmem:[#allocation9 + $0xe] sm:$0x1]  ;;  %v10155_v44 = vld [vmem:[#allocation9 + $0xf] sm:$0x1] }
 0x8bd   :  { %v9340_v10 = vadd.f32 %v19962_v1, %v9260_v60 }
 0x8d4   :  { %v19979_v19 = vpop.f32.mrf.mxu1 }
 0x8d6   :  { %v19980_v9 = vpop.f32.mrf.mxu1 }
 0x8d7   :  { %v19981_v37 = vadd.f32 %v19980_v9, %v19979_v19  ;;  %v10112_v19 = vsel %vm9480_vm1, %v10110_v49, 0  ;;  %v21850_v9 = vld [vmem:[#allocation10] sm:$0xff]  }
 0x8d8   :  { %v19982_v13 = vpop.f32.mrf.mxu1 }
 0x8d9   :  { %v9378_v28 = vadd.f32 %v19981_v37, %v9337_v26 }
 0x8da   :  { %v19983_v39 = vpop.f32.mrf.mxu1 }
 0x8db   :  { %v19984_v36 = vadd.f32 %v19983_v39, %v19982_v13 }
 0x8dd   :  { %v9381_v14 = vadd.f32 %v19984_v36, %v9340_v10 }
 0x8f4   :  { %v20001_v33 = vpop.f32.mrf.mxu0 }
 0x8f6   :  { %v20002_v0 = vpop.f32.mrf.mxu0 }
 0x8f7   :  { %v20003_v7 = vadd.f32 %v20002_v0, %v20001_v33  ;;  %v10157_v33 = vsel %vm9480_vm1, %v10155_v44, 0 }
 0x8f8   :  { %v20004_v6 = vpop.f32.mrf.mxu0 }
 0x8f9   :  { %v9419_v56 = vadd.f32 %v20003_v7, %v9378_v28 }
 0x8fa   :  { %v20005_v20 = vpop.f32.mrf.mxu0 }
 0x8fb   :  { %v20006_v5 = vadd.f32 %v20005_v20, %v20004_v6 }
 0x8fd   :  { %v9422_v11 = vadd.f32 %v20006_v5, %v9381_v14 }
 0x914   :  { %v20023_v3 = vpop.f32.mrf.mxu1 }
 0x916   :  { %v20024_v29 = vpop.f32.mrf.mxu1 }
 0x917   :  { %v20025_v2 = vadd.f32 %v20024_v29, %v20023_v3 }
 0x918   :  { %v20026_v4 = vpop.f32.mrf.mxu1 }
 0x919   :  { %v9460_v24 = vadd.f32 %v20025_v2, %v9419_v56 }
 0x91a   :  { %v20027_v23 = vpop.f32.mrf.mxu1 }
 0x91b   :  { %9467 = vst.msk [vmem:[%s25493_s21] sm:$0xff] %vm9466_vm3, %v9460_v24  ;;  %v20028_v50 = vadd.f32 %v20027_v23, %v20026_v4 }
 0x91d   :  { %v9463_v47 = vadd.f32 %v20028_v50, %v9422_v11 }
 0x91f   :  { %9468 = vst.msk [vmem:[%s25494_s22] sm:$0xff] %vm9466_vm3, %v9463_v47  ;;  %v9470_v57 = vmul.f32 0.5, %v9463_v47 }
 0x921   :  { %v9471_v31 = vmul.f32 1.442695, %v9470_v57 }
 0x923   :  { %22655 = vpow2.f32 %v9471_v31 }
 0x930   :  { %v22656_v43 = vpop.eup %22655 }
 0x931   :  { %v9473_v35 = vmul.f32 %v22656_v43, %v9469_v46 }
 0x933   :  { %v9474_v8 = vadd.f32 %v9473_v35, %v9460_v24 }
 0x935   :  { %v24165_v63 = vpack.c.bf16 %v9474_v8, %v9474_v8 }
 0x937   :  { %20816 = vmatmul.mubr.msk.bf16.vlgmr.msra.gmra.mxu0 %vm9466_vm3, %v24165_v63  ;;  %20822 = vmatmul.mubr.msk.bf16.vlgmr.msra.gmra.mxu1 %vm9466_vm3, %v24165_v63 }
 0x938   :  { %20826 = vmatpush3.bf16.msra.mxu0 %v9572_v62  ;;  %20832 = vmatpush3.bf16.msra.mxu1 %v9617_v30 }
 0x939   :  { %20827 = vmatprep.mubr.msk.bf16.mxu0 %vm22896_vm2, %v22895_v21  ;;  %20833 = vmatprep.mubr.msk.bf16.mxu1 %vm22896_vm2, %v22895_v21 }
 0x93a   :  { %20837 = vmatprep.subr.bf16.mxu0 %v22895_v21  ;;  %20843 = vmatprep.subr.bf16.mxu1 %v22895_v21 }
 0x93f   :  { %20828 = vmatmul.mubr.msk.bf16.vlgmr.msra.gmra.mxu0 %vm9466_vm3, %v24165_v63  ;;  %20834 = vmatmul.mubr.msk.bf16.vlgmr.msra.gmra.mxu1 %vm9466_vm3, %v24165_v63 }
 0x940   :  { %20838 = vmatpush3.bf16.msra.mxu0 %v9662_v25  ;;  %20844 = vmatpush3.bf16.msra.mxu1 %v9707_v53 }
 0x941   :  { %20839 = vmatprep.mubr.msk.bf16.mxu0 %vm22896_vm2, %v22895_v21  ;;  %20845 = vmatprep.mubr.msk.bf16.mxu1 %vm22896_vm2, %v22895_v21 }
 0x942   :  { %20849 = vmatprep.subr.bf16.mxu0 %v22895_v21  ;;  %20855 = vmatprep.subr.bf16.mxu1 %v22895_v21 }
 0x947   :  { %20840 = vmatmul.mubr.msk.bf16.vlgmr.msra.gmra.mxu0 %vm9466_vm3, %v24165_v63  ;;  %20846 = vmatmul.mubr.msk.bf16.vlgmr.msra.gmra.mxu1 %vm9466_vm3, %v24165_v63 }
 0x948   :  { %20850 = vmatpush3.bf16.msra.mxu0 %v9752_v32  ;;  %20856 = vmatpush3.bf16.msra.mxu1 %v9797_v18 }
 0x949   :  { %20851 = vmatprep.mubr.msk.bf16.mxu0 %vm22896_vm2, %v22895_v21  ;;  %20857 = vmatprep.mubr.msk.bf16.mxu1 %vm22896_vm2, %v22895_v21 }
 0x94a   :  { %20861 = vmatprep.subr.bf16.mxu0 %v22895_v21  ;;  %20867 = vmatprep.subr.bf16.mxu1 %v22895_v21 }
 0x94f   :  { %20852 = vmatmul.mubr.msk.bf16.vlgmr.msra.gmra.mxu0 %vm9466_vm3, %v24165_v63  ;;  %20858 = vmatmul.mubr.msk.bf16.vlgmr.msra.gmra.mxu1 %vm9466_vm3, %v24165_v63 }
 0x950   :  { %20862 = vmatpush3.bf16.msra.mxu0 %v9842_v16  ;;  %20868 = vmatpush3.bf16.msra.mxu1 %v9887_v22 }
 0x951   :  { %20863 = vmatprep.mubr.msk.bf16.mxu0 %vm22896_vm2, %v22895_v21  ;;  %20869 = vmatprep.mubr.msk.bf16.mxu1 %vm22896_vm2, %v22895_v21 }
 0x952   :  { %20873 = vmatprep.subr.bf16.mxu0 %v22895_v21  ;;  %20879 = vmatprep.subr.bf16.mxu1 %v22895_v21 }
 0x957   :  { %20864 = vmatmul.mubr.msk.bf16.vlgmr.msra.gmra.mxu0 %vm9466_vm3, %v24165_v63  ;;  %20870 = vmatmul.mubr.msk.bf16.vlgmr.msra.gmra.mxu1 %vm9466_vm3, %v24165_v63 }
 0x958   :  { %20874 = vmatpush3.bf16.msra.mxu0 %v9932_v17  ;;  %20880 = vmatpush3.bf16.msra.mxu1 %v9977_v40 }
 0x959   :  { %20875 = vmatprep.mubr.msk.bf16.mxu0 %vm22896_vm2, %v22895_v21  ;;  %20881 = vmatprep.mubr.msk.bf16.mxu1 %vm22896_vm2, %v22895_v21 }
 0x95a   :  { %20885 = vmatprep.subr.bf16.mxu0 %v22895_v21  ;;  %20891 = vmatprep.subr.bf16.mxu1 %v22895_v21 }
 0x95f   :  { %20876 = vmatmul.mubr.msk.bf16.vlgmr.msra.gmra.mxu0 %vm9466_vm3, %v24165_v63  ;;  %20882 = vmatmul.mubr.msk.bf16.vlgmr.msra.gmra.mxu1 %vm9466_vm3, %v24165_v63 }
 0x960   :  { %20886 = vmatpush3.bf16.msra.mxu0 %v10022_v59  ;;  %20892 = vmatpush3.bf16.msra.mxu1 %v10067_v45 }
 0x961   :  { %20887 = vmatprep.mubr.msk.bf16.mxu0 %vm22896_vm2, %v22895_v21  ;;  %20893 = vmatprep.mubr.msk.bf16.mxu1 %vm22896_vm2, %v22895_v21 }
 0x962   :  { %20897 = vmatprep.subr.bf16.mxu0 %v22895_v21  ;;  %20903 = vmatprep.subr.bf16.mxu1 %v22895_v21 }
 0x967   :  { %20888 = vmatmul.mubr.msk.bf16.vlgmr.msra.gmra.mxu0 %vm9466_vm3, %v24165_v63  ;;  %20894 = vmatmul.mubr.msk.bf16.vlgmr.msra.gmra.mxu1 %vm9466_vm3, %v24165_v63 }
 0x968   :  { %20898 = vmatpush3.bf16.msra.mxu0 %v10112_v19  ;;  %20904 = vmatpush3.bf16.msra.mxu1 %v10157_v33 }
 0x969   :  { %20899 = vmatprep.mubr.msk.bf16.mxu0 %vm22896_vm2, %v22895_v21  ;;  %20905 = vmatprep.mubr.msk.bf16.mxu1 %vm22896_vm2, %v22895_v21 }
 0x96f   :  { %20900 = vmatmul.mubr.msk.bf16.vlgmr.msra.gmra.mxu0 %vm9466_vm3, %v24165_v63  ;;  %20906 = vmatmul.mubr.msk.bf16.vlgmr.msra.gmra.mxu1 %vm9466_vm3, %v24165_v63 }
 0x970   :  { %20925 = vmatprep.mubr.bf16.mxu0 %v21850_v9 }
 0x9f7   :  { %v9518_v0 = vpop.f32.mrf.mxu0  ;;  %v9563_v13 = vpop.f32.mrf.mxu1 }
 0x9f8   :  { %v24253_v12 = vpack.c.bf16 %v9563_v13, %v9518_v0 }
 0x9f9   :  { %v20817_v6 = vpop.f32.mrf.mxu0  ;;  %v20823_v37 = vpop.f32.mrf.mxu1 }
 0x9fb   :  { %v9521_v38 = vpop.f32.mrf.mxu0  ;;  %v9566_v39 = vpop.f32.mrf.mxu1 }
 0x9fd   :  { %v20818_v26 = vpop.f32.mrf.mxu0  ;;  %v20824_v1 = vpop.f32.mrf.mxu1 }
 0x9ff   :  { %v9608_v7 = vpop.f32.mrf.mxu0  ;;  %v9653_v21 = vpop.f32.mrf.mxu1 }
 0xa00   :  { %v24255_v20 = vpack.c.bf16 %v9653_v21, %v9608_v7  ;;  %v21851_v7 = vld [vmem:[#allocation10 + $0x8] sm:$0xff]   ;;  %v21852_v21 = vld [vmem:[#allocation10 + $0x10] sm:$0xff]  }
 0xa01   :  { %v20829_v3 = vpop.f32.mrf.mxu0  ;;  %v20835_v28 = vpop.f32.mrf.mxu1 }
 0xa02   :  { %v21853_v3 = vld [vmem:[#allocation10 + $0x18] sm:$0xff]   ;;  %v21854_v28 = vld [vmem:[#allocation12 + $0x8] sm:$0xff]  }
 0xa03   :  { %v9611_v36 = vpop.f32.mrf.mxu0  ;;  %v9656_v60 = vpop.f32.mrf.mxu1  ;;  %20933 = vmatprep.subr.bf16.mxu1 %v21854_v28 }
 0xa04   :  { %v21855_v36 = vld [vmem:[#allocation12 + $0x38] sm:$0xff]   ;;  %20934 = vmatpush3.bf16.msra.mxu1 %v21854_v28  ;;  %v21856_v60 = vld [vmem:[#allocation12] sm:$0xff]   ;;  %v21882_v28 = vld [vmem:[#allocation12 + $0xc8] sm:$0xff]  }
 0xa05   :  { %v20830_v29 = vpop.f32.mrf.mxu0  ;;  %v20836_v10 = vpop.f32.mrf.mxu1  ;;  %20935 = vmatprep.subr.bf16.mxu1 %v21856_v60 }
 0xa06   :  { %v21857_v29 = vld [vmem:[#allocation12 + $0x30] sm:$0xff]  }
 0xa07   :  { %v9698_v56 = vpop.f32.mrf.mxu0  ;;  %v9743_v5 = vpop.f32.mrf.mxu1 }
 0xa08   :  { %v10201_v1 = vpack.c.bf16 %v9743_v5, %v9698_v56  ;;  %20936 = vmatpush3.bf16.msra.mxu1 %v21856_v60  ;;  %v10215_v5 = vld [vmem:[%s25485_s13] sm:$0xff]  ;;  %v21884_v60 = vld [vmem:[#allocation12 + $0xe8] sm:$0xff]  }
 0xa09   :  { %v20841_v2 = vpop.f32.mrf.mxu0  ;;  %v20847_v4 = vpop.f32.mrf.mxu1 }
 0xa0a   :  { %v10218_v2 = vld [vmem:[%s25485_s13 + $0x18] sm:$0xff]  ;;  %v10217_v4 = vld [vmem:[%s25485_s13 + $0x10] sm:$0xff] }
 0xa0b   :  { %v9701_v14 = vpop.f32.mrf.mxu0  ;;  %v9746_v24 = vpop.f32.mrf.mxu1 }
 0xa0c   :  { %v10216_v24 = vld [vmem:[%s25485_s13 + $0x8] sm:$0xff] }
 0xa0d   :  { %v20842_v23 = vpop.f32.mrf.mxu0  ;;  %v20848_v11 = vpop.f32.mrf.mxu1 }
 0xa0f   :  { %v9788_v50 = vpop.f32.mrf.mxu0  ;;  %v9833_v47 = vpop.f32.mrf.mxu1 }
 0xa10   :  { %v10202_v26 = vpack.c.bf16 %v9833_v47, %v9788_v50 }
 0xa11   :  { %v20853_v57 = vpop.f32.mrf.mxu0  ;;  %v20859_v31 = vpop.f32.mrf.mxu1 }
 0xa13   :  { %v9791_v46 = vpop.f32.mrf.mxu0  ;;  %v9836_v43 = vpop.f32.mrf.mxu1 }
 0xa15   :  { %v20854_v35 = vpop.f32.mrf.mxu0  ;;  %v20860_v41 = vpop.f32.mrf.mxu1 }
 0xa17   :  { %v9878_v48 = vpop.f32.mrf.mxu0  ;;  %v9923_v8 = vpop.f32.mrf.mxu1 }
 0xa18   :  { %v10203_v39 = vpack.c.bf16 %v9923_v8, %v9878_v48  ;;  %v10219_v8 = vld [vmem:[%s25485_s13 + $0x20] sm:$0xff] }
 0xa19   :  { %v20865_v63 = vpop.f32.mrf.mxu0  ;;  %v20871_v62 = vpop.f32.mrf.mxu1 }
 0xa1a   :  { %v10222_v63 = vld [vmem:[%s25485_s13 + $0x38] sm:$0xff] }
 0xa1b   :  { %v9881_v30 = vpop.f32.mrf.mxu0  ;;  %v9926_v15 = vpop.f32.mrf.mxu1 }
 0xa1c   :  { %v10221_v30 = vld [vmem:[%s25485_s13 + $0x30] sm:$0xff] }
 0xa1d   :  { %v20866_v61 = vpop.f32.mrf.mxu0  ;;  %v20872_v25 = vpop.f32.mrf.mxu1 }
 0xa1e   :  { %v10220_v25 = vld [vmem:[%s25485_s13 + $0x28] sm:$0xff] }
 0xa1f   :  { %v9968_v53 = vpop.f32.mrf.mxu0  ;;  %v10013_v51 = vpop.f32.mrf.mxu1 }
 0xa20   :  { %v10204_v38 = vpack.c.bf16 %v10013_v51, %v9968_v53  ;;  %v21859_v53 = vld [vmem:[#allocation12 + $0x10] sm:$0xff]  }
 0xa21   :  { %v20877_v55 = vpop.f32.mrf.mxu0  ;;  %v20883_v32 = vpop.f32.mrf.mxu1  ;;  %v21861_v51 = vld [vmem:[#allocation12 + $0x50] sm:$0xff]  }
 0xa23   :  { %v9971_v18 = vpop.f32.mrf.mxu0  ;;  %v10016_v52 = vpop.f32.mrf.mxu1 }
 0xa25   :  { %v20878_v58 = vpop.f32.mrf.mxu0  ;;  %v20884_v16 = vpop.f32.mrf.mxu1 }
 0xa27   :  { %v10058_v22 = vpop.f32.mrf.mxu0  ;;  %v10103_v54 = vpop.f32.mrf.mxu1 }
 0xa28   :  { %v10205_v9 = vpack.c.bf16 %v10103_v54, %v10058_v22  ;;  %v21862_v22 = vld [vmem:[#allocation12 + $0x28] sm:$0xff]   ;;  %v21864_v54 = vld [vmem:[#allocation12 + $0x78] sm:$0xff]  }
 0xa29   :  { %v20889_v42 = vpop.f32.mrf.mxu0  ;;  %v20895_v17 = vpop.f32.mrf.mxu1 }
 0xa2b   :  { %v10061_v40 = vpop.f32.mrf.mxu0  ;;  %v10106_v27 = vpop.f32.mrf.mxu1 }
 0xa2d   :  { %v20890_v34 = vpop.f32.mrf.mxu0  ;;  %v20896_v59 = vpop.f32.mrf.mxu1 }
 0xa2e   :  { %v21863_v59 = vld [vmem:[#allocation12 + $0x20] sm:$0xff]  }
 0xa2f   :  { %v10148_v45 = vpop.f32.mrf.mxu0  ;;  %v10193_v49 = vpop.f32.mrf.mxu1 }
 0xa30   :  { %v10206_v44 = vpack.c.bf16 %v10193_v49, %v10148_v45  ;;  %v21865_v45 = vld [vmem:[#allocation12 + $0x70] sm:$0xff]   ;;  %v21866_v49 = vld [vmem:[#allocation12 + $0x48] sm:$0xff]  }
 0xa31   :  { %v20901_v19 = vpop.f32.mrf.mxu0  ;;  %v20907_v33 = vpop.f32.mrf.mxu1 }
 0xa32   :  { %20909 = vmatprep.subr.bf16.mxu0 %v10206_v44  ;;  %v21867_v19 = vld [vmem:[#allocation12 + $0x40] sm:$0xff]   ;;  %v21869_v33 = vld [vmem:[#allocation12 + $0x90] sm:$0xff]  }
 0xa33   :  { %v10151_v0 = vpop.f32.mrf.mxu0  ;;  %v10196_v13 = vpop.f32.mrf.mxu1  ;;  %20910 = vmatpush3.bf16.msra.mxu0 %v10206_v44  ;;  %v21868_v44 = vld [vmem:[#allocation12 + $0x98] sm:$0xff]  }
 0xa34   :  { %20911 = vmatprep.subr.bf16.mxu0 %v10205_v9  ;;  %v21872_v0 = vld [vmem:[#allocation12 + $0xb8] sm:$0xff]   ;;  %v21871_v13 = vld [vmem:[#allocation12 + $0x60] sm:$0xff]  }
 0xa35   :  { %v20902_v6 = vpop.f32.mrf.mxu0  ;;  %v20908_v37 = vpop.f32.mrf.mxu1 }
 0xa36   :  { %v21873_v6 = vld [vmem:[#allocation12 + $0xb0] sm:$0xff]   ;;  %v21874_v37 = vld [vmem:[#allocation12 + $0x88] sm:$0xff]  }
 0xa37   :  { %20912 = vmatpush3.bf16.msra.mxu0 %v10205_v9  ;;  %v21870_v9 = vld [vmem:[#allocation12 + $0x68] sm:$0xff]  }
 0xa38   :  { %20913 = vmatprep.subr.bf16.mxu0 %v10204_v38 }
 0xa3b   :  { %20914 = vmatpush3.bf16.msra.mxu0 %v10204_v38  ;;  %v21876_v38 = vld [vmem:[#allocation12 + $0xd8] sm:$0xff]  }
 0xa3c   :  { %20915 = vmatprep.subr.bf16.mxu0 %v10203_v39 }
 0xa3f   :  { %20916 = vmatpush3.bf16.msra.mxu0 %v10203_v39  ;;  %v21875_v39 = vld [vmem:[#allocation12 + $0x80] sm:$0xff]  }
 0xa40   :  { %20917 = vmatprep.subr.bf16.mxu0 %v10202_v26 }
 0xa43   :  { %20918 = vmatpush3.bf16.msra.mxu0 %v10202_v26  ;;  %v21877_v26 = vld [vmem:[#allocation12 + $0xd0] sm:$0xff]  }
 0xa44   :  { %20919 = vmatprep.subr.bf16.mxu0 %v10201_v1 }
 0xa47   :  { %20920 = vmatpush3.bf16.msra.mxu0 %v10201_v1  ;;  %v21878_v1 = vld [vmem:[#allocation12 + $0xa8] sm:$0xff]  }
 0xa48   :  { %20921 = vmatprep.subr.bf16.mxu0 %v24255_v20 }
 0xa4b   :  { %20922 = vmatpush3.bf16.msra.mxu0 %v24255_v20  ;;  %v21858_v20 = vld [vmem:[#allocation12 + $0x18] sm:$0xff]  }
 0xa4c   :  { %20923 = vmatprep.subr.bf16.mxu0 %v24253_v12  ;;  %20945 = vmatprep.subr.bf16.mxu1 %v21858_v20 }
 0xa4f   :  { %20924 = vmatpush3.bf16.msra.mxu0 %v24253_v12  ;;  %v21860_v12 = vld [vmem:[#allocation12 + $0x58] sm:$0xff]  }
 0xa50   :  { %20969 = vmatprep.subr.bf16.mxu0 %v21855_v36 }
 0xa52   :  { %20926 = vmatmul.mubr.bf16.vlgmr.msra.gmra.mxu0 %v21851_v7  ;;  %v21880_v7 = vld [vmem:[#allocation12 + $0xf8] sm:$0xff]  }
 0xa53   :  { %20929 = vmatprep.mubr.bf16.mxu0 %v21852_v21  ;;  %20970 = vmatpush3.bf16.msra.mxu0 %v21855_v36  ;;  %v21879_v21 = vld [vmem:[#allocation12 + $0xa0] sm:$0xff]  }
 0xa54   :  { %20971 = vmatprep.subr.bf16.mxu0 %v21857_v29  ;;  %v21883_v36 = vld [vmem:[#allocation12 + $0xc0] sm:$0xff]  }
 0xa57   :  { %20972 = vmatpush3.bf16.msra.mxu0 %v21857_v29  ;;  %v21885_v29 = vld [vmem:[#allocation12 + $0xe0] sm:$0xff]  }
 0xa58   :  { %20993 = vmatprep.subr.bf16.mxu0 %v21860_v12 }
 0xa5a   :  { %20930 = vmatmul.mubr.bf16.gmra.mxu0 %v21853_v3  ;;  %v21881_v3 = vld [vmem:[#allocation12 + $0xf0] sm:$0xff]  }
 0xb12   :  { %v20927_v10 = vpop.f32.mrf.mxu0 }
 0xb13   :  { %v10290_v50 = vadd.f32 %v20927_v10, %v10217_v4 }
 0xb14   :  { %v10281_v56 = vpop.f32.mrf.mxu0 }
 0xb15   :  { %v10282_v23 = vadd.f32 %v10281_v56, %v10215_v5  ;;  %v10314_v41 = vmax.f32 %v10290_v50, 0.0  ;;  %v24429_v5 = vld [vmem:[#allocation13 + $0x8] sm:$0xff] }
 0xb16   :  { %v20928_v14 = vpop.f32.mrf.mxu0 }
 0xb17   :  { %v10293_v11 = vadd.f32 %v20928_v14, %v10218_v2  ;;  %v10312_v43 = vmax.f32 %v10282_v23, 0.0  ;;  %v24431_v2 = vld [vmem:[#allocation13 + $0x28] sm:$0xff] }
 0xb18   :  { %v10284_v47 = vpop.f32.mrf.mxu0  ;;  %v18366_v4 = vcombine.high %v24429_v5, %v24431_v2  ;;  %v18365_v14 = vcombine.low %v24429_v5, %v24431_v2 }
 0xb19   :  { %v10285_v57 = vadd.f32 %v10284_v47, %v10216_v24  ;;  %v10315_v31 = vmax.f32 %v10293_v11, 0.0 }
 0xb1a   :  { %v20931_v46 = vpop.f32.mrf.mxu0 }
 0xb1b   :  { %v10313_v35 = vmax.f32 %v10285_v57, 0.0  ;;  %v24284_v15 = vpack.c.bf16 %v10315_v31, %v10314_v41  ;;  %v10306_v18 = vadd.f32 %v20931_v46, %v10221_v30 }
 0xb1c   :  { %v10297_v48 = vpop.f32.mrf.mxu0 }
 0xb1d   :  { %v24279_v62 = vpack.c.bf16 %v10313_v35, %v10312_v43  ;;  %v10298_v55 = vadd.f32 %v10297_v48, %v10219_v8  ;;  %v10318_v40 = vmax.f32 %v10306_v18, 0.0 }
 0xb1e   :  { %v20932_v61 = vpop.f32.mrf.mxu0 }
 0xb1f   :  { %v10309_v32 = vadd.f32 %v20932_v61, %v10222_v63  ;;  %20937 = vmatprep.mubr.msk.bf16.mxu1 %vm7870_vm0, %v24279_v62  ;;  %20973 = vmatprep.mubr.msk.bf16.mxu0 %vm7870_vm0, %v24279_v62  ;;  %v10316_v42 = vmax.f32 %v10298_v55, 0.0 }
 0xb20   :  { %v10300_v52 = vpop.f32.mrf.mxu0  ;;  %20938 = vmatmul.mubr.msk.bf16.vlgmr.msra.gmra.mxu1 %vm7870_vm0, %v24284_v15  ;;  %20974 = vmatmul.mubr.msk.bf16.vlgmr.msra.gmra.mxu0 %vm7870_vm0, %v24284_v15 }
 0xb21   :  { %v10301_v58 = vadd.f32 %v10300_v52, %v10220_v25  ;;  %20946 = vmatpush3.bf16.msra.mxu1 %v21858_v20  ;;  %20994 = vmatpush3.bf16.msra.mxu0 %v21860_v12  ;;  %v10319_v16 = vmax.f32 %v10309_v32, 0.0  ;;  %v24415_v20 = vld [vmem:[#allocation13] sm:$0xff] }
 0xb22   :  { %20947 = vmatprep.subr.bf16.mxu1 %v21859_v53  ;;  %20995 = vmatprep.subr.bf16.mxu0 %v21861_v51  ;;  %v24417_v12 = vld [vmem:[#allocation13 + $0x20] sm:$0xff] }
 0xb23   :  { %v10317_v17 = vmax.f32 %v10301_v58, 0.0  ;;  %v24299_v34 = vpack.c.bf16 %v10319_v16, %v10318_v40  ;;  %v18363_v10 = vcombine.low %v24415_v20, %v24417_v12  ;;  %v18364_v56 = vcombine.high %v24415_v20, %v24417_v12 }
 0xb25   :  { %v24297_v27 = vpack.c.bf16 %v10317_v17, %v10316_v42  ;;  %20948 = vmatpush3.bf16.msra.mxu1 %v21859_v53  ;;  %20996 = vmatpush3.bf16.msra.mxu0 %v21861_v51 }
 0xb26   :  { %20957 = vmatprep.subr.bf16.mxu1 %v21862_v22  ;;  %21017 = vmatprep.subr.bf16.mxu0 %v21864_v54 }
 0xb27   :  { %20941 = vmatprep.mubr.msk.bf16.mxu1 %vm7870_vm0, %v24297_v27  ;;  %20977 = vmatprep.mubr.msk.bf16.mxu0 %vm7870_vm0, %v24297_v27 }
 0xb28   :  { %20942 = vmatmul.mubr.msk.bf16.gmra.mxu1 %vm7870_vm0, %v24299_v34  ;;  %20978 = vmatmul.mubr.msk.bf16.gmra.mxu0 %vm7870_vm0, %v24299_v34 }
 0xb29   :  { %20949 = vmatprep.mubr.msk.bf16.mxu1 %vm7870_vm0, %v24279_v62  ;;  %20997 = vmatprep.mubr.msk.bf16.mxu0 %vm7870_vm0, %v24279_v62 }
 0xb30   :  { %20950 = vmatmul.mubr.msk.bf16.vlgmr.msra.gmra.mxu1 %vm7870_vm0, %v24284_v15  ;;  %20998 = vmatmul.mubr.msk.bf16.vlgmr.msra.gmra.mxu0 %vm7870_vm0, %v24284_v15 }
 0xb31   :  { %20958 = vmatpush3.bf16.msra.mxu1 %v21862_v22  ;;  %20953 = vmatprep.mubr.msk.bf16.mxu1 %vm7870_vm0, %v24297_v27 }
 0xb32   :  { %21001 = vmatprep.mubr.msk.bf16.mxu0 %vm7870_vm0, %v24297_v27  ;;  %20959 = vmatprep.subr.bf16.mxu1 %v21863_v59 }
 0xb33   :  { %21018 = vmatpush3.bf16.msra.mxu0 %v21864_v54 }
 0xb34   :  { %21019 = vmatprep.subr.bf16.mxu0 %v21865_v45 }
 0xb35   :  { %20960 = vmatpush3.bf16.msra.mxu1 %v21863_v59 }
 0xb36   :  { %20981 = vmatprep.subr.bf16.mxu1 %v21866_v49 }
 0xb37   :  { %21020 = vmatpush3.bf16.msra.mxu0 %v21865_v45 }
 0xb38   :  { %20954 = vmatmul.mubr.msk.bf16.gmra.mxu1 %vm7870_vm0, %v24299_v34  ;;  %21002 = vmatmul.mubr.msk.bf16.gmra.mxu0 %vm7870_vm0, %v24299_v34 }
 0xb39   :  { %20961 = vmatprep.mubr.msk.bf16.mxu1 %vm7870_vm0, %v24279_v62  ;;  %21021 = vmatprep.mubr.msk.bf16.mxu0 %vm7870_vm0, %v24279_v62 }
 0xb3a   :  { %21041 = vmatprep.subr.bf16.mxu0 %v21868_v44 }
 0xb40   :  { %20962 = vmatmul.mubr.msk.bf16.vlgmr.msra.gmra.mxu1 %vm7870_vm0, %v24284_v15  ;;  %21022 = vmatmul.mubr.msk.bf16.vlgmr.msra.gmra.mxu0 %vm7870_vm0, %v24284_v15 }
 0xb41   :  { %20982 = vmatpush3.bf16.msra.mxu1 %v21866_v49  ;;  %20965 = vmatprep.mubr.msk.bf16.mxu1 %vm7870_vm0, %v24297_v27 }
 0xb42   :  { %21025 = vmatprep.mubr.msk.bf16.mxu0 %vm7870_vm0, %v24297_v27  ;;  %20983 = vmatprep.subr.bf16.mxu1 %v21867_v19 }
 0xb43   :  { %21042 = vmatpush3.bf16.msra.mxu0 %v21868_v44 }
 0xb44   :  { %21043 = vmatprep.subr.bf16.mxu0 %v21869_v33 }
 0xb45   :  { %20984 = vmatpush3.bf16.msra.mxu1 %v21867_v19 }
 0xb46   :  { %21005 = vmatprep.subr.bf16.mxu1 %v21870_v9 }
 0xb47   :  { %21044 = vmatpush3.bf16.msra.mxu0 %v21869_v33 }
 0xb48   :  { %20966 = vmatmul.mubr.msk.bf16.gmra.mxu1 %vm7870_vm0, %v24299_v34  ;;  %21026 = vmatmul.mubr.msk.bf16.gmra.mxu0 %vm7870_vm0, %v24299_v34 }
 0xb49   :  { %20985 = vmatprep.mubr.msk.bf16.mxu1 %vm7870_vm0, %v24279_v62  ;;  %21045 = vmatprep.mubr.msk.bf16.mxu0 %vm7870_vm0, %v24279_v62 }
 0xb4a   :  { %21065 = vmatprep.subr.bf16.mxu0 %v21872_v0 }
 0xb50   :  { %20986 = vmatmul.mubr.msk.bf16.vlgmr.msra.gmra.mxu1 %vm7870_vm0, %v24284_v15  ;;  %21046 = vmatmul.mubr.msk.bf16.vlgmr.msra.gmra.mxu0 %vm7870_vm0, %v24284_v15 }
 0xb51   :  { %21006 = vmatpush3.bf16.msra.mxu1 %v21870_v9  ;;  %20989 = vmatprep.mubr.msk.bf16.mxu1 %vm7870_vm0, %v24297_v27 }
 0xb52   :  { %21049 = vmatprep.mubr.msk.bf16.mxu0 %vm7870_vm0, %v24297_v27  ;;  %21007 = vmatprep.subr.bf16.mxu1 %v21871_v13 }
 0xb53   :  { %21066 = vmatpush3.bf16.msra.mxu0 %v21872_v0 }
 0xb54   :  { %21067 = vmatprep.subr.bf16.mxu0 %v21873_v6 }
 0xb55   :  { %21008 = vmatpush3.bf16.msra.mxu1 %v21871_v13 }
 0xb56   :  { %21029 = vmatprep.subr.bf16.mxu1 %v21874_v37 }
 0xb57   :  { %21068 = vmatpush3.bf16.msra.mxu0 %v21873_v6 }
 0xb58   :  { %20990 = vmatmul.mubr.msk.bf16.gmra.mxu1 %vm7870_vm0, %v24299_v34  ;;  %21050 = vmatmul.mubr.msk.bf16.gmra.mxu0 %vm7870_vm0, %v24299_v34 }
 0xb59   :  { %21009 = vmatprep.mubr.msk.bf16.mxu1 %vm7870_vm0, %v24279_v62  ;;  %21069 = vmatprep.mubr.msk.bf16.mxu0 %vm7870_vm0, %v24279_v62 }
 0xb5a   :  { %21089 = vmatprep.subr.bf16.mxu0 %v21876_v38 }
 0xb60   :  { %21010 = vmatmul.mubr.msk.bf16.vlgmr.msra.gmra.mxu1 %vm7870_vm0, %v24284_v15  ;;  %21070 = vmatmul.mubr.msk.bf16.vlgmr.msra.gmra.mxu0 %vm7870_vm0, %v24284_v15 }
 0xb61   :  { %21030 = vmatpush3.bf16.msra.mxu1 %v21874_v37  ;;  %21013 = vmatprep.mubr.msk.bf16.mxu1 %vm7870_vm0, %v24297_v27 }
 0xb62   :  { %21073 = vmatprep.mubr.msk.bf16.mxu0 %vm7870_vm0, %v24297_v27  ;;  %21031 = vmatprep.subr.bf16.mxu1 %v21875_v39 }
 0xb63   :  { %21090 = vmatpush3.bf16.msra.mxu0 %v21876_v38 }
 0xb64   :  { %21091 = vmatprep.subr.bf16.mxu0 %v21877_v26 }
 0xb65   :  { %21032 = vmatpush3.bf16.msra.mxu1 %v21875_v39 }
 0xb66   :  { %21053 = vmatprep.subr.bf16.mxu1 %v21878_v1 }
 0xb67   :  { %21092 = vmatpush3.bf16.msra.mxu0 %v21877_v26 }
 0xb68   :  { %21014 = vmatmul.mubr.msk.bf16.gmra.mxu1 %vm7870_vm0, %v24299_v34  ;;  %21074 = vmatmul.mubr.msk.bf16.gmra.mxu0 %vm7870_vm0, %v24299_v34 }
 0xb69   :  { %21033 = vmatprep.mubr.msk.bf16.mxu1 %vm7870_vm0, %v24279_v62  ;;  %21093 = vmatprep.mubr.msk.bf16.mxu0 %vm7870_vm0, %v24279_v62 }
 0xb6a   :  { %21113 = vmatprep.subr.bf16.mxu0 %v21880_v7 }
 0xb70   :  { %21034 = vmatmul.mubr.msk.bf16.vlgmr.msra.gmra.mxu1 %vm7870_vm0, %v24284_v15  ;;  %21094 = vmatmul.mubr.msk.bf16.vlgmr.msra.gmra.mxu0 %vm7870_vm0, %v24284_v15 }
 0xb71   :  { %21054 = vmatpush3.bf16.msra.mxu1 %v21878_v1  ;;  %21037 = vmatprep.mubr.msk.bf16.mxu1 %vm7870_vm0, %v24297_v27 }
 0xb72   :  { %21097 = vmatprep.mubr.msk.bf16.mxu0 %vm7870_vm0, %v24297_v27  ;;  %21055 = vmatprep.subr.bf16.mxu1 %v21879_v21 }
 0xb73   :  { %21114 = vmatpush3.bf16.msra.mxu0 %v21880_v7 }
 0xb74   :  { %21115 = vmatprep.subr.bf16.mxu0 %v21881_v3 }
 0xb75   :  { %21056 = vmatpush3.bf16.msra.mxu1 %v21879_v21 }
 0xb76   :  { %21077 = vmatprep.subr.bf16.mxu1 %v21882_v28 }
 0xb77   :  { %21116 = vmatpush3.bf16.msra.mxu0 %v21881_v3 }
 0xb78   :  { %21038 = vmatmul.mubr.msk.bf16.gmra.mxu1 %vm7870_vm0, %v24299_v34  ;;  %21098 = vmatmul.mubr.msk.bf16.gmra.mxu0 %vm7870_vm0, %v24299_v34 }
 0xb79   :  { %21057 = vmatprep.mubr.msk.bf16.mxu1 %vm7870_vm0, %v24279_v62  ;;  %21117 = vmatprep.mubr.msk.bf16.mxu0 %vm7870_vm0, %v24279_v62 }
 0xb80   :  { %21058 = vmatmul.mubr.msk.bf16.vlgmr.msra.gmra.mxu1 %vm7870_vm0, %v24284_v15  ;;  %21118 = vmatmul.mubr.msk.bf16.vlgmr.msra.gmra.mxu0 %vm7870_vm0, %v24284_v15 }
 0xb81   :  { %21078 = vmatpush3.bf16.msra.mxu1 %v21882_v28  ;;  %21061 = vmatprep.mubr.msk.bf16.mxu1 %vm7870_vm0, %v24297_v27 }
 0xb82   :  { %21121 = vmatprep.mubr.msk.bf16.mxu0 %vm7870_vm0, %v24297_v27  ;;  %21079 = vmatprep.subr.bf16.mxu1 %v21883_v36 }
 0xb85   :  { %21080 = vmatpush3.bf16.msra.mxu1 %v21883_v36 }
 0xb86   :  { %21101 = vmatprep.subr.bf16.mxu1 %v21884_v60 }
 0xb88   :  { %21062 = vmatmul.mubr.msk.bf16.gmra.mxu1 %vm7870_vm0, %v24299_v34  ;;  %21122 = vmatmul.mubr.msk.bf16.gmra.mxu0 %vm7870_vm0, %v24299_v34 }
 0xb89   :  { %21081 = vmatprep.mubr.msk.bf16.mxu1 %vm7870_vm0, %v24279_v62  ;;  %11912 = vmatprep.mubr.bf16.mxu0 %v18366_v4 }
 0xb90   :  { %21082 = vmatmul.mubr.msk.bf16.vlgmr.msra.gmra.mxu1 %vm7870_vm0, %v24284_v15 }
 0xb91   :  { %21102 = vmatpush3.bf16.msra.mxu1 %v21884_v60  ;;  %21085 = vmatprep.mubr.msk.bf16.mxu1 %vm7870_vm0, %v24297_v27 }
 0xb92   :  { %21103 = vmatprep.subr.bf16.mxu1 %v21885_v29 }
 0xb95   :  { %21104 = vmatpush3.bf16.msra.mxu1 %v21885_v29 }
 0xb98   :  { %21086 = vmatmul.mubr.msk.bf16.gmra.mxu1 %vm7870_vm0, %v24299_v34 }
 0xb99   :  { %21105 = vmatprep.mubr.msk.bf16.mxu1 %vm7870_vm0, %v24279_v62 }
 0xba0   :  { %21106 = vmatmul.mubr.msk.bf16.vlgmr.msra.gmra.mxu1 %vm7870_vm0, %v24284_v15 }
 0xba1   :  { %21109 = vmatprep.mubr.msk.bf16.mxu1 %vm7870_vm0, %v24297_v27 }
 0xba8   :  { %21110 = vmatmul.mubr.msk.bf16.gmra.mxu1 %vm7870_vm0, %v24299_v34 }
 0xba9   :  { %11863 = vmatprep.mubr.bf16.mxu1 %v18364_v56 }
 0xbe0   :  { %v24437_v24 = vpop.f32.mrf.mxu1  ;;  %v20975_v23 = vpop.f32.mrf.mxu0 }
 0xbe2   :  { %v24439_v11 = vpop.f32.mrf.mxu1  ;;  %v10632_v50 = vpop.f32.mrf.mxu0 }
 0xbe4   :  { %v24441_v47 = vpop.f32.mrf.mxu1  ;;  %v20976_v57 = vpop.f32.mrf.mxu0 }
 0xbe5   :  { %v11660_v19 = vpack.c.bf16 %v20976_v57, %v20975_v23 }
 0xbe6   :  { %v24443_v31 = vpop.f32.mrf.mxu1  ;;  %v10635_v46 = vpop.f32.mrf.mxu0 }
 0xbe7   :  { %v11659_v37 = vpack.c.bf16 %v10635_v46, %v10632_v50 }
 0xbe8   :  { %v24445_v43 = vpop.f32.mrf.mxu1  ;;  %v20979_v35 = vpop.f32.mrf.mxu0 }
 0xbea   :  { %v24447_v41 = vpop.f32.mrf.mxu1  ;;  %v10648_v48 = vpop.f32.mrf.mxu0 }
 0xbec   :  { %v20944_v8 = vpop.f32.mrf.mxu1  ;;  %v20980_v63 = vpop.f32.mrf.mxu0 }
 0xbed   :  { %v11662_v62 = vpack.c.bf16 %v20980_v63, %v20979_v35  ;;  %v11650_v56 = vpack.c.bf16 %v20944_v8, %v24445_v43 }
 0xbee   :  { %v24449_v30 = vpop.f32.mrf.mxu1  ;;  %v10651_v15 = vpop.f32.mrf.mxu0 }
 0xbef   :  { %20169 = vmatprep.subr.bf16.mxu1 %v11662_v62  ;;  %v11661_v27 = vpack.c.bf16 %v10651_v15, %v10648_v48  ;;  %v11649_v63 = vpack.c.bf16 %v24449_v30, %v24447_v41 }
 0xbf0   :  { %v20951_v61 = vpop.f32.mrf.mxu1  ;;  %v24451_v25 = vpop.f32.mrf.mxu0 }
 0xbf2   :  { %v10468_v53 = vpop.f32.mrf.mxu1  ;;  %v24453_v51 = vpop.f32.mrf.mxu0 }
 0xbf4   :  { %v20952_v55 = vpop.f32.mrf.mxu1  ;;  %v24455_v32 = vpop.f32.mrf.mxu0 }
 0xbf5   :  { %v11652_v6 = vpack.c.bf16 %v20952_v55, %v20951_v61  ;;  %v11668_v41 = vpack.c.bf16 %v24455_v32, %v24451_v25 }
 0xbf6   :  { %v10471_v18 = vpop.f32.mrf.mxu1  ;;  %v24457_v52 = vpop.f32.mrf.mxu0 }
 0xbf7   :  { %v11651_v7 = vpack.c.bf16 %v10471_v18, %v10468_v53  ;;  %v11648_v18 = vpack.c.bf16 %v24441_v47, %v24437_v24  ;;  %v11647_v24 = vpack.c.bf16 %v24443_v31, %v24439_v11  ;;  %v11667_v47 = vpack.c.bf16 %v24457_v52, %v24453_v51  ;;  %v24489_v11 = vld [vmem:[#allocation13 + $0x10] sm:$0xff] }
 0xbf8   :  { %v20955_v58 = vpop.f32.mrf.mxu1  ;;  %v21003_v16 = vpop.f32.mrf.mxu0  ;;  %v24491_v31 = vld [vmem:[#allocation13 + $0x30] sm:$0xff] }
 0xbfa   :  { %v10484_v22 = vpop.f32.mrf.mxu1  ;;  %v10812_v54 = vpop.f32.mrf.mxu0 }
 0xbfc   :  { %v20956_v42 = vpop.f32.mrf.mxu1  ;;  %v21004_v17 = vpop.f32.mrf.mxu0 }
 0xbfd   :  { %v11654_v40 = vpack.c.bf16 %v20956_v42, %v20955_v58  ;;  %v11670_v4 = vpack.c.bf16 %v21004_v17, %v21003_v16  ;;  %v11719_v17 = vld [vmem:[#allocation13 + $0x40] sm:$0xff] }
 0xbfe   :  { %v10487_v34 = vpop.f32.mrf.mxu1  ;;  %v10815_v59 = vpop.f32.mrf.mxu0 }
 0xbff   :  { %20170 = vmatpush3.bf16.msra.mxu1 %v11654_v40  ;;  %v11653_v44 = vpack.c.bf16 %v10487_v34, %v10484_v22  ;;  %v11669_v62 = vpack.c.bf16 %v10815_v59, %v10812_v54  ;;  %v11723_v40 = vld [vmem:[#allocation13 + $0x60] sm:$0xff] }
 0xc00   :  { %v20963_v45 = vpop.f32.mrf.mxu1  ;;  %v21023_v49 = vpop.f32.mrf.mxu0  ;;  %20171 = vmatprep.subr.bf16.mxu1 %v11661_v27  ;;  %v18372_v59 = vcombine.high %v11719_v17, %v11723_v40 }
 0xc02   :  { %v10550_v33 = vpop.f32.mrf.mxu1  ;;  %v10960_v9 = vpop.f32.mrf.mxu0 }
 0xc03   :  { %20172 = vmatpush3.bf16.msra.mxu1 %v11653_v44 }
 0xc04   :  { %v20964_v0 = vpop.f32.mrf.mxu1  ;;  %v21024_v13 = vpop.f32.mrf.mxu0  ;;  %20173 = vmatprep.subr.bf16.mxu1 %v11660_v19 }
 0xc05   :  { %v11656_v15 = vpack.c.bf16 %v20964_v0, %v20963_v45  ;;  %v11676_v61 = vpack.c.bf16 %v21024_v13, %v21023_v49  ;;  %v18368_v13 = vcombine.high %v24489_v11, %v24491_v31 }
 0xc06   :  { %v10553_v38 = vpop.f32.mrf.mxu1  ;;  %v10963_v39 = vpop.f32.mrf.mxu0 }
 0xc07   :  { %20174 = vmatpush3.bf16.msra.mxu1 %v11652_v6  ;;  %v11655_v16 = vpack.c.bf16 %v10553_v38, %v10550_v33  ;;  %v11675_v22 = vpack.c.bf16 %v10963_v39, %v10960_v9  ;;  %v18371_v33 = vcombine.low %v11719_v17, %v11723_v40 }
 0xc08   :  { %v20967_v26 = vpop.f32.mrf.mxu1  ;;  %v21027_v1 = vpop.f32.mrf.mxu0  ;;  %20175 = vmatprep.subr.bf16.mxu1 %v11659_v37 }
 0xc0a   :  { %v10566_v21 = vpop.f32.mrf.mxu1  ;;  %v10976_v3 = vpop.f32.mrf.mxu0 }
 0xc0b   :  { %20176 = vmatpush3.bf16.msra.mxu1 %v11651_v7 }
 0xc0c   :  { %v20968_v28 = vpop.f32.mrf.mxu1  ;;  %v21028_v36 = vpop.f32.mrf.mxu0 }
 0xc0d   :  { %v11658_v60 = vpack.c.bf16 %v20968_v28, %v20967_v26  ;;  %v11678_v29 = vpack.c.bf16 %v21028_v36, %v21027_v1 }
 0xc0e   :  { %v10569_v23 = vpop.f32.mrf.mxu1  ;;  %v10979_v57 = vpop.f32.mrf.mxu0 }
 0xc0f   :  { %v11657_v50 = vpack.c.bf16 %v10569_v23, %v10566_v21  ;;  %v11677_v46 = vpack.c.bf16 %v10979_v57, %v10976_v3  ;;  %20177 = vmatprep.subr.bf16.mxu1 %v11658_v60  ;;  %20197 = vmatprep.subr.bf16.mxu0 %v11678_v29 }
 0xc10   :  { %v24460_v35 = vpop.f32.mrf.mxu1  ;;  %v24462_v48 = vpop.f32.mrf.mxu0  ;;  %20178 = vmatpush3.bf16.msra.mxu1 %v11650_v56  ;;  %20198 = vmatpush3.bf16.msra.mxu0 %v11670_v4 }
 0xc11   :  { %20179 = vmatprep.subr.bf16.mxu1 %v11657_v50  ;;  %20199 = vmatprep.subr.bf16.mxu0 %v11677_v46 }
 0xc12   :  { %v24466_v43 = vpop.f32.mrf.mxu1  ;;  %v24468_v8 = vpop.f32.mrf.mxu0 }
 0xc14   :  { %v24470_v53 = vpop.f32.mrf.mxu1  ;;  %v24472_v55 = vpop.f32.mrf.mxu0  ;;  %20180 = vmatpush3.bf16.msra.mxu1 %v11649_v63  ;;  %20200 = vmatpush3.bf16.msra.mxu0 %v11669_v62 }
 0xc15   :  { %20181 = vmatprep.subr.bf16.mxu1 %v11656_v15  ;;  %20201 = vmatprep.subr.bf16.mxu0 %v11676_v61 }
 0xc16   :  { %v24478_v30 = vpop.f32.mrf.mxu1  ;;  %v24480_v58 = vpop.f32.mrf.mxu0 }
 0xc18   :  { %v20991_v54 = vpop.f32.mrf.mxu1  ;;  %v21051_v42 = vpop.f32.mrf.mxu0  ;;  %20182 = vmatpush3.bf16.msra.mxu1 %v11648_v18  ;;  %20202 = vmatpush3.bf16.msra.mxu0 %v11668_v41  ;;  %v11664_v18 = vpack.c.bf16 %v24470_v53, %v24460_v35  ;;  %v11684_v41 = vpack.c.bf16 %v24472_v55, %v24462_v48  ;;  %v11663_v35 = vpack.c.bf16 %v24478_v30, %v24466_v43  ;;  %v24522_v43 = vld [vmem:[#allocation13 + $0x18] sm:$0xff] }
 0xc19   :  { %20183 = vmatprep.subr.bf16.mxu1 %v11655_v16  ;;  %20203 = vmatprep.subr.bf16.mxu0 %v11675_v22  ;;  %v11683_v48 = vpack.c.bf16 %v24480_v58, %v24468_v8  ;;  %v24524_v30 = vld [vmem:[#allocation13 + $0x38] sm:$0xff] }
 0xc1a   :  { %v10730_v25 = vpop.f32.mrf.mxu1  ;;  %v11140_v32 = vpop.f32.mrf.mxu0 }
 0xc1c   :  { %v20992_v27 = vpop.f32.mrf.mxu1  ;;  %v21052_v34 = vpop.f32.mrf.mxu0  ;;  %20184 = vmatpush3.bf16.msra.mxu1 %v11647_v24  ;;  %20204 = vmatpush3.bf16.msra.mxu0 %v11667_v47  ;;  %v11720_v24 = vld [vmem:[#allocation13 + $0x48] sm:$0xff] }
 0xc1d   :  { %v11666_v21 = vpack.c.bf16 %v20992_v27, %v20991_v54  ;;  %v11686_v3 = vpack.c.bf16 %v21052_v34, %v21051_v42  ;;  %v11724_v47 = vld [vmem:[#allocation13 + $0x68] sm:$0xff] }
 0xc1e   :  { %v10733_v45 = vpop.f32.mrf.mxu1  ;;  %v11143_v49 = vpop.f32.mrf.mxu0  ;;  %v18374_v27 = vcombine.high %v11720_v24, %v11724_v47 }
 0xc1f   :  { %11864 = vmatmul.mubr.bf16.vlgmr.msra.gmra.mxu1 %v18363_v10  ;;  %v11665_v23 = vpack.c.bf16 %v10733_v45, %v10730_v25  ;;  %v11685_v57 = vpack.c.bf16 %v11143_v49, %v11140_v32 }
 0xc20   :  { %v21011_v44 = vpop.f32.mrf.mxu1  ;;  %v21071_v19 = vpop.f32.mrf.mxu0  ;;  %11871 = vmatprep.mubr.bf16.mxu1 %v18372_v59 }
 0xc22   :  { %v10878_v51 = vpop.f32.mrf.mxu1  ;;  %v11288_v52 = vpop.f32.mrf.mxu0 }
 0xc24   :  { %v21012_v9 = vpop.f32.mrf.mxu1  ;;  %v21072_v0 = vpop.f32.mrf.mxu0 }
 0xc25   :  { %v11672_v63 = vpack.c.bf16 %v21012_v9, %v21011_v44  ;;  %v11692_v62 = vpack.c.bf16 %v21072_v0, %v21071_v19  ;;  %v18373_v44 = vcombine.low %v11720_v24, %v11724_v47 }
 0xc26   :  { %v10881_v6 = vpop.f32.mrf.mxu1  ;;  %v11291_v37 = vpop.f32.mrf.mxu0 }
 0xc27   :  { %11872 = vmatmul.mubr.bf16.gmra.mxu1 %v18371_v33  ;;  %v11671_v54 = vpack.c.bf16 %v10881_v6, %v10878_v51  ;;  %v11691_v42 = vpack.c.bf16 %v11291_v37, %v11288_v52  ;;  %v18370_v52 = vcombine.high %v24522_v43, %v24524_v30 }
 0xc28   :  { %v21015_v20 = vpop.f32.mrf.mxu1  ;;  %v21075_v12 = vpop.f32.mrf.mxu0  ;;  %11961 = vmatprep.mubr.bf16.mxu1 %v18368_v13 }
 0xc2a   :  { %v10894_v10 = vpop.f32.mrf.mxu1  ;;  %v11304_v38 = vpop.f32.mrf.mxu0 }
 0xc2c   :  { %v21016_v39 = vpop.f32.mrf.mxu1  ;;  %v21076_v26 = vpop.f32.mrf.mxu0 }
 0xc2d   :  { %v11674_v1 = vpack.c.bf16 %v21016_v39, %v21015_v20  ;;  %v11694_v7 = vpack.c.bf16 %v21076_v26, %v21075_v12 }
 0xc2e   :  { %v10897_v28 = vpop.f32.mrf.mxu1  ;;  %v11307_v36 = vpop.f32.mrf.mxu0 }
 0xc2f   :  { %v11673_v60 = vpack.c.bf16 %v10897_v28, %v10894_v10  ;;  %v11693_v29 = vpack.c.bf16 %v11307_v36, %v11304_v38  ;;  %20205 = vmatprep.subr.bf16.mxu0 %v11674_v1  ;;  %20225 = vmatprep.subr.bf16.mxu1 %v11694_v7 }
 0xc30   :  { %v24495_v56 = vpop.f32.mrf.mxu1  ;;  %v24497_v4 = vpop.f32.mrf.mxu0  ;;  %20206 = vmatpush3.bf16.msra.mxu0 %v11666_v21  ;;  %20226 = vmatpush3.bf16.msra.mxu1 %v11686_v3 }
 0xc31   :  { %20207 = vmatprep.subr.bf16.mxu0 %v11673_v60  ;;  %20227 = vmatprep.subr.bf16.mxu1 %v11693_v29 }
 0xc32   :  { %v24499_v50 = vpop.f32.mrf.mxu1  ;;  %v24501_v46 = vpop.f32.mrf.mxu0 }
 0xc34   :  { %v24503_v15 = vpop.f32.mrf.mxu1  ;;  %v24505_v61 = vpop.f32.mrf.mxu0  ;;  %20208 = vmatpush3.bf16.msra.mxu0 %v11665_v23  ;;  %20228 = vmatpush3.bf16.msra.mxu1 %v11685_v57 }
 0xc35   :  { %20209 = vmatprep.subr.bf16.mxu0 %v11672_v63  ;;  %20229 = vmatprep.subr.bf16.mxu1 %v11692_v62  ;;  %v11680_v23 = vpack.c.bf16 %v24503_v15, %v24495_v56  ;;  %v11700_v57 = vpack.c.bf16 %v24505_v61, %v24497_v4  ;;  %v18367_v4 = vcombine.low %v24489_v11, %v24491_v31 }
 0xc36   :  { %v24511_v16 = vpop.f32.mrf.mxu1  ;;  %v24513_v22 = vpop.f32.mrf.mxu0 }
 0xc38   :  { %v21039_v17 = vpop.f32.mrf.mxu1  ;;  %v21099_v40 = vpop.f32.mrf.mxu0  ;;  %20210 = vmatpush3.bf16.msra.mxu0 %v11664_v18  ;;  %20230 = vmatpush3.bf16.msra.mxu1 %v11684_v41 }
 0xc39   :  { %20211 = vmatprep.subr.bf16.mxu0 %v11671_v54  ;;  %20231 = vmatprep.subr.bf16.mxu1 %v11691_v42  ;;  %v11721_v54 = vld [vmem:[#allocation13 + $0x50] sm:$0xff] }
 0xc3a   :  { %v11058_v53 = vpop.f32.mrf.mxu1  ;;  %v11468_v55 = vpop.f32.mrf.mxu0  ;;  %v11725_v42 = vld [vmem:[#allocation13 + $0x70] sm:$0xff] }
 0xc3b   :  { %v18376_v61 = vcombine.high %v11721_v54, %v11725_v42 }
 0xc3c   :  { %v21040_v25 = vpop.f32.mrf.mxu1  ;;  %v21100_v32 = vpop.f32.mrf.mxu0  ;;  %20212 = vmatpush3.bf16.msra.mxu0 %v11663_v35  ;;  %20232 = vmatpush3.bf16.msra.mxu1 %v11683_v48  ;;  %v18375_v48 = vcombine.low %v11721_v54, %v11725_v42  ;;  %v21936_v54 = vld [vmem:[#allocation15 + $0x1e4] ss:$16 sps:$4 sm:$0xff]   ;;  %v21939_v42 = vld [vmem:[#allocation15 + $0x1ec] ss:$16 sps:$4 sm:$0xff]  }
 0xc3d   :  { %v11682_v12 = vpack.c.bf16 %v21040_v25, %v21039_v17  ;;  %v11702_v10 = vpack.c.bf16 %v21100_v32, %v21099_v40  ;;  %v11679_v17 = vpack.c.bf16 %v24511_v16, %v24499_v50  ;;  %v11699_v40 = vpack.c.bf16 %v24513_v22, %v24501_v46 }
 0xc3e   :  { %v11061_v34 = vpop.f32.mrf.mxu1  ;;  %v11471_v59 = vpop.f32.mrf.mxu0  ;;  %v25581_v16 = vmov 0  }
 0xc3f   :  { %11913 = vmatmul.mubr.bf16.vlgmr.msra.gmra.mxu0 %v18365_v14  ;;  %v11681_v21 = vpack.c.bf16 %v11061_v34, %v11058_v53  ;;  %v11701_v3 = vpack.c.bf16 %v11471_v59, %v11468_v55 }
 0xc40   :  { %v21059_v45 = vpop.f32.mrf.mxu1  ;;  %v21119_v49 = vpop.f32.mrf.mxu0  ;;  %11920 = vmatprep.mubr.bf16.mxu0 %v18374_v27 }
 0xc42   :  { %v11206_v8 = vpop.f32.mrf.mxu1  ;;  %v11616_v58 = vpop.f32.mrf.mxu0 }
 0xc44   :  { %v21060_v19 = vpop.f32.mrf.mxu1  ;;  %v21120_v51 = vpop.f32.mrf.mxu0 }
 0xc45   :  { %v11688_v36 = vpack.c.bf16 %v21060_v19, %v21059_v45  ;;  %v11708_v60 = vpack.c.bf16 %v21120_v51, %v21119_v49  ;;  %v11722_v49 = vld [vmem:[#allocation13 + $0x58] sm:$0xff] }
 0xc46   :  { %v11209_v33 = vpop.f32.mrf.mxu1  ;;  %v11619_v9 = vpop.f32.mrf.mxu0 }
 0xc47   :  { %11921 = vmatmul.mubr.bf16.gmra.mxu0 %v18373_v44  ;;  %v11687_v62 = vpack.c.bf16 %v11209_v33, %v11206_v8  ;;  %v11707_v18 = vpack.c.bf16 %v11619_v9, %v11616_v58  ;;  %v11726_v8 = vld [vmem:[#allocation13 + $0x78] sm:$0xff]  ;;  %v18369_v44 = vcombine.low %v24522_v43, %v24524_v30  ;;  %v21886_v9 = vld [vmem:[#allocation15 + $0xe0] ss:$16 sps:$4 sm:$0xff]   ;;  %v21900_v30 = vld [vmem:[#allocation15 + $0xa4] ss:$16 sps:$4 sm:$0xff]  }
 0xc48   :  { %v21063_v5 = vpop.f32.mrf.mxu1  ;;  %v21123_v2 = vpop.f32.mrf.mxu0  ;;  %12010 = vmatprep.mubr.bf16.mxu0 %v18370_v52  ;;  %v18378_v19 = vcombine.high %v11722_v49, %v11726_v8  ;;  %v18377_v51 = vcombine.low %v11722_v49, %v11726_v8  ;;  %v21888_v52 = vld [vmem:[#allocation15 + $0xe4] ss:$16 sps:$4 sm:$0xff]   ;;  %v21891_v33 = vld [vmem:[#allocation15 + $0xec] ss:$16 sps:$4 sm:$0xff]  }
 0xc49   :  { %v21897_v43 = vld [vmem:[#allocation15 + $0xcc] ss:$16 sps:$4 sm:$0xff]  }
 0xc4a   :  { %v11222_v14 = vpop.f32.mrf.mxu1  ;;  %v11632_v0 = vpop.f32.mrf.mxu0 }
 0xc4c   :  { %v21064_v13 = vpop.f32.mrf.mxu1  ;;  %v21124_v6 = vpop.f32.mrf.mxu0 }
 0xc4d   :  { %v11690_v37 = vpack.c.bf16 %v21064_v13, %v21063_v5  ;;  %v11710_v20 = vpack.c.bf16 %v21124_v6, %v21123_v2  ;;  %v21889_v5 = vld [vmem:[#allocation15 + $0xe8] ss:$16 sps:$4 sm:$0xff]   ;;  %v21892_v2 = vld [vmem:[#allocation15 + $0xc0] ss:$16 sps:$4 sm:$0xff]   ;;  %v21903_v13 = vld [vmem:[#allocation15 + $0xac] ss:$16 sps:$4 sm:$0xff]  }
 0xc4e   :  { %v11225_v38 = vpop.f32.mrf.mxu1  ;;  %v11635_v39 = vpop.f32.mrf.mxu0  ;;  %v21898_v6 = vld [vmem:[#allocation15 + $0xa0] ss:$16 sps:$4 sm:$0xff]  }
 0xc4f   :  { %v11689_v26 = vpack.c.bf16 %v11225_v38, %v11222_v14  ;;  %v11709_v1 = vpack.c.bf16 %v11635_v39, %v11632_v0  ;;  %20233 = vmatprep.subr.bf16.mxu1 %v11690_v37  ;;  %20253 = vmatprep.subr.bf16.mxu0 %v11710_v20  ;;  %v21894_v14 = vld [vmem:[#allocation15 + $0xc4] ss:$16 sps:$4 sm:$0xff]   ;;  %v21895_v0 = vld [vmem:[#allocation15 + $0xc8] ss:$16 sps:$4 sm:$0xff]  }
 0xc50   :  { %v21083_v7 = vpop.f32.mrf.mxu1  ;;  %20234 = vmatpush3.bf16.msra.mxu1 %v11682_v12  ;;  %20254 = vmatpush3.bf16.msra.mxu0 %v11702_v10  ;;  %v21901_v37 = vld [vmem:[#allocation15 + $0xa8] ss:$16 sps:$4 sm:$0xff]   ;;  %v21906_v20 = vld [vmem:[#allocation15 + $0x84] ss:$16 sps:$4 sm:$0xff]   ;;  %v21909_v12 = vld [vmem:[#allocation15 + $0x8c] ss:$16 sps:$4 sm:$0xff]  }
 0xc51   :  { %20235 = vmatprep.subr.bf16.mxu1 %v11689_v26  ;;  %20255 = vmatprep.subr.bf16.mxu0 %v11709_v1  ;;  %v21904_v10 = vld [vmem:[#allocation15 + $0x80] ss:$16 sps:$4 sm:$0xff]   ;;  %v21907_v38 = vld [vmem:[#allocation15 + $0x88] ss:$16 sps:$4 sm:$0xff]   ;;  %v21912_v39 = vld [vmem:[#allocation15 + $0x64] ss:$16 sps:$4 sm:$0xff]  }
 0xc52   :  { %v11370_v28 = vpop.f32.mrf.mxu1  ;;  %v21915_v26 = vld [vmem:[#allocation15 + $0x6c] ss:$16 sps:$4 sm:$0xff]   ;;  %v21910_v1 = vld [vmem:[#allocation15 + $0x60] ss:$16 sps:$4 sm:$0xff]  }
 0xc54   :  { %v21084_v29 = vpop.f32.mrf.mxu1  ;;  %20236 = vmatpush3.bf16.msra.mxu1 %v11681_v21  ;;  %20256 = vmatpush3.bf16.msra.mxu0 %v11701_v3  ;;  %v21918_v21 = vld [vmem:[#allocation15 + $0x44] ss:$16 sps:$4 sm:$0xff]   ;;  %v21921_v3 = vld [vmem:[#allocation15 + $0x4c] ss:$16 sps:$4 sm:$0xff]  }
 0xc55   :  { %20237 = vmatprep.subr.bf16.mxu1 %v11688_v36  ;;  %20257 = vmatprep.subr.bf16.mxu0 %v11708_v60  ;;  %v11696_v59 = vpack.c.bf16 %v21084_v29, %v21083_v7  ;;  %v21913_v7 = vld [vmem:[#allocation15 + $0x68] ss:$16 sps:$4 sm:$0xff]   ;;  %v21924_v60 = vld [vmem:[#allocation15 + $0x24] ss:$16 sps:$4 sm:$0xff]   ;;  %v21927_v29 = vld [vmem:[#allocation15 + $0x2c] ss:$16 sps:$4 sm:$0xff]  }
 0xc56   :  { %v11373_v63 = vpop.f32.mrf.mxu1  ;;  %v21919_v36 = vld [vmem:[#allocation15 + $0x48] ss:$16 sps:$4 sm:$0xff]  }
 0xc57   :  { %v11695_v58 = vpack.c.bf16 %v11373_v63, %v11370_v28  ;;  %v21916_v28 = vld [vmem:[#allocation15 + $0x40] ss:$16 sps:$4 sm:$0xff]   ;;  %v21930_v63 = vld [vmem:[#allocation15 + $0x4] ss:$16 sps:$4 sm:$0xff]  }
 0xc58   :  { %v21087_v41 = vpop.f32.mrf.mxu1  ;;  %20238 = vmatpush3.bf16.msra.mxu1 %v11680_v23  ;;  %20258 = vmatpush3.bf16.msra.mxu0 %v11700_v57  ;;  %v21922_v23 = vld [vmem:[#allocation15 + $0x20] ss:$16 sps:$4 sm:$0xff]   ;;  %v21925_v57 = vld [vmem:[#allocation15 + $0x28] ss:$16 sps:$4 sm:$0xff]  }
 0xc59   :  { %20239 = vmatprep.subr.bf16.mxu1 %v11687_v62  ;;  %20259 = vmatprep.subr.bf16.mxu0 %v11707_v18  ;;  %v21933_v62 = vld [vmem:[#allocation15 + $0xc] ss:$16 sps:$4 sm:$0xff]   ;;  %v21928_v18 = vld [vmem:[#allocation15] ss:$16 sps:$4 sm:$0xff]  }
 0xc5a   :  { %v11386_v56 = vpop.f32.mrf.mxu1 }
 0xc5c   :  { %v21088_v15 = vpop.f32.mrf.mxu1  ;;  %20240 = vmatpush3.bf16.msra.mxu1 %v11679_v17  ;;  %20260 = vmatpush3.bf16.msra.mxu0 %v11699_v40 }
 0xc5d   :  { %v11698_v11 = vpack.c.bf16 %v21088_v15, %v21087_v41  ;;  %12225 = vmatprep.subr.bf16.mxu1 %v21888_v52  ;;  %v21931_v41 = vld [vmem:[#allocation15 + $0x8] ss:$16 sps:$4 sm:$0xff]  }
 0xc5e   :  { %v11389_v24 = vpop.f32.mrf.mxu1 }
 0xc5f   :  { %11962 = vmatmul.mubr.bf16.vlgmr.msra.gmra.mxu1 %v18367_v4  ;;  %v11697_v27 = vpack.c.bf16 %v11389_v24, %v11386_v56 }
 0xc60   :  { %v21107_v47 = vpop.f32.mrf.mxu1  ;;  %11969 = vmatprep.mubr.bf16.mxu1 %v18376_v61  ;;  %12226 = vmatpush1.bf16.msra.mxu1 %v21886_v9 }
 0xc61   :  { %12227 = vmatprep.subr.bf16.mxu1 %v21894_v14 }
 0xc62   :  { %v11534_v35 = vpop.f32.mrf.mxu1 }
 0xc64   :  { %v21108_v53 = vpop.f32.mrf.mxu1  ;;  %12228 = vmatpush1.bf16.msra.mxu1 %v21892_v2 }
 0xc65   :  { %v11704_v34 = vpack.c.bf16 %v21108_v53, %v21107_v47  ;;  %12229 = vmatprep.subr.bf16.mxu1 %v21900_v30 }
 0xc66   :  { %v11537_v55 = vpop.f32.mrf.mxu1 }
 0xc67   :  { %11970 = vmatmul.mubr.bf16.gmra.mxu1 %v18375_v48  ;;  %v11703_v45 = vpack.c.bf16 %v11537_v55, %v11534_v35 }
 0xc68   :  { %v21111_v50 = vpop.f32.mrf.mxu1  ;;  %12257 = vmatprep.mubr.bf16.mxu1 %v25581_v16  ;;  %12230 = vmatpush1.bf16.msra.mxu1 %v21898_v6 }
 0xc69   :  { %12231 = vmatprep.subr.bf16.mxu1 %v21906_v20 }
 0xc6a   :  { %v11550_v46 = vpop.f32.mrf.mxu1 }
 0xc6c   :  { %v21112_v22 = vpop.f32.mrf.mxu1  ;;  %12232 = vmatpush1.bf16.msra.mxu1 %v21904_v10 }
 0xc6d   :  { %v11706_v25 = vpack.c.bf16 %v21112_v22, %v21111_v50  ;;  %12233 = vmatprep.subr.bf16.mxu1 %v21912_v39 }
 0xc6e   :  { %v11553_v31 = vpop.f32.mrf.mxu1 }
 0xc6f   :  { %v11705_v32 = vpack.c.bf16 %v11553_v31, %v11550_v46  ;;  %20261 = vmatprep.subr.bf16.mxu0 %v11706_v25 }
 0xc70   :  { %20262 = vmatpush3.bf16.msra.mxu0 %v11698_v11  ;;  %12234 = vmatpush1.bf16.msra.mxu1 %v21910_v1 }
 0xc71   :  { %20263 = vmatprep.subr.bf16.mxu0 %v11705_v32  ;;  %12235 = vmatprep.subr.bf16.mxu1 %v21918_v21 }
 0xc74   :  { %20264 = vmatpush3.bf16.msra.mxu0 %v11697_v27  ;;  %12236 = vmatpush1.bf16.msra.mxu1 %v21916_v28 }
 0xc75   :  { %20265 = vmatprep.subr.bf16.mxu0 %v11704_v34  ;;  %12237 = vmatprep.subr.bf16.mxu1 %v21924_v60 }
 0xc78   :  { %20266 = vmatpush3.bf16.msra.mxu0 %v11696_v59  ;;  %12238 = vmatpush1.bf16.msra.mxu1 %v21922_v23 }
 0xc79   :  { %20267 = vmatprep.subr.bf16.mxu0 %v11703_v45  ;;  %12239 = vmatprep.subr.bf16.mxu1 %v21930_v63  ;;  %v11734_v45 = vpop.permute.xlu0 %11733 }
 0xc7c   :  { %20268 = vmatpush3.bf16.msra.mxu0 %v11695_v58  ;;  %12240 = vmatpush1.bf16.msra.mxu1 %v21928_v18 }
 0xc7d   :  { %12278 = vmatprep.subr.bf16.mxu0 %v21891_v33  ;;  %12524 = vmatprep.subr.bf16.mxu1 %v21936_v54  ;;  %v11739_v33 = vpop.permute.xlu1 %11738 }
 0xc7f   :  { %12011 = vmatmul.mubr.bf16.vlgmr.msra.gmra.mxu0 %v18369_v44 }
 0xc80   :  { %12018 = vmatprep.mubr.bf16.mxu0 %v18378_v19  ;;  %12279 = vmatpush1.bf16.msra.mxu0 %v21889_v5 }
 0xc81   :  { %12280 = vmatprep.subr.bf16.mxu0 %v21897_v43  ;;  %v11749_v28 = vpop.permute.xlu1 %11748 }
 0xc84   :  { %12281 = vmatpush1.bf16.msra.mxu0 %v21895_v0 }
 0xc85   :  { %12282 = vmatprep.subr.bf16.mxu0 %v21903_v13 }
 0xc87   :  { %12019 = vmatmul.mubr.bf16.gmra.mxu0 %v18377_v51 }
 0xc88   :  { %12310 = vmatprep.mubr.bf16.mxu0 %v25581_v16  ;;  %12283 = vmatpush1.bf16.msra.mxu0 %v21901_v37 }
 0xc89   :  { %12284 = vmatprep.subr.bf16.mxu0 %v21909_v12 }
 0xc8c   :  { %12285 = vmatpush1.bf16.msra.mxu0 %v21907_v38  ;;  %v11744_v38 = vpop.permute.xlu0 %11743 }
 0xc8d   :  { %12286 = vmatprep.subr.bf16.mxu0 %v21915_v26 }
 0xc90   :  { %12287 = vmatpush1.bf16.msra.mxu0 %v21913_v7 }
 0xc91   :  { %12288 = vmatprep.subr.bf16.mxu0 %v21921_v3 }
 0xc94   :  { %12289 = vmatpush1.bf16.msra.mxu0 %v21919_v36 }
 0xc95   :  { %12290 = vmatprep.subr.bf16.mxu0 %v21927_v29 }
 0xc98   :  { %12291 = vmatpush1.bf16.msra.mxu0 %v21925_v57 }
 0xc99   :  { %12292 = vmatprep.subr.bf16.mxu0 %v21933_v62 }
 0xc9c   :  { %12293 = vmatpush1.bf16.msra.mxu0 %v21931_v41 }
 0xc9d   :  { %12577 = vmatprep.subr.bf16.mxu0 %v21939_v42 }
 0xcdf   :  { %v20185_v17 = vpop.f32.mrf.mxu1 }
 0xce1   :  { %v20186_v40 = vpop.f32.mrf.mxu1 }
 0xce2   :  { %v20187_v34 = vadd.f32 %v20186_v40, %v20185_v17  ;;  %v21934_v17 = vld [vmem:[#allocation15 + $0x1e0] ss:$16 sps:$4 sm:$0xff]   ;;  %v21937_v40 = vld [vmem:[#allocation15 + $0x1e8] ss:$16 sps:$4 sm:$0xff]  }
 0xce3   :  { %v20188_v56 = vpop.f32.mrf.mxu1 }
 0xce4   :  { %v11866_v19 = vadd.f32 %v20187_v34, %v11734_v45  ;;  %v21957_v45 = vld [vmem:[#allocation15 + $0x18c] ss:$16 sps:$4 sm:$0xff]  }
 0xce5   :  { %v20189_v4 = vpop.f32.mrf.mxu1 }
 0xce6   :  { %v20190_v49 = vadd.f32 %v20189_v4, %v20188_v56 }
 0xce7   :  { %v20191_v15 = vpop.f32.mrf.mxu1 }
 0xce8   :  { %v11869_v5 = vadd.f32 %v20190_v49, %v11739_v33  ;;  %v21952_v49 = vld [vmem:[#allocation15 + $0x180] ss:$16 sps:$4 sm:$0xff]   ;;  %v21969_v33 = vld [vmem:[#allocation15 + $0x14c] ss:$16 sps:$4 sm:$0xff]  }
 0xce9   :  { %v20192_v61 = vpop.f32.mrf.mxu1 }
 0xcea   :  { %v20193_v43 = vadd.f32 %v20192_v61, %v20191_v15  ;;  %v21942_v61 = vld [vmem:[#allocation15 + $0x1c4] ss:$16 sps:$4 sm:$0xff]  }
 0xceb   :  { %v20194_v47 = vpop.f32.mrf.mxu1 }
 0xcec   :  { %v11874_v7 = vadd.f32 %v20193_v43, %v11744_v38  ;;  %v21973_v43 = vld [vmem:[#allocation15 + $0x128] ss:$16 sps:$4 sm:$0xff]  }
 0xced   :  { %v20195_v48 = vpop.f32.mrf.mxu1  ;;  %v21985_v38 = vld [vmem:[#allocation15 + $0x2e8] ss:$16 sps:$4 sm:$0xff]  }
 0xcee   :  { %v20196_v20 = vadd.f32 %v20195_v48, %v20194_v47 }
 0xcf0   :  { %v11877_v23 = vadd.f32 %v20196_v20, %v11749_v28  ;;  %v21984_v20 = vld [vmem:[#allocation15 + $0x2e4] ss:$16 sps:$4 sm:$0xff]   ;;  %v21994_v28 = vld [vmem:[#allocation15 + $0x2a0] ss:$16 sps:$4 sm:$0xff]  }
 0xcff   :  { %v20213_v24 = vpop.f32.mrf.mxu0 }
 0xd01   :  { %v20214_v35 = vpop.f32.mrf.mxu0 }
 0xd02   :  { %v20215_v8 = vadd.f32 %v20214_v35, %v20213_v24  ;;  %v21945_v24 = vld [vmem:[#allocation15 + $0x1cc] ss:$16 sps:$4 sm:$0xff]  }
 0xd03   :  { %v20216_v53 = vpop.f32.mrf.mxu0 }
 0xd04   :  { %v11915_v2 = vadd.f32 %v20215_v8, %v11866_v19  ;;  %v21955_v8 = vld [vmem:[#allocation15 + $0x188] ss:$16 sps:$4 sm:$0xff]   ;;  %v21958_v19 = vld [vmem:[#allocation15 + $0x160] ss:$16 sps:$4 sm:$0xff]  }
 0xd05   :  { %v20217_v50 = vpop.f32.mrf.mxu0 }
 0xd06   :  { %v20218_v51 = vadd.f32 %v20217_v50, %v20216_v53  ;;  %v21943_v50 = vld [vmem:[#allocation15 + $0x1c8] ss:$16 sps:$4 sm:$0xff]  }
 0xd07   :  { %v20219_v22 = vpop.f32.mrf.mxu0 }
 0xd08   :  { %v11918_v6 = vadd.f32 %v20218_v51, %v11869_v5  ;;  %v21961_v51 = vld [vmem:[#allocation15 + $0x168] ss:$16 sps:$4 sm:$0xff]  }
 0xd09   :  { %v20220_v11 = vpop.f32.mrf.mxu0  ;;  %v21967_v5 = vld [vmem:[#allocation15 + $0x148] ss:$16 sps:$4 sm:$0xff]  }
 0xd0a   :  { %v20221_v12 = vadd.f32 %v20220_v11, %v20219_v22  ;;  %v21948_v22 = vld [vmem:[#allocation15 + $0x1a4] ss:$16 sps:$4 sm:$0xff]  }
 0xd0b   :  { %v20222_v32 = vpop.f32.mrf.mxu0 }
 0xd0c   :  { %v11923_v57 = vadd.f32 %v20221_v12, %v11874_v7  ;;  %v21987_v12 = vld [vmem:[#allocation15 + $0x2ec] ss:$16 sps:$4 sm:$0xff]   ;;  %v21991_v7 = vld [vmem:[#allocation15 + $0x2c8] ss:$16 sps:$4 sm:$0xff]  }
 0xd0d   :  { %v20223_v59 = vpop.f32.mrf.mxu0 }
 0xd0e   :  { %v20224_v36 = vadd.f32 %v20223_v59, %v20222_v32  ;;  %v21946_v32 = vld [vmem:[#allocation15 + $0x1a0] ss:$16 sps:$4 sm:$0xff]   ;;  %v21954_v59 = vld [vmem:[#allocation15 + $0x184] ss:$16 sps:$4 sm:$0xff]  }
 0xd10   :  { %v11926_v56 = vadd.f32 %v20224_v36, %v11877_v23  ;;  %v21997_v36 = vld [vmem:[#allocation15 + $0x2a8] ss:$16 sps:$4 sm:$0xff]   ;;  %v22000_v23 = vld [vmem:[#allocation15 + $0x280] ss:$16 sps:$4 sm:$0xff]  }
 0xd1f   :  { %v20241_v55 = vpop.f32.mrf.mxu1 }
 0xd21   :  { %v20242_v46 = vpop.f32.mrf.mxu1 }
 0xd22   :  { %v20243_v52 = vadd.f32 %v20242_v46, %v20241_v55  ;;  %v21940_v55 = vld [vmem:[#allocation15 + $0x1c0] ss:$16 sps:$4 sm:$0xff]  }
 0xd23   :  { %v20244_v25 = vpop.f32.mrf.mxu1 }
 0xd24   :  { %v11964_v37 = vadd.f32 %v20243_v52, %v11915_v2  ;;  %v21966_v52 = vld [vmem:[#allocation15 + $0x144] ss:$16 sps:$4 sm:$0xff]  }
 0xd25   :  { %v20245_v31 = vpop.f32.mrf.mxu1  ;;  %v21972_v2 = vld [vmem:[#allocation15 + $0x124] ss:$16 sps:$4 sm:$0xff]  }
 0xd26   :  { %v20246_v14 = vadd.f32 %v20245_v31, %v20244_v25  ;;  %v21951_v25 = vld [vmem:[#allocation15 + $0x1ac] ss:$16 sps:$4 sm:$0xff]  }
 0xd27   :  { %v20247_v27 = vpop.f32.mrf.mxu1 }
 0xd28   :  { %v11967_v39 = vadd.f32 %v20246_v14, %v11918_v6  ;;  %v21975_v14 = vld [vmem:[#allocation15 + $0x12c] ss:$16 sps:$4 sm:$0xff]   ;;  %v21976_v6 = vld [vmem:[#allocation15 + $0x100] ss:$16 sps:$4 sm:$0xff]  }
 0xd29   :  { %v20248_v58 = vpop.f32.mrf.mxu1 }
 0xd2a   :  { %v20249_v60 = vadd.f32 %v20248_v58, %v20247_v27  ;;  %v21949_v27 = vld [vmem:[#allocation15 + $0x1a8] ss:$16 sps:$4 sm:$0xff]   ;;  %v21960_v58 = vld [vmem:[#allocation15 + $0x164] ss:$16 sps:$4 sm:$0xff]  }
 0xd2b   :  { %v20250_v30 = vpop.f32.mrf.mxu1 }
 0xd2c   :  { %v11972_v4 = vadd.f32 %v20249_v60, %v11923_v57  ;;  %v22002_v60 = vld [vmem:[#allocation15 + $0x284] ss:$16 sps:$4 sm:$0xff]   ;;  %v22003_v57 = vld [vmem:[#allocation15 + $0x288] ss:$16 sps:$4 sm:$0xff]  }
 0xd2d   :  { %v20251_v21 = vpop.f32.mrf.mxu1 }
 0xd2e   :  { %v20252_v62 = vadd.f32 %v20251_v21, %v20250_v30  ;;  %v21978_v30 = vld [vmem:[#allocation15 + $0x104] ss:$16 sps:$4 sm:$0xff]  }
 0xd2f   :  { %v21996_v21 = vld [vmem:[#allocation15 + $0x2a4] ss:$16 sps:$4 sm:$0xff]  }
 0xd30   :  { %v11975_v35 = vadd.f32 %v20252_v62, %v11926_v56  ;;  %v22011_v62 = vld [vmem:[#allocation15 + $0x26c] ss:$16 sps:$4 sm:$0xff]   ;;  %v22020_v56 = vld [vmem:[#allocation15 + $0x224] ss:$16 sps:$4 sm:$0xff]  }
 0xd3f   :  { %v20269_v44 = vpop.f32.mrf.mxu0 }
 0xd41   :  { %v20270_v9 = vpop.f32.mrf.mxu0 }
 0xd42   :  { %v20271_v0 = vadd.f32 %v20270_v9, %v20269_v44  ;;  %v21963_v44 = vld [vmem:[#allocation15 + $0x16c] ss:$16 sps:$4 sm:$0xff]   ;;  %v21964_v9 = vld [vmem:[#allocation15 + $0x140] ss:$16 sps:$4 sm:$0xff]  }
 0xd43   :  { %v20272_v13 = vpop.f32.mrf.mxu0 }
 0xd44   :  { %v12013_v26 = vadd.f32 %v20271_v0, %v11964_v37  ;;  %v21970_v0 = vld [vmem:[#allocation15 + $0x120] ss:$16 sps:$4 sm:$0xff]   ;;  %v21979_v37 = vld [vmem:[#allocation15 + $0x108] ss:$16 sps:$4 sm:$0xff]  }
 0xd45   :  { %v20273_v10 = vpop.f32.mrf.mxu0 }
 0xd46   :  { %v20274_v1 = vadd.f32 %v20273_v10, %v20272_v13  ;;  %v12027_v18 = vmax.f32 %v12013_v26, 0.0  ;;  %v21981_v13 = vld [vmem:[#allocation15 + $0x10c] ss:$16 sps:$4 sm:$0xff]   ;;  %v21982_v10 = vld [vmem:[#allocation15 + $0x2e0] ss:$16 sps:$4 sm:$0xff]  }
 0xd47   :  { %v20275_v3 = vpop.f32.mrf.mxu0  ;;  %v21993_v26 = vld [vmem:[#allocation15 + $0x2cc] ss:$16 sps:$4 sm:$0xff]  }
 0xd48   :  { %v12016_v29 = vadd.f32 %v20274_v1, %v11967_v39  ;;  %v21990_v39 = vld [vmem:[#allocation15 + $0x2c4] ss:$16 sps:$4 sm:$0xff]   ;;  %v21988_v1 = vld [vmem:[#allocation15 + $0x2c0] ss:$16 sps:$4 sm:$0xff]  }
 0xd49   :  { %v20276_v63 = vpop.f32.mrf.mxu0 }
 0xd4a   :  { %v12028_v41 = vmax.f32 %v12016_v29, 0.0  ;;  %v20277_v54 = vadd.f32 %v20276_v63, %v20275_v3  ;;  %v21999_v3 = vld [vmem:[#allocation15 + $0x2ac] ss:$16 sps:$4 sm:$0xff]   ;;  %v22008_v63 = vld [vmem:[#allocation15 + $0x264] ss:$16 sps:$4 sm:$0xff]  }
 0xd4b   :  { %v20278_v42 = vpop.f32.mrf.mxu0  ;;  %v22005_v29 = vld [vmem:[#allocation15 + $0x28c] ss:$16 sps:$4 sm:$0xff]  }
 0xd4c   :  { %v24542_v15 = vpack.c.bf16 %v12028_v41, %v12027_v18  ;;  %v12021_v48 = vadd.f32 %v20277_v54, %v11972_v4  ;;  %v22006_v18 = vld [vmem:[#allocation15 + $0x260] ss:$16 sps:$4 sm:$0xff]   ;;  %v22009_v41 = vld [vmem:[#allocation15 + $0x268] ss:$16 sps:$4 sm:$0xff]   ;;  %v22014_v54 = vld [vmem:[#allocation15 + $0x244] ss:$16 sps:$4 sm:$0xff]  }
 0xd4d   :  { %v20279_v47 = vpop.f32.mrf.mxu0  ;;  %v22023_v4 = vld [vmem:[#allocation15 + $0x22c] ss:$16 sps:$4 sm:$0xff]  }
 0xd4e   :  { %v20280_v53 = vadd.f32 %v20279_v47, %v20278_v42  ;;  %12258 = vmatmul.mubr.bf16.vlgmr.msra.gmra.mxu1 %v24542_v15  ;;  %12311 = vmatmul.mubr.bf16.vlgmr.msra.gmra.mxu0 %v24542_v15  ;;  %v12029_v11 = vmax.f32 %v12021_v48, 0.0  ;;  %v22017_v42 = vld [vmem:[#allocation15 + $0x24c] ss:$16 sps:$4 sm:$0xff]   ;;  %v22026_v47 = vld [vmem:[#allocation15 + $0x204] ss:$16 sps:$4 sm:$0xff]  }
 0xd4f   :  { %12525 = vmatpush1.bf16.msra.mxu1 %v21934_v17  ;;  %12578 = vmatpush1.bf16.msra.mxu0 %v21937_v40  ;;  %v22012_v17 = vld [vmem:[#allocation15 + $0x240] ss:$16 sps:$4 sm:$0xff]   ;;  %v22015_v40 = vld [vmem:[#allocation15 + $0x248] ss:$16 sps:$4 sm:$0xff]  }
 0xd50   :  { %v12024_v46 = vadd.f32 %v20280_v53, %v11975_v35  ;;  %12526 = vmatprep.subr.bf16.mxu1 %v21942_v61  ;;  %12579 = vmatprep.subr.bf16.mxu0 %v21945_v24  ;;  %v22018_v61 = vld [vmem:[#allocation15 + $0x220] ss:$16 sps:$4 sm:$0xff]   ;;  %v22021_v24 = vld [vmem:[#allocation15 + $0x228] ss:$16 sps:$4 sm:$0xff]   ;;  %v22029_v35 = vld [vmem:[#allocation15 + $0x20c] ss:$16 sps:$4 sm:$0xff]  }
 0xd51   :  { %12267 = vmatprep.mubr.bf16.mxu1 %v25581_v16  ;;  %12320 = vmatprep.mubr.bf16.mxu0 %v25581_v16  ;;  %v22024_v48 = vld [vmem:[#allocation15 + $0x200] ss:$16 sps:$4 sm:$0xff]   ;;  %v22027_v53 = vld [vmem:[#allocation15 + $0x208] ss:$16 sps:$4 sm:$0xff]  }
 0xd52   :  { %v12030_v31 = vmax.f32 %v12024_v46, 0.0  ;;  %v22030_v46 = vld [vmem:[#allocation15 + $0x3e0] ss:$16 sps:$4 sm:$0xff]  }
 0xd53   :  { %12527 = vmatpush1.bf16.msra.mxu1 %v21940_v55  ;;  %12580 = vmatpush1.bf16.msra.mxu0 %v21943_v50  ;;  %v22032_v55 = vld [vmem:[#allocation15 + $0x3e4] ss:$16 sps:$4 sm:$0xff]   ;;  %v22035_v50 = vld [vmem:[#allocation15 + $0x3ec] ss:$16 sps:$4 sm:$0xff]  }
 0xd54   :  { %v24548_v34 = vpack.c.bf16 %v12030_v31, %v12029_v11  ;;  %12528 = vmatprep.subr.bf16.mxu1 %v21948_v22  ;;  %12581 = vmatprep.subr.bf16.mxu0 %v21951_v25  ;;  %v22033_v22 = vld [vmem:[#allocation15 + $0x3e8] ss:$16 sps:$4 sm:$0xff]   ;;  %v22038_v25 = vld [vmem:[#allocation15 + $0x3c4] ss:$16 sps:$4 sm:$0xff]   ;;  %v22041_v11 = vld [vmem:[#allocation15 + $0x3cc] ss:$16 sps:$4 sm:$0xff]  }
 0xd55   :  { %v22036_v31 = vld [vmem:[#allocation15 + $0x3c0] ss:$16 sps:$4 sm:$0xff]  }
 0xd56   :  { %12268 = vmatmul.mubr.bf16.gmra.mxu1 %v24548_v34  ;;  %12321 = vmatmul.mubr.bf16.gmra.mxu0 %v24548_v34 }
 0xd57   :  { %12529 = vmatpush1.bf16.msra.mxu1 %v21946_v32  ;;  %12582 = vmatpush1.bf16.msra.mxu0 %v21949_v27  ;;  %v22039_v32 = vld [vmem:[#allocation15 + $0x3c8] ss:$16 sps:$4 sm:$0xff]   ;;  %v22044_v27 = vld [vmem:[#allocation15 + $0x3a4] ss:$16 sps:$4 sm:$0xff]  }
 0xd58   :  { %12530 = vmatprep.subr.bf16.mxu1 %v21954_v59  ;;  %12583 = vmatprep.subr.bf16.mxu0 %v21957_v45  ;;  %v22047_v59 = vld [vmem:[#allocation15 + $0x3ac] ss:$16 sps:$4 sm:$0xff]   ;;  %v22042_v45 = vld [vmem:[#allocation15 + $0x3a0] ss:$16 sps:$4 sm:$0xff]  }
 0xd59   :  { %12556 = vmatprep.mubr.bf16.mxu1 %v25581_v16  ;;  %12609 = vmatprep.mubr.bf16.mxu0 %v25581_v16 }
 0xd5b   :  { %12531 = vmatpush1.bf16.msra.mxu1 %v21952_v49  ;;  %12584 = vmatpush1.bf16.msra.mxu0 %v21955_v8  ;;  %v22045_v49 = vld [vmem:[#allocation15 + $0x3a8] ss:$16 sps:$4 sm:$0xff]   ;;  %v22050_v8 = vld [vmem:[#allocation15 + $0x384] ss:$16 sps:$4 sm:$0xff]  }
 0xd5c   :  { %12532 = vmatprep.subr.bf16.mxu1 %v21960_v58  ;;  %12585 = vmatprep.subr.bf16.mxu0 %v21963_v44  ;;  %v22053_v58 = vld [vmem:[#allocation15 + $0x38c] ss:$16 sps:$4 sm:$0xff]   ;;  %v22048_v44 = vld [vmem:[#allocation15 + $0x380] ss:$16 sps:$4 sm:$0xff]  }
 0xd5f   :  { %12533 = vmatpush1.bf16.msra.mxu1 %v21958_v19  ;;  %12586 = vmatpush1.bf16.msra.mxu0 %v21961_v51  ;;  %v22051_v19 = vld [vmem:[#allocation15 + $0x388] ss:$16 sps:$4 sm:$0xff]   ;;  %v22056_v51 = vld [vmem:[#allocation15 + $0x364] ss:$16 sps:$4 sm:$0xff]  }
 0xd60   :  { %12534 = vmatprep.subr.bf16.mxu1 %v21966_v52  ;;  %12587 = vmatprep.subr.bf16.mxu0 %v21969_v33  ;;  %v22059_v52 = vld [vmem:[#allocation15 + $0x36c] ss:$16 sps:$4 sm:$0xff]   ;;  %v22054_v33 = vld [vmem:[#allocation15 + $0x360] ss:$16 sps:$4 sm:$0xff]  }
 0xd63   :  { %12535 = vmatpush1.bf16.msra.mxu1 %v21964_v9  ;;  %12588 = vmatpush1.bf16.msra.mxu0 %v21967_v5  ;;  %v22057_v9 = vld [vmem:[#allocation15 + $0x368] ss:$16 sps:$4 sm:$0xff]   ;;  %v22062_v5 = vld [vmem:[#allocation15 + $0x344] ss:$16 sps:$4 sm:$0xff]  }
 0xd64   :  { %12536 = vmatprep.subr.bf16.mxu1 %v21972_v2  ;;  %12589 = vmatprep.subr.bf16.mxu0 %v21975_v14  ;;  %v22065_v2 = vld [vmem:[#allocation15 + $0x34c] ss:$16 sps:$4 sm:$0xff]   ;;  %v22060_v14 = vld [vmem:[#allocation15 + $0x340] ss:$16 sps:$4 sm:$0xff]  }
 0xd67   :  { %12537 = vmatpush1.bf16.msra.mxu1 %v21970_v0  ;;  %12590 = vmatpush1.bf16.msra.mxu0 %v21973_v43  ;;  %v22063_v0 = vld [vmem:[#allocation15 + $0x348] ss:$16 sps:$4 sm:$0xff]   ;;  %v22068_v43 = vld [vmem:[#allocation15 + $0x324] ss:$16 sps:$4 sm:$0xff]  }
 0xd68   :  { %12538 = vmatprep.subr.bf16.mxu1 %v21978_v30  ;;  %12591 = vmatprep.subr.bf16.mxu0 %v21981_v13  ;;  %v22071_v30 = vld [vmem:[#allocation15 + $0x32c] ss:$16 sps:$4 sm:$0xff]   ;;  %v22066_v13 = vld [vmem:[#allocation15 + $0x320] ss:$16 sps:$4 sm:$0xff]  }
 0xd6b   :  { %12539 = vmatpush1.bf16.msra.mxu1 %v21976_v6  ;;  %12592 = vmatpush1.bf16.msra.mxu0 %v21979_v37  ;;  %v22069_v6 = vld [vmem:[#allocation15 + $0x328] ss:$16 sps:$4 sm:$0xff]   ;;  %v22074_v37 = vld [vmem:[#allocation15 + $0x304] ss:$16 sps:$4 sm:$0xff]  }
 0xd6c   :  { %12823 = vmatprep.subr.bf16.mxu1 %v21984_v20  ;;  %12876 = vmatprep.subr.bf16.mxu0 %v21987_v12  ;;  %v22077_v20 = vld [vmem:[#allocation15 + $0x30c] ss:$16 sps:$4 sm:$0xff]   ;;  %v22072_v12 = vld [vmem:[#allocation15 + $0x300] ss:$16 sps:$4 sm:$0xff]  }
 0xd6e   :  { %12557 = vmatmul.mubr.bf16.vlgmr.msra.gmra.mxu1 %v24542_v15  ;;  %12610 = vmatmul.mubr.bf16.vlgmr.msra.gmra.mxu0 %v24542_v15 }
 0xd6f   :  { %12824 = vmatpush1.bf16.msra.mxu1 %v21982_v10  ;;  %12877 = vmatpush1.bf16.msra.mxu0 %v21985_v38  ;;  %v22075_v10 = vld [vmem:[#allocation15 + $0x308] ss:$16 sps:$4 sm:$0xff]   ;;  %v22080_v38 = vld [vmem:[#allocation15 + $0x4e4] ss:$16 sps:$4 sm:$0xff]  }
 0xd70   :  { %12825 = vmatprep.subr.bf16.mxu1 %v21990_v39  ;;  %12878 = vmatprep.subr.bf16.mxu0 %v21993_v26  ;;  %v22083_v39 = vld [vmem:[#allocation15 + $0x4ec] ss:$16 sps:$4 sm:$0xff]   ;;  %v22078_v26 = vld [vmem:[#allocation15 + $0x4e0] ss:$16 sps:$4 sm:$0xff]  }
 0xd71   :  { %12566 = vmatprep.mubr.bf16.mxu1 %v25581_v16  ;;  %12619 = vmatprep.mubr.bf16.mxu0 %v25581_v16 }
 0xd73   :  { %12826 = vmatpush1.bf16.msra.mxu1 %v21988_v1  ;;  %12879 = vmatpush1.bf16.msra.mxu0 %v21991_v7  ;;  %v22081_v1 = vld [vmem:[#allocation15 + $0x4e8] ss:$16 sps:$4 sm:$0xff]   ;;  %v22086_v7 = vld [vmem:[#allocation15 + $0x4c4] ss:$16 sps:$4 sm:$0xff]  }
 0xd74   :  { %12827 = vmatprep.subr.bf16.mxu1 %v21996_v21  ;;  %12880 = vmatprep.subr.bf16.mxu0 %v21999_v3  ;;  %v22089_v21 = vld [vmem:[#allocation15 + $0x4cc] ss:$16 sps:$4 sm:$0xff]   ;;  %v22084_v3 = vld [vmem:[#allocation15 + $0x4c0] ss:$16 sps:$4 sm:$0xff]  }
 0xd76   :  { %12567 = vmatmul.mubr.bf16.gmra.mxu1 %v24548_v34  ;;  %12620 = vmatmul.mubr.bf16.gmra.mxu0 %v24548_v34 }
 0xd77   :  { %12828 = vmatpush1.bf16.msra.mxu1 %v21994_v28  ;;  %12881 = vmatpush1.bf16.msra.mxu0 %v21997_v36  ;;  %v22087_v28 = vld [vmem:[#allocation15 + $0x4c8] ss:$16 sps:$4 sm:$0xff]   ;;  %v22092_v36 = vld [vmem:[#allocation15 + $0x4a4] ss:$16 sps:$4 sm:$0xff]  }
 0xd78   :  { %12829 = vmatprep.subr.bf16.mxu1 %v22002_v60  ;;  %12882 = vmatprep.subr.bf16.mxu0 %v22005_v29  ;;  %v22095_v60 = vld [vmem:[#allocation15 + $0x4ac] ss:$16 sps:$4 sm:$0xff]   ;;  %v22090_v29 = vld [vmem:[#allocation15 + $0x4a0] ss:$16 sps:$4 sm:$0xff]  }
 0xd79   :  { %12855 = vmatprep.mubr.bf16.mxu1 %v25581_v16  ;;  %12908 = vmatprep.mubr.bf16.mxu0 %v25581_v16 }
 0xd7b   :  { %12830 = vmatpush1.bf16.msra.mxu1 %v22000_v23  ;;  %12883 = vmatpush1.bf16.msra.mxu0 %v22003_v57  ;;  %v22093_v23 = vld [vmem:[#allocation15 + $0x4a8] ss:$16 sps:$4 sm:$0xff]   ;;  %v22098_v57 = vld [vmem:[#allocation15 + $0x484] ss:$16 sps:$4 sm:$0xff]  }
 0xd7c   :  { %12831 = vmatprep.subr.bf16.mxu1 %v22008_v63  ;;  %12884 = vmatprep.subr.bf16.mxu0 %v22011_v62  ;;  %v22101_v63 = vld [vmem:[#allocation15 + $0x48c] ss:$16 sps:$4 sm:$0xff]   ;;  %v22096_v62 = vld [vmem:[#allocation15 + $0x480] ss:$16 sps:$4 sm:$0xff]  }
 0xd7f   :  { %12832 = vmatpush1.bf16.msra.mxu1 %v22006_v18  ;;  %12885 = vmatpush1.bf16.msra.mxu0 %v22009_v41  ;;  %v22099_v18 = vld [vmem:[#allocation15 + $0x488] ss:$16 sps:$4 sm:$0xff]   ;;  %v22104_v41 = vld [vmem:[#allocation15 + $0x464] ss:$16 sps:$4 sm:$0xff]  }
 0xd80   :  { %12833 = vmatprep.subr.bf16.mxu1 %v22014_v54  ;;  %12886 = vmatprep.subr.bf16.mxu0 %v22017_v42  ;;  %v22107_v54 = vld [vmem:[#allocation15 + $0x46c] ss:$16 sps:$4 sm:$0xff]   ;;  %v22102_v42 = vld [vmem:[#allocation15 + $0x460] ss:$16 sps:$4 sm:$0xff]  }
 0xd83   :  { %12834 = vmatpush1.bf16.msra.mxu1 %v22012_v17  ;;  %12887 = vmatpush1.bf16.msra.mxu0 %v22015_v40  ;;  %v22105_v17 = vld [vmem:[#allocation15 + $0x468] ss:$16 sps:$4 sm:$0xff]   ;;  %v22110_v40 = vld [vmem:[#allocation15 + $0x444] ss:$16 sps:$4 sm:$0xff]  }
 0xd84   :  { %12835 = vmatprep.subr.bf16.mxu1 %v22020_v56  ;;  %12888 = vmatprep.subr.bf16.mxu0 %v22023_v4  ;;  %v22113_v56 = vld [vmem:[#allocation15 + $0x44c] ss:$16 sps:$4 sm:$0xff]   ;;  %v22108_v4 = vld [vmem:[#allocation15 + $0x440] ss:$16 sps:$4 sm:$0xff]  }
 0xd87   :  { %12836 = vmatpush1.bf16.msra.mxu1 %v22018_v61  ;;  %12889 = vmatpush1.bf16.msra.mxu0 %v22021_v24  ;;  %v22111_v61 = vld [vmem:[#allocation15 + $0x448] ss:$16 sps:$4 sm:$0xff]   ;;  %v22116_v24 = vld [vmem:[#allocation15 + $0x424] ss:$16 sps:$4 sm:$0xff]  }
 0xd88   :  { %12837 = vmatprep.subr.bf16.mxu1 %v22026_v47  ;;  %12890 = vmatprep.subr.bf16.mxu0 %v22029_v35  ;;  %v22119_v47 = vld [vmem:[#allocation15 + $0x42c] ss:$16 sps:$4 sm:$0xff]   ;;  %v22114_v35 = vld [vmem:[#allocation15 + $0x420] ss:$16 sps:$4 sm:$0xff]  }
 0xd8b   :  { %12838 = vmatpush1.bf16.msra.mxu1 %v22024_v48  ;;  %12891 = vmatpush1.bf16.msra.mxu0 %v22027_v53  ;;  %v22117_v48 = vld [vmem:[#allocation15 + $0x428] ss:$16 sps:$4 sm:$0xff]   ;;  %v22122_v53 = vld [vmem:[#allocation15 + $0x404] ss:$16 sps:$4 sm:$0xff]  }
 0xd8c   :  { %13122 = vmatprep.subr.bf16.mxu1 %v22032_v55  ;;  %13175 = vmatprep.subr.bf16.mxu0 %v22035_v50  ;;  %v22125_v55 = vld [vmem:[#allocation15 + $0x40c] ss:$16 sps:$4 sm:$0xff]   ;;  %v22120_v50 = vld [vmem:[#allocation15 + $0x400] ss:$16 sps:$4 sm:$0xff]  }
 0xd8e   :  { %12856 = vmatmul.mubr.bf16.vlgmr.msra.gmra.mxu1 %v24542_v15  ;;  %12909 = vmatmul.mubr.bf16.vlgmr.msra.gmra.mxu0 %v24542_v15 }
 0xd8f   :  { %13123 = vmatpush1.bf16.msra.mxu1 %v22030_v46  ;;  %13176 = vmatpush1.bf16.msra.mxu0 %v22033_v22  ;;  %v22123_v46 = vld [vmem:[#allocation15 + $0x408] ss:$16 sps:$4 sm:$0xff]   ;;  %v22128_v22 = vld [vmem:[#allocation15 + $0x5e4] ss:$16 sps:$4 sm:$0xff]  }
 0xd90   :  { %13124 = vmatprep.subr.bf16.mxu1 %v22038_v25  ;;  %13177 = vmatprep.subr.bf16.mxu0 %v22041_v11  ;;  %v22131_v25 = vld [vmem:[#allocation15 + $0x5ec] ss:$16 sps:$4 sm:$0xff]   ;;  %v22126_v11 = vld [vmem:[#allocation15 + $0x5e0] ss:$16 sps:$4 sm:$0xff]  }
 0xd91   :  { %12865 = vmatprep.mubr.bf16.mxu1 %v25581_v16  ;;  %12918 = vmatprep.mubr.bf16.mxu0 %v25581_v16 }
 0xd93   :  { %13125 = vmatpush1.bf16.msra.mxu1 %v22036_v31  ;;  %13178 = vmatpush1.bf16.msra.mxu0 %v22039_v32  ;;  %v22129_v31 = vld [vmem:[#allocation15 + $0x5e8] ss:$16 sps:$4 sm:$0xff]   ;;  %v22134_v32 = vld [vmem:[#allocation15 + $0x5c4] ss:$16 sps:$4 sm:$0xff]  }
 0xd94   :  { %13126 = vmatprep.subr.bf16.mxu1 %v22044_v27  ;;  %13179 = vmatprep.subr.bf16.mxu0 %v22047_v59  ;;  %v22137_v27 = vld [vmem:[#allocation15 + $0x5cc] ss:$16 sps:$4 sm:$0xff]   ;;  %v22132_v59 = vld [vmem:[#allocation15 + $0x5c0] ss:$16 sps:$4 sm:$0xff]  }
 0xd96   :  { %12866 = vmatmul.mubr.bf16.gmra.mxu1 %v24548_v34  ;;  %12919 = vmatmul.mubr.bf16.gmra.mxu0 %v24548_v34 }
 0xd97   :  { %13127 = vmatpush1.bf16.msra.mxu1 %v22042_v45  ;;  %13180 = vmatpush1.bf16.msra.mxu0 %v22045_v49  ;;  %v22135_v45 = vld [vmem:[#allocation15 + $0x5c8] ss:$16 sps:$4 sm:$0xff]   ;;  %v22140_v49 = vld [vmem:[#allocation15 + $0x5a4] ss:$16 sps:$4 sm:$0xff]  }
 0xd98   :  { %13128 = vmatprep.subr.bf16.mxu1 %v22050_v8  ;;  %13181 = vmatprep.subr.bf16.mxu0 %v22053_v58  ;;  %v22143_v8 = vld [vmem:[#allocation15 + $0x5ac] ss:$16 sps:$4 sm:$0xff]   ;;  %v22138_v58 = vld [vmem:[#allocation15 + $0x5a0] ss:$16 sps:$4 sm:$0xff]  }
 0xd99   :  { %13154 = vmatprep.mubr.bf16.mxu1 %v25581_v16  ;;  %13207 = vmatprep.mubr.bf16.mxu0 %v25581_v16 }
 0xd9b   :  { %13129 = vmatpush1.bf16.msra.mxu1 %v22048_v44  ;;  %13182 = vmatpush1.bf16.msra.mxu0 %v22051_v19  ;;  %v22141_v44 = vld [vmem:[#allocation15 + $0x5a8] ss:$16 sps:$4 sm:$0xff]   ;;  %v22146_v19 = vld [vmem:[#allocation15 + $0x584] ss:$16 sps:$4 sm:$0xff]  }
 0xd9c   :  { %13130 = vmatprep.subr.bf16.mxu1 %v22056_v51  ;;  %13183 = vmatprep.subr.bf16.mxu0 %v22059_v52  ;;  %v22149_v51 = vld [vmem:[#allocation15 + $0x58c] ss:$16 sps:$4 sm:$0xff]   ;;  %v22144_v52 = vld [vmem:[#allocation15 + $0x580] ss:$16 sps:$4 sm:$0xff]  }
 0xd9f   :  { %13131 = vmatpush1.bf16.msra.mxu1 %v22054_v33  ;;  %13184 = vmatpush1.bf16.msra.mxu0 %v22057_v9  ;;  %v22147_v33 = vld [vmem:[#allocation15 + $0x588] ss:$16 sps:$4 sm:$0xff]   ;;  %v22152_v9 = vld [vmem:[#allocation15 + $0x564] ss:$16 sps:$4 sm:$0xff]  }
 0xda0   :  { %13132 = vmatprep.subr.bf16.mxu1 %v22062_v5  ;;  %13185 = vmatprep.subr.bf16.mxu0 %v22065_v2  ;;  %v22155_v5 = vld [vmem:[#allocation15 + $0x56c] ss:$16 sps:$4 sm:$0xff]   ;;  %v22150_v2 = vld [vmem:[#allocation15 + $0x560] ss:$16 sps:$4 sm:$0xff]  }
 0xda3   :  { %13133 = vmatpush1.bf16.msra.mxu1 %v22060_v14  ;;  %13186 = vmatpush1.bf16.msra.mxu0 %v22063_v0  ;;  %v22153_v14 = vld [vmem:[#allocation15 + $0x568] ss:$16 sps:$4 sm:$0xff]   ;;  %v22158_v0 = vld [vmem:[#allocation15 + $0x544] ss:$16 sps:$4 sm:$0xff]  }
 0xda4   :  { %13134 = vmatprep.subr.bf16.mxu1 %v22068_v43  ;;  %13187 = vmatprep.subr.bf16.mxu0 %v22071_v30  ;;  %v22161_v43 = vld [vmem:[#allocation15 + $0x54c] ss:$16 sps:$4 sm:$0xff]   ;;  %v22156_v30 = vld [vmem:[#allocation15 + $0x540] ss:$16 sps:$4 sm:$0xff]  }
 0xda7   :  { %13135 = vmatpush1.bf16.msra.mxu1 %v22066_v13  ;;  %13188 = vmatpush1.bf16.msra.mxu0 %v22069_v6  ;;  %v22159_v13 = vld [vmem:[#allocation15 + $0x548] ss:$16 sps:$4 sm:$0xff]   ;;  %v22164_v6 = vld [vmem:[#allocation15 + $0x524] ss:$16 sps:$4 sm:$0xff]  }
 0xda8   :  { %13136 = vmatprep.subr.bf16.mxu1 %v22074_v37  ;;  %13189 = vmatprep.subr.bf16.mxu0 %v22077_v20  ;;  %v22167_v37 = vld [vmem:[#allocation15 + $0x52c] ss:$16 sps:$4 sm:$0xff]   ;;  %v22162_v20 = vld [vmem:[#allocation15 + $0x520] ss:$16 sps:$4 sm:$0xff]  }
 0xdab   :  { %13137 = vmatpush1.bf16.msra.mxu1 %v22072_v12  ;;  %13190 = vmatpush1.bf16.msra.mxu0 %v22075_v10  ;;  %v22165_v12 = vld [vmem:[#allocation15 + $0x528] ss:$16 sps:$4 sm:$0xff]   ;;  %v22170_v10 = vld [vmem:[#allocation15 + $0x504] ss:$16 sps:$4 sm:$0xff]  }
 0xdac   :  { %13421 = vmatprep.subr.bf16.mxu1 %v22080_v38  ;;  %13474 = vmatprep.subr.bf16.mxu0 %v22083_v39  ;;  %v22173_v38 = vld [vmem:[#allocation15 + $0x50c] ss:$16 sps:$4 sm:$0xff]   ;;  %v22168_v39 = vld [vmem:[#allocation15 + $0x500] ss:$16 sps:$4 sm:$0xff]  }
 0xdae   :  { %13155 = vmatmul.mubr.bf16.vlgmr.msra.gmra.mxu1 %v24542_v15  ;;  %13208 = vmatmul.mubr.bf16.vlgmr.msra.gmra.mxu0 %v24542_v15 }
 0xdaf   :  { %13422 = vmatpush1.bf16.msra.mxu1 %v22078_v26  ;;  %13475 = vmatpush1.bf16.msra.mxu0 %v22081_v1  ;;  %v22171_v26 = vld [vmem:[#allocation15 + $0x508] ss:$16 sps:$4 sm:$0xff]   ;;  %v22176_v1 = vld [vmem:[#allocation15 + $0x6e4] ss:$16 sps:$4 sm:$0xff]  }
 0xdb0   :  { %13423 = vmatprep.subr.bf16.mxu1 %v22086_v7  ;;  %13476 = vmatprep.subr.bf16.mxu0 %v22089_v21  ;;  %v22179_v7 = vld [vmem:[#allocation15 + $0x6ec] ss:$16 sps:$4 sm:$0xff]   ;;  %v22174_v21 = vld [vmem:[#allocation15 + $0x6e0] ss:$16 sps:$4 sm:$0xff]  }
 0xdb1   :  { %13164 = vmatprep.mubr.bf16.mxu1 %v25581_v16  ;;  %13217 = vmatprep.mubr.bf16.mxu0 %v25581_v16 }
 0xdb3   :  { %13424 = vmatpush1.bf16.msra.mxu1 %v22084_v3  ;;  %13477 = vmatpush1.bf16.msra.mxu0 %v22087_v28  ;;  %v22177_v3 = vld [vmem:[#allocation15 + $0x6e8] ss:$16 sps:$4 sm:$0xff]   ;;  %v22182_v28 = vld [vmem:[#allocation15 + $0x6c4] ss:$16 sps:$4 sm:$0xff]  }
 0xdb4   :  { %13425 = vmatprep.subr.bf16.mxu1 %v22092_v36  ;;  %13478 = vmatprep.subr.bf16.mxu0 %v22095_v60  ;;  %v22185_v36 = vld [vmem:[#allocation15 + $0x6cc] ss:$16 sps:$4 sm:$0xff]   ;;  %v22180_v60 = vld [vmem:[#allocation15 + $0x6c0] ss:$16 sps:$4 sm:$0xff]  }
 0xdb6   :  { %13165 = vmatmul.mubr.bf16.gmra.mxu1 %v24548_v34  ;;  %13218 = vmatmul.mubr.bf16.gmra.mxu0 %v24548_v34 }
 0xdb7   :  { %13426 = vmatpush1.bf16.msra.mxu1 %v22090_v29  ;;  %13479 = vmatpush1.bf16.msra.mxu0 %v22093_v23  ;;  %v22183_v29 = vld [vmem:[#allocation15 + $0x6c8] ss:$16 sps:$4 sm:$0xff]   ;;  %v22188_v23 = vld [vmem:[#allocation15 + $0x6a4] ss:$16 sps:$4 sm:$0xff]  }
 0xdb8   :  { %13427 = vmatprep.subr.bf16.mxu1 %v22098_v57  ;;  %13480 = vmatprep.subr.bf16.mxu0 %v22101_v63  ;;  %v22191_v57 = vld [vmem:[#allocation15 + $0x6ac] ss:$16 sps:$4 sm:$0xff]   ;;  %v22186_v63 = vld [vmem:[#allocation15 + $0x6a0] ss:$16 sps:$4 sm:$0xff]  }
 0xdb9   :  { %13453 = vmatprep.mubr.bf16.mxu1 %v25581_v16  ;;  %13506 = vmatprep.mubr.bf16.mxu0 %v25581_v16 }
 0xdbb   :  { %13428 = vmatpush1.bf16.msra.mxu1 %v22096_v62  ;;  %13481 = vmatpush1.bf16.msra.mxu0 %v22099_v18  ;;  %v22189_v62 = vld [vmem:[#allocation15 + $0x6a8] ss:$16 sps:$4 sm:$0xff]   ;;  %v22194_v18 = vld [vmem:[#allocation15 + $0x684] ss:$16 sps:$4 sm:$0xff]  }
 0xdbc   :  { %13429 = vmatprep.subr.bf16.mxu1 %v22104_v41  ;;  %13482 = vmatprep.subr.bf16.mxu0 %v22107_v54  ;;  %v22197_v41 = vld [vmem:[#allocation15 + $0x68c] ss:$16 sps:$4 sm:$0xff]   ;;  %v22192_v54 = vld [vmem:[#allocation15 + $0x680] ss:$16 sps:$4 sm:$0xff]  }
 0xdbf   :  { %13430 = vmatpush1.bf16.msra.mxu1 %v22102_v42  ;;  %13483 = vmatpush1.bf16.msra.mxu0 %v22105_v17  ;;  %v22195_v42 = vld [vmem:[#allocation15 + $0x688] ss:$16 sps:$4 sm:$0xff]   ;;  %v22200_v17 = vld [vmem:[#allocation15 + $0x664] ss:$16 sps:$4 sm:$0xff]  }
 0xdc0   :  { %13431 = vmatprep.subr.bf16.mxu1 %v22110_v40  ;;  %13484 = vmatprep.subr.bf16.mxu0 %v22113_v56  ;;  %v22203_v40 = vld [vmem:[#allocation15 + $0x66c] ss:$16 sps:$4 sm:$0xff]   ;;  %v22198_v56 = vld [vmem:[#allocation15 + $0x660] ss:$16 sps:$4 sm:$0xff]  }
 0xdc3   :  { %13432 = vmatpush1.bf16.msra.mxu1 %v22108_v4  ;;  %13485 = vmatpush1.bf16.msra.mxu0 %v22111_v61  ;;  %v22201_v4 = vld [vmem:[#allocation15 + $0x668] ss:$16 sps:$4 sm:$0xff]   ;;  %v22206_v61 = vld [vmem:[#allocation15 + $0x644] ss:$16 sps:$4 sm:$0xff]  }
 0xdc4   :  { %13433 = vmatprep.subr.bf16.mxu1 %v22116_v24  ;;  %13486 = vmatprep.subr.bf16.mxu0 %v22119_v47  ;;  %v22209_v24 = vld [vmem:[#allocation15 + $0x64c] ss:$16 sps:$4 sm:$0xff]   ;;  %v22204_v47 = vld [vmem:[#allocation15 + $0x640] ss:$16 sps:$4 sm:$0xff]  }
 0xdc7   :  { %13434 = vmatpush1.bf16.msra.mxu1 %v22114_v35  ;;  %13487 = vmatpush1.bf16.msra.mxu0 %v22117_v48  ;;  %v22207_v35 = vld [vmem:[#allocation15 + $0x648] ss:$16 sps:$4 sm:$0xff]   ;;  %v22212_v48 = vld [vmem:[#allocation15 + $0x624] ss:$16 sps:$4 sm:$0xff]  }
 0xdc8   :  { %13435 = vmatprep.subr.bf16.mxu1 %v22122_v53  ;;  %13488 = vmatprep.subr.bf16.mxu0 %v22125_v55  ;;  %v22215_v53 = vld [vmem:[#allocation15 + $0x62c] ss:$16 sps:$4 sm:$0xff]   ;;  %v22210_v55 = vld [vmem:[#allocation15 + $0x620] ss:$16 sps:$4 sm:$0xff]  }
 0xdcb   :  { %13436 = vmatpush1.bf16.msra.mxu1 %v22120_v50  ;;  %13489 = vmatpush1.bf16.msra.mxu0 %v22123_v46  ;;  %v22213_v50 = vld [vmem:[#allocation15 + $0x628] ss:$16 sps:$4 sm:$0xff]   ;;  %v22218_v46 = vld [vmem:[#allocation15 + $0x604] ss:$16 sps:$4 sm:$0xff]  }
 0xdcc   :  { %13720 = vmatprep.subr.bf16.mxu1 %v22128_v22  ;;  %13773 = vmatprep.subr.bf16.mxu0 %v22131_v25  ;;  %v22221_v22 = vld [vmem:[#allocation15 + $0x60c] ss:$16 sps:$4 sm:$0xff]   ;;  %v22216_v25 = vld [vmem:[#allocation15 + $0x600] ss:$16 sps:$4 sm:$0xff]  }
 0xdce   :  { %13454 = vmatmul.mubr.bf16.vlgmr.msra.gmra.mxu1 %v24542_v15  ;;  %13507 = vmatmul.mubr.bf16.vlgmr.msra.gmra.mxu0 %v24542_v15 }
 0xdcf   :  { %13721 = vmatpush1.bf16.msra.mxu1 %v22126_v11  ;;  %13774 = vmatpush1.bf16.msra.mxu0 %v22129_v31  ;;  %v22219_v11 = vld [vmem:[#allocation15 + $0x608] ss:$16 sps:$4 sm:$0xff]   ;;  %v22224_v31 = vld [vmem:[#allocation15 + $0x7e4] ss:$16 sps:$4 sm:$0xff]  }
 0xdd0   :  { %13722 = vmatprep.subr.bf16.mxu1 %v22134_v32  ;;  %13775 = vmatprep.subr.bf16.mxu0 %v22137_v27  ;;  %v22227_v32 = vld [vmem:[#allocation15 + $0x7ec] ss:$16 sps:$4 sm:$0xff]   ;;  %v22222_v27 = vld [vmem:[#allocation15 + $0x7e0] ss:$16 sps:$4 sm:$0xff]  }
 0xdd1   :  { %13463 = vmatprep.mubr.bf16.mxu1 %v25581_v16  ;;  %13516 = vmatprep.mubr.bf16.mxu0 %v25581_v16 }
 0xdd3   :  { %13723 = vmatpush1.bf16.msra.mxu1 %v22132_v59  ;;  %13776 = vmatpush1.bf16.msra.mxu0 %v22135_v45  ;;  %v22225_v59 = vld [vmem:[#allocation15 + $0x7e8] ss:$16 sps:$4 sm:$0xff]   ;;  %v22230_v45 = vld [vmem:[#allocation15 + $0x7c4] ss:$16 sps:$4 sm:$0xff]  }
 0xdd4   :  { %13724 = vmatprep.subr.bf16.mxu1 %v22140_v49  ;;  %13777 = vmatprep.subr.bf16.mxu0 %v22143_v8  ;;  %v22233_v49 = vld [vmem:[#allocation15 + $0x7cc] ss:$16 sps:$4 sm:$0xff]  }
 0xdd6   :  { %13464 = vmatmul.mubr.bf16.gmra.mxu1 %v24548_v34  ;;  %13517 = vmatmul.mubr.bf16.gmra.mxu0 %v24548_v34 }
 0xdd7   :  { %13725 = vmatpush1.bf16.msra.mxu1 %v22138_v58  ;;  %13778 = vmatpush1.bf16.msra.mxu0 %v22141_v44  ;;  %v22228_v44 = vld [vmem:[#allocation15 + $0x7c0] ss:$16 sps:$4 sm:$0xff]  }
 0xdd8   :  { %13726 = vmatprep.subr.bf16.mxu1 %v22146_v19  ;;  %13779 = vmatprep.subr.bf16.mxu0 %v22149_v51  ;;  %v22231_v19 = vld [vmem:[#allocation15 + $0x7c8] ss:$16 sps:$4 sm:$0xff]  }
 0xdd9   :  { %13752 = vmatprep.mubr.bf16.mxu1 %v25581_v16  ;;  %13805 = vmatprep.mubr.bf16.mxu0 %v25581_v16 }
 0xddb   :  { %13727 = vmatpush1.bf16.msra.mxu1 %v22144_v52  ;;  %13780 = vmatpush1.bf16.msra.mxu0 %v22147_v33  ;;  %v22236_v33 = vld [vmem:[#allocation15 + $0x7a4] ss:$16 sps:$4 sm:$0xff]  }
 0xddc   :  { %13728 = vmatprep.subr.bf16.mxu1 %v22152_v9  ;;  %13781 = vmatprep.subr.bf16.mxu0 %v22155_v5  ;;  %v22239_v9 = vld [vmem:[#allocation15 + $0x7ac] ss:$16 sps:$4 sm:$0xff]  }
 0xddf   :  { %13729 = vmatpush1.bf16.msra.mxu1 %v22150_v2  ;;  %13782 = vmatpush1.bf16.msra.mxu0 %v22153_v14 }
 0xde0   :  { %13730 = vmatprep.subr.bf16.mxu1 %v22158_v0  ;;  %13783 = vmatprep.subr.bf16.mxu0 %v22161_v43  ;;  %v22234_v43 = vld [vmem:[#allocation15 + $0x7a0] ss:$16 sps:$4 sm:$0xff]   ;;  %v22350_v0 = vld [vmem:[#allocation15 + $0x944] ss:$16 sps:$4 sm:$0xff]  }
 0xde3   :  { %13731 = vmatpush1.bf16.msra.mxu1 %v22156_v30  ;;  %13784 = vmatpush1.bf16.msra.mxu0 %v22159_v13  ;;  %v22237_v30 = vld [vmem:[#allocation15 + $0x7a8] ss:$16 sps:$4 sm:$0xff]  }
 0xde4   :  { %13732 = vmatprep.subr.bf16.mxu1 %v22164_v6  ;;  %13785 = vmatprep.subr.bf16.mxu0 %v22167_v37  ;;  %v22242_v37 = vld [vmem:[#allocation15 + $0x784] ss:$16 sps:$4 sm:$0xff]  }
 0xde7   :  { %13733 = vmatpush1.bf16.msra.mxu1 %v22162_v20  ;;  %13786 = vmatpush1.bf16.msra.mxu0 %v22165_v12  ;;  %v22245_v20 = vld [vmem:[#allocation15 + $0x78c] ss:$16 sps:$4 sm:$0xff]  }
 0xde8   :  { %13734 = vmatprep.subr.bf16.mxu1 %v22170_v10  ;;  %13787 = vmatprep.subr.bf16.mxu0 %v22173_v38  ;;  %v22240_v38 = vld [vmem:[#allocation15 + $0x780] ss:$16 sps:$4 sm:$0xff]  }
 0xdeb   :  { %13735 = vmatpush1.bf16.msra.mxu1 %v22168_v39  ;;  %13788 = vmatpush1.bf16.msra.mxu0 %v22171_v26  ;;  %v22243_v39 = vld [vmem:[#allocation15 + $0x788] ss:$16 sps:$4 sm:$0xff]  }
 0xdec   :  { %14019 = vmatprep.subr.bf16.mxu1 %v22176_v1  ;;  %14072 = vmatprep.subr.bf16.mxu0 %v22179_v7  ;;  %v22248_v7 = vld [vmem:[#allocation15 + $0x764] ss:$16 sps:$4 sm:$0xff]  }
 0xdee   :  { %13753 = vmatmul.mubr.bf16.vlgmr.msra.gmra.mxu1 %v24542_v15  ;;  %13806 = vmatmul.mubr.bf16.vlgmr.msra.gmra.mxu0 %v24542_v15 }
 0xdef   :  { %14020 = vmatpush1.bf16.msra.mxu1 %v22174_v21  ;;  %14073 = vmatpush1.bf16.msra.mxu0 %v22177_v3  ;;  %v22251_v21 = vld [vmem:[#allocation15 + $0x76c] ss:$16 sps:$4 sm:$0xff]  }
 0xdf0   :  { %14021 = vmatprep.subr.bf16.mxu1 %v22182_v28  ;;  %14074 = vmatprep.subr.bf16.mxu0 %v22185_v36 }
 0xdf1   :  { %13762 = vmatprep.mubr.bf16.mxu1 %v25581_v16  ;;  %13815 = vmatprep.mubr.bf16.mxu0 %v25581_v16 }
 0xdf3   :  { %14022 = vmatpush1.bf16.msra.mxu1 %v22180_v60  ;;  %14075 = vmatpush1.bf16.msra.mxu0 %v22183_v29  ;;  %v22246_v29 = vld [vmem:[#allocation15 + $0x760] ss:$16 sps:$4 sm:$0xff]  }
 0xdf4   :  { %14023 = vmatprep.subr.bf16.mxu1 %v22188_v23  ;;  %14076 = vmatprep.subr.bf16.mxu0 %v22191_v57  ;;  %v22249_v23 = vld [vmem:[#allocation15 + $0x768] ss:$16 sps:$4 sm:$0xff]   ;;  %v22254_v57 = vld [vmem:[#allocation15 + $0x744] ss:$16 sps:$4 sm:$0xff]   ;;  %v22348_v60 = vld [vmem:[#allocation15 + $0x940] ss:$16 sps:$4 sm:$0xff]  }
 0xdf6   :  { %13763 = vmatmul.mubr.bf16.gmra.mxu1 %v24548_v34  ;;  %13816 = vmatmul.mubr.bf16.gmra.mxu0 %v24548_v34 }
 0xdf7   :  { %14024 = vmatpush1.bf16.msra.mxu1 %v22186_v63  ;;  %14077 = vmatpush1.bf16.msra.mxu0 %v22189_v62  ;;  %v22257_v63 = vld [vmem:[#allocation15 + $0x74c] ss:$16 sps:$4 sm:$0xff]   ;;  %v22252_v62 = vld [vmem:[#allocation15 + $0x740] ss:$16 sps:$4 sm:$0xff]  }
 0xdf8   :  { %14025 = vmatprep.subr.bf16.mxu1 %v22194_v18  ;;  %14078 = vmatprep.subr.bf16.mxu0 %v22197_v41  ;;  %v22255_v18 = vld [vmem:[#allocation15 + $0x748] ss:$16 sps:$4 sm:$0xff]   ;;  %v22260_v41 = vld [vmem:[#allocation15 + $0x724] ss:$16 sps:$4 sm:$0xff]  }
 0xdf9   :  { %14051 = vmatprep.mubr.bf16.mxu1 %v25581_v16  ;;  %14104 = vmatprep.mubr.bf16.mxu0 %v25581_v16 }
 0xdfb   :  { %14026 = vmatpush1.bf16.msra.mxu1 %v22192_v54  ;;  %14079 = vmatpush1.bf16.msra.mxu0 %v22195_v42  ;;  %v22263_v54 = vld [vmem:[#allocation15 + $0x72c] ss:$16 sps:$4 sm:$0xff]   ;;  %v22258_v42 = vld [vmem:[#allocation15 + $0x720] ss:$16 sps:$4 sm:$0xff]  }
 0xdfc   :  { %14027 = vmatprep.subr.bf16.mxu1 %v22200_v17  ;;  %14080 = vmatprep.subr.bf16.mxu0 %v22203_v40  ;;  %v22261_v17 = vld [vmem:[#allocation15 + $0x728] ss:$16 sps:$4 sm:$0xff]   ;;  %v22266_v40 = vld [vmem:[#allocation15 + $0x704] ss:$16 sps:$4 sm:$0xff]  }
 0xdff   :  { %14028 = vmatpush1.bf16.msra.mxu1 %v22198_v56  ;;  %14081 = vmatpush1.bf16.msra.mxu0 %v22201_v4  ;;  %v22269_v56 = vld [vmem:[#allocation15 + $0x70c] ss:$16 sps:$4 sm:$0xff]   ;;  %v22264_v4 = vld [vmem:[#allocation15 + $0x700] ss:$16 sps:$4 sm:$0xff]  }
 0xe00   :  { %14029 = vmatprep.subr.bf16.mxu1 %v22206_v61  ;;  %14082 = vmatprep.subr.bf16.mxu0 %v22209_v24  ;;  %v22267_v61 = vld [vmem:[#allocation15 + $0x708] ss:$16 sps:$4 sm:$0xff]   ;;  %v22272_v24 = vld [vmem:[#allocation15 + $0x8e4] ss:$16 sps:$4 sm:$0xff]  }
 0xe03   :  { %14030 = vmatpush1.bf16.msra.mxu1 %v22204_v47  ;;  %14083 = vmatpush1.bf16.msra.mxu0 %v22207_v35  ;;  %v22275_v47 = vld [vmem:[#allocation15 + $0x8ec] ss:$16 sps:$4 sm:$0xff]   ;;  %v22270_v35 = vld [vmem:[#allocation15 + $0x8e0] ss:$16 sps:$4 sm:$0xff]  }
 0xe04   :  { %14031 = vmatprep.subr.bf16.mxu1 %v22212_v48  ;;  %14084 = vmatprep.subr.bf16.mxu0 %v22215_v53  ;;  %v22273_v48 = vld [vmem:[#allocation15 + $0x8e8] ss:$16 sps:$4 sm:$0xff]  }
 0xe07   :  { %14032 = vmatpush1.bf16.msra.mxu1 %v22210_v55  ;;  %14085 = vmatpush1.bf16.msra.mxu0 %v22213_v50  ;;  %v22278_v50 = vld [vmem:[#allocation15 + $0x8c4] ss:$16 sps:$4 sm:$0xff]  }
 0xe08   :  { %14033 = vmatprep.subr.bf16.mxu1 %v22218_v46  ;;  %14086 = vmatprep.subr.bf16.mxu0 %v22221_v22  ;;  %v22281_v46 = vld [vmem:[#allocation15 + $0x8cc] ss:$16 sps:$4 sm:$0xff]  }
 0xe0b   :  { %14034 = vmatpush1.bf16.msra.mxu1 %v22216_v25  ;;  %14087 = vmatpush1.bf16.msra.mxu0 %v22219_v11  ;;  %v22276_v11 = vld [vmem:[#allocation15 + $0x8c0] ss:$16 sps:$4 sm:$0xff]  }
 0xe0c   :  { %14318 = vmatprep.subr.bf16.mxu1 %v22224_v31  ;;  %14371 = vmatprep.subr.bf16.mxu0 %v22227_v32  ;;  %v22279_v31 = vld [vmem:[#allocation15 + $0x8c8] ss:$16 sps:$4 sm:$0xff]  }
 0xe0e   :  { %14052 = vmatmul.mubr.bf16.vlgmr.msra.gmra.mxu1 %v24542_v15  ;;  %14105 = vmatmul.mubr.bf16.vlgmr.msra.gmra.mxu0 %v24542_v15  ;;  %v24596_v8 = vpop.f32.mrf.mxu1  ;;  %v24598_v58 = vpop.f32.mrf.mxu0 }
 0xe0f   :  { %25582 = vst [vmem:[#allocation24_spill] sm:$0xff] %v24598_v58  ;;  %14319 = vmatpush1.bf16.msra.mxu1 %v22222_v27  ;;  %14372 = vmatpush1.bf16.msra.mxu0 %v22225_v59  ;;  %v22284_v59 = vld [vmem:[#allocation15 + $0x8a4] ss:$16 sps:$4 sm:$0xff]   ;;  %v22389_v58 = vld [vmem:[#allocation15 + $0xa8c] ss:$16 sps:$4 sm:$0xff]  }
 0xe10   :  { %v24600_v51 = vpop.f32.mrf.mxu1  ;;  %v24602_v52 = vpop.f32.mrf.mxu0  ;;  %14320 = vmatprep.subr.bf16.mxu1 %v22230_v45  ;;  %14373 = vmatprep.subr.bf16.mxu0 %v22233_v49  ;;  %v22287_v45 = vld [vmem:[#allocation15 + $0x8ac] ss:$16 sps:$4 sm:$0xff]  }
 0xe11   :  { %25583 = vst [vmem:[#allocation25_spill] sm:$0xff] %v24602_v52  ;;  %14061 = vmatprep.mubr.bf16.mxu1 %v25581_v16  ;;  %14114 = vmatprep.mubr.bf16.mxu0 %v25581_v16 }
 0xe12   :  { %v24606_v5 = vpop.f32.mrf.mxu1  ;;  %v24608_v2 = vpop.f32.mrf.mxu0 }
 0xe13   :  { %25584 = vst [vmem:[#allocation26_spill] sm:$0xff] %v24608_v2  ;;  %14321 = vmatpush1.bf16.msra.mxu1 %v22228_v44  ;;  %14374 = vmatpush1.bf16.msra.mxu0 %v22231_v19  ;;  %v22392_v2 = vld [vmem:[#allocation15 + $0xa64] ss:$16 sps:$4 sm:$0xff]  }
 0xe14   :  { %v24614_v13 = vpop.f32.mrf.mxu1  ;;  %v24616_v6 = vpop.f32.mrf.mxu0  ;;  %14322 = vmatprep.subr.bf16.mxu1 %v22236_v33  ;;  %14375 = vmatprep.subr.bf16.mxu0 %v22239_v9  ;;  %v22282_v9 = vld [vmem:[#allocation15 + $0x8a0] ss:$16 sps:$4 sm:$0xff]   ;;  %v22351_v33 = vld [vmem:[#allocation15 + $0x948] ss:$16 sps:$4 sm:$0xff]  }
 0xe15   :  { %25585 = vst [vmem:[#allocation27_spill] sm:$0xff] %v24616_v6  ;;  %v22401_v6 = vld [vmem:[#allocation15 + $0xa4c] ss:$16 sps:$4 sm:$0xff]  }
 0xe16   :  { %14062 = vmatmul.mubr.bf16.gmra.mxu1 %v24548_v34  ;;  %14115 = vmatmul.mubr.bf16.gmra.mxu0 %v24548_v34  ;;  %v24620_v12 = vpop.f32.mrf.mxu1  ;;  %v24622_v10 = vpop.f32.mrf.mxu0 }
 0xe17   :  { %25586 = vst [vmem:[#allocation28_spill] sm:$0xff] %v24622_v10  ;;  %14323 = vmatpush1.bf16.msra.mxu1 %v22234_v43  ;;  %14376 = vmatpush1.bf16.msra.mxu0 %v22237_v30  ;;  %v22285_v43 = vld [vmem:[#allocation15 + $0x8a8] ss:$16 sps:$4 sm:$0xff]   ;;  %v22395_v10 = vld [vmem:[#allocation15 + $0xa6c] ss:$16 sps:$4 sm:$0xff]  }
 0xe18   :  { %v24624_v26 = vpop.f32.mrf.mxu1  ;;  %v24626_v1 = vpop.f32.mrf.mxu0  ;;  %14324 = vmatprep.subr.bf16.mxu1 %v22242_v37  ;;  %14377 = vmatprep.subr.bf16.mxu0 %v22245_v20  ;;  %v22290_v20 = vld [vmem:[#allocation15 + $0x884] ss:$16 sps:$4 sm:$0xff]  }
 0xe19   :  { %25587 = vst [vmem:[#allocation29_spill] sm:$0xff] %v24626_v1  ;;  %14350 = vmatprep.mubr.bf16.mxu1 %v25581_v16  ;;  %14403 = vmatprep.mubr.bf16.mxu0 %v25581_v16  ;;  %v22408_v1 = vld [vmem:[#allocation15 + $0xa00] ss:$16 sps:$4 sm:$0xff]  }
 0xe1a   :  { %v24630_v3 = vpop.f32.mrf.mxu1  ;;  %v24632_v28 = vpop.f32.mrf.mxu0 }
 0xe1b   :  { %25588 = vst [vmem:[#allocation30_spill] sm:$0xff] %v24632_v28  ;;  %14325 = vmatpush1.bf16.msra.mxu1 %v22240_v38  ;;  %14378 = vmatpush1.bf16.msra.mxu0 %v22243_v39  ;;  %v22293_v38 = vld [vmem:[#allocation15 + $0x88c] ss:$16 sps:$4 sm:$0xff]   ;;  %v22398_v28 = vld [vmem:[#allocation15 + $0xa44] ss:$16 sps:$4 sm:$0xff]  }
 0xe1c   :  { %14326 = vmatprep.subr.bf16.mxu1 %v22248_v7  ;;  %14379 = vmatprep.subr.bf16.mxu0 %v22251_v21  ;;  %v24638_v53 = vpop.f32.mrf.mxu1  ;;  %v24640_v55 = vpop.f32.mrf.mxu0  ;;  %v22288_v21 = vld [vmem:[#allocation15 + $0x880] ss:$16 sps:$4 sm:$0xff]  }
 0xe1d   :  { %25589 = vst [vmem:[#allocation31_spill] sm:$0xff] %v24640_v55  ;;  %v22405_v55 = vld [vmem:[#allocation15 + $0xa28] ss:$16 sps:$4 sm:$0xff]  }
 0xe1f   :  { %14327 = vmatpush1.bf16.msra.mxu1 %v22246_v29  ;;  %14380 = vmatpush1.bf16.msra.mxu0 %v22249_v23  ;;  %v22291_v29 = vld [vmem:[#allocation15 + $0x888] ss:$16 sps:$4 sm:$0xff]  }
 0xe20   :  { %14328 = vmatprep.subr.bf16.mxu1 %v22254_v57  ;;  %14381 = vmatprep.subr.bf16.mxu0 %v22257_v63  ;;  %v22296_v63 = vld [vmem:[#allocation15 + $0x864] ss:$16 sps:$4 sm:$0xff]  }
 0xe23   :  { %14329 = vmatpush1.bf16.msra.mxu1 %v22252_v62  ;;  %14382 = vmatpush1.bf16.msra.mxu0 %v22255_v18  ;;  %v22299_v62 = vld [vmem:[#allocation15 + $0x86c] ss:$16 sps:$4 sm:$0xff]  }
 0xe24   :  { %14330 = vmatprep.subr.bf16.mxu1 %v22260_v41  ;;  %14383 = vmatprep.subr.bf16.mxu0 %v22263_v54 }
 0xe27   :  { %14331 = vmatpush1.bf16.msra.mxu1 %v22258_v42  ;;  %14384 = vmatpush1.bf16.msra.mxu0 %v22261_v17  ;;  %v22294_v17 = vld [vmem:[#allocation15 + $0x860] ss:$16 sps:$4 sm:$0xff]   ;;  %v22356_v42 = vld [vmem:[#allocation15 + $0x924] ss:$16 sps:$4 sm:$0xff]  }
 0xe28   :  { %14332 = vmatprep.subr.bf16.mxu1 %v22266_v40  ;;  %14385 = vmatprep.subr.bf16.mxu0 %v22269_v56  ;;  %v22297_v40 = vld [vmem:[#allocation15 + $0x868] ss:$16 sps:$4 sm:$0xff]   ;;  %v22302_v56 = vld [vmem:[#allocation15 + $0x844] ss:$16 sps:$4 sm:$0xff]  }
 0xe2b   :  { %14333 = vmatpush1.bf16.msra.mxu1 %v22264_v4  ;;  %14386 = vmatpush1.bf16.msra.mxu0 %v22267_v61  ;;  %v22305_v4 = vld [vmem:[#allocation15 + $0x84c] ss:$16 sps:$4 sm:$0xff]   ;;  %v22300_v61 = vld [vmem:[#allocation15 + $0x840] ss:$16 sps:$4 sm:$0xff]  }
 0xe2c   :  { %14617 = vmatprep.subr.bf16.mxu1 %v22272_v24  ;;  %14670 = vmatprep.subr.bf16.mxu0 %v22275_v47  ;;  %v22303_v24 = vld [vmem:[#allocation15 + $0x848] ss:$16 sps:$4 sm:$0xff]   ;;  %v22308_v47 = vld [vmem:[#allocation15 + $0x824] ss:$16 sps:$4 sm:$0xff]  }
 0xe2e   :  { %v24642_v22 = vpop.f32.mrf.mxu1  ;;  %v24644_v25 = vpop.f32.mrf.mxu0  ;;  %14351 = vmatmul.mubr.bf16.vlgmr.msra.gmra.mxu1 %v24542_v15  ;;  %14404 = vmatmul.mubr.bf16.vlgmr.msra.gmra.mxu0 %v24542_v15 }
 0xe2f   :  { %25590 = vst [vmem:[#allocation32_spill] sm:$0xff] %v24644_v25  ;;  %14618 = vmatpush1.bf16.msra.mxu1 %v22270_v35  ;;  %14671 = vmatpush1.bf16.msra.mxu0 %v22273_v48  ;;  %v22311_v35 = vld [vmem:[#allocation15 + $0x82c] ss:$16 sps:$4 sm:$0xff]   ;;  %v22306_v48 = vld [vmem:[#allocation15 + $0x820] ss:$16 sps:$4 sm:$0xff]  }
 0xe30   :  { %v24648_v32 = vpop.f32.mrf.mxu1  ;;  %v24650_v27 = vpop.f32.mrf.mxu0  ;;  %14619 = vmatprep.subr.bf16.mxu1 %v22278_v50  ;;  %14672 = vmatprep.subr.bf16.mxu0 %v22281_v46  ;;  %v22309_v50 = vld [vmem:[#allocation15 + $0x828] ss:$16 sps:$4 sm:$0xff]   ;;  %v22314_v46 = vld [vmem:[#allocation15 + $0x804] ss:$16 sps:$4 sm:$0xff]  }
 0xe31   :  { %25591 = vst [vmem:[#allocation33_spill] sm:$0xff] %v24650_v27  ;;  %14360 = vmatprep.mubr.bf16.mxu1 %v25581_v16  ;;  %14413 = vmatprep.mubr.bf16.mxu0 %v25581_v16 }
 0xe32   :  { %v24654_v49 = vpop.f32.mrf.mxu1  ;;  %v24656_v44 = vpop.f32.mrf.mxu0 }
 0xe33   :  { %25592 = vst [vmem:[#allocation34_spill] sm:$0xff] %v24656_v44  ;;  %14620 = vmatpush1.bf16.msra.mxu1 %v22276_v11  ;;  %14673 = vmatpush1.bf16.msra.mxu0 %v22279_v31  ;;  %v22317_v11 = vld [vmem:[#allocation15 + $0x80c] ss:$16 sps:$4 sm:$0xff]   ;;  %v22312_v31 = vld [vmem:[#allocation15 + $0x800] ss:$16 sps:$4 sm:$0xff]  }
 0xe34   :  { %v24662_v30 = vpop.f32.mrf.mxu1  ;;  %v24664_v37 = vpop.f32.mrf.mxu0  ;;  %14621 = vmatprep.subr.bf16.mxu1 %v22284_v59  ;;  %14674 = vmatprep.subr.bf16.mxu0 %v22287_v45  ;;  %v22315_v59 = vld [vmem:[#allocation15 + $0x808] ss:$16 sps:$4 sm:$0xff]   ;;  %v22320_v45 = vld [vmem:[#allocation15 + $0x9e4] ss:$16 sps:$4 sm:$0xff]   ;;  %v22402_v44 = vld [vmem:[#allocation15 + $0xa20] ss:$16 sps:$4 sm:$0xff]  }
 0xe35   :  { %25593 = vst [vmem:[#allocation35_spill] sm:$0xff] %v24664_v37  ;;  %v22417_v37 = vld [vmem:[#allocation15 + $0xbe8] ss:$16 sps:$4 sm:$0xff]  }
 0xe36   :  { %v24666_v39 = vpop.f32.mrf.mxu1  ;;  %v24668_v7 = vpop.f32.mrf.mxu0  ;;  %14361 = vmatmul.mubr.bf16.gmra.mxu1 %v24548_v34  ;;  %14414 = vmatmul.mubr.bf16.gmra.mxu0 %v24548_v34 }
 0xe37   :  { %25594 = vst [vmem:[#allocation36_spill] sm:$0xff] %v24668_v7  ;;  %14622 = vmatpush1.bf16.msra.mxu1 %v22282_v9  ;;  %14675 = vmatpush1.bf16.msra.mxu0 %v22285_v43  ;;  %v22323_v9 = vld [vmem:[#allocation15 + $0x9ec] ss:$16 sps:$4 sm:$0xff]   ;;  %v22318_v43 = vld [vmem:[#allocation15 + $0x9e0] ss:$16 sps:$4 sm:$0xff]  }
 0xe38   :  { %v24672_v23 = vpop.f32.mrf.mxu1  ;;  %v24674_v57 = vpop.f32.mrf.mxu0  ;;  %14623 = vmatprep.subr.bf16.mxu1 %v22290_v20  ;;  %14676 = vmatprep.subr.bf16.mxu0 %v22293_v38  ;;  %v22321_v20 = vld [vmem:[#allocation15 + $0x9e8] ss:$16 sps:$4 sm:$0xff]  }
 0xe39   :  { %25595 = vst [vmem:[#allocation37_spill] sm:$0xff] %v24674_v57  ;;  %14649 = vmatprep.mubr.bf16.mxu1 %v25581_v16  ;;  %14702 = vmatprep.mubr.bf16.mxu0 %v25581_v16  ;;  %v22411_v7 = vld [vmem:[#allocation15 + $0xa08] ss:$16 sps:$4 sm:$0xff]  }
 0xe3a   :  { %v24678_v18 = vpop.f32.mrf.mxu1  ;;  %v24680_v41 = vpop.f32.mrf.mxu0 }
 0xe3b   :  { %25596 = vst [vmem:[#allocation38_spill] sm:$0xff] %v24680_v41  ;;  %14624 = vmatpush1.bf16.msra.mxu1 %v22288_v21  ;;  %14677 = vmatpush1.bf16.msra.mxu0 %v22291_v29  ;;  %v22326_v29 = vld [vmem:[#allocation15 + $0x9c4] ss:$16 sps:$4 sm:$0xff]   ;;  %v22414_v41 = vld [vmem:[#allocation15 + $0xbe0] ss:$16 sps:$4 sm:$0xff]  }
 0xe3c   :  { %14625 = vmatprep.subr.bf16.mxu1 %v22296_v63  ;;  %14678 = vmatprep.subr.bf16.mxu0 %v22299_v62  ;;  %v24686_v38 = vpop.f32.mrf.mxu1  ;;  %v24688_v21 = vpop.f32.mrf.mxu0  ;;  %v22329_v63 = vld [vmem:[#allocation15 + $0x9cc] ss:$16 sps:$4 sm:$0xff]  }
 0xe3d   :  { %25597 = vst [vmem:[#allocation39_spill] sm:$0xff] %v24688_v21 }
 0xe3f   :  { %14626 = vmatpush1.bf16.msra.mxu1 %v22294_v17  ;;  %14679 = vmatpush1.bf16.msra.mxu0 %v22297_v40  ;;  %v22324_v40 = vld [vmem:[#allocation15 + $0x9c0] ss:$16 sps:$4 sm:$0xff]  }
 0xe40   :  { %14627 = vmatprep.subr.bf16.mxu1 %v22302_v56  ;;  %14680 = vmatprep.subr.bf16.mxu0 %v22305_v4  ;;  %v22327_v56 = vld [vmem:[#allocation15 + $0x9c8] ss:$16 sps:$4 sm:$0xff]  }
 0xe43   :  { %14628 = vmatpush1.bf16.msra.mxu1 %v22300_v61  ;;  %14681 = vmatpush1.bf16.msra.mxu0 %v22303_v24  ;;  %v22332_v24 = vld [vmem:[#allocation15 + $0x9a4] ss:$16 sps:$4 sm:$0xff]  }
 0xe44   :  { %14629 = vmatprep.subr.bf16.mxu1 %v22308_v47  ;;  %14682 = vmatprep.subr.bf16.mxu0 %v22311_v35  ;;  %v22335_v47 = vld [vmem:[#allocation15 + $0x9ac] ss:$16 sps:$4 sm:$0xff]  }
 0xe47   :  { %14630 = vmatpush1.bf16.msra.mxu1 %v22306_v48  ;;  %14683 = vmatpush1.bf16.msra.mxu0 %v22309_v50  ;;  %v22381_v50 = vld [vmem:[#allocation15 + $0xaa8] ss:$16 sps:$4 sm:$0xff]  }
 0xe48   :  { %14631 = vmatprep.subr.bf16.mxu1 %v22314_v46  ;;  %14684 = vmatprep.subr.bf16.mxu0 %v22317_v11  ;;  %v22330_v11 = vld [vmem:[#allocation15 + $0x9a0] ss:$16 sps:$4 sm:$0xff]   ;;  %v22359_v46 = vld [vmem:[#allocation15 + $0x92c] ss:$16 sps:$4 sm:$0xff]  }
 0xe4b   :  { %14632 = vmatpush1.bf16.msra.mxu1 %v22312_v31  ;;  %14685 = vmatpush1.bf16.msra.mxu0 %v22315_v59  ;;  %v22333_v31 = vld [vmem:[#allocation15 + $0x9a8] ss:$16 sps:$4 sm:$0xff]  }
 0xe4c   :  { %14916 = vmatprep.subr.bf16.mxu1 %v22320_v45  ;;  %14969 = vmatprep.subr.bf16.mxu0 %v22323_v9  ;;  %v22338_v45 = vld [vmem:[#allocation15 + $0x984] ss:$16 sps:$4 sm:$0xff]   ;;  %v22341_v9 = vld [vmem:[#allocation15 + $0x98c] ss:$16 sps:$4 sm:$0xff]  }
 0xe4e   :  { %v24690_v62 = vpop.f32.mrf.mxu1  ;;  %v24692_v17 = vpop.f32.mrf.mxu0  ;;  %14650 = vmatmul.mubr.bf16.vlgmr.msra.gmra.mxu1 %v24542_v15  ;;  %14703 = vmatmul.mubr.bf16.vlgmr.msra.gmra.mxu0 %v24542_v15 }
 0xe4f   :  { %25598 = vst [vmem:[#allocation40_spill] sm:$0xff] %v24692_v17  ;;  %14917 = vmatpush1.bf16.msra.mxu1 %v22318_v43  ;;  %14970 = vmatpush1.bf16.msra.mxu0 %v22321_v20  ;;  %v22336_v20 = vld [vmem:[#allocation15 + $0x980] ss:$16 sps:$4 sm:$0xff]  }
 0xe50   :  { %v24696_v4 = vpop.f32.mrf.mxu1  ;;  %v24698_v61 = vpop.f32.mrf.mxu0  ;;  %14918 = vmatprep.subr.bf16.mxu1 %v22326_v29  ;;  %14971 = vmatprep.subr.bf16.mxu0 %v22329_v63  ;;  %v22339_v29 = vld [vmem:[#allocation15 + $0x988] ss:$16 sps:$4 sm:$0xff]  }
 0xe51   :  { %25599 = vst [vmem:[#allocation41_spill] sm:$0xff] %v24698_v61  ;;  %14659 = vmatprep.mubr.bf16.mxu1 %v25581_v16  ;;  %14712 = vmatprep.mubr.bf16.mxu0 %v25581_v16  ;;  %v22434_v61 = vld [vmem:[#allocation15 + $0xb84] ss:$16 sps:$4 sm:$0xff]  }
 0xe52   :  { %v24702_v35 = vpop.f32.mrf.mxu1  ;;  %v24704_v48 = vpop.f32.mrf.mxu0 }
 0xe53   :  { %25600 = vst [vmem:[#allocation42_spill] sm:$0xff] %v24704_v48  ;;  %14919 = vmatpush1.bf16.msra.mxu1 %v22324_v40  ;;  %14972 = vmatpush1.bf16.msra.mxu0 %v22327_v56  ;;  %v22344_v40 = vld [vmem:[#allocation15 + $0x964] ss:$16 sps:$4 sm:$0xff]   ;;  %v22347_v56 = vld [vmem:[#allocation15 + $0x96c] ss:$16 sps:$4 sm:$0xff]  }
 0xe54   :  { %v24710_v59 = vpop.f32.mrf.mxu1  ;;  %14920 = vmatprep.subr.bf16.mxu1 %v22332_v24  ;;  %14973 = vmatprep.subr.bf16.mxu0 %v22335_v47  ;;  %v22386_v47 = vld [vmem:[#allocation15 + $0xa84] ss:$16 sps:$4 sm:$0xff]  }
 0xe56   :  { %v24712_v43 = vpop.f32.mrf.mxu1  ;;  %14660 = vmatmul.mubr.bf16.gmra.mxu1 %v24548_v34  ;;  %14713 = vmatmul.mubr.bf16.gmra.mxu0 %v24548_v34 }
 0xe57   :  { %14921 = vmatpush1.bf16.msra.mxu1 %v22330_v11  ;;  %14974 = vmatpush1.bf16.msra.mxu0 %v22333_v31  ;;  %v22342_v11 = vld [vmem:[#allocation15 + $0x960] ss:$16 sps:$4 sm:$0xff]   ;;  %v22345_v31 = vld [vmem:[#allocation15 + $0x968] ss:$16 sps:$4 sm:$0xff]  }
 0xe58   :  { %v24716_v63 = vpop.f32.mrf.mxu1  ;;  %14922 = vmatprep.subr.bf16.mxu1 %v22338_v45  ;;  %14975 = vmatprep.subr.bf16.mxu0 %v22341_v9  ;;  %v22353_v45 = vld [vmem:[#allocation15 + $0x94c] ss:$16 sps:$4 sm:$0xff]   ;;  %v24724_v9 = vpop.f32.mrf.mxu0 }
 0xe59   :  { %14948 = vmatprep.mubr.bf16.mxu1 %v25581_v16  ;;  %15001 = vmatprep.mubr.bf16.mxu0 %v25581_v16  ;;  %25601 = vst [vmem:[#allocation43_spill] sm:$0xff] %v24724_v9 }
 0xe5a   :  { %v24720_v24 = vpop.f32.mrf.mxu1  ;;  %v24726_v14 = vpop.f32.mrf.mxu0 }
 0xe5b   :  { %14923 = vmatpush1.bf16.msra.mxu1 %v22336_v20  ;;  %14976 = vmatpush1.bf16.msra.mxu0 %v22339_v29  ;;  %25602 = vst [vmem:[#allocation44_spill] sm:$0xff] %v24726_v14  ;;  %v22354_v20 = vld [vmem:[#allocation15 + $0x920] ss:$16 sps:$4 sm:$0xff]   ;;  %v22357_v29 = vld [vmem:[#allocation15 + $0x928] ss:$16 sps:$4 sm:$0xff]  }
 0xe5c   :  { %14924 = vmatprep.subr.bf16.mxu1 %v22344_v40  ;;  %14977 = vmatprep.subr.bf16.mxu0 %v22347_v56  ;;  %v22362_v40 = vld [vmem:[#allocation15 + $0x904] ss:$16 sps:$4 sm:$0xff]   ;;  %v22365_v56 = vld [vmem:[#allocation15 + $0x90c] ss:$16 sps:$4 sm:$0xff]   ;;  %v24728_v36 = vpop.f32.mrf.mxu0  ;;  %v24732_v54 = vpop.f32.mrf.mxu1 }
 0xe5d   :  { %25603 = vst [vmem:[#allocation45_spill] sm:$0xff] %v24728_v36  ;;  %v22440_v14 = vld [vmem:[#allocation15 + $0xb64] ss:$16 sps:$4 sm:$0xff]  }
 0xe5e   :  { %v24730_v19 = vpop.f32.mrf.mxu0  ;;  %v22446_v36 = vld [vmem:[#allocation15 + $0xb44] ss:$16 sps:$4 sm:$0xff]  }
 0xe5f   :  { %14925 = vmatpush1.bf16.msra.mxu1 %v22342_v11  ;;  %14978 = vmatpush1.bf16.msra.mxu0 %v22345_v31  ;;  %v22360_v11 = vld [vmem:[#allocation15 + $0x900] ss:$16 sps:$4 sm:$0xff]   ;;  %v22363_v31 = vld [vmem:[#allocation15 + $0x908] ss:$16 sps:$4 sm:$0xff]   ;;  %25604 = vst [vmem:[#allocation46_spill] sm:$0xff] %v24730_v19 }
 0xe60   :  { %14926 = vmatprep.subr.bf16.mxu1 %v22350_v0  ;;  %14979 = vmatprep.subr.bf16.mxu0 %v22353_v45  ;;  %v22368_v0 = vld [vmem:[#allocation15 + $0xae4] ss:$16 sps:$4 sm:$0xff]   ;;  %v22371_v45 = vld [vmem:[#allocation15 + $0xaec] ss:$16 sps:$4 sm:$0xff]  }
 0xe61   :  { %v22437_v19 = vld [vmem:[#allocation15 + $0xb8c] ss:$16 sps:$4 sm:$0xff]  }
 0xe63   :  { %14927 = vmatpush1.bf16.msra.mxu1 %v22348_v60  ;;  %14980 = vmatpush1.bf16.msra.mxu0 %v22351_v33  ;;  %v22366_v60 = vld [vmem:[#allocation15 + $0xae0] ss:$16 sps:$4 sm:$0xff]   ;;  %v22369_v33 = vld [vmem:[#allocation15 + $0xae8] ss:$16 sps:$4 sm:$0xff]  }
 0xe64   :  { %14928 = vmatprep.subr.bf16.mxu1 %v22356_v42  ;;  %14981 = vmatprep.subr.bf16.mxu0 %v22359_v46  ;;  %v22374_v42 = vld [vmem:[#allocation15 + $0xac4] ss:$16 sps:$4 sm:$0xff]   ;;  %v22377_v46 = vld [vmem:[#allocation15 + $0xacc] ss:$16 sps:$4 sm:$0xff]  }
 0xe67   :  { %14929 = vmatpush1.bf16.msra.mxu1 %v22354_v20  ;;  %14982 = vmatpush1.bf16.msra.mxu0 %v22357_v29  ;;  %v24734_v20 = vpop.f32.mrf.mxu0  ;;  %v22372_v29 = vld [vmem:[#allocation15 + $0xac0] ss:$16 sps:$4 sm:$0xff]  }
 0xe68   :  { %14930 = vmatprep.subr.bf16.mxu1 %v22362_v40  ;;  %14983 = vmatprep.subr.bf16.mxu0 %v22365_v56  ;;  %25605 = vst [vmem:[#allocation47_spill] sm:$0xff] %v24734_v20  ;;  %v22375_v40 = vld [vmem:[#allocation15 + $0xac8] ss:$16 sps:$4 sm:$0xff]  }
 0xe6b   :  { %14931 = vmatpush1.bf16.msra.mxu1 %v22360_v11  ;;  %14984 = vmatpush1.bf16.msra.mxu0 %v22363_v31  ;;  %v22380_v31 = vld [vmem:[#allocation15 + $0xaa4] ss:$16 sps:$4 sm:$0xff]  }
 0xe6c   :  { %15215 = vmatprep.subr.bf16.mxu1 %v22368_v0  ;;  %15268 = vmatprep.subr.bf16.mxu0 %v22371_v45  ;;  %v22383_v0 = vld [vmem:[#allocation15 + $0xaac] ss:$16 sps:$4 sm:$0xff]   ;;  %v22378_v45 = vld [vmem:[#allocation15 + $0xaa0] ss:$16 sps:$4 sm:$0xff]  }
 0xe6e   :  { %14949 = vmatmul.mubr.bf16.vlgmr.msra.gmra.mxu1 %v24542_v15  ;;  %15002 = vmatmul.mubr.bf16.vlgmr.msra.gmra.mxu0 %v24542_v15  ;;  %v24738_v56 = vpop.f32.mrf.mxu1  ;;  %v24740_v11 = vpop.f32.mrf.mxu0 }
 0xe6f   :  { %15216 = vmatpush1.bf16.msra.mxu1 %v22366_v60  ;;  %15269 = vmatpush1.bf16.msra.mxu0 %v22369_v33  ;;  %25606 = vst [vmem:[#allocation48_spill] sm:$0xff] %v24740_v11  ;;  %v22456_v11 = vld [vmem:[#allocation15 + $0xb00] ss:$16 sps:$4 sm:$0xff]  }
 0xe70   :  { %15217 = vmatprep.subr.bf16.mxu1 %v22374_v42  ;;  %15270 = vmatprep.subr.bf16.mxu0 %v22377_v46  ;;  %v24744_v60 = vpop.f32.mrf.mxu1  ;;  %v24746_v33 = vpop.f32.mrf.mxu0  ;;  %v22384_v42 = vld [vmem:[#allocation15 + $0xa80] ss:$16 sps:$4 sm:$0xff]   ;;  %v22387_v46 = vld [vmem:[#allocation15 + $0xa88] ss:$16 sps:$4 sm:$0xff]  }
 0xe71   :  { %14958 = vmatprep.mubr.bf16.mxu1 %v25581_v16  ;;  %15011 = vmatprep.mubr.bf16.mxu0 %v25581_v16  ;;  %25607 = vst [vmem:[#allocation49_spill] sm:$0xff] %v24746_v33 }
 0xe73   :  { %15218 = vmatpush1.bf16.msra.mxu1 %v22372_v29  ;;  %15271 = vmatpush1.bf16.msra.mxu0 %v22375_v40  ;;  %v24750_v29 = vpop.f32.mrf.mxu1  ;;  %v24752_v40 = vpop.f32.mrf.mxu0 }
 0xe74   :  { %15219 = vmatprep.subr.bf16.mxu1 %v22380_v31  ;;  %15272 = vmatprep.subr.bf16.mxu0 %v22383_v0  ;;  %25608 = vst [vmem:[#allocation50_spill] sm:$0xff] %v24752_v40  ;;  %v22390_v31 = vld [vmem:[#allocation15 + $0xa60] ss:$16 sps:$4 sm:$0xff]   ;;  %v22393_v0 = vld [vmem:[#allocation15 + $0xa68] ss:$16 sps:$4 sm:$0xff]  }
 0xe75   :  { %v22449_v40 = vld [vmem:[#allocation15 + $0xb4c] ss:$16 sps:$4 sm:$0xff]  }
 0xe76   :  { %14959 = vmatmul.mubr.bf16.gmra.mxu1 %v24548_v34  ;;  %15012 = vmatmul.mubr.bf16.gmra.mxu0 %v24548_v34 }
 0xe77   :  { %15220 = vmatpush1.bf16.msra.mxu1 %v22378_v45  ;;  %15273 = vmatpush1.bf16.msra.mxu0 %v22381_v50  ;;  %v24756_v45 = vpop.f32.mrf.mxu1  ;;  %v24758_v50 = vpop.f32.mrf.mxu0 }
 0xe78   :  { %15221 = vmatprep.subr.bf16.mxu1 %v22386_v47  ;;  %15274 = vmatprep.subr.bf16.mxu0 %v22389_v58  ;;  %25609 = vst [vmem:[#allocation51_spill] sm:$0xff] %v24758_v50  ;;  %v22396_v58 = vld [vmem:[#allocation15 + $0xa40] ss:$16 sps:$4 sm:$0xff]   ;;  %v22399_v47 = vld [vmem:[#allocation15 + $0xa48] ss:$16 sps:$4 sm:$0xff]  }
 0xe79   :  { %15247 = vmatprep.mubr.bf16.mxu1 %v25581_v16  ;;  %15300 = vmatprep.mubr.bf16.mxu0 %v25581_v16  ;;  %v24760_v52 = vpop.f32.mrf.mxu1  ;;  %v24762_v25 = vpop.f32.mrf.mxu0  ;;  %v22461_v50 = vld [vmem:[#allocation15 + $0xb0c] ss:$16 sps:$4 sm:$0xff]  }
 0xe7a   :  { %25610 = vst [vmem:[#allocation52_spill] sm:$0xff] %v24762_v25 }
 0xe7b   :  { %15222 = vmatpush1.bf16.msra.mxu1 %v22384_v42  ;;  %15275 = vmatpush1.bf16.msra.mxu0 %v22387_v46  ;;  %v22404_v42 = vld [vmem:[#allocation15 + $0xa24] ss:$16 sps:$4 sm:$0xff]   ;;  %v22407_v46 = vld [vmem:[#allocation15 + $0xa2c] ss:$16 sps:$4 sm:$0xff]  }
 0xe7c   :  { %15223 = vmatprep.subr.bf16.mxu1 %v22392_v2  ;;  %15276 = vmatprep.subr.bf16.mxu0 %v22395_v10  ;;  %v24764_v2 = vpop.f32.mrf.mxu1  ;;  %v24766_v10 = vpop.f32.mrf.mxu0 }
 0xe7d   :  { %25611 = vst [vmem:[#allocation53_spill] sm:$0xff] %v24766_v10  ;;  %v22540_v10 = vld [vmem:[#allocation15 + $0xd40] ss:$16 sps:$4 sm:$0xff]  }
 0xe7f   :  { %15224 = vmatpush1.bf16.msra.mxu1 %v22390_v31  ;;  %15277 = vmatpush1.bf16.msra.mxu0 %v22393_v0  ;;  %v22410_v31 = vld [vmem:[#allocation15 + $0xa04] ss:$16 sps:$4 sm:$0xff]   ;;  %v22413_v0 = vld [vmem:[#allocation15 + $0xa0c] ss:$16 sps:$4 sm:$0xff]  }
 0xe80   :  { %15225 = vmatprep.subr.bf16.mxu1 %v22398_v28  ;;  %15278 = vmatprep.subr.bf16.mxu0 %v22401_v6  ;;  %v24768_v28 = vpop.f32.mrf.mxu1  ;;  %v24770_v6 = vpop.f32.mrf.mxu0 }
 0xe81   :  { %25612 = vst [vmem:[#allocation54_spill] sm:$0xff] %v24770_v6 }
 0xe83   :  { %15226 = vmatpush1.bf16.msra.mxu1 %v22396_v58  ;;  %15279 = vmatpush1.bf16.msra.mxu0 %v22399_v47  ;;  %v22416_v58 = vld [vmem:[#allocation15 + $0xbe4] ss:$16 sps:$4 sm:$0xff]   ;;  %v22419_v47 = vld [vmem:[#allocation15 + $0xbec] ss:$16 sps:$4 sm:$0xff]  }
 0xe84   :  { %15227 = vmatprep.subr.bf16.mxu1 %v22404_v42  ;;  %15280 = vmatprep.subr.bf16.mxu0 %v22407_v46  ;;  %v24772_v42 = vpop.f32.mrf.mxu1  ;;  %v24774_v46 = vpop.f32.mrf.mxu0 }
 0xe85   :  { %25613 = vst [vmem:[#allocation55_spill] sm:$0xff] %v24774_v46 }
 0xe87   :  { %15228 = vmatpush1.bf16.msra.mxu1 %v22402_v44  ;;  %15281 = vmatpush1.bf16.msra.mxu0 %v22405_v55  ;;  %v22422_v55 = vld [vmem:[#allocation15 + $0xbc4] ss:$16 sps:$4 sm:$0xff]   ;;  %v22425_v44 = vld [vmem:[#allocation15 + $0xbcc] ss:$16 sps:$4 sm:$0xff]  }
 0xe88   :  { %15229 = vmatprep.subr.bf16.mxu1 %v22410_v31  ;;  %15282 = vmatprep.subr.bf16.mxu0 %v22413_v0 }
 0xe8b   :  { %15230 = vmatpush1.bf16.msra.mxu1 %v22408_v1  ;;  %15283 = vmatpush1.bf16.msra.mxu0 %v22411_v7  ;;  %v22420_v1 = vld [vmem:[#allocation15 + $0xbc0] ss:$16 sps:$4 sm:$0xff]   ;;  %v22423_v7 = vld [vmem:[#allocation15 + $0xbc8] ss:$16 sps:$4 sm:$0xff]  }
 0xe8c   :  { %15514 = vmatprep.subr.bf16.mxu1 %v22416_v58  ;;  %15567 = vmatprep.subr.bf16.mxu0 %v22419_v47  ;;  %v22428_v58 = vld [vmem:[#allocation15 + $0xba4] ss:$16 sps:$4 sm:$0xff]   ;;  %v22431_v47 = vld [vmem:[#allocation15 + $0xbac] ss:$16 sps:$4 sm:$0xff]  }
 0xe8e   :  { %v24776_v27 = vpop.f32.mrf.mxu1  ;;  %v24778_v17 = vpop.f32.mrf.mxu0  ;;  %15248 = vmatmul.mubr.bf16.vlgmr.msra.gmra.mxu1 %v24542_v15  ;;  %15301 = vmatmul.mubr.bf16.vlgmr.msra.gmra.mxu0 %v24542_v15 }
 0xe8f   :  { %25614 = vst [vmem:[#allocation56_spill] sm:$0xff] %v24776_v27  ;;  %25615 = vst [vmem:[#allocation57_spill] sm:$0xff] %v24778_v17  ;;  %15515 = vmatpush1.bf16.msra.mxu1 %v22414_v41  ;;  %15568 = vmatpush1.bf16.msra.mxu0 %v22417_v37  ;;  %v22443_v37 = vld [vmem:[#allocation15 + $0xb6c] ss:$16 sps:$4 sm:$0xff]   ;;  %v22500_v27 = vld [vmem:[#allocation15 + $0xc24] ss:$16 sps:$4 sm:$0xff]  }
 0xe90   :  { %v24782_v31 = vpop.f32.mrf.mxu1  ;;  %v24784_v0 = vpop.f32.mrf.mxu0  ;;  %15516 = vmatprep.subr.bf16.mxu1 %v22422_v55  ;;  %15569 = vmatprep.subr.bf16.mxu0 %v22425_v44  ;;  %v22426_v55 = vld [vmem:[#allocation15 + $0xba0] ss:$16 sps:$4 sm:$0xff]   ;;  %v22429_v44 = vld [vmem:[#allocation15 + $0xba8] ss:$16 sps:$4 sm:$0xff]  }
 0xe91   :  { %25616 = vst [vmem:[#allocation58_spill] sm:$0xff] %v24782_v31  ;;  %25617 = vst [vmem:[#allocation59_spill] sm:$0xff] %v24784_v0  ;;  %15257 = vmatprep.mubr.bf16.mxu1 %v25581_v16  ;;  %15310 = vmatprep.mubr.bf16.mxu0 %v25581_v16  ;;  %v22543_v31 = vld [vmem:[#allocation15 + $0xd48] ss:$16 sps:$4 sm:$0xff]  }
 0xe92   :  { %v24788_v48 = vpop.f32.mrf.mxu1  ;;  %v24790_v21 = vpop.f32.mrf.mxu0 }
 0xe93   :  { %25618 = vst [vmem:[#allocation60_spill] sm:$0xff] %v24788_v48  ;;  %25619 = vst [vmem:[#allocation61_spill] sm:$0xff] %v24790_v21  ;;  %15517 = vmatpush1.bf16.msra.mxu1 %v22420_v1  ;;  %15570 = vmatpush1.bf16.msra.mxu0 %v22423_v7  ;;  %v22432_v7 = vld [vmem:[#allocation15 + $0xb80] ss:$16 sps:$4 sm:$0xff]   ;;  %v22503_v48 = vld [vmem:[#allocation15 + $0xc2c] ss:$16 sps:$4 sm:$0xff]  }
 0xe94   :  { %v24796_v57 = vpop.f32.mrf.mxu1  ;;  %v24798_v9 = vpop.f32.mrf.mxu0  ;;  %15518 = vmatprep.subr.bf16.mxu1 %v22428_v58  ;;  %15571 = vmatprep.subr.bf16.mxu0 %v22431_v47  ;;  %v22435_v58 = vld [vmem:[#allocation15 + $0xb88] ss:$16 sps:$4 sm:$0xff]  }
 0xe95   :  { %25620 = vst [vmem:[#allocation62_spill] sm:$0xff] %v24796_v57  ;;  %25621 = vst [vmem:[#allocation63_spill] sm:$0xff] %v24798_v9  ;;  %v22548_v57 = vld [vmem:[#allocation15 + $0xd24] ss:$16 sps:$4 sm:$0xff]  }
 0xe96   :  { %v24804_v20 = vpop.f32.mrf.mxu1  ;;  %v24806_v1 = vpop.f32.mrf.mxu0  ;;  %15258 = vmatmul.mubr.bf16.gmra.mxu1 %v24548_v34  ;;  %15311 = vmatmul.mubr.bf16.gmra.mxu0 %v24548_v34 }
 0xe97   :  { %25622 = vst [vmem:[#allocation64_spill] sm:$0xff] %v24804_v20  ;;  %25623 = vst [vmem:[#allocation65_spill] sm:$0xff] %v24806_v1  ;;  %15519 = vmatpush1.bf16.msra.mxu1 %v22426_v55  ;;  %15572 = vmatpush1.bf16.msra.mxu0 %v22429_v44  ;;  %v22452_v44 = vld [vmem:[#allocation15 + $0xb24] ss:$16 sps:$4 sm:$0xff]   ;;  %v22455_v1 = vld [vmem:[#allocation15 + $0xb2c] ss:$16 sps:$4 sm:$0xff]  }
 0xe98   :  { %v24810_v47 = vpop.f32.mrf.mxu1  ;;  %v24812_v41 = vpop.f32.mrf.mxu0  ;;  %15520 = vmatprep.subr.bf16.mxu1 %v22434_v61  ;;  %15573 = vmatprep.subr.bf16.mxu0 %v22437_v19  ;;  %v22438_v61 = vld [vmem:[#allocation15 + $0xb60] ss:$16 sps:$4 sm:$0xff]   ;;  %v22441_v19 = vld [vmem:[#allocation15 + $0xb68] ss:$16 sps:$4 sm:$0xff]   ;;  %v22554_v20 = vld [vmem:[#allocation15 + $0xd04] ss:$16 sps:$4 sm:$0xff]  }
 0xe99   :  { %25624 = vst [vmem:[#allocation66_spill] sm:$0xff] %v24810_v47  ;;  %25625 = vst [vmem:[#allocation67_spill] sm:$0xff] %v24812_v41  ;;  %15546 = vmatprep.mubr.bf16.mxu1 %v25581_v16  ;;  %15599 = vmatprep.mubr.bf16.mxu0 %v25581_v16  ;;  %v22459_v55 = vld [vmem:[#allocation15 + $0xb08] ss:$16 sps:$4 sm:$0xff]   ;;  %v22566_v47 = vld [vmem:[#allocation15 + $0xec4] ss:$16 sps:$4 sm:$0xff]  }
 0xe9a   :  { %v24816_v17 = vpop.f32.mrf.mxu1  ;;  %v24818_v21 = vpop.f32.mrf.mxu0 }
 0xe9b   :  { %25626 = vst [vmem:[#allocation68_spill] sm:$0xff] %v24816_v17  ;;  %25627 = vst [vmem:[#allocation69_spill] sm:$0xff] %v24818_v21  ;;  %15521 = vmatpush1.bf16.msra.mxu1 %v22432_v7  ;;  %15574 = vmatpush1.bf16.msra.mxu0 %v22435_v58  ;;  %v22444_v7 = vld [vmem:[#allocation15 + $0xb40] ss:$16 sps:$4 sm:$0xff]   ;;  %v22447_v58 = vld [vmem:[#allocation15 + $0xb48] ss:$16 sps:$4 sm:$0xff]  }
 0xe9c   :  { %v24824_v0 = vpop.f32.mrf.mxu1  ;;  %v24826_v9 = vpop.f32.mrf.mxu0  ;;  %15522 = vmatprep.subr.bf16.mxu1 %v22440_v14  ;;  %15575 = vmatprep.subr.bf16.mxu0 %v22443_v37  ;;  %v22450_v14 = vld [vmem:[#allocation15 + $0xb20] ss:$16 sps:$4 sm:$0xff]   ;;  %v22453_v37 = vld [vmem:[#allocation15 + $0xb28] ss:$16 sps:$4 sm:$0xff]   ;;  %v22458_v21 = vld [vmem:[#allocation15 + $0xb04] ss:$16 sps:$4 sm:$0xff]  }
 0xe9d   :  { %25628 = vst [vmem:[#allocation70_spill] sm:$0xff] %v24824_v0  ;;  %25629 = vst [vmem:[#allocation71_spill] sm:$0xff] %v24826_v9  ;;  %v22482_v9 = vld [vmem:[#allocation15 + $0xc84] ss:$16 sps:$4 sm:$0xff]  }
 0xe9e   :  { %v22560_v17 = vld [vmem:[#allocation15 + $0xee4] ss:$16 sps:$4 sm:$0xff]  }
 0xe9f   :  { %15523 = vmatpush1.bf16.msra.mxu1 %v22438_v61  ;;  %15576 = vmatpush1.bf16.msra.mxu0 %v22441_v19  ;;  %v22464_v61 = vld [vmem:[#allocation15 + $0xce4] ss:$16 sps:$4 sm:$0xff]   ;;  %v22467_v19 = vld [vmem:[#allocation15 + $0xcec] ss:$16 sps:$4 sm:$0xff]  }
 0xea0   :  { %15524 = vmatprep.subr.bf16.mxu1 %v22446_v36  ;;  %15577 = vmatprep.subr.bf16.mxu0 %v22449_v40  ;;  %v22462_v36 = vld [vmem:[#allocation15 + $0xce0] ss:$16 sps:$4 sm:$0xff]   ;;  %v22465_v40 = vld [vmem:[#allocation15 + $0xce8] ss:$16 sps:$4 sm:$0xff]   ;;  %v22578_v0 = vld [vmem:[#allocation15 + $0xe84] ss:$16 sps:$4 sm:$0xff]  }
 0xea3   :  { %15525 = vmatpush1.bf16.msra.mxu1 %v22444_v7  ;;  %15578 = vmatpush1.bf16.msra.mxu0 %v22447_v58  ;;  %v22470_v7 = vld [vmem:[#allocation15 + $0xcc4] ss:$16 sps:$4 sm:$0xff]   ;;  %v22473_v58 = vld [vmem:[#allocation15 + $0xccc] ss:$16 sps:$4 sm:$0xff]  }
 0xea4   :  { %15526 = vmatprep.subr.bf16.mxu1 %v22452_v44  ;;  %15579 = vmatprep.subr.bf16.mxu0 %v22455_v1 }
 0xea7   :  { %15527 = vmatpush1.bf16.msra.mxu1 %v22450_v14  ;;  %15580 = vmatpush1.bf16.msra.mxu0 %v22453_v37  ;;  %v22476_v14 = vld [vmem:[#allocation15 + $0xca4] ss:$16 sps:$4 sm:$0xff]   ;;  %v22479_v37 = vld [vmem:[#allocation15 + $0xcac] ss:$16 sps:$4 sm:$0xff]  }
 0xea8   :  { %15528 = vmatprep.subr.bf16.mxu1 %v22458_v21  ;;  %15581 = vmatprep.subr.bf16.mxu0 %v22461_v50  ;;  %v22468_v21 = vld [vmem:[#allocation15 + $0xcc0] ss:$16 sps:$4 sm:$0xff]   ;;  %v22471_v50 = vld [vmem:[#allocation15 + $0xcc8] ss:$16 sps:$4 sm:$0xff]  }
 0xeab   :  { %15529 = vmatpush1.bf16.msra.mxu1 %v22456_v11  ;;  %15582 = vmatpush1.bf16.msra.mxu0 %v22459_v55 }
 0xeac   :  { %15813 = vmatprep.subr.bf16.mxu1 %v22464_v61  ;;  %15866 = vmatprep.subr.bf16.mxu0 %v22467_v19 }
 0xeae   :  { %v24832_v44 = vpop.f32.mrf.mxu1  ;;  %v24834_v1 = vpop.f32.mrf.mxu0  ;;  %15547 = vmatmul.mubr.bf16.vlgmr.msra.gmra.mxu1 %v24542_v15  ;;  %15600 = vmatmul.mubr.bf16.vlgmr.msra.gmra.mxu0 %v24542_v15 }
 0xeaf   :  { %25630 = vst [vmem:[#allocation72_spill] sm:$0xff] %v24832_v44  ;;  %25631 = vst [vmem:[#allocation73_spill] sm:$0xff] %v24834_v1  ;;  %15814 = vmatpush1.bf16.msra.mxu1 %v22462_v36  ;;  %15867 = vmatpush1.bf16.msra.mxu0 %v22465_v40  ;;  %v22494_v1 = vld [vmem:[#allocation15 + $0xc44] ss:$16 sps:$4 sm:$0xff]  }
 0xeb0   :  { %v24838_v11 = vpop.f32.mrf.mxu1  ;;  %v24840_v55 = vpop.f32.mrf.mxu0  ;;  %15815 = vmatprep.subr.bf16.mxu1 %v22470_v7  ;;  %15868 = vmatprep.subr.bf16.mxu0 %v22473_v58  ;;  %v22474_v7 = vld [vmem:[#allocation15 + $0xca0] ss:$16 sps:$4 sm:$0xff]   ;;  %v22477_v58 = vld [vmem:[#allocation15 + $0xca8] ss:$16 sps:$4 sm:$0xff]   ;;  %v22584_v44 = vld [vmem:[#allocation15 + $0xe64] ss:$16 sps:$4 sm:$0xff]  }
 0xeb1   :  { %25632 = vst [vmem:[#allocation74_spill] sm:$0xff] %v24838_v11  ;;  %25633 = vst [vmem:[#allocation75_spill] sm:$0xff] %v24840_v55  ;;  %15556 = vmatprep.mubr.bf16.mxu1 %v25581_v16  ;;  %15609 = vmatprep.mubr.bf16.mxu0 %v25581_v16  ;;  %v22485_v55 = vld [vmem:[#allocation15 + $0xc8c] ss:$16 sps:$4 sm:$0xff]  }
 0xeb2   :  { %v24844_v61 = vpop.f32.mrf.mxu1  ;;  %v24846_v19 = vpop.f32.mrf.mxu0 }
 0xeb3   :  { %25634 = vst [vmem:[#allocation76_spill] sm:$0xff] %v24844_v61  ;;  %25635 = vst [vmem:[#allocation77_spill] sm:$0xff] %v24846_v19  ;;  %15816 = vmatpush1.bf16.msra.mxu1 %v22468_v21  ;;  %15869 = vmatpush1.bf16.msra.mxu0 %v22471_v50  ;;  %v22480_v21 = vld [vmem:[#allocation15 + $0xc80] ss:$16 sps:$4 sm:$0xff]   ;;  %v22483_v50 = vld [vmem:[#allocation15 + $0xc88] ss:$16 sps:$4 sm:$0xff]  }
 0xeb4   :  { %v24852_v41 = vpop.f32.mrf.mxu1  ;;  %15817 = vmatprep.subr.bf16.mxu1 %v22476_v14  ;;  %15870 = vmatprep.subr.bf16.mxu0 %v22479_v37  ;;  %v22488_v14 = vld [vmem:[#allocation15 + $0xc64] ss:$16 sps:$4 sm:$0xff]   ;;  %v22491_v37 = vld [vmem:[#allocation15 + $0xc6c] ss:$16 sps:$4 sm:$0xff]   ;;  %v22495_v19 = vld [vmem:[#allocation15 + $0xc48] ss:$16 sps:$4 sm:$0xff]   ;;  %v24868_v25 = vpop.f32.mrf.mxu0 }
 0xeb5   :  { %25636 = vst [vmem:[#allocation78_spill] sm:$0xff] %v24852_v41  ;;  %25640 = vst [vmem:[#allocation82_spill] sm:$0xff] %v24868_v25  ;;  %v22590_v61 = vld [vmem:[#allocation15 + $0xe44] ss:$16 sps:$4 sm:$0xff]  }
 0xeb6   :  { %v24856_v6 = vpop.f32.mrf.mxu1  ;;  %15557 = vmatmul.mubr.bf16.gmra.mxu1 %v24548_v34  ;;  %15610 = vmatmul.mubr.bf16.gmra.mxu0 %v24548_v34  ;;  %v24870_v33 = vpop.f32.mrf.mxu0 }
 0xeb7   :  { %25637 = vst [vmem:[#allocation79_spill] sm:$0xff] %v24856_v6  ;;  %15818 = vmatpush1.bf16.msra.mxu1 %v22474_v7  ;;  %15871 = vmatpush1.bf16.msra.mxu0 %v22477_v58  ;;  %v22486_v7 = vld [vmem:[#allocation15 + $0xc60] ss:$16 sps:$4 sm:$0xff]   ;;  %v22489_v58 = vld [vmem:[#allocation15 + $0xc68] ss:$16 sps:$4 sm:$0xff]   ;;  %25641 = vst [vmem:[#allocation83_spill] sm:$0xff] %v24870_v33 }
 0xeb8   :  { %v24860_v40 = vpop.f32.mrf.mxu1  ;;  %15819 = vmatprep.subr.bf16.mxu1 %v22482_v9  ;;  %15872 = vmatprep.subr.bf16.mxu0 %v22485_v55  ;;  %v22497_v9 = vld [vmem:[#allocation15 + $0xc4c] ss:$16 sps:$4 sm:$0xff]   ;;  %v22492_v55 = vld [vmem:[#allocation15 + $0xc40] ss:$16 sps:$4 sm:$0xff]   ;;  %v24872_v46 = vpop.f32.mrf.mxu0 }
 0xeb9   :  { %25638 = vst [vmem:[#allocation80_spill] sm:$0xff] %v24860_v40  ;;  %15845 = vmatprep.mubr.bf16.mxu1 %v25581_v16  ;;  %15898 = vmatprep.mubr.bf16.mxu0 %v25581_v16  ;;  %25642 = vst [vmem:[#allocation84_spill] sm:$0xff] %v24872_v46  ;;  %v22533_v33 = vld [vmem:[#allocation15 + $0xd8c] ss:$16 sps:$4 sm:$0xff]   ;;  %v22531_v46 = vld [vmem:[#allocation15 + $0xd88] ss:$16 sps:$4 sm:$0xff]  }
 0xeba   :  { %v24864_v36 = vpop.f32.mrf.mxu1  ;;  %v24874_v25 = vpop.f32.mrf.mxu0  ;;  %v22594_v6 = vld [vmem:[#allocation15 + $0xe20] ss:$16 sps:$4 sm:$0xff]  }
 0xebb   :  { %25639 = vst [vmem:[#allocation81_spill] sm:$0xff] %v24864_v36  ;;  %15820 = vmatpush1.bf16.msra.mxu1 %v22480_v21  ;;  %15873 = vmatpush1.bf16.msra.mxu0 %v22483_v50  ;;  %v22498_v21 = vld [vmem:[#allocation15 + $0xc20] ss:$16 sps:$4 sm:$0xff]   ;;  %v22501_v50 = vld [vmem:[#allocation15 + $0xc28] ss:$16 sps:$4 sm:$0xff]   ;;  %25643 = vst [vmem:[#allocation85_spill] sm:$0xff] %v24874_v25 }
 0xebc   :  { %15821 = vmatprep.subr.bf16.mxu1 %v22488_v14  ;;  %15874 = vmatprep.subr.bf16.mxu0 %v22491_v37  ;;  %v22506_v14 = vld [vmem:[#allocation15 + $0xc04] ss:$16 sps:$4 sm:$0xff]   ;;  %v22509_v37 = vld [vmem:[#allocation15 + $0xc0c] ss:$16 sps:$4 sm:$0xff]   ;;  %v22600_v36 = vld [vmem:[#allocation15 + $0xe00] ss:$16 sps:$4 sm:$0xff]  }
 0xebd   :  { %v22530_v25 = vld [vmem:[#allocation15 + $0xd84] ss:$16 sps:$4 sm:$0xff]  }
 0xebf   :  { %15822 = vmatpush1.bf16.msra.mxu1 %v22486_v7  ;;  %15875 = vmatpush1.bf16.msra.mxu0 %v22489_v58  ;;  %v22504_v7 = vld [vmem:[#allocation15 + $0xc00] ss:$16 sps:$4 sm:$0xff]   ;;  %v22507_v58 = vld [vmem:[#allocation15 + $0xc08] ss:$16 sps:$4 sm:$0xff]  }
 0xec0   :  { %15823 = vmatprep.subr.bf16.mxu1 %v22494_v1  ;;  %15876 = vmatprep.subr.bf16.mxu0 %v22497_v9  ;;  %v22512_v1 = vld [vmem:[#allocation15 + $0xde4] ss:$16 sps:$4 sm:$0xff]   ;;  %v22515_v9 = vld [vmem:[#allocation15 + $0xdec] ss:$16 sps:$4 sm:$0xff]  }
 0xec3   :  { %15824 = vmatpush1.bf16.msra.mxu1 %v22492_v55  ;;  %15877 = vmatpush1.bf16.msra.mxu0 %v22495_v19  ;;  %v22510_v19 = vld [vmem:[#allocation15 + $0xde0] ss:$16 sps:$4 sm:$0xff]   ;;  %v22513_v55 = vld [vmem:[#allocation15 + $0xde8] ss:$16 sps:$4 sm:$0xff]  }
 0xec4   :  { %15825 = vmatprep.subr.bf16.mxu1 %v22500_v27  ;;  %15878 = vmatprep.subr.bf16.mxu0 %v22503_v48  ;;  %v22518_v27 = vld [vmem:[#allocation15 + $0xdc4] ss:$16 sps:$4 sm:$0xff]   ;;  %v22521_v48 = vld [vmem:[#allocation15 + $0xdcc] ss:$16 sps:$4 sm:$0xff]  }
 0xec7   :  { %15826 = vmatpush1.bf16.msra.mxu1 %v22498_v21  ;;  %15879 = vmatpush1.bf16.msra.mxu0 %v22501_v50  ;;  %v22516_v21 = vld [vmem:[#allocation15 + $0xdc0] ss:$16 sps:$4 sm:$0xff]   ;;  %v22519_v50 = vld [vmem:[#allocation15 + $0xdc8] ss:$16 sps:$4 sm:$0xff]  }
 0xec8   :  { %15827 = vmatprep.subr.bf16.mxu1 %v22506_v14  ;;  %15880 = vmatprep.subr.bf16.mxu0 %v22509_v37  ;;  %v24878_v14 = vpop.f32.mrf.mxu1  ;;  %v24880_v37 = vpop.f32.mrf.mxu0 }
 0xec9   :  { %25644 = vst [vmem:[#allocation86_spill] sm:$0xff] %v24878_v14  ;;  %25645 = vst [vmem:[#allocation87_spill] sm:$0xff] %v24880_v37  ;;  %v22528_v37 = vld [vmem:[#allocation15 + $0xd80] ss:$16 sps:$4 sm:$0xff]  }
 0xeca   :  { %v22606_v14 = vld [vmem:[#allocation15 + $0xfe0] ss:$16 sps:$4 sm:$0xff]  }
 0xecb   :  { %15828 = vmatpush1.bf16.msra.mxu1 %v22504_v7  ;;  %15881 = vmatpush1.bf16.msra.mxu0 %v22507_v58  ;;  %v22524_v7 = vld [vmem:[#allocation15 + $0xda4] ss:$16 sps:$4 sm:$0xff]   ;;  %v22527_v58 = vld [vmem:[#allocation15 + $0xdac] ss:$16 sps:$4 sm:$0xff]  }
 0xecc   :  { %16112 = vmatprep.subr.bf16.mxu1 %v22512_v1  ;;  %16165 = vmatprep.subr.bf16.mxu0 %v22515_v9 }
 0xece   :  { %15846 = vmatmul.mubr.bf16.vlgmr.msra.gmra.mxu1 %v24542_v15  ;;  %15899 = vmatmul.mubr.bf16.vlgmr.msra.gmra.mxu0 %v24542_v15  ;;  %v24884_v1 = vpop.f32.mrf.mxu1  ;;  %v24886_v9 = vpop.f32.mrf.mxu0 }
 0xecf   :  { %16113 = vmatpush1.bf16.msra.mxu1 %v22510_v19  ;;  %16166 = vmatpush1.bf16.msra.mxu0 %v22513_v55  ;;  %25646 = vst [vmem:[#allocation88_spill] sm:$0xff] %v24884_v1  ;;  %25647 = vst [vmem:[#allocation89_spill] sm:$0xff] %v24886_v9  ;;  %v22522_v19 = vld [vmem:[#allocation15 + $0xda0] ss:$16 sps:$4 sm:$0xff]   ;;  %v22525_v55 = vld [vmem:[#allocation15 + $0xda8] ss:$16 sps:$4 sm:$0xff]  }
 0xed0   :  { %16114 = vmatprep.subr.bf16.mxu1 %v22518_v27  ;;  %16167 = vmatprep.subr.bf16.mxu0 %v22521_v48  ;;  %v24888_v27 = vpop.f32.mrf.mxu1  ;;  %v24890_v48 = vpop.f32.mrf.mxu0  ;;  %v22534_v9 = vld [vmem:[#allocation15 + $0xd60] ss:$16 sps:$4 sm:$0xff]  }
 0xed1   :  { %15855 = vmatprep.mubr.bf16.mxu1 %v25581_v16  ;;  %15908 = vmatprep.mubr.bf16.mxu0 %v25581_v16  ;;  %25648 = vst [vmem:[#allocation90_spill] sm:$0xff] %v24888_v27  ;;  %25649 = vst [vmem:[#allocation91_spill] sm:$0xff] %v24890_v48  ;;  %v22537_v48 = vld [vmem:[#allocation15 + $0xd68] ss:$16 sps:$4 sm:$0xff]   ;;  %v22626_v27 = vld [vmem:[#allocation15 + $0xf84] ss:$16 sps:$4 sm:$0xff]  }
 0xed3   :  { %16115 = vmatpush1.bf16.msra.mxu1 %v22516_v21  ;;  %16168 = vmatpush1.bf16.msra.mxu0 %v22519_v50  ;;  %v22536_v21 = vld [vmem:[#allocation15 + $0xd64] ss:$16 sps:$4 sm:$0xff]   ;;  %v22539_v50 = vld [vmem:[#allocation15 + $0xd6c] ss:$16 sps:$4 sm:$0xff]  }
 0xed4   :  { %16116 = vmatprep.subr.bf16.mxu1 %v22524_v7  ;;  %16169 = vmatprep.subr.bf16.mxu0 %v22527_v58  ;;  %v24896_v7 = vpop.f32.mrf.mxu1  ;;  %v24898_v58 = vpop.f32.mrf.mxu0 }
 0xed5   :  { %25650 = vst [vmem:[#allocation92_spill] sm:$0xff] %v24896_v7  ;;  %25651 = vst [vmem:[#allocation93_spill] sm:$0xff] %v24898_v58  ;;  %v22551_v58 = vld [vmem:[#allocation15 + $0xd2c] ss:$16 sps:$4 sm:$0xff]  }
 0xed6   :  { %15856 = vmatmul.mubr.bf16.gmra.mxu1 %v24548_v34  ;;  %15909 = vmatmul.mubr.bf16.gmra.mxu0 %v24548_v34 }
 0xed7   :  { %16117 = vmatpush1.bf16.msra.mxu1 %v22522_v19  ;;  %16170 = vmatpush1.bf16.msra.mxu0 %v22525_v55  ;;  %v22542_v19 = vld [vmem:[#allocation15 + $0xd44] ss:$16 sps:$4 sm:$0xff]   ;;  %v22545_v55 = vld [vmem:[#allocation15 + $0xd4c] ss:$16 sps:$4 sm:$0xff]  }
 0xed8   :  { %16118 = vmatprep.subr.bf16.mxu1 %v22530_v25  ;;  %16171 = vmatprep.subr.bf16.mxu0 %v22533_v33  ;;  %v24900_v25 = vpop.f32.mrf.mxu1  ;;  %v24902_v33 = vpop.f32.mrf.mxu0 }
 0xed9   :  { %16144 = vmatprep.mubr.bf16.mxu1 %v25581_v16  ;;  %16197 = vmatprep.mubr.bf16.mxu0 %v25581_v16  ;;  %25652 = vst [vmem:[#allocation94_spill] sm:$0xff] %v24900_v25  ;;  %25653 = vst [vmem:[#allocation95_spill] sm:$0xff] %v24902_v33  ;;  %v22557_v33 = vld [vmem:[#allocation15 + $0xd0c] ss:$16 sps:$4 sm:$0xff]  }
 0xedb   :  { %16119 = vmatpush1.bf16.msra.mxu1 %v22528_v37  ;;  %16172 = vmatpush1.bf16.msra.mxu0 %v22531_v46  ;;  %v24904_v37 = vpop.f32.mrf.mxu1  ;;  %v24906_v46 = vpop.f32.mrf.mxu0 }
 0xedc   :  { %16120 = vmatprep.subr.bf16.mxu1 %v22536_v21  ;;  %16173 = vmatprep.subr.bf16.mxu0 %v22539_v50  ;;  %25654 = vst [vmem:[#allocation96_spill] sm:$0xff] %v24904_v37  ;;  %25655 = vst [vmem:[#allocation97_spill] sm:$0xff] %v24906_v46  ;;  %v22546_v21 = vld [vmem:[#allocation15 + $0xd20] ss:$16 sps:$4 sm:$0xff]   ;;  %v22549_v50 = vld [vmem:[#allocation15 + $0xd28] ss:$16 sps:$4 sm:$0xff]  }
 0xedd   :  { %v22563_v46 = vld [vmem:[#allocation15 + $0xeec] ss:$16 sps:$4 sm:$0xff]   ;;  %v22632_v37 = vld [vmem:[#allocation15 + $0xf64] ss:$16 sps:$4 sm:$0xff]  }
 0xedf   :  { %16121 = vmatpush1.bf16.msra.mxu1 %v22534_v9  ;;  %16174 = vmatpush1.bf16.msra.mxu0 %v22537_v48  ;;  %v24908_v9 = vpop.f32.mrf.mxu1  ;;  %v24910_v48 = vpop.f32.mrf.mxu0 }
 0xee0   :  { %16122 = vmatprep.subr.bf16.mxu1 %v22542_v19  ;;  %16175 = vmatprep.subr.bf16.mxu0 %v22545_v55  ;;  %25656 = vst [vmem:[#allocation98_spill] sm:$0xff] %v24910_v48  ;;  %v22552_v19 = vld [vmem:[#allocation15 + $0xd00] ss:$16 sps:$4 sm:$0xff]   ;;  %v22555_v55 = vld [vmem:[#allocation15 + $0xd08] ss:$16 sps:$4 sm:$0xff]  }
 0xee1   :  { %v22569_v48 = vld [vmem:[#allocation15 + $0xecc] ss:$16 sps:$4 sm:$0xff]  }
 0xee3   :  { %16123 = vmatpush1.bf16.msra.mxu1 %v22540_v10  ;;  %16176 = vmatpush1.bf16.msra.mxu0 %v22543_v31  ;;  %v24912_v10 = vpop.f32.mrf.mxu1  ;;  %v24914_v31 = vpop.f32.mrf.mxu0 }
 0xee4   :  { %16124 = vmatprep.subr.bf16.mxu1 %v22548_v57  ;;  %16177 = vmatprep.subr.bf16.mxu0 %v22551_v58  ;;  %25657 = vst [vmem:[#allocation99_spill] sm:$0xff] %v24912_v10  ;;  %25658 = vst [vmem:[#allocation100_spill] sm:$0xff] %v24914_v31  ;;  %v22558_v57 = vld [vmem:[#allocation15 + $0xee0] ss:$16 sps:$4 sm:$0xff]   ;;  %v22561_v58 = vld [vmem:[#allocation15 + $0xee8] ss:$16 sps:$4 sm:$0xff]  }
 0xee5   :  { %v22570_v31 = vld [vmem:[#allocation15 + $0xea0] ss:$16 sps:$4 sm:$0xff]   ;;  %v22629_v10 = vld [vmem:[#allocation15 + $0xf8c] ss:$16 sps:$4 sm:$0xff]  }
 0xee7   :  { %16125 = vmatpush1.bf16.msra.mxu1 %v22546_v21  ;;  %16178 = vmatpush1.bf16.msra.mxu0 %v22549_v50  ;;  %v24916_v21 = vpop.f32.mrf.mxu1  ;;  %v24918_v50 = vpop.f32.mrf.mxu0 }
 0xee8   :  { %16126 = vmatprep.subr.bf16.mxu1 %v22554_v20  ;;  %16179 = vmatprep.subr.bf16.mxu0 %v22557_v33  ;;  %25659 = vst [vmem:[#allocation101_spill] sm:$0xff] %v24918_v50  ;;  %v22564_v20 = vld [vmem:[#allocation15 + $0xec0] ss:$16 sps:$4 sm:$0xff]   ;;  %v22567_v33 = vld [vmem:[#allocation15 + $0xec8] ss:$16 sps:$4 sm:$0xff]  }
 0xee9   :  { %v22573_v50 = vld [vmem:[#allocation15 + $0xea8] ss:$16 sps:$4 sm:$0xff]  }
 0xeeb   :  { %16127 = vmatpush1.bf16.msra.mxu1 %v22552_v19  ;;  %16180 = vmatpush1.bf16.msra.mxu0 %v22555_v55 }
 0xeec   :  { %16411 = vmatprep.subr.bf16.mxu1 %v22560_v17  ;;  %16464 = vmatprep.subr.bf16.mxu0 %v22563_v46  ;;  %v22572_v17 = vld [vmem:[#allocation15 + $0xea4] ss:$16 sps:$4 sm:$0xff]   ;;  %v22575_v46 = vld [vmem:[#allocation15 + $0xeac] ss:$16 sps:$4 sm:$0xff]  }
 0xeee   :  { %16145 = vmatmul.mubr.bf16.vlgmr.msra.gmra.mxu1 %v24542_v15  ;;  %16198 = vmatmul.mubr.bf16.vlgmr.msra.gmra.mxu0 %v24542_v15  ;;  %v24922_v19 = vpop.f32.mrf.mxu1  ;;  %v24924_v55 = vpop.f32.mrf.mxu0 }
 0xeef   :  { %16412 = vmatpush1.bf16.msra.mxu1 %v22558_v57  ;;  %16465 = vmatpush1.bf16.msra.mxu0 %v22561_v58  ;;  %25660 = vst [vmem:[#allocation102_spill] sm:$0xff] %v24924_v55  ;;  %v22581_v55 = vld [vmem:[#allocation15 + $0xe8c] ss:$16 sps:$4 sm:$0xff]  }
 0xef0   :  { %16413 = vmatprep.subr.bf16.mxu1 %v22566_v47  ;;  %16466 = vmatprep.subr.bf16.mxu0 %v22569_v48  ;;  %v24928_v57 = vpop.f32.mrf.mxu1  ;;  %v24930_v58 = vpop.f32.mrf.mxu0  ;;  %v22576_v47 = vld [vmem:[#allocation15 + $0xe80] ss:$16 sps:$4 sm:$0xff]   ;;  %v22579_v48 = vld [vmem:[#allocation15 + $0xe88] ss:$16 sps:$4 sm:$0xff]  }
 0xef1   :  { %16154 = vmatprep.mubr.bf16.mxu1 %v25581_v16  ;;  %16207 = vmatprep.mubr.bf16.mxu0 %v25581_v16  ;;  %25661 = vst [vmem:[#allocation103_spill] sm:$0xff] %v24930_v58  ;;  %v22587_v58 = vld [vmem:[#allocation15 + $0xe6c] ss:$16 sps:$4 sm:$0xff]  }
 0xef3   :  { %16414 = vmatpush1.bf16.msra.mxu1 %v22564_v20  ;;  %16467 = vmatpush1.bf16.msra.mxu0 %v22567_v33  ;;  %v24934_v20 = vpop.f32.mrf.mxu1  ;;  %v24936_v33 = vpop.f32.mrf.mxu0 }
 0xef4   :  { %16415 = vmatprep.subr.bf16.mxu1 %v22572_v17  ;;  %16468 = vmatprep.subr.bf16.mxu0 %v22575_v46  ;;  %25662 = vst [vmem:[#allocation104_spill] sm:$0xff] %v24936_v33  ;;  %v22582_v17 = vld [vmem:[#allocation15 + $0xe60] ss:$16 sps:$4 sm:$0xff]   ;;  %v22585_v46 = vld [vmem:[#allocation15 + $0xe68] ss:$16 sps:$4 sm:$0xff]  }
 0xef5   :  { %v22593_v33 = vld [vmem:[#allocation15 + $0xe4c] ss:$16 sps:$4 sm:$0xff]  }
 0xef6   :  { %16155 = vmatmul.mubr.bf16.gmra.mxu1 %v24548_v34  ;;  %16208 = vmatmul.mubr.bf16.gmra.mxu0 %v24548_v34 }
 0xef7   :  { %16416 = vmatpush1.bf16.msra.mxu1 %v22570_v31  ;;  %16469 = vmatpush1.bf16.msra.mxu0 %v22573_v50  ;;  %v24940_v31 = vpop.f32.mrf.mxu1  ;;  %v24942_v50 = vpop.f32.mrf.mxu0 }
 0xef8   :  { %16417 = vmatprep.subr.bf16.mxu1 %v22578_v0  ;;  %16470 = vmatprep.subr.bf16.mxu0 %v22581_v55  ;;  %25663 = vst [vmem:[#allocation105_spill] sm:$0xff] %v24942_v50  ;;  %v22588_v0 = vld [vmem:[#allocation15 + $0xe40] ss:$16 sps:$4 sm:$0xff]   ;;  %v22591_v55 = vld [vmem:[#allocation15 + $0xe48] ss:$16 sps:$4 sm:$0xff]  }
 0xef9   :  { %16443 = vmatprep.mubr.bf16.mxu1 %v25581_v16  ;;  %16496 = vmatprep.mubr.bf16.mxu0 %v25581_v16  ;;  %v24944_v11 = vpop.f32.mrf.mxu1  ;;  %v24946_v41 = vpop.f32.mrf.mxu0  ;;  %v22597_v50 = vld [vmem:[#allocation15 + $0xe28] ss:$16 sps:$4 sm:$0xff]  }
 0xefa   :  { %25664 = vst [vmem:[#allocation106_spill] sm:$0xff] %v24946_v41  ;;  %v22603_v41 = vld [vmem:[#allocation15 + $0xe08] ss:$16 sps:$4 sm:$0xff]  }
 0xefb   :  { %16418 = vmatpush1.bf16.msra.mxu1 %v22576_v47  ;;  %16471 = vmatpush1.bf16.msra.mxu0 %v22579_v48  ;;  %v22596_v47 = vld [vmem:[#allocation15 + $0xe24] ss:$16 sps:$4 sm:$0xff]   ;;  %v22599_v48 = vld [vmem:[#allocation15 + $0xe2c] ss:$16 sps:$4 sm:$0xff]  }
 0xefc   :  { %16419 = vmatprep.subr.bf16.mxu1 %v22584_v44  ;;  %16472 = vmatprep.subr.bf16.mxu0 %v22587_v58  ;;  %v24948_v44 = vpop.f32.mrf.mxu1  ;;  %v24950_v58 = vpop.f32.mrf.mxu0 }
 0xefd   :  { %25665 = vst [vmem:[#allocation107_spill] sm:$0xff] %v24950_v58  ;;  %v22609_v58 = vld [vmem:[#allocation15 + $0xfe8] ss:$16 sps:$4 sm:$0xff]  }
 0xeff   :  { %16420 = vmatpush1.bf16.msra.mxu1 %v22582_v17  ;;  %16473 = vmatpush1.bf16.msra.mxu0 %v22585_v46  ;;  %v22602_v17 = vld [vmem:[#allocation15 + $0xe04] ss:$16 sps:$4 sm:$0xff]   ;;  %v22605_v46 = vld [vmem:[#allocation15 + $0xe0c] ss:$16 sps:$4 sm:$0xff]  }
 0xf00   :  { %16421 = vmatprep.subr.bf16.mxu1 %v22590_v61  ;;  %16474 = vmatprep.subr.bf16.mxu0 %v22593_v33  ;;  %v24952_v61 = vpop.f32.mrf.mxu1  ;;  %v24954_v33 = vpop.f32.mrf.mxu0 }
 0xf01   :  { %25666 = vst [vmem:[#allocation108_spill] sm:$0xff] %v24954_v33 }
 0xf03   :  { %16422 = vmatpush1.bf16.msra.mxu1 %v22588_v0  ;;  %16475 = vmatpush1.bf16.msra.mxu0 %v22591_v55  ;;  %v22608_v0 = vld [vmem:[#allocation15 + $0xfe4] ss:$16 sps:$4 sm:$0xff]   ;;  %v22611_v55 = vld [vmem:[#allocation15 + $0xfec] ss:$16 sps:$4 sm:$0xff]  }
 0xf04   :  { %16423 = vmatprep.subr.bf16.mxu1 %v22596_v47  ;;  %16476 = vmatprep.subr.bf16.mxu0 %v22599_v48  ;;  %v24956_v47 = vpop.f32.mrf.mxu1  ;;  %v24958_v48 = vpop.f32.mrf.mxu0 }
 0xf05   :  { %25667 = vst [vmem:[#allocation109_spill] sm:$0xff] %v24958_v48 }
 0xf07   :  { %16424 = vmatpush1.bf16.msra.mxu1 %v22594_v6  ;;  %16477 = vmatpush1.bf16.msra.mxu0 %v22597_v50  ;;  %v22614_v6 = vld [vmem:[#allocation15 + $0xfc4] ss:$16 sps:$4 sm:$0xff]   ;;  %v22617_v50 = vld [vmem:[#allocation15 + $0xfcc] ss:$16 sps:$4 sm:$0xff]  }
 0xf08   :  { %16425 = vmatprep.subr.bf16.mxu1 %v22602_v17  ;;  %16478 = vmatprep.subr.bf16.mxu0 %v22605_v46 }
 0xf0b   :  { %16426 = vmatpush1.bf16.msra.mxu1 %v22600_v36  ;;  %16479 = vmatpush1.bf16.msra.mxu0 %v22603_v41  ;;  %v22612_v41 = vld [vmem:[#allocation15 + $0xfc0] ss:$16 sps:$4 sm:$0xff]   ;;  %v22615_v36 = vld [vmem:[#allocation15 + $0xfc8] ss:$16 sps:$4 sm:$0xff]  }
 0xf0c   :  { %16710 = vmatprep.subr.bf16.mxu1 %v22608_v0  ;;  %16763 = vmatprep.subr.bf16.mxu0 %v22611_v55  ;;  %v22620_v0 = vld [vmem:[#allocation15 + $0xfa4] ss:$16 sps:$4 sm:$0xff]   ;;  %v22623_v55 = vld [vmem:[#allocation15 + $0xfac] ss:$16 sps:$4 sm:$0xff]  }
 0xf0e   :  { %v24960_v40 = vpop.f32.mrf.mxu1  ;;  %v24962_v7 = vpop.f32.mrf.mxu0  ;;  %16444 = vmatmul.mubr.bf16.vlgmr.msra.gmra.mxu1 %v24542_v15  ;;  %16497 = vmatmul.mubr.bf16.vlgmr.msra.gmra.mxu0 %v24542_v15 }
 0xf0f   :  { %25668 = vst [vmem:[#allocation110_spill] sm:$0xff] %v24960_v40  ;;  %25669 = vst [vmem:[#allocation111_spill] sm:$0xff] %v24962_v7  ;;  %16711 = vmatpush1.bf16.msra.mxu1 %v22606_v14  ;;  %16764 = vmatpush1.bf16.msra.mxu0 %v22609_v58  ;;  %v22635_v14 = vld [vmem:[#allocation15 + $0xf6c] ss:$16 sps:$4 sm:$0xff]  }
 0xf10   :  { %v24966_v17 = vpop.f32.mrf.mxu1  ;;  %v24968_v46 = vpop.f32.mrf.mxu0  ;;  %16712 = vmatprep.subr.bf16.mxu1 %v22614_v6  ;;  %16765 = vmatprep.subr.bf16.mxu0 %v22617_v50  ;;  %v22618_v6 = vld [vmem:[#allocation15 + $0xfa0] ss:$16 sps:$4 sm:$0xff]   ;;  %v22621_v50 = vld [vmem:[#allocation15 + $0xfa8] ss:$16 sps:$4 sm:$0xff]  }
 0xf11   :  { %25670 = vst [vmem:[#allocation112_spill] sm:$0xff] %v24966_v17  ;;  %25671 = vst [vmem:[#allocation113_spill] sm:$0xff] %v24968_v46  ;;  %16453 = vmatprep.mubr.bf16.mxu1 %v25581_v16  ;;  %16506 = vmatprep.mubr.bf16.mxu0 %v25581_v16  ;;  %v22641_v17 = vld [vmem:[#allocation15 + $0xf4c] ss:$16 sps:$4 sm:$0xff]  }
 0xf12   :  { %v24972_v33 = vpop.f32.mrf.mxu1  ;;  %v24974_v48 = vpop.f32.mrf.mxu0 }
 0xf13   :  { %25672 = vst [vmem:[#allocation114_spill] sm:$0xff] %v24972_v33  ;;  %25673 = vst [vmem:[#allocation115_spill] sm:$0xff] %v24974_v48  ;;  %16713 = vmatpush1.bf16.msra.mxu1 %v22612_v41  ;;  %16766 = vmatpush1.bf16.msra.mxu0 %v22615_v36  ;;  %v22624_v36 = vld [vmem:[#allocation15 + $0xf80] ss:$16 sps:$4 sm:$0xff]   ;;  %v22638_v33 = vld [vmem:[#allocation15 + $0xf44] ss:$16 sps:$4 sm:$0xff]  }
 0xf14   :  { %v24980_v1 = vpop.f32.mrf.mxu1  ;;  %v24982_v25 = vpop.f32.mrf.mxu0  ;;  %16714 = vmatprep.subr.bf16.mxu1 %v22620_v0  ;;  %16767 = vmatprep.subr.bf16.mxu0 %v22623_v55  ;;  %v22627_v0 = vld [vmem:[#allocation15 + $0xf88] ss:$16 sps:$4 sm:$0xff]  }
 0xf15   :  { %25674 = vst [vmem:[#allocation116_spill] sm:$0xff] %v24980_v1  ;;  %25675 = vst [vmem:[#allocation117_spill] sm:$0xff] %v24982_v25  ;;  %v22650_v1 = vld [vmem:[#allocation15 + $0xf04] ss:$16 sps:$4 sm:$0xff]  }
 0xf16   :  { %v24988_v40 = vpop.f32.mrf.mxu1  ;;  %v24990_v41 = vpop.f32.mrf.mxu0  ;;  %16454 = vmatmul.mubr.bf16.gmra.mxu1 %v24548_v34  ;;  %16507 = vmatmul.mubr.bf16.gmra.mxu0 %v24548_v34 }
 0xf17   :  { %25676 = vst [vmem:[#allocation118_spill] sm:$0xff] %v24988_v40  ;;  %25677 = vst [vmem:[#allocation119_spill] sm:$0xff] %v24990_v41  ;;  %16715 = vmatpush1.bf16.msra.mxu1 %v22618_v6  ;;  %16768 = vmatpush1.bf16.msra.mxu0 %v22621_v50  ;;  %v22644_v50 = vld [vmem:[#allocation15 + $0xf24] ss:$16 sps:$4 sm:$0xff]   ;;  %v22647_v41 = vld [vmem:[#allocation15 + $0xf2c] ss:$16 sps:$4 sm:$0xff]  }
 0xf18   :  { %v24994_v55 = vpop.f32.mrf.mxu1  ;;  %v24996_v58 = vpop.f32.mrf.mxu0  ;;  %16716 = vmatprep.subr.bf16.mxu1 %v22626_v27  ;;  %16769 = vmatprep.subr.bf16.mxu0 %v22629_v10  ;;  %v22630_v27 = vld [vmem:[#allocation15 + $0xf60] ss:$16 sps:$4 sm:$0xff]   ;;  %v22633_v10 = vld [vmem:[#allocation15 + $0xf68] ss:$16 sps:$4 sm:$0xff]  }
 0xf19   :  { %25678 = vst [vmem:[#allocation120_spill] sm:$0xff] %v24994_v55  ;;  %25679 = vst [vmem:[#allocation121_spill] sm:$0xff] %v24996_v58  ;;  %16742 = vmatprep.mubr.bf16.mxu1 %v25581_v16  ;;  %16795 = vmatprep.mubr.bf16.mxu0 %v25581_v16  ;;  %v22653_v55 = vld [vmem:[#allocation15 + $0xf0c] ss:$16 sps:$4 sm:$0xff]  }
 0xf1a   :  { %v25000_v7 = vpop.f32.mrf.mxu1  ;;  %v25002_v48 = vpop.f32.mrf.mxu0 }
 0xf1b   :  { %25680 = vst [vmem:[#allocation122_spill] sm:$0xff] %v25000_v7  ;;  %25681 = vst [vmem:[#allocation123_spill] sm:$0xff] %v25002_v48  ;;  %16717 = vmatpush1.bf16.msra.mxu1 %v22624_v36  ;;  %16770 = vmatpush1.bf16.msra.mxu0 %v22627_v0  ;;  %v22636_v36 = vld [vmem:[#allocation15 + $0xf40] ss:$16 sps:$4 sm:$0xff]   ;;  %v22639_v0 = vld [vmem:[#allocation15 + $0xf48] ss:$16 sps:$4 sm:$0xff]   ;;  %v16956_v7 = vlaneseq }
 0xf1c   :  { %v25008_v46 = vpop.f32.mrf.mxu1  ;;  %v25010_v25 = vpop.f32.mrf.mxu0  ;;  %16718 = vmatprep.subr.bf16.mxu1 %v22632_v37  ;;  %16771 = vmatprep.subr.bf16.mxu0 %v22635_v14  ;;  %v22642_v37 = vld [vmem:[#allocation15 + $0xf20] ss:$16 sps:$4 sm:$0xff]   ;;  %v22645_v14 = vld [vmem:[#allocation15 + $0xf28] ss:$16 sps:$4 sm:$0xff]   ;;  %v22897_v48 = vmov 1983009808  }
 0xf1d   :  { %25682 = vst [vmem:[#allocation124_spill] sm:$0xff] %v25010_v25  ;;  %v16954_v40 = vunpack.c.l.s4 %v22897_v48  ;;  %v25020_v48 = vld [vmem:[#allocation16] sm:$0xff] }
 0xf1f   :  { %16719 = vmatpush1.bf16.msra.mxu1 %v22630_v27  ;;  %16772 = vmatpush1.bf16.msra.mxu0 %v22633_v10  ;;  %v22648_v27 = vld [vmem:[#allocation15 + $0xf00] ss:$16 sps:$4 sm:$0xff]   ;;  %v22651_v10 = vld [vmem:[#allocation15 + $0xf08] ss:$16 sps:$4 sm:$0xff]   ;;  %v16955_v6 = vunpack.c.0.s8 %v16954_v40 }
 0xf20   :  { %16720 = vmatprep.subr.bf16.mxu1 %v22638_v33  ;;  %16773 = vmatprep.subr.bf16.mxu0 %v22641_v17  ;;  %v16957_v33 = vshrl.u32 %v16956_v7, 7  ;;  %v16845_v17 = vpack.c.bf16 %v24772_v42, %v24764_v2 }
 0xf23   :  { %16721 = vmatpush1.bf16.msra.mxu1 %v22636_v36  ;;  %16774 = vmatpush1.bf16.msra.mxu0 %v22639_v0  ;;  %v25018_v36 = vsub.s32 %v16955_v6, %v16957_v33  ;;  %v25698_v33 = vld [vmem:[#allocation88_spill] sm:$0xff] }
 0xf24   :  { %16722 = vmatprep.subr.bf16.mxu1 %v22644_v50  ;;  %16775 = vmatprep.subr.bf16.mxu0 %v22647_v41  ;;  %v16844_v41 = vpack.c.bf16 %v24768_v28, %v24760_v52  ;;  %v16841_v50 = vpack.c.bf16 %v24756_v45, %v24744_v60  ;;  %v16840_v52 = vpack.c.bf16 %v24750_v29, %v24738_v56  ;;  %v25739_v28 = vld [vmem:[#allocation42_spill] sm:$0xff] }
 0xf25   :  { %v25033_v2 = vrot.slane %v25020_v48, %v25018_v36  ;;  %v16837_v60 = vpack.c.bf16 %v24732_v54, %v24716_v63  ;;  %v16833_v54 = vpack.c.bf16 %v24710_v59, %v24696_v4  ;;  %v25688_v29 = vpack.c.bf16 %v24720_v24, %v24712_v43 }
 0xf26   :  { %v16829_v4 = vpack.c.bf16 %v24686_v38, %v24672_v23  ;;  %v16825_v23 = vpack.c.bf16 %v24662_v30, %v24648_v32  ;;  %v16817_v32 = vpack.c.bf16 %v24614_v13, %v24600_v51  ;;  %v16876_v51 = vpack.c.bf16 %v24952_v61, %v24944_v11  ;;  %v25694_v61 = vld [vmem:[#allocation96_spill] sm:$0xff] }
 0xf27   :  { %16723 = vmatpush1.bf16.msra.mxu1 %v22642_v37  ;;  %16776 = vmatpush1.bf16.msra.mxu0 %v22645_v14  ;;  %v25690_v37 = vpack.c.bf16 %v24678_v18, %v24666_v39  ;;  %v25691_v14 = vpack.c.bf16 %v24654_v49, %v24642_v22  ;;  %v25692_v39 = vpack.c.bf16 %v24630_v3, %v24620_v12 }
 0xf28   :  { %16724 = vmatprep.subr.bf16.mxu1 %v22650_v1  ;;  %16777 = vmatprep.subr.bf16.mxu0 %v22653_v55  ;;  %v25050_v1 = vcombine.high %v25033_v2, %v25033_v2  ;;  %v25693_v22 = vpack.c.bf16 %v24606_v5, %v24596_v8  ;;  %v16873_v13 = vpack.c.bf16 %v24940_v31, %v24928_v57 }
 0xf29   :  { %v16872_v8 = vpack.c.bf16 %v24934_v20, %v24922_v19  ;;  %v16869_v5 = vpack.c.bf16 %v24916_v21, %v24908_v9  ;;  %v25696_v20 = vld [vmem:[#allocation90_spill] sm:$0xff]  ;;  %v25745_v19 = vld [vmem:[#allocation36_spill] sm:$0xff] }
 0xf2b   :  { %16725 = vmatpush1.bf16.msra.mxu1 %v22648_v27  ;;  %16778 = vmatpush1.bf16.msra.mxu0 %v22651_v10  ;;  %v25697_v10 = vld [vmem:[#allocation94_spill] sm:$0xff] }
 0xf2c   :  { %16973 = vmatprep.subr.bf16.mxu1 %v16845_v17  ;;  %v16865_v9 = vpack.c.bf16 %v25697_v10, %v25696_v20  ;;  %v25699_v17 = vld [vmem:[#allocation92_spill] sm:$0xff] }
 0xf2e   :  { %v25026_v40 = vpop.f32.mrf.mxu0  ;;  %16743 = vmatmul.mubr.bf16.vlgmr.msra.gmra.mxu1 %v24542_v15  ;;  %16796 = vmatmul.mubr.bf16.vlgmr.msra.gmra.mxu0 %v24542_v15  ;;  %v25042_v45 = vpop.f32.mrf.mxu1 }
 0xf2f   :  { %25683 = vst [vmem:[#allocation125_spill] sm:$0xff] %v25026_v40  ;;  %16974 = vmatpush1.bf16.msra.mxu1 %v16844_v41  ;;  %16752 = vmatprep.mubr.bf16.mxu1 %v25581_v16  ;;  %v16864_v41 = vpack.c.bf16 %v25699_v17, %v25698_v33  ;;  %v25718_v33 = vld [vmem:[#allocation58_spill] sm:$0xff] }
 0xf30   :  { %v25035_v42 = vpop.f32.mrf.mxu0  ;;  %16975 = vmatprep.subr.bf16.mxu1 %v16841_v50  ;;  %16805 = vmatprep.mubr.bf16.mxu0 %v25581_v16  ;;  %v25058_v63 = vpop.f32.mrf.mxu1  ;;  %v25700_v50 = vld [vmem:[#allocation80_spill] sm:$0xff] }
 0xf31   :  { %25684 = vst [vmem:[#allocation126_spill] sm:$0xff] %v25035_v42  ;;  %v25740_v16 = vld [vmem:[#allocation40_spill] sm:$0xff] }
 0xf32   :  { %v25044_v15 = vpop.f32.mrf.mxu0  ;;  %v25072_v59 = vpop.f32.mrf.mxu1  ;;  %v25741_v0 = vpack.c.bf16 %v25739_v28, %v25740_v16  ;;  %v25747_v28 = vld [vmem:[#allocation29_spill] sm:$0xff]  ;;  %v25748_v16 = vld [vmem:[#allocation31_spill] sm:$0xff] }
 0xf33   :  { %25685 = vst [vmem:[#allocation127_spill] sm:$0xff] %v25044_v15  ;;  %16976 = vmatpush1.bf16.msra.mxu1 %v16840_v52  ;;  %v25701_v52 = vld [vmem:[#allocation86_spill] sm:$0xff] }
 0xf34   :  { %v25052_v7 = vpop.f32.mrf.mxu0  ;;  %16977 = vmatprep.subr.bf16.mxu1 %v16837_v60  ;;  %v25087_v38 = vpop.f32.mrf.mxu1  ;;  %v16861_v60 = vpack.c.bf16 %v25701_v52, %v25700_v50  ;;  %v25721_v50 = vld [vmem:[#allocation55_spill] sm:$0xff] }
 0xf35   :  { %25686 = vst [vmem:[#allocation128_spill] sm:$0xff] %v25052_v7 }
 0xf36   :  { %v25060_v56 = vpop.f32.mrf.mxu0  ;;  %16753 = vmatmul.mubr.bf16.gmra.mxu1 %v24548_v34  ;;  %16806 = vmatmul.mubr.bf16.gmra.mxu0 %v24548_v34  ;;  %v25689_v34 = vpack.c.bf16 %v24702_v35, %v24690_v62  ;;  %v16821_v62 = vpack.c.bf16 %v24638_v53, %v24624_v26  ;;  %v25094_v35 = vpop.f32.mrf.mxu1  ;;  %v16877_v26 = vpack.c.bf16 %v24956_v47, %v24948_v44  ;;  %v25695_v47 = vld [vmem:[#allocation99_spill] sm:$0xff] }
 0xf37   :  { %25687 = vst [vmem:[#allocation129_spill] sm:$0xff] %v25060_v56  ;;  %16978 = vmatpush1.bf16.msra.mxu1 %v25688_v29  ;;  %17005 = vmatprep.mubr.bf16.mxu1 %v25050_v1  ;;  %v16868_v27 = vpack.c.bf16 %v25695_v47, %v25694_v61  ;;  %v25702_v29 = vld [vmem:[#allocation81_spill] sm:$0xff]  ;;  %v25714_v47 = vld [vmem:[#allocation68_spill] sm:$0xff] }
 0xf38   :  { %v25068_v55 = vpop.f32.mrf.mxu0  ;;  %16979 = vmatprep.subr.bf16.mxu1 %v16833_v54  ;;  %v25101_v30 = vpop.f32.mrf.mxu1 }
 0xf3a   :  { %v25074_v6 = vpop.f32.mrf.mxu0  ;;  %v25108_v53 = vpop.f32.mrf.mxu1 }
 0xf3b   :  { %16980 = vmatpush1.bf16.msra.mxu1 %v25689_v34 }
 0xf3c   :  { %v25081_v43 = vpop.f32.mrf.mxu0  ;;  %16981 = vmatprep.subr.bf16.mxu1 %v16829_v4  ;;  %v25117_v49 = vpop.f32.mrf.mxu1  ;;  %v25703_v4 = vld [vmem:[#allocation79_spill] sm:$0xff] }
 0xf3d   :  { %v25704_v34 = vpack.c.bf16 %v25702_v29, %v25703_v4  ;;  %v25722_v29 = vld [vmem:[#allocation60_spill] sm:$0xff] }
 0xf3e   :  { %v25723_v4 = vld [vmem:[#allocation56_spill] sm:$0xff] }
 0xf3f   :  { %16982 = vmatpush1.bf16.msra.mxu1 %v25690_v37  ;;  %v25705_v37 = vld [vmem:[#allocation78_spill] sm:$0xff] }
 0xf40   :  { %16983 = vmatprep.subr.bf16.mxu1 %v16825_v23 }
 0xf43   :  { %16984 = vmatpush1.bf16.msra.mxu1 %v25691_v14 }
 0xf44   :  { %16985 = vmatprep.subr.bf16.mxu1 %v16821_v62  ;;  %v25706_v62 = vld [vmem:[#allocation74_spill] sm:$0xff] }
 0xf45   :  { %v25707_v14 = vpack.c.bf16 %v25705_v37, %v25706_v62  ;;  %v25725_v62 = vld [vmem:[#allocation52_spill] sm:$0xff] }
 0xf47   :  { %16986 = vmatpush1.bf16.msra.mxu1 %v25692_v39  ;;  %v25708_v39 = vld [vmem:[#allocation76_spill] sm:$0xff] }
 0xf48   :  { %16987 = vmatprep.subr.bf16.mxu1 %v16817_v32 }
 0xf4b   :  { %16988 = vmatpush1.bf16.msra.mxu1 %v25693_v22 }
 0xf4c   :  { %16989 = vmatprep.subr.bf16.mxu1 %v16877_v26  ;;  %v25709_v26 = vld [vmem:[#allocation72_spill] sm:$0xff] }
 0xf4d   :  { %v25710_v22 = vpack.c.bf16 %v25708_v39, %v25709_v26  ;;  %v25727_v26 = vld [vmem:[#allocation49_spill] sm:$0xff] }
 0xf4e   :  { %v25119_v12 = vpop.f32.mrf.mxu0  ;;  %v25121_v3 = vpop.f32.mrf.mxu1 }
 0xf4f   :  { %16990 = vmatpush2.bf16.msra.mxu1 %v16876_v51 }
 0xf50   :  { %v25123_v18 = vpop.f32.mrf.mxu0  ;;  %16991 = vmatprep.subr.bf16.mxu1 %v16873_v13  ;;  %v25133_v31 = vpop.f32.mrf.mxu1  ;;  %v25711_v13 = vld [vmem:[#allocation70_spill] sm:$0xff] }
 0xf52   :  { %v25129_v11 = vpop.f32.mrf.mxu0  ;;  %v25143_v21 = vpop.f32.mrf.mxu1 }
 0xf53   :  { %16992 = vmatpush2.bf16.msra.mxu1 %v16872_v8  ;;  %v25712_v8 = vld [vmem:[#allocation66_spill] sm:$0xff] }
 0xf54   :  { %v25135_v44 = vpop.f32.mrf.mxu0  ;;  %16993 = vmatprep.subr.bf16.mxu1 %v16869_v5  ;;  %v25149_v54 = vpop.f32.mrf.mxu1  ;;  %v25713_v5 = vpack.c.bf16 %v25711_v13, %v25712_v8 }
 0xf56   :  { %v25154_v23 = vpop.f32.mrf.mxu1  ;;  %v25159_v32 = vpop.f32.mrf.mxu0 }
 0xf57   :  { %16994 = vmatpush2.bf16.msra.mxu1 %v16868_v27  ;;  %v25715_v27 = vld [vmem:[#allocation64_spill] sm:$0xff] }
 0xf58   :  { %16995 = vmatprep.subr.bf16.mxu1 %v16865_v9  ;;  %v15261_v51 = vpop.f32.mrf.mxu1  ;;  %v25167_v61 = vpop.f32.mrf.mxu0  ;;  %v25716_v20 = vpack.c.bf16 %v25714_v47, %v25715_v27  ;;  %v25717_v9 = vld [vmem:[#allocation62_spill] sm:$0xff] }
 0xf59   :  { %v25719_v17 = vpack.c.bf16 %v25717_v9, %v25718_v33  ;;  %v25730_v9 = vld [vmem:[#allocation50_spill] sm:$0xff] }
 0xf5a   :  { %v15263_v10 = vpop.f32.mrf.mxu1 }
 0xf5b   :  { %16996 = vmatpush2.bf16.msra.mxu1 %v16864_v41  ;;  %v25720_v41 = vld [vmem:[#allocation53_spill] sm:$0xff] }
 0xf5c   :  { %16997 = vmatprep.subr.bf16.mxu1 %v16861_v60  ;;  %v16847_v52 = vpack.c.bf16 %v25721_v50, %v25720_v41  ;;  %v25177_v60 = vpop.f32.mrf.mxu0  ;;  %v15265_v37 = vpop.f32.mrf.mxu1  ;;  %v25732_v41 = vld [vmem:[#allocation47_spill] sm:$0xff] }
 0xf5e   :  { %v25186_v8 = vpop.f32.mrf.mxu0 }
 0xf5f   :  { %16998 = vmatpush2.bf16.msra.mxu1 %v25704_v34  ;;  %v25724_v34 = vpack.c.bf16 %v25722_v29, %v25723_v4 }
 0xf60   :  { %16999 = vmatprep.subr.bf16.mxu1 %v25707_v14  ;;  %v25726_v14 = vld [vmem:[#allocation54_spill] sm:$0xff] }
 0xf61   :  { %v16846_v39 = vpack.c.bf16 %v25726_v14, %v25725_v62  ;;  %v25734_v62 = vld [vmem:[#allocation46_spill] sm:$0xff] }
 0xf63   :  { %17000 = vmatpush2.bf16.msra.mxu1 %v25710_v22  ;;  %v25728_v22 = vld [vmem:[#allocation51_spill] sm:$0xff] }
 0xf64   :  { %17001 = vmatprep.subr.bf16.mxu1 %v25713_v5  ;;  %v16843_v13 = vpack.c.bf16 %v25728_v22, %v25727_v26 }
 0xf67   :  { %17002 = vmatpush2.bf16.msra.mxu1 %v25716_v20  ;;  %v25729_v20 = vld [vmem:[#allocation48_spill] sm:$0xff] }
 0xf68   :  { %17003 = vmatprep.subr.bf16.mxu1 %v25719_v17  ;;  %v16842_v33 = vpack.c.bf16 %v25730_v9, %v25729_v20  ;;  %v25731_v17 = vld [vmem:[#allocation45_spill] sm:$0xff] }
 0xf69   :  { %v16839_v50 = vpack.c.bf16 %v25732_v41, %v25731_v17  ;;  %v25737_v9 = vld [vmem:[#allocation37_spill] sm:$0xff]  ;;  %v25738_v17 = vld [vmem:[#allocation39_spill] sm:$0xff] }
 0xf6a   :  { %v16831_v41 = vpack.c.bf16 %v25738_v17, %v25737_v9 }
 0xf6b   :  { %17004 = vmatpush2.bf16.msra.mxu1 %v25724_v34  ;;  %v25733_v34 = vld [vmem:[#allocation44_spill] sm:$0xff] }
 0xf6c   :  { %17055 = vmatprep.subr.bf16.mxu1 %v16847_v52  ;;  %v16838_v14 = vpack.c.bf16 %v25734_v62, %v25733_v34 }
 0xf6e   :  { %v15548_v5 = vpop.f32.mrf.mxu1  ;;  %17006 = vmatmul.mubr.bf16.vlgmr.msra.gmra.mxu1 %v25033_v2  ;;  %v25190_v47 = vpop.f32.mrf.mxu0 }
 0xf6f   :  { %17056 = vmatpush1.bf16.msra.mxu1 %v16846_v39  ;;  %17087 = vmatprep.mubr.bf16.mxu1 %v25050_v1  ;;  %v25735_v1 = vld [vmem:[#allocation41_spill] sm:$0xff]  ;;  %v25736_v39 = vld [vmem:[#allocation43_spill] sm:$0xff] }
 0xf70   :  { %v15550_v27 = vpop.f32.mrf.mxu1  ;;  %17057 = vmatprep.subr.bf16.mxu1 %v16843_v13  ;;  %v25196_v29 = vpop.f32.mrf.mxu0  ;;  %v16835_v26 = vpack.c.bf16 %v25736_v39, %v25735_v1  ;;  %v25742_v1 = vld [vmem:[#allocation33_spill] sm:$0xff]  ;;  %v25743_v39 = vld [vmem:[#allocation35_spill] sm:$0xff] }
 0xf72   :  { %v15552_v52 = vpop.f32.mrf.mxu1  ;;  %v25202_v13 = vpop.f32.mrf.mxu0 }
 0xf73   :  { %17058 = vmatpush1.bf16.msra.mxu1 %v16842_v33  ;;  %v16904_v17 = vpack.c.bf16 %v15552_v52, %v15548_v5  ;;  %v25755_v5 = vld [vmem:[#allocation28_spill] sm:$0xff]  ;;  %v25757_v52 = vld [vmem:[#allocation107_spill] sm:$0xff] }
 0xf74   :  { %v15554_v4 = vpop.f32.mrf.mxu1  ;;  %17059 = vmatprep.subr.bf16.mxu1 %v16839_v50  ;;  %v25209_v50 = vpop.f32.mrf.mxu0 }
 0xf75   :  { %v16905_v57 = vpack.c.bf16 %v15554_v4, %v15550_v27 }
 0xf76   :  { %v15558_v22 = vpop.f32.mrf.mxu1  ;;  %v25216_v9 = vpop.f32.mrf.mxu0 }
 0xf77   :  { %17060 = vmatpush1.bf16.msra.mxu1 %v16838_v14  ;;  %v16827_v14 = vpack.c.bf16 %v25743_v39, %v25742_v1  ;;  %v16896_v39 = vpack.c.bf16 %v25143_v21, %v25121_v3  ;;  %v16892_v3 = vpack.c.bf16 %v25108_v53, %v25094_v35  ;;  %v25771_v35 = vld [vmem:[#allocation101_spill] sm:$0xff] }
 0xf78   :  { %v15560_v20 = vpop.f32.mrf.mxu1  ;;  %17061 = vmatprep.subr.bf16.mxu1 %v16835_v26  ;;  %v25744_v26 = vld [vmem:[#allocation38_spill] sm:$0xff]  ;;  %v25223_v27 = vpop.f32.mrf.mxu0 }
 0xf79   :  { %v25746_v58 = vpack.c.bf16 %v25744_v26, %v25745_v19  ;;  %v25753_v19 = vld [vmem:[#allocation27_spill] sm:$0xff]  ;;  %v25762_v26 = vld [vmem:[#allocation106_spill] sm:$0xff] }
 0xf7a   :  { %v15562_v33 = vpop.f32.mrf.mxu1 }
 0xf7b   :  { %17062 = vmatpush1.bf16.msra.mxu1 %v25741_v0  ;;  %v16908_v24 = vpack.c.bf16 %v15562_v33, %v15558_v22  ;;  %v16823_v0 = vpack.c.bf16 %v25748_v16, %v25747_v28  ;;  %v25754_v22 = vld [vmem:[#allocation30_spill] sm:$0xff]  ;;  %v25758_v33 = vld [vmem:[#allocation109_spill] sm:$0xff]  ;;  %v25763_v28 = vld [vmem:[#allocation108_spill] sm:$0xff] }
 0xf7c   :  { %v15564_v34 = vpop.f32.mrf.mxu1  ;;  %17063 = vmatprep.subr.bf16.mxu1 %v16831_v41  ;;  %v25749_v41 = vld [vmem:[#allocation34_spill] sm:$0xff]  ;;  %v16878_v16 = vpack.c.bf16 %v25763_v28, %v25762_v26 }
 0xf7d   :  { %v16909_v62 = vpack.c.bf16 %v15564_v34, %v15560_v20  ;;  %v16901_v20 = vpack.c.bf16 %v15265_v37, %v15261_v51  ;;  %v25750_v34 = vld [vmem:[#allocation32_spill] sm:$0xff]  ;;  %v25756_v51 = vpack.c.bf16 %v25754_v22, %v25755_v5  ;;  %v25233_v37 = vpop.f32.mrf.mxu0 }
 0xf7e   :  { %v25751_v1 = vpack.c.bf16 %v25749_v41, %v25750_v34 }
 0xf7f   :  { %17014 = vmatprep.subr.bf16.mxu0 %v16909_v62  ;;  %17064 = vmatpush1.bf16.msra.mxu1 %v25746_v58  ;;  %v25752_v58 = vld [vmem:[#allocation25_spill] sm:$0xff]  ;;  %v16879_v62 = vpack.c.bf16 %v25758_v33, %v25757_v52  ;;  %v25775_v33 = vld [vmem:[#allocation100_spill] sm:$0xff] }
 0xf80   :  { %17015 = vmatpush1.bf16.msra.mxu0 %v16908_v24  ;;  %17065 = vmatprep.subr.bf16.mxu1 %v16827_v14  ;;  %v16819_v4 = vpack.c.bf16 %v25753_v19, %v25752_v58  ;;  %v16900_v24 = vpack.c.bf16 %v15263_v10, %v25154_v23  ;;  %v16893_v23 = vpack.c.bf16 %v25117_v49, %v25101_v30  ;;  %v25759_v10 = vld [vmem:[#allocation26_spill] sm:$0xff]  ;;  %v25244_v14 = vpop.f32.mrf.mxu0  ;;  %v25769_v58 = vld [vmem:[#allocation104_spill] sm:$0xff]  ;;  %v25774_v52 = vld [vmem:[#allocation97_spill] sm:$0xff] }
 0xf81   :  { %17016 = vmatprep.subr.bf16.mxu0 %v16905_v57  ;;  %v16897_v57 = vpack.c.bf16 %v25149_v54, %v25133_v31  ;;  %v25760_v31 = vld [vmem:[#allocation24_spill] sm:$0xff]  ;;  %v16889_v49 = vpack.c.bf16 %v25087_v38, %v25058_v63 }
 0xf82   :  { %v25761_v54 = vpack.c.bf16 %v25759_v10, %v25760_v31  ;;  %v25778_v10 = vld [vmem:[#allocation91_spill] sm:$0xff] }
 0xf83   :  { %17066 = vmatpush1.bf16.msra.mxu1 %v25751_v1  ;;  %v25768_v1 = vld [vmem:[#allocation102_spill] sm:$0xff]  ;;  %v25779_v31 = vld [vmem:[#allocation95_spill] sm:$0xff] }
 0xf84   :  { %17017 = vmatpush1.bf16.msra.mxu0 %v16904_v17  ;;  %17067 = vmatprep.subr.bf16.mxu1 %v16823_v0  ;;  %v25764_v0 = vld [vmem:[#allocation103_spill] sm:$0xff]  ;;  %v25765_v17 = vld [vmem:[#allocation105_spill] sm:$0xff]  ;;  %v16874_v19 = vpack.c.bf16 %v25769_v58, %v25768_v1 }
 0xf85   :  { %17018 = vmatprep.subr.bf16.mxu0 %v16901_v20  ;;  %v16875_v20 = vpack.c.bf16 %v25765_v17, %v25764_v0  ;;  %v25782_v17 = vld [vmem:[#allocation122_spill] sm:$0xff]  ;;  %v25786_v1 = vld [vmem:[#allocation93_spill] sm:$0xff] }
 0xf87   :  { %17068 = vmatpush1.bf16.msra.mxu1 %v25756_v51 }
 0xf88   :  { %17019 = vmatpush1.bf16.msra.mxu0 %v16900_v24  ;;  %17069 = vmatprep.subr.bf16.mxu1 %v16819_v4  ;;  %v25770_v4 = vld [vmem:[#allocation98_spill] sm:$0xff]  ;;  %v16888_v24 = vpack.c.bf16 %v25072_v59, %v25042_v45  ;;  %v16870_v45 = vpack.c.bf16 %v25775_v33, %v25774_v52 }
 0xf89   :  { %17020 = vmatprep.subr.bf16.mxu0 %v16897_v57  ;;  %v16871_v53 = vpack.c.bf16 %v25771_v35, %v25770_v4  ;;  %v25788_v4 = vld [vmem:[#allocation112_spill] sm:$0xff] }
 0xf8b   :  { %17070 = vmatpush1.bf16.msra.mxu1 %v25761_v54  ;;  %v16867_v54 = vpack.c.bf16 %v25779_v31, %v25778_v10 }
 0xf8c   :  { %17021 = vmatpush1.bf16.msra.mxu0 %v16896_v39  ;;  %17071 = vmatprep.subr.bf16.mxu1 %v16879_v62  ;;  %v25776_v39 = vld [vmem:[#allocation120_spill] sm:$0xff]  ;;  %v25810_v62 = vld [vmem:[#allocation63_spill] sm:$0xff] }
 0xf8d   :  { %17022 = vmatprep.subr.bf16.mxu0 %v16893_v23  ;;  %v25777_v23 = vpack.c.bf16 %v25008_v46, %v25776_v39  ;;  %v16952_v46 = vcombine.high %v25020_v48, %v25020_v48 }
 0xf8e   :  { %v25252_v21 = vpop.f32.mrf.mxu1  ;;  %v25254_v30 = vpop.f32.mrf.mxu0 }
 0xf8f   :  { %25766 = vst [vmem:[#allocation96_spill] sm:$0xff] %v25254_v30  ;;  %17072 = vmatpush2.bf16.msra.mxu1 %v16878_v16  ;;  %v25316_v39 = vrot.slane %v16952_v46, %v25018_v36  ;;  %v25798_v46 = vld [vmem:[#allocation85_spill] sm:$0xff] }
 0xf90   :  { %v25258_v41 = vpop.f32.mrf.mxu1  ;;  %v25260_v34 = vpop.f32.mrf.mxu0  ;;  %17023 = vmatpush1.bf16.msra.mxu0 %v16892_v3  ;;  %17073 = vmatprep.subr.bf16.mxu1 %v16875_v20  ;;  %v25783_v20 = vld [vmem:[#allocation118_spill] sm:$0xff] }
 0xf91   :  { %25767 = vst [vmem:[#allocation99_spill] sm:$0xff] %v25260_v34  ;;  %17024 = vmatprep.subr.bf16.mxu0 %v16889_v49  ;;  %v25784_v3 = vpack.c.bf16 %v25782_v17, %v25783_v20  ;;  %v25785_v49 = vld [vmem:[#allocation89_spill] sm:$0xff]  ;;  %v25795_v17 = vld [vmem:[#allocation110_spill] sm:$0xff]  ;;  %v25331_v36 = vcombine.high %v25316_v39, %v25316_v39 }
 0xf92   :  { %v25268_v57 = vpop.f32.mrf.mxu1  ;;  %v25270_v63 = vpop.f32.mrf.mxu0  ;;  %v16866_v58 = vpack.c.bf16 %v25786_v1, %v25785_v49 }
 0xf93   :  { %25772 = vst [vmem:[#allocation90_spill] sm:$0xff] %v25270_v63  ;;  %17074 = vmatpush2.bf16.msra.mxu1 %v16874_v19  ;;  %v25787_v19 = vld [vmem:[#allocation116_spill] sm:$0xff]  ;;  %17046 = vmatprep.mubr.bf16.mxu0 %v25331_v36 }
 0xf94   :  { %v25276_v5 = vpop.f32.mrf.mxu1  ;;  %v25278_v51 = vpop.f32.mrf.mxu0  ;;  %17025 = vmatpush1.bf16.msra.mxu0 %v16888_v24  ;;  %17075 = vmatprep.subr.bf16.mxu1 %v16871_v53  ;;  %v25789_v35 = vpack.c.bf16 %v25787_v19, %v25788_v4  ;;  %v25790_v53 = vld [vmem:[#allocation84_spill] sm:$0xff]  ;;  %v25791_v24 = vld [vmem:[#allocation87_spill] sm:$0xff]  ;;  %v25800_v4 = vld [vmem:[#allocation82_spill] sm:$0xff] }
 0xf95   :  { %25773 = vst [vmem:[#allocation94_spill] sm:$0xff] %v25278_v51  ;;  %17026 = vmatprep.subr.bf16.mxu0 %v25777_v23  ;;  %v16863_v52 = vpack.c.bf16 %v25791_v24, %v25790_v53  ;;  %v25799_v19 = vld [vmem:[#allocation75_spill] sm:$0xff]  ;;  %v25801_v53 = vld [vmem:[#allocation77_spill] sm:$0xff] }
 0xf96   :  { %v25291_v26 = vpop.f32.mrf.mxu1  ;;  %v25293_v28 = vpop.f32.mrf.mxu0  ;;  %v25802_v24 = vld [vmem:[#allocation73_spill] sm:$0xff]  ;;  %v25811_v23 = vld [vmem:[#allocation59_spill] sm:$0xff] }
 0xf97   :  { %25780 = vst [vmem:[#allocation88_spill] sm:$0xff] %v25293_v28  ;;  %17076 = vmatpush2.bf16.msra.mxu1 %v16870_v45 }
 0xf98   :  { %v25295_v16 = vpop.f32.mrf.mxu1  ;;  %v25297_v0 = vpop.f32.mrf.mxu0  ;;  %17027 = vmatpush1.bf16.msra.mxu0 %v25784_v3  ;;  %17077 = vmatprep.subr.bf16.mxu1 %v16867_v54  ;;  %v25794_v54 = vld [vmem:[#allocation114_spill] sm:$0xff]  ;;  %v25797_v3 = vld [vmem:[#allocation83_spill] sm:$0xff] }
 0xf99   :  { %25781 = vst [vmem:[#allocation92_spill] sm:$0xff] %v25297_v0  ;;  %17028 = vmatprep.subr.bf16.mxu0 %v25789_v35  ;;  %v25796_v20 = vpack.c.bf16 %v25794_v54, %v25795_v17  ;;  %v16862_v49 = vpack.c.bf16 %v25798_v46, %v25797_v3  ;;  %v16859_v35 = vpack.c.bf16 %v25800_v4, %v25799_v19  ;;  %v25804_v54 = vld [vmem:[#allocation71_spill] sm:$0xff]  ;;  %v25807_v3 = vld [vmem:[#allocation69_spill] sm:$0xff] }
 0xf9a   :  { %v25311_v33 = vpop.f32.mrf.mxu1  ;;  %v25313_v45 = vpop.f32.mrf.mxu0  ;;  %v25805_v17 = vld [vmem:[#allocation67_spill] sm:$0xff]  ;;  %v25808_v46 = vld [vmem:[#allocation65_spill] sm:$0xff] }
 0xf9b   :  { %25792 = vst [vmem:[#allocation80_spill] sm:$0xff] %v25313_v45  ;;  %17078 = vmatpush2.bf16.msra.mxu1 %v16866_v58  ;;  %v25809_v22 = vpack.c.bf16 %v25807_v3, %v25808_v46  ;;  %v25812_v58 = vpack.c.bf16 %v25810_v62, %v25811_v23  ;;  %v25813_v19 = vld [vmem:[#allocation61_spill] sm:$0xff] }
 0xf9c   :  { %v25322_v10 = vpop.f32.mrf.mxu1  ;;  %v25324_v31 = vpop.f32.mrf.mxu0  ;;  %17029 = vmatpush1.bf16.msra.mxu0 %v25796_v20  ;;  %17079 = vmatprep.subr.bf16.mxu1 %v16863_v52  ;;  %v25803_v52 = vpack.c.bf16 %v25801_v53, %v25802_v24  ;;  %v25806_v20 = vpack.c.bf16 %v25804_v54, %v25805_v17  ;;  %v25814_v4 = vld [vmem:[#allocation57_spill] sm:$0xff] }
 0xf9d   :  { %25793 = vst [vmem:[#allocation86_spill] sm:$0xff] %v25324_v31 }
 0xf9f   :  { %17080 = vmatpush2.bf16.msra.mxu1 %v16862_v49  ;;  %v25815_v49 = vpack.c.bf16 %v25813_v19, %v25814_v4 }
 0xfa0   :  { %17081 = vmatprep.subr.bf16.mxu1 %v16859_v35 }
 0xfa3   :  { %17082 = vmatpush2.bf16.msra.mxu1 %v25803_v52 }
 0xfa4   :  { %17083 = vmatprep.subr.bf16.mxu1 %v25806_v20 }
 0xfa7   :  { %17084 = vmatpush2.bf16.msra.mxu1 %v25809_v22 }
 0xfa8   :  { %17085 = vmatprep.subr.bf16.mxu1 %v25812_v58 }
 0xfab   :  { %17086 = vmatpush2.bf16.msra.mxu1 %v25815_v49 }
 0xfae   :  { %v25357_v35 = vpop.f32.mrf.mxu0  ;;  %17088 = vmatmul.mubr.bf16.vlgmr.msra.gmra.mxu1 %v25033_v2  ;;  %v16146_v24 = vpop.f32.mrf.mxu1 }
 0xfaf   :  { %25816 = vst [vmem:[#allocation81_spill] sm:$0xff] %v25357_v35 }
 0xfb0   :  { %v25360_v53 = vpop.f32.mrf.mxu0  ;;  %v16148_v54 = vpop.f32.mrf.mxu1 }
 0xfb1   :  { %25817 = vst [vmem:[#allocation79_spill] sm:$0xff] %v25360_v53 }
 0xfb2   :  { %v25362_v52 = vpop.f32.mrf.mxu0  ;;  %v16150_v17 = vpop.f32.mrf.mxu1 }
 0xfb3   :  { %25818 = vst [vmem:[#allocation78_spill] sm:$0xff] %v25362_v52 }
 0xfb4   :  { %v16152_v62 = vpop.f32.mrf.mxu1  ;;  %v25366_v48 = vpop.f32.mrf.mxu0 }
 0xfb5   :  { %25819 = vst [vmem:[#allocation74_spill] sm:$0xff] %v25366_v48 }
 0xfb6   :  { %v16156_v23 = vpop.f32.mrf.mxu1  ;;  %v25368_v63 = vpop.f32.mrf.mxu0 }
 0xfb7   :  { %25820 = vst [vmem:[#allocation76_spill] sm:$0xff] %v25368_v63 }
 0xfb8   :  { %v16158_v58 = vpop.f32.mrf.mxu1  ;;  %v25370_v51 = vpop.f32.mrf.mxu0 }
 0xfb9   :  { %25821 = vst [vmem:[#allocation72_spill] sm:$0xff] %v25370_v51 }
 0xfba   :  { %v16160_v20 = vpop.f32.mrf.mxu1  ;;  %v25372_v0 = vpop.f32.mrf.mxu0 }
 0xfbb   :  { %25822 = vst [vmem:[#allocation70_spill] sm:$0xff] %v25372_v0 }
 0xfbc   :  { %v16162_v3 = vpop.f32.mrf.mxu1  ;;  %v25374_v52 = vpop.f32.mrf.mxu0 }
 0xfce   :  { %v16445_v46 = vpop.f32.mrf.mxu1  ;;  %v25376_v40 = vpop.f32.mrf.mxu0 }
 0xfd0   :  { %v16447_v19 = vpop.f32.mrf.mxu1  ;;  %v25378_v63 = vpop.f32.mrf.mxu0 }
 0xfd2   :  { %v16449_v4 = vpop.f32.mrf.mxu1  ;;  %v25380_v0 = vpop.f32.mrf.mxu0 }
 0xfd4   :  { %v16451_v49 = vpop.f32.mrf.mxu1 }
 0xfd5   :  { %v16929_v56 = vpack.c.bf16 %v16451_v49, %v16447_v19 }
 0xfd6   :  { %v16455_v2 = vpop.f32.mrf.mxu1 }
 0xfd8   :  { %v16457_v38 = vpop.f32.mrf.mxu1 }
 0xfda   :  { %v16459_v59 = vpop.f32.mrf.mxu1 }
 0xfdb   :  { %v16932_v7 = vpack.c.bf16 %v16459_v59, %v16455_v2  ;;  %v16911_v59 = vpack.c.bf16 %v25244_v14, %v25223_v27  ;;  %v16906_v27 = vpack.c.bf16 %v25202_v13, %v25190_v47  ;;  %v16903_v14 = vpack.c.bf16 %v25186_v8, %v25167_v61 }
 0xfdc   :  { %v16461_v1 = vpop.f32.mrf.mxu1  ;;  %v25829_v61 = vpack.c.bf16 %v25081_v43, %v25068_v55  ;;  %v25838_v55 = vld [vmem:[#allocation124_spill] sm:$0xff]  ;;  %v25839_v43 = vld [vmem:[#allocation121_spill] sm:$0xff] }
 0xfdd   :  { %v16933_v42 = vpack.c.bf16 %v16461_v1, %v16457_v38  ;;  %v25825_v38 = vpack.c.bf16 %v25276_v5, %v25258_v41  ;;  %v25826_v1 = vpack.c.bf16 %v25268_v57, %v25252_v21  ;;  %v25828_v57 = vpack.c.bf16 %v25129_v11, %v25119_v12  ;;  %v25832_v5 = vld [vmem:[#allocation128_spill] sm:$0xff]  ;;  %v25836_v12 = vld [vmem:[#allocation125_spill] sm:$0xff] }
 0xfee   :  { %v16744_v30 = vpop.f32.mrf.mxu1 }
 0xff0   :  { %v16746_v22 = vpop.f32.mrf.mxu1 }
 0xff2   :  { %v16748_v34 = vpop.f32.mrf.mxu1 }
 0xff3   :  { %v16936_v51 = vpack.c.bf16 %v16748_v34, %v16744_v30  ;;  %v16920_v30 = vpack.c.bf16 %v16150_v17, %v16146_v24  ;;  %v25840_v24 = vpack.c.bf16 %v25838_v55, %v25839_v43  ;;  %v25842_v17 = vld [vmem:[#allocation119_spill] sm:$0xff] }
 0xff4   :  { %v16750_v28 = vpop.f32.mrf.mxu1 }
 0xff5   :  { %v16937_v15 = vpack.c.bf16 %v16750_v28, %v16746_v22  ;;  %v16921_v28 = vpack.c.bf16 %v16152_v62, %v16148_v54  ;;  %v25841_v54 = vld [vmem:[#allocation123_spill] sm:$0xff]  ;;  %v25844_v62 = vld [vmem:[#allocation117_spill] sm:$0xff] }
 0xff6   :  { %v16754_v45 = vpop.f32.mrf.mxu1 }
 0xff8   :  { %v16756_v31 = vpop.f32.mrf.mxu1 }
 0xffa   :  { %v16758_v35 = vpop.f32.mrf.mxu1 }
 0xffb   :  { %v16940_v48 = vpack.c.bf16 %v16758_v35, %v16754_v45  ;;  %v16925_v45 = vpack.c.bf16 %v16162_v3, %v16158_v58  ;;  %v25847_v3 = vld [vmem:[#allocation115_spill] sm:$0xff] }
 0xffc   :  { %v16760_v53 = vpop.f32.mrf.mxu1 }
 0xffd   :  { %v16941_v25 = vpack.c.bf16 %v16760_v53, %v16756_v31  ;;  %v16928_v31 = vpack.c.bf16 %v16449_v4, %v16445_v46  ;;  %v25382_v53 = vpop.f32.mrf.mxu0  ;;  %v25848_v46 = vld [vmem:[#allocation111_spill] sm:$0xff] }
 0xffe   :  { %v25849_v19 = vpack.c.bf16 %v25847_v3, %v25848_v46 }
 0xfff   :  { %17030 = vmatprep.subr.bf16.mxu0 %v16941_v25  ;;  %v16924_v25 = vpack.c.bf16 %v16160_v20, %v16156_v23  ;;  %v25845_v23 = vld [vmem:[#allocation113_spill] sm:$0xff] }
0x1000   :  { %17031 = vmatpush2.bf16.msra.mxu0 %v16940_v48  ;;  %v25846_v58 = vpack.c.bf16 %v25844_v62, %v25845_v23 }
0x1001   :  { %17032 = vmatprep.subr.bf16.mxu0 %v16937_v15  ;;  %v16508_v15 = vpop.f32.mrf.mxu0 }
0x1003   :  { %v16510_v34 = vpop.f32.mrf.mxu0 }
0x1004   :  { %17033 = vmatpush2.bf16.msra.mxu0 %v16936_v51 }
0x1005   :  { %17034 = vmatprep.subr.bf16.mxu0 %v16933_v42  ;;  %v25823_v42 = vpack.c.bf16 %v25322_v10, %v25295_v16  ;;  %v16910_v16 = vpack.c.bf16 %v25233_v37, %v25216_v9  ;;  %v16902_v9 = vpack.c.bf16 %v25177_v60, %v25159_v32  ;;  %v25830_v32 = vld [vmem:[#allocation129_spill] sm:$0xff] }
0x1006   :  { %v25831_v60 = vpack.c.bf16 %v25074_v6, %v25830_v32  ;;  %v25843_v6 = vpack.c.bf16 %v25841_v54, %v25842_v17 }
0x1008   :  { %17035 = vmatpush2.bf16.msra.mxu0 %v16932_v7  ;;  %v16512_v7 = vpop.f32.mrf.mxu0 }
0x1009   :  { %17036 = vmatprep.subr.bf16.mxu0 %v16929_v56  ;;  %v25824_v56 = vpack.c.bf16 %v25311_v33, %v25291_v26  ;;  %v16907_v26 = vpack.c.bf16 %v25209_v50, %v25196_v29  ;;  %v25827_v50 = vpack.c.bf16 %v25135_v44, %v25123_v18  ;;  %v25833_v33 = vld [vmem:[#allocation126_spill] sm:$0xff] }
0x100a   :  { %v16514_v51 = vpop.f32.mrf.mxu0  ;;  %v25834_v18 = vpack.c.bf16 %v25832_v5, %v25833_v33 }
0x100c   :  { %17037 = vmatpush2.bf16.msra.mxu0 %v16928_v31  ;;  %v16797_v48 = vpop.f32.mrf.mxu0  ;;  %v16935_v31 = vpack.c.bf16 %v16514_v51, %v16510_v34  ;;  %v25853_v34 = vld [vmem:[#allocation79_spill] sm:$0xff]  ;;  %v25854_v51 = vld [vmem:[#allocation74_spill] sm:$0xff] }
0x100d   :  { %17038 = vmatprep.subr.bf16.mxu0 %v16925_v45  ;;  %v16934_v45 = vpack.c.bf16 %v16512_v7, %v16508_v15  ;;  %v25855_v15 = vld [vmem:[#allocation78_spill] sm:$0xff] }
0x100e   :  { %v16799_v41 = vpop.f32.mrf.mxu0  ;;  %v25858_v7 = vld [vmem:[#allocation86_spill] sm:$0xff] }
0x1010   :  { %17039 = vmatpush2.bf16.msra.mxu0 %v16924_v25  ;;  %v16801_v21 = vpop.f32.mrf.mxu0  ;;  %v16931_v25 = vpack.c.bf16 %v25382_v53, %v25378_v63  ;;  %v25856_v63 = vld [vmem:[#allocation81_spill] sm:$0xff] }
0x1011   :  { %17040 = vmatprep.subr.bf16.mxu0 %v16921_v28  ;;  %v16938_v2 = vpack.c.bf16 %v16801_v21, %v16797_v48  ;;  %v16930_v28 = vpack.c.bf16 %v25380_v0, %v25376_v40  ;;  %v16923_v48 = vpack.c.bf16 %v25854_v51, %v25853_v34  ;;  %v25857_v53 = vpack.c.bf16 %v25855_v15, %v25856_v63  ;;  %v25861_v0 = vld [vmem:[#allocation80_spill] sm:$0xff] }
0x1012   :  { %v16803_v29 = vpop.f32.mrf.mxu0  ;;  %v25868_v21 = vld [vmem:[#allocation96_spill] sm:$0xff] }
0x1013   :  { %v16939_v49 = vpack.c.bf16 %v16803_v29, %v16799_v41  ;;  %v25865_v41 = vld [vmem:[#allocation99_spill] sm:$0xff]  ;;  %v16949_v29 = vpop.permute.xlu0 %16948 }
0x1014   :  { %17041 = vmatpush2.bf16.msra.mxu0 %v16920_v30  ;;  %v16807_v37 = vpop.f32.mrf.mxu0  ;;  %v25850_v30 = vld [vmem:[#allocation72_spill] sm:$0xff] }
0x1015   :  { %17042 = vmatprep.subr.bf16.mxu0 %v25823_v42  ;;  %v16927_v42 = vpack.c.bf16 %v25374_v52, %v25850_v30  ;;  %v25862_v52 = vld [vmem:[#allocation88_spill] sm:$0xff] }
0x1016   :  { %v16809_v47 = vpop.f32.mrf.mxu0 }
0x1018   :  { %17043 = vmatpush2.bf16.msra.mxu0 %v25824_v56  ;;  %v16811_v10 = vpop.f32.mrf.mxu0  ;;  %v25851_v56 = vld [vmem:[#allocation76_spill] sm:$0xff] }
0x1019   :  { %17044 = vmatprep.subr.bf16.mxu0 %v25825_v38  ;;  %v16942_v4 = vpack.c.bf16 %v16811_v10, %v16807_v37  ;;  %v25852_v38 = vld [vmem:[#allocation70_spill] sm:$0xff] }
0x101a   :  { %v16813_v22 = vpop.f32.mrf.mxu0 }
0x101b   :  { %v16943_v20 = vpack.c.bf16 %v16813_v22, %v16809_v47 }
0x101c   :  { %17045 = vmatpush2.bf16.msra.mxu0 %v25826_v1  ;;  %v25859_v1 = vld [vmem:[#allocation92_spill] sm:$0xff] }
0x101d   :  { %17096 = vmatprep.subr.bf16.mxu0 %v16911_v59  ;;  %v16926_v59 = vpack.c.bf16 %v25852_v38, %v25851_v56  ;;  %v25860_v40 = vpack.c.bf16 %v25858_v7, %v25859_v1 }
0x101f   :  { %17047 = vmatmul.mubr.bf16.vlgmr.msra.gmra.mxu0 %v25316_v39 }
0x1020   :  { %17097 = vmatpush1.bf16.msra.mxu0 %v16910_v16  ;;  %17128 = vmatprep.mubr.bf16.mxu0 %v25331_v36  ;;  %v25835_v36 = vld [vmem:[#allocation127_spill] sm:$0xff]  ;;  %v25863_v16 = vpack.c.bf16 %v25861_v0, %v25862_v52 }
0x1021   :  { %17098 = vmatprep.subr.bf16.mxu0 %v16907_v26  ;;  %v25837_v11 = vpack.c.bf16 %v25835_v36, %v25836_v12  ;;  %v25864_v26 = vld [vmem:[#allocation94_spill] sm:$0xff] }
0x1024   :  { %17099 = vmatpush1.bf16.msra.mxu0 %v16906_v27  ;;  %v25866_v27 = vpack.c.bf16 %v25864_v26, %v25865_v41 }
0x1025   :  { %17100 = vmatprep.subr.bf16.mxu0 %v16903_v14  ;;  %v25867_v14 = vld [vmem:[#allocation90_spill] sm:$0xff] }
0x1028   :  { %17101 = vmatpush1.bf16.msra.mxu0 %v16902_v9  ;;  %v25869_v9 = vpack.c.bf16 %v25867_v14, %v25868_v21 }
0x1029   :  { %17102 = vmatprep.subr.bf16.mxu0 %v25827_v50 }
0x102c   :  { %17103 = vmatpush1.bf16.msra.mxu0 %v25828_v57 }
0x102d   :  { %17104 = vmatprep.subr.bf16.mxu0 %v25829_v61 }
0x102e   :  { %v17007_v8 = vpop.f32.mrf.mxu1 }
0x1030   :  { %v17009_v13 = vpop.f32.mrf.mxu1  ;;  %17105 = vmatpush1.bf16.msra.mxu0 %v25831_v60  ;;  %v17008_v60 = vadd.f32 %v17007_v8, %v16949_v29 }
0x1031   :  { %17106 = vmatprep.subr.bf16.mxu0 %v25834_v18  ;;  %v17010_v33 = vadd.f32 %v17009_v13, %v16949_v29 }
0x1032   :  { %v17011_v44 = vpop.f32.mrf.mxu1 }
0x1034   :  { %17107 = vmatpush1.bf16.msra.mxu0 %v25837_v11  ;;  %v17012_v35 = vpop.f32.mrf.mxu1 }
0x1035   :  { %17108 = vmatprep.subr.bf16.mxu0 %v25840_v24 }
0x1038   :  { %17109 = vmatpush1.bf16.msra.mxu0 %v25843_v6 }
0x1039   :  { %17110 = vmatprep.subr.bf16.mxu0 %v25846_v58 }
0x103c   :  { %17111 = vmatpush1.bf16.msra.mxu0 %v25849_v19 }
0x103d   :  { %17112 = vmatprep.subr.bf16.mxu0 %v16943_v20 }
0x1040   :  { %17113 = vmatpush2.bf16.msra.mxu0 %v16942_v4 }
0x1041   :  { %17114 = vmatprep.subr.bf16.mxu0 %v16939_v49 }
0x1044   :  { %17115 = vmatpush2.bf16.msra.mxu0 %v16938_v2 }
0x1045   :  { %17116 = vmatprep.subr.bf16.mxu0 %v16935_v31 }
0x1048   :  { %17117 = vmatpush2.bf16.msra.mxu0 %v16934_v45 }
0x1049   :  { %17118 = vmatprep.subr.bf16.mxu0 %v16931_v25 }
0x104c   :  { %17119 = vmatpush2.bf16.msra.mxu0 %v16930_v28 }
0x104d   :  { %17120 = vmatprep.subr.bf16.mxu0 %v16927_v42 }
0x1050   :  { %17121 = vmatpush2.bf16.msra.mxu0 %v16926_v59 }
0x1051   :  { %17122 = vmatprep.subr.bf16.mxu0 %v16923_v48 }
0x1054   :  { %17123 = vmatpush2.bf16.msra.mxu0 %v25857_v53 }
0x1055   :  { %17124 = vmatprep.subr.bf16.mxu0 %v25860_v40 }
0x1058   :  { %17125 = vmatpush2.bf16.msra.mxu0 %v25863_v16 }
0x1059   :  { %17126 = vmatprep.subr.bf16.mxu0 %v25866_v27 }
0x105c   :  { %17127 = vmatpush2.bf16.msra.mxu0 %v25869_v9 }
0x105f   :  { %17129 = vmatmul.mubr.bf16.vlgmr.msra.gmra.mxu0 %v25316_v39 }
0x106e   :  { %v17089_v50 = vpop.f32.mrf.mxu1 }
0x106f   :  { %v17090_v37 = vadd.f32 %v17089_v50, %v16949_v29 }
0x1070   :  { %v17091_v57 = vpop.f32.mrf.mxu1 }
0x1071   :  { %v17092_v61 = vadd.f32 %v17091_v57, %v16949_v29 }
0x1072   :  { %v17093_v47 = vpop.f32.mrf.mxu1 }
0x1074   :  { %v17094_v32 = vpop.f32.mrf.mxu1 }
0x10df   :  { %v17048_v5 = vpop.f32.mrf.mxu0 }
0x10e0   :  { %v17049_v18 = vadd.f32 %v17048_v5, %v17008_v60 }
0x10e1   :  { %v17050_v44 = vpop.f32.mrf.mxu0 }
0x10e2   :  { %v17137_v10 = vmul.f32 0.5, %v17049_v18  ;;  %v17051_v36 = vadd.f32 %v17050_v44, %v17010_v33 }
0x10e3   :  { %v17052_v12 = vpop.f32.mrf.mxu0 }
0x10e4   :  { %22657 = vtanh.f32 %v17137_v10  ;;  %v17138_v11 = vmul.f32 0.5, %v17051_v36 }
0x10e5   :  { %v17053_v35 = vpop.f32.mrf.mxu0 }
0x10e6   :  { %22659 = vtanh.f32 %v17138_v11 }
0x10f1   :  { %v22658_v39 = vpop.eup %22657 }
0x10f2   :  { %v17145_v55 = vadd.f32 1.0, %v22658_v39 }
0x10f3   :  { %v22660_v43 = vpop.eup %22659 }
0x10f4   :  { %v17146_v24 = vadd.f32 1.0, %v22660_v43  ;;  %v17149_v22 = vmul.f32 0.5, %v17145_v55 }
0x10f6   :  { %v17150_v54 = vmul.f32 0.5, %v17146_v24 }
0x10f8   :  { %v17157_v17 = vcombine.low %v17149_v22, %v17150_v54 }
0x10fa   :  { %17161 = vst [vmem:[%s25870_s14] sm:$0x77] %v17157_v17 }
0x111f   :  { %v17130_v8 = vpop.f32.mrf.mxu0 }
0x1120   :  { %v17131_v13 = vadd.f32 %v17130_v8, %v17090_v37 }
0x1121   :  { %v17132_v6 = vpop.f32.mrf.mxu0 }
0x1122   :  { %v17139_v62 = vmul.f32 0.5, %v17131_v13  ;;  %v17133_v23 = vadd.f32 %v17132_v6, %v17092_v61 }
0x1123   :  { %v17134_v58 = vpop.f32.mrf.mxu0 }
0x1124   :  { %22661 = vtanh.f32 %v17139_v62  ;;  %v17140_v20 = vmul.f32 0.5, %v17133_v23 }
0x1125   :  { %v17135_v3 = vpop.f32.mrf.mxu0 }
0x1126   :  { %22663 = vtanh.f32 %v17140_v20 }
0x1131   :  { %v22662_v46 = vpop.eup %22661 }
0x1132   :  { %v17147_v19 = vadd.f32 1.0, %v22662_v46 }
0x1133   :  { %v22664_v4 = vpop.eup %22663 }
0x1134   :  { %v17148_v49 = vadd.f32 1.0, %v22664_v4  ;;  %v17151_v2 = vmul.f32 0.5, %v17147_v19 }
0x1136   :  { %v17152_v31 = vmul.f32 0.5, %v17148_v49 }
0x1138   :  { %v17158_v45 = vcombine.low %v17151_v2, %v17152_v31 }
0x113a   :  { %17162 = vst [vmem:[%s25870_s14 + $0x8] sm:$0x77] %v17158_v45 }
0x113b   :  { %17175 = vsyncpa [#allocation3], 1 }
0x113c   :  { %17176 = vsyncpa [#allocation5], 1 }
0x113d   :  { %17177 = vsyncpa [#allocation8], 1 }
0x113e   :  { %17178 = vsyncpa [#allocation11], 1 }
0x113f   :  { %17179 = vsyncpa [#allocation14], 1 }
0x1140   :  { %17180 = vsyncpa [#allocation17], 1 }

</bundles_post_ra>
